<compile_context>
chip_gen: v6e
topology: v6e:2x2x1
jax: 0.10.0
libtpu: 0.0.40
codegen_flags: <defaults>
</compile_context>

<pallas_src>
import functools

import jax
import jax.numpy as jnp
from jax.experimental import pallas as pl
from jax.experimental.pallas import tpu as pltpu


def _round_up(x, m):
    return (x + m - 1) // m * m


# ----------------------------------------------------------------------------
# Kernel: full T-step recurrence for one batch tile + final Linear.
# Gate order follows PyTorch: i, f, g, o.
# ----------------------------------------------------------------------------
def _lstm_kernel(x_ref,      # (Bb, T*I)   lane-dense input block
                 wih0_ref,   # (I, 4Hp)
                 whh0_ref,   # (Hp, 4Hp)
                 b0_ref,     # (1, 4Hp)  = b_ih_l0 + b_hh_l0 (gate-padded)
                 wih1_ref,   # (Hp, 4Hp)
                 whh1_ref,   # (Hp, 4Hp)
                 b1_ref,     # (1, 4Hp)  = b_ih_l1 + b_hh_l1 (gate-padded)
                 wfc_ref,    # (Hp, Pp)
                 bfc_ref,    # (1, Pp)
                 out_ref,    # (Bb, Pp)
                 *, seq_len, input_size, use_bf16):
    Bb = x_ref.shape[0]
    Hp4 = whh0_ref.shape[1]
    Hp = Hp4 // 4
    mmdt = jnp.bfloat16 if use_bf16 else jnp.float32

    # Weights stay VMEM/vreg-resident across the whole unrolled recurrence.
    wih0 = wih0_ref[...]
    whh0 = whh0_ref[...]
    wih1 = wih1_ref[...]
    whh1 = whh1_ref[...]
    # Hoist (1,4Hp)->(Bb,4Hp) bias broadcasts out of the time loop
    # (broadcast_in_dim is not CSE'd by JAX).
    b0 = jnp.broadcast_to(b0_ref[...], (Bb, Hp4)).astype(jnp.float32)
    b1 = jnp.broadcast_to(b1_ref[...], (Bb, Hp4)).astype(jnp.float32)

    def gates_to_hc(gates, c):
        # Each slice is exactly one 128-lane tile (Hp is a multiple of 128).
        i = jax.nn.sigmoid(gates[:, 0 * Hp:1 * Hp])
        f = jax.nn.sigmoid(gates[:, 1 * Hp:2 * Hp])
        g = jnp.tanh(gates[:, 2 * Hp:3 * Hp])
        o = jax.nn.sigmoid(gates[:, 3 * Hp:4 * Hp])
        c_new = f * c + i * g
        h_new = o * jnp.tanh(c_new)
        return h_new, c_new

    z = jnp.zeros((Bb, Hp), jnp.float32)
    h0, c0, h1, c1 = z, z, z, z

    # T is small/static -> full unroll gives the LLO scheduler cross-timestep
    # visibility.  The input projection depends only on x, so it is hoisted
    # off the serial chain by the scheduler without keeping T blocks live.
    for t in range(seq_len):
        xt = x_ref[:, t * input_size:(t + 1) * input_size].astype(jnp.float32)
        if input_size == 1:
            xw0 = xt * wih0                      # (Bb,1)*(1,4Hp) broadcast-mul
        else:
            xw0 = jnp.dot(xt.astype(mmdt), wih0,
                          preferred_element_type=jnp.float32)
        # layer 0: only the recurrent matmul sits on the serial chain
        g0 = xw0 + b0 + jnp.dot(h0.astype(mmdt), whh0,
                                preferred_element_type=jnp.float32)
        h0, c0 = gates_to_hc(g0, c0)
        # layer 1: two K=Hp dots, no per-step concatenate copy
        g1 = (jnp.dot(h0.astype(mmdt), wih1, preferred_element_type=jnp.float32)
              + jnp.dot(h1.astype(mmdt), whh1, preferred_element_type=jnp.float32)
              + b1)
        h1, c1 = gates_to_hc(g1, c1)

    # fc1(h_n[-1]) -- lane-dense store (Pp is a multiple of 128)
    out_ref[...] = (jnp.dot(h1.astype(mmdt), wfc_ref[...],
                            preferred_element_type=jnp.float32)
                    + bfc_ref[...]).astype(out_ref.dtype)


# ----------------------------------------------------------------------------
# Wrapper: padding, bias folding, batch tiling/grid, VMEM budget, final slice.
# ----------------------------------------------------------------------------
@functools.partial(jax.jit,
                   static_argnames=("n_predictions", "output_size", "use_bf16"))
def lstm_forward(x, params, *, n_predictions=80, output_size=1, use_bf16=False):
    """x: (B, T, I) batch_first, matching PyTorch. Returns (B, n_pred, out)."""
    B, T, I = x.shape
    H = params["w_hh_l0"].shape[1]
    P = n_predictions * output_size
    Hp = _round_up(H, 128)      # lane-align each gate slice
    Pp = _round_up(P, 128)      # lane-dense output store
    f32 = jnp.float32
    mmdt = jnp.bfloat16 if use_bf16 else f32

    def pad_gate_cols(w):
        """(..., 4H) -> (..., 4Hp): zero-pad each of the 4 gate blocks to Hp."""
        parts = jnp.split(w.astype(f32), 4, axis=-1)
        pad = [(0, 0)] * (w.ndim - 1) + [(0, Hp - H)]
        return jnp.concatenate([jnp.pad(p, pad) for p in parts], axis=-1)

    def pad_rows(w):
        """(H, X) -> (Hp, X): zero-pad the hidden-dim rows."""
        return jnp.pad(w, ((0, Hp - H), (0, 0)))

    # layer 0
    wih0 = pad_gate_cols(params["w_ih_l0"].T)                       # (I, 4Hp)
    wih0 = wih0 if I == 1 else wih0.astype(mmdt)                    # I==1 -> VPU mul
    whh0 = pad_rows(pad_gate_cols(params["w_hh_l0"].T)).astype(mmdt)
    b0 = pad_gate_cols((params["b_ih_l0"] + params["b_hh_l0"]).reshape(1, 4 * H))
    # layer 1
    wih1 = pad_rows(pad_gate_cols(params["w_ih_l1"].T)).astype(mmdt)
    whh1 = pad_rows(pad_gate_cols(params["w_hh_l1"].T)).astype(mmdt)
    b1 = pad_gate_cols((params["b_ih_l1"] + params["b_hh_l1"]).reshape(1, 4 * H))
    # fc1
    wfc = jnp.pad(params["fc_w"].T.astype(f32),
                  ((0, Hp - H), (0, Pp - P))).astype(mmdt)
    bfc = jnp.pad(params["fc_b"].reshape(1, P).astype(f32), ((0, 0), (0, Pp - P)))

    # ---- batch tiling: pad B to a multiple of 8; grow the tile for real
    #      batches and keep >= 2 programs so both v7x TensorCores get work.
    x2d = x.reshape(B, T * I).astype(f32)       # lane-dense (time*input on lanes)
    B8 = _round_up(B, 8)
    if B8 < 16:
        Bb = B8                                  # toy batch: single program
    else:
        Bb = min(256, _round_up((B8 + 1) // 2, 8))
    Bp = _round_up(B8, Bb)
    if Bp != B:
        x2d = jnp.pad(x2d, ((0, Bp - B), (0, 0)))   # zero rows, sliced off below
    grid = (Bp // Bb,)

    # ---- VMEM budget (scoped defaults: v5e 16 MiB, v6e/v7x 32 MiB) ----
    wbytes = 2 if use_bf16 else 4
    est_vmem = (2 * Bb * T * I * 4                 # x block, double-buffered
                + 2 * Bb * Pp * 4                  # out block, double-buffered
                + (I * 4 * Hp + 3 * Hp * 4 * Hp + Hp * Pp) * wbytes   # weights
                + (2 * 4 * Hp + Pp) * 4)           # biases
    vmem_limit = None
    if est_vmem > (12 << 20):
        vmem_limit = min(2 * est_vmem, 64 << 20)   # v7x physical VMEM is 64 MiB

    kernel = functools.partial(_lstm_kernel, seq_len=T, input_size=I,
                               use_bf16=use_bf16)
    out = pl.pallas_call(
        kernel,
        out_shape=jax.ShapeDtypeStruct((Bp, Pp), f32),
        grid=grid,
        in_specs=[
            pl.BlockSpec((Bb, T * I), lambda b: (b, 0)),
            pl.BlockSpec((I, 4 * Hp), lambda b: (0, 0)),
            pl.BlockSpec((Hp, 4 * Hp), lambda b: (0, 0)),
            pl.BlockSpec((1, 4 * Hp), lambda b: (0, 0)),
            pl.BlockSpec((Hp, 4 * Hp), lambda b: (0, 0)),
            pl.BlockSpec((Hp, 4 * Hp), lambda b: (0, 0)),
            pl.BlockSpec((1, 4 * Hp), lambda b: (0, 0)),
            pl.BlockSpec((Hp, Pp), lambda b: (0, 0)),
            pl.BlockSpec((1, Pp), lambda b: (0, 0)),
        ],
        out_specs=pl.BlockSpec((Bb, Pp), lambda b: (b, 0)),
        compiler_params=pltpu.CompilerParams(
            dimension_semantics=("parallel",),
            vmem_limit_bytes=vmem_limit),
    )(x2d, wih0, whh0, b0, wih1, whh1, b1, wfc, bfc)

    # .view(-1, n_predictions, output_size)
    return out[:B, :P].reshape(-1, n_predictions, output_size)


# ----------------------------------------------------------------------------
# Deterministic parameter init (PyTorch-style uniform(-1/sqrt(H), 1/sqrt(H)))
# ----------------------------------------------------------------------------
def init_params(key, input_size=1, hidden=80, n_predictions=80, output_size=1):
    k = 1.0 / jnp.sqrt(hidden)
    shapes = {
        "w_ih_l0": (4 * hidden, input_size),
        "w_hh_l0": (4 * hidden, hidden),
        "b_ih_l0": (4 * hidden,),
        "b_hh_l0": (4 * hidden,),
        "w_ih_l1": (4 * hidden, hidden),
        "w_hh_l1": (4 * hidden, hidden),
        "b_ih_l1": (4 * hidden,),
        "b_hh_l1": (4 * hidden,),
        "fc_w": (n_predictions * output_size, hidden),
        "fc_b": (n_predictions * output_size,),
    }
    params = {}
    keys = jax.random.split(key, len(shapes))
    for (name, shape), kk in zip(shapes.items(), keys):
        params[name] = jax.random.uniform(kk, shape, jnp.float32, -k, k)
    return params


# ----------------------------------------------------------------------------
# Pure-JAX reference (for correctness check)
# ----------------------------------------------------------------------------
def lstm_ref(x, params, n_predictions=80, output_size=1):
    B, T, I = x.shape
    H = params["w_hh_l0"].shape[1]

    def cell(x_in, h, c, wih, whh, bih, bhh):
        g = x_in @ wih.T + bih + h @ whh.T + bhh
        i, f, gg, o = jnp.split(g, 4, axis=-1)
        c = jax.nn.sigmoid(f) * c + jax.nn.sigmoid(i) * jnp.tanh(gg)
        h = jax.nn.sigmoid(o) * jnp.tanh(c)
        return h, c

    h0 = c0 = h1 = c1 = jnp.zeros((B, H), jnp.float32)
    for t in range(T):
        x_t = x[:, t, :]
        h0, c0 = cell(x_t, h0, c0, params["w_ih_l0"], params["w_hh_l0"],
                      params["b_ih_l0"], params["b_hh_l0"])
        h1, c1 = cell(h0, h1, c1, params["w_ih_l1"], params["w_hh_l1"],
                      params["b_ih_l1"], params["b_hh_l1"])
    out = h1 @ params["fc_w"].T + params["fc_b"]
    return out.reshape(-1, n_predictions, output_size)


if __name__ == "__main__":
    key = jax.random.PRNGKey(0)
    k_param, k_data = jax.random.split(key)

    B, T, I = 2, 8, 1          # batch=2, seq=8, input_size=1 (as in the module)
    H, NPRED, OUT = 80, 80, 1

    params = init_params(k_param, input_size=I, hidden=H,
                         n_predictions=NPRED, output_size=OUT)
    x = jax.random.normal(k_data, (B, T, I), jnp.float32)

    preds = lstm_forward(x, params, n_predictions=NPRED, output_size=OUT)
    preds = jax.block_until_ready(preds)

    ref = lstm_ref(x, params, n_predictions=NPRED, output_size=OUT)
    assert preds.shape == (B, NPRED, OUT), preds.shape
    err = float(jnp.max(jnp.abs(preds - ref)))
    assert jnp.allclose(preds, ref, atol=1e-4, rtol=1e-4), err

    print("KERNEL_OK")
</pallas_src>

<mosaic_0001>
module attributes {stable_mosaic.version = 11 : i64} {
  func.func @_lstm_kernel(%arg0: i32, %arg1: memref<8x8xf32, #tpu.memory_space<vmem>>, %arg2: memref<1x512xf32, #tpu.memory_space<vmem>>, %arg3: memref<128x512xf32, #tpu.memory_space<vmem>>, %arg4: memref<1x512xf32, #tpu.memory_space<vmem>>, %arg5: memref<128x512xf32, #tpu.memory_space<vmem>>, %arg6: memref<128x512xf32, #tpu.memory_space<vmem>>, %arg7: memref<1x512xf32, #tpu.memory_space<vmem>>, %arg8: memref<128x128xf32, #tpu.memory_space<vmem>>, %arg9: memref<1x128xf32, #tpu.memory_space<vmem>>, %arg10: memref<8x128xf32, #tpu.memory_space<vmem>>) attributes {dimension_semantics = [#tpu.dimension_semantics<parallel>], iteration_bounds = array<i64: 1>, scalar_prefetch = 0 : i64, scratch_operands = 0 : i64, tpu.core_type = #tpu.core_type<tc>, window_params = [{transform_indices = @transform_0, window_bounds = array<i64: 8, 8>}, {pipeline_mode = #tpu.pipeline_mode<synchronous>, transform_indices = @transform_1, window_bounds = array<i64: 1, 512>}, {pipeline_mode = #tpu.pipeline_mode<synchronous>, transform_indices = @transform_2, window_bounds = array<i64: 128, 512>}, {pipeline_mode = #tpu.pipeline_mode<synchronous>, transform_indices = @transform_3, window_bounds = array<i64: 1, 512>}, {pipeline_mode = #tpu.pipeline_mode<synchronous>, transform_indices = @transform_4, window_bounds = array<i64: 128, 512>}, {pipeline_mode = #tpu.pipeline_mode<synchronous>, transform_indices = @transform_5, window_bounds = array<i64: 128, 512>}, {pipeline_mode = #tpu.pipeline_mode<synchronous>, transform_indices = @transform_6, window_bounds = array<i64: 1, 512>}, {pipeline_mode = #tpu.pipeline_mode<synchronous>, transform_indices = @transform_7, window_bounds = array<i64: 128, 128>}, {pipeline_mode = #tpu.pipeline_mode<synchronous>, transform_indices = @transform_8, window_bounds = array<i64: 1, 128>}, {transform_indices = @transform_9, window_bounds = array<i64: 8, 128>}]} {
    %c0 = arith.constant 0 : index
    %c0_0 = arith.constant 0 : index
    %0 = vector.load %arg2[%c0, %c0_0] : memref<1x512xf32, #tpu.memory_space<vmem>>, vector<1x512xf32>
    %c0_1 = arith.constant 0 : index
    %c0_2 = arith.constant 0 : index
    %1 = vector.load %arg3[%c0_1, %c0_2] : memref<128x512xf32, #tpu.memory_space<vmem>>, vector<128x512xf32>
    %c0_3 = arith.constant 0 : index
    %c0_4 = arith.constant 0 : index
    %2 = vector.load %arg5[%c0_3, %c0_4] : memref<128x512xf32, #tpu.memory_space<vmem>>, vector<128x512xf32>
    %c0_5 = arith.constant 0 : index
    %c0_6 = arith.constant 0 : index
    %3 = vector.load %arg6[%c0_5, %c0_6] : memref<128x512xf32, #tpu.memory_space<vmem>>, vector<128x512xf32>
    %c0_7 = arith.constant 0 : index
    %c0_8 = arith.constant 0 : index
    %4 = vector.load %arg4[%c0_7, %c0_8] : memref<1x512xf32, #tpu.memory_space<vmem>>, vector<1x512xf32>
    %5 = vector.shape_cast %4 : vector<1x512xf32> to vector<1x512xf32>
    %6 = vector.broadcast %5 : vector<1x512xf32> to vector<8x512xf32>
    %c0_9 = arith.constant 0 : index
    %c0_10 = arith.constant 0 : index
    %7 = vector.load %arg7[%c0_9, %c0_10] : memref<1x512xf32, #tpu.memory_space<vmem>>, vector<1x512xf32>
    %8 = vector.shape_cast %7 : vector<1x512xf32> to vector<1x512xf32>
    %9 = vector.broadcast %8 : vector<1x512xf32> to vector<8x512xf32>
    %cst = arith.constant 0.000000e+00 : f32
    %10 = vector.broadcast %cst : f32 to vector<8x128xf32>
    %c0_11 = arith.constant 0 : index
    %c0_12 = arith.constant 0 : index
    %11 = vector.load %arg1[%c0_11, %c0_12] : memref<8x8xf32, #tpu.memory_space<vmem>>, vector<8x1xf32>
    %12 = vector.broadcast %11 : vector<8x1xf32> to vector<8x512xf32>
    %13 = vector.broadcast %0 : vector<1x512xf32> to vector<8x512xf32>
    %14 = arith.mulf %12, %13 : vector<8x512xf32>
    %15 = arith.addf %14, %6 : vector<8x512xf32>
    %cst_13 = arith.constant dense<0.000000e+00> : vector<8x512xf32>
    %16 = tpu.matmul %10, %1, %cst_13 {dimension_numbers = #tpu.dot_dimension_numbers<[1], [0], [0], [1], [0, 0, 1, 1], [], []>} : vector<8x128xf32>, vector<128x512xf32>, vector<8x512xf32> -> vector<8x512xf32>
    %17 = arith.addf %15, %16 : vector<8x512xf32>
    %18 = vector.extract_strided_slice %17 {offsets = [0, 0], sizes = [8, 128], strides = [1, 1]} : vector<8x512xf32> to vector<8x128xf32>
    %19 = arith.negf %18 : vector<8x128xf32>
    %20 = math.exp %19 : vector<8x128xf32>
    %cst_14 = arith.constant 1.000000e+00 : f32
    %21 = vector.broadcast %cst_14 : f32 to vector<8x128xf32>
    %22 = arith.addf %21, %20 : vector<8x128xf32>
    %23 = arith.divf %21, %22 : vector<8x128xf32>
    %24 = vector.extract_strided_slice %17 {offsets = [0, 128], sizes = [8, 128], strides = [1, 1]} : vector<8x512xf32> to vector<8x128xf32>
    %25 = arith.negf %24 : vector<8x128xf32>
    %26 = math.exp %25 : vector<8x128xf32>
    %cst_15 = arith.constant 1.000000e+00 : f32
    %27 = vector.broadcast %cst_15 : f32 to vector<8x128xf32>
    %28 = arith.addf %27, %26 : vector<8x128xf32>
    %29 = arith.divf %27, %28 : vector<8x128xf32>
    %30 = vector.extract_strided_slice %17 {offsets = [0, 256], sizes = [8, 128], strides = [1, 1]} : vector<8x512xf32> to vector<8x128xf32>
    %31 = math.tanh %30 : vector<8x128xf32>
    %32 = vector.extract_strided_slice %17 {offsets = [0, 384], sizes = [8, 128], strides = [1, 1]} : vector<8x512xf32> to vector<8x128xf32>
    %33 = arith.negf %32 : vector<8x128xf32>
    %34 = math.exp %33 : vector<8x128xf32>
    %cst_16 = arith.constant 1.000000e+00 : f32
    %35 = vector.broadcast %cst_16 : f32 to vector<8x128xf32>
    %36 = arith.addf %35, %34 : vector<8x128xf32>
    %37 = arith.divf %35, %36 : vector<8x128xf32>
    %38 = arith.mulf %29, %10 : vector<8x128xf32>
    %39 = arith.mulf %23, %31 : vector<8x128xf32>
    %40 = arith.addf %38, %39 : vector<8x128xf32>
    %41 = math.tanh %40 : vector<8x128xf32>
    %42 = arith.mulf %37, %41 : vector<8x128xf32>
    %cst_17 = arith.constant dense<0.000000e+00> : vector<8x512xf32>
    %43 = tpu.matmul %42, %2, %cst_17 {dimension_numbers = #tpu.dot_dimension_numbers<[1], [0], [0], [1], [0, 0, 1, 1], [], []>} : vector<8x128xf32>, vector<128x512xf32>, vector<8x512xf32> -> vector<8x512xf32>
    %cst_18 = arith.constant dense<0.000000e+00> : vector<8x512xf32>
    %44 = tpu.matmul %10, %3, %cst_18 {dimension_numbers = #tpu.dot_dimension_numbers<[1], [0], [0], [1], [0, 0, 1, 1], [], []>} : vector<8x128xf32>, vector<128x512xf32>, vector<8x512xf32> -> vector<8x512xf32>
    %45 = arith.addf %43, %44 : vector<8x512xf32>
    %46 = arith.addf %45, %9 : vector<8x512xf32>
    %47 = vector.extract_strided_slice %46 {offsets = [0, 0], sizes = [8, 128], strides = [1, 1]} : vector<8x512xf32> to vector<8x128xf32>
    %48 = arith.negf %47 : vector<8x128xf32>
    %49 = math.exp %48 : vector<8x128xf32>
    %cst_19 = arith.constant 1.000000e+00 : f32
    %50 = vector.broadcast %cst_19 : f32 to vector<8x128xf32>
    %51 = arith.addf %50, %49 : vector<8x128xf32>
    %52 = arith.divf %50, %51 : vector<8x128xf32>
    %53 = vector.extract_strided_slice %46 {offsets = [0, 128], sizes = [8, 128], strides = [1, 1]} : vector<8x512xf32> to vector<8x128xf32>
    %54 = arith.negf %53 : vector<8x128xf32>
    %55 = math.exp %54 : vector<8x128xf32>
    %cst_20 = arith.constant 1.000000e+00 : f32
    %56 = vector.broadcast %cst_20 : f32 to vector<8x128xf32>
    %57 = arith.addf %56, %55 : vector<8x128xf32>
    %58 = arith.divf %56, %57 : vector<8x128xf32>
    %59 = vector.extract_strided_slice %46 {offsets = [0, 256], sizes = [8, 128], strides = [1, 1]} : vector<8x512xf32> to vector<8x128xf32>
    %60 = math.tanh %59 : vector<8x128xf32>
    %61 = vector.extract_strided_slice %46 {offsets = [0, 384], sizes = [8, 128], strides = [1, 1]} : vector<8x512xf32> to vector<8x128xf32>
    %62 = arith.negf %61 : vector<8x128xf32>
    %63 = math.exp %62 : vector<8x128xf32>
    %cst_21 = arith.constant 1.000000e+00 : f32
    %64 = vector.broadcast %cst_21 : f32 to vector<8x128xf32>
    %65 = arith.addf %64, %63 : vector<8x128xf32>
    %66 = arith.divf %64, %65 : vector<8x128xf32>
    %67 = arith.mulf %58, %10 : vector<8x128xf32>
    %68 = arith.mulf %52, %60 : vector<8x128xf32>
    %69 = arith.addf %67, %68 : vector<8x128xf32>
    %70 = math.tanh %69 : vector<8x128xf32>
    %71 = arith.mulf %66, %70 : vector<8x128xf32>
    %c0_22 = arith.constant 0 : index
    %c1 = arith.constant 1 : index
    %72 = vector.load %arg1[%c0_22, %c1] : memref<8x8xf32, #tpu.memory_space<vmem>>, vector<8x1xf32>
    %73 = vector.broadcast %72 : vector<8x1xf32> to vector<8x512xf32>
    %74 = vector.broadcast %0 : vector<1x512xf32> to vector<8x512xf32>
    %75 = arith.mulf %73, %74 : vector<8x512xf32>
    %76 = arith.addf %75, %6 : vector<8x512xf32>
    %cst_23 = arith.constant dense<0.000000e+00> : vector<8x512xf32>
    %77 = tpu.matmul %42, %1, %cst_23 {dimension_numbers = #tpu.dot_dimension_numbers<[1], [0], [0], [1], [0, 0, 1, 1], [], []>} : vector<8x128xf32>, vector<128x512xf32>, vector<8x512xf32> -> vector<8x512xf32>
    %78 = arith.addf %76, %77 : vector<8x512xf32>
    %79 = vector.extract_strided_slice %78 {offsets = [0, 0], sizes = [8, 128], strides = [1, 1]} : vector<8x512xf32> to vector<8x128xf32>
    %80 = arith.negf %79 : vector<8x128xf32>
    %81 = math.exp %80 : vector<8x128xf32>
    %cst_24 = arith.constant 1.000000e+00 : f32
    %82 = vector.broadcast %cst_24 : f32 to vector<8x128xf32>
    %83 = arith.addf %82, %81 : vector<8x128xf32>
    %84 = arith.divf %82, %83 : vector<8x128xf32>
    %85 = vector.extract_strided_slice %78 {offsets = [0, 128], sizes = [8, 128], strides = [1, 1]} : vector<8x512xf32> to vector<8x128xf32>
    %86 = arith.negf %85 : vector<8x128xf32>
    %87 = math.exp %86 : vector<8x128xf32>
    %cst_25 = arith.constant 1.000000e+00 : f32
    %88 = vector.broadcast %cst_25 : f32 to vector<8x128xf32>
    %89 = arith.addf %88, %87 : vector<8x128xf32>
    %90 = arith.divf %88, %89 : vector<8x128xf32>
    %91 = vector.extract_strided_slice %78 {offsets = [0, 256], sizes = [8, 128], strides = [1, 1]} : vector<8x512xf32> to vector<8x128xf32>
    %92 = math.tanh %91 : vector<8x128xf32>
    %93 = vector.extract_strided_slice %78 {offsets = [0, 384], sizes = [8, 128], strides = [1, 1]} : vector<8x512xf32> to vector<8x128xf32>
    %94 = arith.negf %93 : vector<8x128xf32>
    %95 = math.exp %94 : vector<8x128xf32>
    %cst_26 = arith.constant 1.000000e+00 : f32
    %96 = vector.broadcast %cst_26 : f32 to vector<8x128xf32>
    %97 = arith.addf %96, %95 : vector<8x128xf32>
    %98 = arith.divf %96, %97 : vector<8x128xf32>
    %99 = arith.mulf %90, %40 : vector<8x128xf32>
    %100 = arith.mulf %84, %92 : vector<8x128xf32>
    %101 = arith.addf %99, %100 : vector<8x128xf32>
    %102 = math.tanh %101 : vector<8x128xf32>
    %103 = arith.mulf %98, %102 : vector<8x128xf32>
    %cst_27 = arith.constant dense<0.000000e+00> : vector<8x512xf32>
    %104 = tpu.matmul %103, %2, %cst_27 {dimension_numbers = #tpu.dot_dimension_numbers<[1], [0], [0], [1], [0, 0, 1, 1], [], []>} : vector<8x128xf32>, vector<128x512xf32>, vector<8x512xf32> -> vector<8x512xf32>
    %cst_28 = arith.constant dense<0.000000e+00> : vector<8x512xf32>
    %105 = tpu.matmul %71, %3, %cst_28 {dimension_numbers = #tpu.dot_dimension_numbers<[1], [0], [0], [1], [0, 0, 1, 1], [], []>} : vector<8x128xf32>, vector<128x512xf32>, vector<8x512xf32> -> vector<8x512xf32>
    %106 = arith.addf %104, %105 : vector<8x512xf32>
    %107 = arith.addf %106, %9 : vector<8x512xf32>
    %108 = vector.extract_strided_slice %107 {offsets = [0, 0], sizes = [8, 128], strides = [1, 1]} : vector<8x512xf32> to vector<8x128xf32>
    %109 = arith.negf %108 : vector<8x128xf32>
    %110 = math.exp %109 : vector<8x128xf32>
    %cst_29 = arith.constant 1.000000e+00 : f32
    %111 = vector.broadcast %cst_29 : f32 to vector<8x128xf32>
    %112 = arith.addf %111, %110 : vector<8x128xf32>
    %113 = arith.divf %111, %112 : vector<8x128xf32>
    %114 = vector.extract_strided_slice %107 {offsets = [0, 128], sizes = [8, 128], strides = [1, 1]} : vector<8x512xf32> to vector<8x128xf32>
    %115 = arith.negf %114 : vector<8x128xf32>
    %116 = math.exp %115 : vector<8x128xf32>
    %cst_30 = arith.constant 1.000000e+00 : f32
    %117 = vector.broadcast %cst_30 : f32 to vector<8x128xf32>
    %118 = arith.addf %117, %116 : vector<8x128xf32>
    %119 = arith.divf %117, %118 : vector<8x128xf32>
    %120 = vector.extract_strided_slice %107 {offsets = [0, 256], sizes = [8, 128], strides = [1, 1]} : vector<8x512xf32> to vector<8x128xf32>
    %121 = math.tanh %120 : vector<8x128xf32>
    %122 = vector.extract_strided_slice %107 {offsets = [0, 384], sizes = [8, 128], strides = [1, 1]} : vector<8x512xf32> to vector<8x128xf32>
    %123 = arith.negf %122 : vector<8x128xf32>
    %124 = math.exp %123 : vector<8x128xf32>
    %cst_31 = arith.constant 1.000000e+00 : f32
    %125 = vector.broadcast %cst_31 : f32 to vector<8x128xf32>
    %126 = arith.addf %125, %124 : vector<8x128xf32>
    %127 = arith.divf %125, %126 : vector<8x128xf32>
    %128 = arith.mulf %119, %69 : vector<8x128xf32>
    %129 = arith.mulf %113, %121 : vector<8x128xf32>
    %130 = arith.addf %128, %129 : vector<8x128xf32>
    %131 = math.tanh %130 : vector<8x128xf32>
    %132 = arith.mulf %127, %131 : vector<8x128xf32>
    %c0_32 = arith.constant 0 : index
    %c2 = arith.constant 2 : index
    %133 = vector.load %arg1[%c0_32, %c2] : memref<8x8xf32, #tpu.memory_space<vmem>>, vector<8x1xf32>
    %134 = vector.broadcast %133 : vector<8x1xf32> to vector<8x512xf32>
    %135 = vector.broadcast %0 : vector<1x512xf32> to vector<8x512xf32>
    %136 = arith.mulf %134, %135 : vector<8x512xf32>
    %137 = arith.addf %136, %6 : vector<8x512xf32>
    %cst_33 = arith.constant dense<0.000000e+00> : vector<8x512xf32>
    %138 = tpu.matmul %103, %1, %cst_33 {dimension_numbers = #tpu.dot_dimension_numbers<[1], [0], [0], [1], [0, 0, 1, 1], [], []>} : vector<8x128xf32>, vector<128x512xf32>, vector<8x512xf32> -> vector<8x512xf32>
    %139 = arith.addf %137, %138 : vector<8x512xf32>
    %140 = vector.extract_strided_slice %139 {offsets = [0, 0], sizes = [8, 128], strides = [1, 1]} : vector<8x512xf32> to vector<8x128xf32>
    %141 = arith.negf %140 : vector<8x128xf32>
    %142 = math.exp %141 : vector<8x128xf32>
    %cst_34 = arith.constant 1.000000e+00 : f32
    %143 = vector.broadcast %cst_34 : f32 to vector<8x128xf32>
    %144 = arith.addf %143, %142 : vector<8x128xf32>
    %145 = arith.divf %143, %144 : vector<8x128xf32>
    %146 = vector.extract_strided_slice %139 {offsets = [0, 128], sizes = [8, 128], strides = [1, 1]} : vector<8x512xf32> to vector<8x128xf32>
    %147 = arith.negf %146 : vector<8x128xf32>
    %148 = math.exp %147 : vector<8x128xf32>
    %cst_35 = arith.constant 1.000000e+00 : f32
    %149 = vector.broadcast %cst_35 : f32 to vector<8x128xf32>
    %150 = arith.addf %149, %148 : vector<8x128xf32>
    %151 = arith.divf %149, %150 : vector<8x128xf32>
    %152 = vector.extract_strided_slice %139 {offsets = [0, 256], sizes = [8, 128], strides = [1, 1]} : vector<8x512xf32> to vector<8x128xf32>
    %153 = math.tanh %152 : vector<8x128xf32>
    %154 = vector.extract_strided_slice %139 {offsets = [0, 384], sizes = [8, 128], strides = [1, 1]} : vector<8x512xf32> to vector<8x128xf32>
    %155 = arith.negf %154 : vector<8x128xf32>
    %156 = math.exp %155 : vector<8x128xf32>
    %cst_36 = arith.constant 1.000000e+00 : f32
    %157 = vector.broadcast %cst_36 : f32 to vector<8x128xf32>
    %158 = arith.addf %157, %156 : vector<8x128xf32>
    %159 = arith.divf %157, %158 : vector<8x128xf32>
    %160 = arith.mulf %151, %101 : vector<8x128xf32>
    %161 = arith.mulf %145, %153 : vector<8x128xf32>
    %162 = arith.addf %160, %161 : vector<8x128xf32>
    %163 = math.tanh %162 : vector<8x128xf32>
    %164 = arith.mulf %159, %163 : vector<8x128xf32>
    %cst_37 = arith.constant dense<0.000000e+00> : vector<8x512xf32>
    %165 = tpu.matmul %164, %2, %cst_37 {dimension_numbers = #tpu.dot_dimension_numbers<[1], [0], [0], [1], [0, 0, 1, 1], [], []>} : vector<8x128xf32>, vector<128x512xf32>, vector<8x512xf32> -> vector<8x512xf32>
    %cst_38 = arith.constant dense<0.000000e+00> : vector<8x512xf32>
    %166 = tpu.matmul %132, %3, %cst_38 {dimension_numbers = #tpu.dot_dimension_numbers<[1], [0], [0], [1], [0, 0, 1, 1], [], []>} : vector<8x128xf32>, vector<128x512xf32>, vector<8x512xf32> -> vector<8x512xf32>
    %167 = arith.addf %165, %166 : vector<8x512xf32>
    %168 = arith.addf %167, %9 : vector<8x512xf32>
    %169 = vector.extract_strided_slice %168 {offsets = [0, 0], sizes = [8, 128], strides = [1, 1]} : vector<8x512xf32> to vector<8x128xf32>
    %170 = arith.negf %169 : vector<8x128xf32>
    %171 = math.exp %170 : vector<8x128xf32>
    %cst_39 = arith.constant 1.000000e+00 : f32
    %172 = vector.broadcast %cst_39 : f32 to vector<8x128xf32>
    %173 = arith.addf %172, %171 : vector<8x128xf32>
    %174 = arith.divf %172, %173 : vector<8x128xf32>
    %175 = vector.extract_strided_slice %168 {offsets = [0, 128], sizes = [8, 128], strides = [1, 1]} : vector<8x512xf32> to vector<8x128xf32>
    %176 = arith.negf %175 : vector<8x128xf32>
    %177 = math.exp %176 : vector<8x128xf32>
    %cst_40 = arith.constant 1.000000e+00 : f32
    %178 = vector.broadcast %cst_40 : f32 to vector<8x128xf32>
    %179 = arith.addf %178, %177 : vector<8x128xf32>
    %180 = arith.divf %178, %179 : vector<8x128xf32>
    %181 = vector.extract_strided_slice %168 {offsets = [0, 256], sizes = [8, 128], strides = [1, 1]} : vector<8x512xf32> to vector<8x128xf32>
    %182 = math.tanh %181 : vector<8x128xf32>
    %183 = vector.extract_strided_slice %168 {offsets = [0, 384], sizes = [8, 128], strides = [1, 1]} : vector<8x512xf32> to vector<8x128xf32>
    %184 = arith.negf %183 : vector<8x128xf32>
    %185 = math.exp %184 : vector<8x128xf32>
    %cst_41 = arith.constant 1.000000e+00 : f32
    %186 = vector.broadcast %cst_41 : f32 to vector<8x128xf32>
    %187 = arith.addf %186, %185 : vector<8x128xf32>
    %188 = arith.divf %186, %187 : vector<8x128xf32>
    %189 = arith.mulf %180, %130 : vector<8x128xf32>
    %190 = arith.mulf %174, %182 : vector<8x128xf32>
    %191 = arith.addf %189, %190 : vector<8x128xf32>
    %192 = math.tanh %191 : vector<8x128xf32>
    %193 = arith.mulf %188, %192 : vector<8x128xf32>
    %c0_42 = arith.constant 0 : index
    %c3 = arith.constant 3 : index
    %194 = vector.load %arg1[%c0_42, %c3] : memref<8x8xf32, #tpu.memory_space<vmem>>, vector<8x1xf32>
    %195 = vector.broadcast %194 : vector<8x1xf32> to vector<8x512xf32>
    %196 = vector.broadcast %0 : vector<1x512xf32> to vector<8x512xf32>
    %197 = arith.mulf %195, %196 : vector<8x512xf32>
    %198 = arith.addf %197, %6 : vector<8x512xf32>
    %cst_43 = arith.constant dense<0.000000e+00> : vector<8x512xf32>
    %199 = tpu.matmul %164, %1, %cst_43 {dimension_numbers = #tpu.dot_dimension_numbers<[1], [0], [0], [1], [0, 0, 1, 1], [], []>} : vector<8x128xf32>, vector<128x512xf32>, vector<8x512xf32> -> vector<8x512xf32>
    %200 = arith.addf %198, %199 : vector<8x512xf32>
    %201 = vector.extract_strided_slice %200 {offsets = [0, 0], sizes = [8, 128], strides = [1, 1]} : vector<8x512xf32> to vector<8x128xf32>
    %202 = arith.negf %201 : vector<8x128xf32>
    %203 = math.exp %202 : vector<8x128xf32>
    %cst_44 = arith.constant 1.000000e+00 : f32
    %204 = vector.broadcast %cst_44 : f32 to vector<8x128xf32>
    %205 = arith.addf %204, %203 : vector<8x128xf32>
    %206 = arith.divf %204, %205 : vector<8x128xf32>
    %207 = vector.extract_strided_slice %200 {offsets = [0, 128], sizes = [8, 128], strides = [1, 1]} : vector<8x512xf32> to vector<8x128xf32>
    %208 = arith.negf %207 : vector<8x128xf32>
    %209 = math.exp %208 : vector<8x128xf32>
    %cst_45 = arith.constant 1.000000e+00 : f32
    %210 = vector.broadcast %cst_45 : f32 to vector<8x128xf32>
    %211 = arith.addf %210, %209 : vector<8x128xf32>
    %212 = arith.divf %210, %211 : vector<8x128xf32>
    %213 = vector.extract_strided_slice %200 {offsets = [0, 256], sizes = [8, 128], strides = [1, 1]} : vector<8x512xf32> to vector<8x128xf32>
    %214 = math.tanh %213 : vector<8x128xf32>
    %215 = vector.extract_strided_slice %200 {offsets = [0, 384], sizes = [8, 128], strides = [1, 1]} : vector<8x512xf32> to vector<8x128xf32>
    %216 = arith.negf %215 : vector<8x128xf32>
    %217 = math.exp %216 : vector<8x128xf32>
    %cst_46 = arith.constant 1.000000e+00 : f32
    %218 = vector.broadcast %cst_46 : f32 to vector<8x128xf32>
    %219 = arith.addf %218, %217 : vector<8x128xf32>
    %220 = arith.divf %218, %219 : vector<8x128xf32>
    %221 = arith.mulf %212, %162 : vector<8x128xf32>
    %222 = arith.mulf %206, %214 : vector<8x128xf32>
    %223 = arith.addf %221, %222 : vector<8x128xf32>
    %224 = math.tanh %223 : vector<8x128xf32>
    %225 = arith.mulf %220, %224 : vector<8x128xf32>
    %cst_47 = arith.constant dense<0.000000e+00> : vector<8x512xf32>
    %226 = tpu.matmul %225, %2, %cst_47 {dimension_numbers = #tpu.dot_dimension_numbers<[1], [0], [0], [1], [0, 0, 1, 1], [], []>} : vector<8x128xf32>, vector<128x512xf32>, vector<8x512xf32> -> vector<8x512xf32>
    %cst_48 = arith.constant dense<0.000000e+00> : vector<8x512xf32>
    %227 = tpu.matmul %193, %3, %cst_48 {dimension_numbers = #tpu.dot_dimension_numbers<[1], [0], [0], [1], [0, 0, 1, 1], [], []>} : vector<8x128xf32>, vector<128x512xf32>, vector<8x512xf32> -> vector<8x512xf32>
    %228 = arith.addf %226, %227 : vector<8x512xf32>
    %229 = arith.addf %228, %9 : vector<8x512xf32>
    %230 = vector.extract_strided_slice %229 {offsets = [0, 0], sizes = [8, 128], strides = [1, 1]} : vector<8x512xf32> to vector<8x128xf32>
    %231 = arith.negf %230 : vector<8x128xf32>
    %232 = math.exp %231 : vector<8x128xf32>
    %cst_49 = arith.constant 1.000000e+00 : f32
    %233 = vector.broadcast %cst_49 : f32 to vector<8x128xf32>
    %234 = arith.addf %233, %232 : vector<8x128xf32>
    %235 = arith.divf %233, %234 : vector<8x128xf32>
    %236 = vector.extract_strided_slice %229 {offsets = [0, 128], sizes = [8, 128], strides = [1, 1]} : vector<8x512xf32> to vector<8x128xf32>
    %237 = arith.negf %236 : vector<8x128xf32>
    %238 = math.exp %237 : vector<8x128xf32>
    %cst_50 = arith.constant 1.000000e+00 : f32
    %239 = vector.broadcast %cst_50 : f32 to vector<8x128xf32>
    %240 = arith.addf %239, %238 : vector<8x128xf32>
    %241 = arith.divf %239, %240 : vector<8x128xf32>
    %242 = vector.extract_strided_slice %229 {offsets = [0, 256], sizes = [8, 128], strides = [1, 1]} : vector<8x512xf32> to vector<8x128xf32>
    %243 = math.tanh %242 : vector<8x128xf32>
    %244 = vector.extract_strided_slice %229 {offsets = [0, 384], sizes = [8, 128], strides = [1, 1]} : vector<8x512xf32> to vector<8x128xf32>
    %245 = arith.negf %244 : vector<8x128xf32>
    %246 = math.exp %245 : vector<8x128xf32>
    %cst_51 = arith.constant 1.000000e+00 : f32
    %247 = vector.broadcast %cst_51 : f32 to vector<8x128xf32>
    %248 = arith.addf %247, %246 : vector<8x128xf32>
    %249 = arith.divf %247, %248 : vector<8x128xf32>
    %250 = arith.mulf %241, %191 : vector<8x128xf32>
    %251 = arith.mulf %235, %243 : vector<8x128xf32>
    %252 = arith.addf %250, %251 : vector<8x128xf32>
    %253 = math.tanh %252 : vector<8x128xf32>
    %254 = arith.mulf %249, %253 : vector<8x128xf32>
    %c0_52 = arith.constant 0 : index
    %c4 = arith.constant 4 : index
    %255 = vector.load %arg1[%c0_52, %c4] : memref<8x8xf32, #tpu.memory_space<vmem>>, vector<8x1xf32>
    %256 = vector.broadcast %255 : vector<8x1xf32> to vector<8x512xf32>
    %257 = vector.broadcast %0 : vector<1x512xf32> to vector<8x512xf32>
    %258 = arith.mulf %256, %257 : vector<8x512xf32>
    %259 = arith.addf %258, %6 : vector<8x512xf32>
    %cst_53 = arith.constant dense<0.000000e+00> : vector<8x512xf32>
    %260 = tpu.matmul %225, %1, %cst_53 {dimension_numbers = #tpu.dot_dimension_numbers<[1], [0], [0], [1], [0, 0, 1, 1], [], []>} : vector<8x128xf32>, vector<128x512xf32>, vector<8x512xf32> -> vector<8x512xf32>
    %261 = arith.addf %259, %260 : vector<8x512xf32>
    %262 = vector.extract_strided_slice %261 {offsets = [0, 0], sizes = [8, 128], strides = [1, 1]} : vector<8x512xf32> to vector<8x128xf32>
    %263 = arith.negf %262 : vector<8x128xf32>
    %264 = math.exp %263 : vector<8x128xf32>
    %cst_54 = arith.constant 1.000000e+00 : f32
    %265 = vector.broadcast %cst_54 : f32 to vector<8x128xf32>
    %266 = arith.addf %265, %264 : vector<8x128xf32>
    %267 = arith.divf %265, %266 : vector<8x128xf32>
    %268 = vector.extract_strided_slice %261 {offsets = [0, 128], sizes = [8, 128], strides = [1, 1]} : vector<8x512xf32> to vector<8x128xf32>
    %269 = arith.negf %268 : vector<8x128xf32>
    %270 = math.exp %269 : vector<8x128xf32>
    %cst_55 = arith.constant 1.000000e+00 : f32
    %271 = vector.broadcast %cst_55 : f32 to vector<8x128xf32>
    %272 = arith.addf %271, %270 : vector<8x128xf32>
    %273 = arith.divf %271, %272 : vector<8x128xf32>
    %274 = vector.extract_strided_slice %261 {offsets = [0, 256], sizes = [8, 128], strides = [1, 1]} : vector<8x512xf32> to vector<8x128xf32>
    %275 = math.tanh %274 : vector<8x128xf32>
    %276 = vector.extract_strided_slice %261 {offsets = [0, 384], sizes = [8, 128], strides = [1, 1]} : vector<8x512xf32> to vector<8x128xf32>
    %277 = arith.negf %276 : vector<8x128xf32>
    %278 = math.exp %277 : vector<8x128xf32>
    %cst_56 = arith.constant 1.000000e+00 : f32
    %279 = vector.broadcast %cst_56 : f32 to vector<8x128xf32>
    %280 = arith.addf %279, %278 : vector<8x128xf32>
    %281 = arith.divf %279, %280 : vector<8x128xf32>
    %282 = arith.mulf %273, %223 : vector<8x128xf32>
    %283 = arith.mulf %267, %275 : vector<8x128xf32>
    %284 = arith.addf %282, %283 : vector<8x128xf32>
    %285 = math.tanh %284 : vector<8x128xf32>
    %286 = arith.mulf %281, %285 : vector<8x128xf32>
    %cst_57 = arith.constant dense<0.000000e+00> : vector<8x512xf32>
    %287 = tpu.matmul %286, %2, %cst_57 {dimension_numbers = #tpu.dot_dimension_numbers<[1], [0], [0], [1], [0, 0, 1, 1], [], []>} : vector<8x128xf32>, vector<128x512xf32>, vector<8x512xf32> -> vector<8x512xf32>
    %cst_58 = arith.constant dense<0.000000e+00> : vector<8x512xf32>
    %288 = tpu.matmul %254, %3, %cst_58 {dimension_numbers = #tpu.dot_dimension_numbers<[1], [0], [0], [1], [0, 0, 1, 1], [], []>} : vector<8x128xf32>, vector<128x512xf32>, vector<8x512xf32> -> vector<8x512xf32>
    %289 = arith.addf %287, %288 : vector<8x512xf32>
    %290 = arith.addf %289, %9 : vector<8x512xf32>
    %291 = vector.extract_strided_slice %290 {offsets = [0, 0], sizes = [8, 128], strides = [1, 1]} : vector<8x512xf32> to vector<8x128xf32>
    %292 = arith.negf %291 : vector<8x128xf32>
    %293 = math.exp %292 : vector<8x128xf32>
    %cst_59 = arith.constant 1.000000e+00 : f32
    %294 = vector.broadcast %cst_59 : f32 to vector<8x128xf32>
    %295 = arith.addf %294, %293 : vector<8x128xf32>
    %296 = arith.divf %294, %295 : vector<8x128xf32>
    %297 = vector.extract_strided_slice %290 {offsets = [0, 128], sizes = [8, 128], strides = [1, 1]} : vector<8x512xf32> to vector<8x128xf32>
    %298 = arith.negf %297 : vector<8x128xf32>
    %299 = math.exp %298 : vector<8x128xf32>
    %cst_60 = arith.constant 1.000000e+00 : f32
    %300 = vector.broadcast %cst_60 : f32 to vector<8x128xf32>
    %301 = arith.addf %300, %299 : vector<8x128xf32>
    %302 = arith.divf %300, %301 : vector<8x128xf32>
    %303 = vector.extract_strided_slice %290 {offsets = [0, 256], sizes = [8, 128], strides = [1, 1]} : vector<8x512xf32> to vector<8x128xf32>
    %304 = math.tanh %303 : vector<8x128xf32>
    %305 = vector.extract_strided_slice %290 {offsets = [0, 384], sizes = [8, 128], strides = [1, 1]} : vector<8x512xf32> to vector<8x128xf32>
    %306 = arith.negf %305 : vector<8x128xf32>
    %307 = math.exp %306 : vector<8x128xf32>
    %cst_61 = arith.constant 1.000000e+00 : f32
    %308 = vector.broadcast %cst_61 : f32 to vector<8x128xf32>
    %309 = arith.addf %308, %307 : vector<8x128xf32>
    %310 = arith.divf %308, %309 : vector<8x128xf32>
    %311 = arith.mulf %302, %252 : vector<8x128xf32>
    %312 = arith.mulf %296, %304 : vector<8x128xf32>
    %313 = arith.addf %311, %312 : vector<8x128xf32>
    %314 = math.tanh %313 : vector<8x128xf32>
    %315 = arith.mulf %310, %314 : vector<8x128xf32>
    %c0_62 = arith.constant 0 : index
    %c5 = arith.constant 5 : index
    %316 = vector.load %arg1[%c0_62, %c5] : memref<8x8xf32, #tpu.memory_space<vmem>>, vector<8x1xf32>
    %317 = vector.broadcast %316 : vector<8x1xf32> to vector<8x512xf32>
    %318 = vector.broadcast %0 : vector<1x512xf32> to vector<8x512xf32>
    %319 = arith.mulf %317, %318 : vector<8x512xf32>
    %320 = arith.addf %319, %6 : vector<8x512xf32>
    %cst_63 = arith.constant dense<0.000000e+00> : vector<8x512xf32>
    %321 = tpu.matmul %286, %1, %cst_63 {dimension_numbers = #tpu.dot_dimension_numbers<[1], [0], [0], [1], [0, 0, 1, 1], [], []>} : vector<8x128xf32>, vector<128x512xf32>, vector<8x512xf32> -> vector<8x512xf32>
    %322 = arith.addf %320, %321 : vector<8x512xf32>
    %323 = vector.extract_strided_slice %322 {offsets = [0, 0], sizes = [8, 128], strides = [1, 1]} : vector<8x512xf32> to vector<8x128xf32>
    %324 = arith.negf %323 : vector<8x128xf32>
    %325 = math.exp %324 : vector<8x128xf32>
    %cst_64 = arith.constant 1.000000e+00 : f32
    %326 = vector.broadcast %cst_64 : f32 to vector<8x128xf32>
    %327 = arith.addf %326, %325 : vector<8x128xf32>
    %328 = arith.divf %326, %327 : vector<8x128xf32>
    %329 = vector.extract_strided_slice %322 {offsets = [0, 128], sizes = [8, 128], strides = [1, 1]} : vector<8x512xf32> to vector<8x128xf32>
    %330 = arith.negf %329 : vector<8x128xf32>
    %331 = math.exp %330 : vector<8x128xf32>
    %cst_65 = arith.constant 1.000000e+00 : f32
    %332 = vector.broadcast %cst_65 : f32 to vector<8x128xf32>
    %333 = arith.addf %332, %331 : vector<8x128xf32>
    %334 = arith.divf %332, %333 : vector<8x128xf32>
    %335 = vector.extract_strided_slice %322 {offsets = [0, 256], sizes = [8, 128], strides = [1, 1]} : vector<8x512xf32> to vector<8x128xf32>
    %336 = math.tanh %335 : vector<8x128xf32>
    %337 = vector.extract_strided_slice %322 {offsets = [0, 384], sizes = [8, 128], strides = [1, 1]} : vector<8x512xf32> to vector<8x128xf32>
    %338 = arith.negf %337 : vector<8x128xf32>
    %339 = math.exp %338 : vector<8x128xf32>
    %cst_66 = arith.constant 1.000000e+00 : f32
    %340 = vector.broadcast %cst_66 : f32 to vector<8x128xf32>
    %341 = arith.addf %340, %339 : vector<8x128xf32>
    %342 = arith.divf %340, %341 : vector<8x128xf32>
    %343 = arith.mulf %334, %284 : vector<8x128xf32>
    %344 = arith.mulf %328, %336 : vector<8x128xf32>
    %345 = arith.addf %343, %344 : vector<8x128xf32>
    %346 = math.tanh %345 : vector<8x128xf32>
    %347 = arith.mulf %342, %346 : vector<8x128xf32>
    %cst_67 = arith.constant dense<0.000000e+00> : vector<8x512xf32>
    %348 = tpu.matmul %347, %2, %cst_67 {dimension_numbers = #tpu.dot_dimension_numbers<[1], [0], [0], [1], [0, 0, 1, 1], [], []>} : vector<8x128xf32>, vector<128x512xf32>, vector<8x512xf32> -> vector<8x512xf32>
    %cst_68 = arith.constant dense<0.000000e+00> : vector<8x512xf32>
    %349 = tpu.matmul %315, %3, %cst_68 {dimension_numbers = #tpu.dot_dimension_numbers<[1], [0], [0], [1], [0, 0, 1, 1], [], []>} : vector<8x128xf32>, vector<128x512xf32>, vector<8x512xf32> -> vector<8x512xf32>
    %350 = arith.addf %348, %349 : vector<8x512xf32>
    %351 = arith.addf %350, %9 : vector<8x512xf32>
    %352 = vector.extract_strided_slice %351 {offsets = [0, 0], sizes = [8, 128], strides = [1, 1]} : vector<8x512xf32> to vector<8x128xf32>
    %353 = arith.negf %352 : vector<8x128xf32>
    %354 = math.exp %353 : vector<8x128xf32>
    %cst_69 = arith.constant 1.000000e+00 : f32
    %355 = vector.broadcast %cst_69 : f32 to vector<8x128xf32>
    %356 = arith.addf %355, %354 : vector<8x128xf32>
    %357 = arith.divf %355, %356 : vector<8x128xf32>
    %358 = vector.extract_strided_slice %351 {offsets = [0, 128], sizes = [8, 128], strides = [1, 1]} : vector<8x512xf32> to vector<8x128xf32>
    %359 = arith.negf %358 : vector<8x128xf32>
    %360 = math.exp %359 : vector<8x128xf32>
    %cst_70 = arith.constant 1.000000e+00 : f32
    %361 = vector.broadcast %cst_70 : f32 to vector<8x128xf32>
    %362 = arith.addf %361, %360 : vector<8x128xf32>
    %363 = arith.divf %361, %362 : vector<8x128xf32>
    %364 = vector.extract_strided_slice %351 {offsets = [0, 256], sizes = [8, 128], strides = [1, 1]} : vector<8x512xf32> to vector<8x128xf32>
    %365 = math.tanh %364 : vector<8x128xf32>
    %366 = vector.extract_strided_slice %351 {offsets = [0, 384], sizes = [8, 128], strides = [1, 1]} : vector<8x512xf32> to vector<8x128xf32>
    %367 = arith.negf %366 : vector<8x128xf32>
    %368 = math.exp %367 : vector<8x128xf32>
    %cst_71 = arith.constant 1.000000e+00 : f32
    %369 = vector.broadcast %cst_71 : f32 to vector<8x128xf32>
    %370 = arith.addf %369, %368 : vector<8x128xf32>
    %371 = arith.divf %369, %370 : vector<8x128xf32>
    %372 = arith.mulf %363, %313 : vector<8x128xf32>
    %373 = arith.mulf %357, %365 : vector<8x128xf32>
    %374 = arith.addf %372, %373 : vector<8x128xf32>
    %375 = math.tanh %374 : vector<8x128xf32>
    %376 = arith.mulf %371, %375 : vector<8x128xf32>
    %c0_72 = arith.constant 0 : index
    %c6 = arith.constant 6 : index
    %377 = vector.load %arg1[%c0_72, %c6] : memref<8x8xf32, #tpu.memory_space<vmem>>, vector<8x1xf32>
    %378 = vector.broadcast %377 : vector<8x1xf32> to vector<8x512xf32>
    %379 = vector.broadcast %0 : vector<1x512xf32> to vector<8x512xf32>
    %380 = arith.mulf %378, %379 : vector<8x512xf32>
    %381 = arith.addf %380, %6 : vector<8x512xf32>
    %cst_73 = arith.constant dense<0.000000e+00> : vector<8x512xf32>
    %382 = tpu.matmul %347, %1, %cst_73 {dimension_numbers = #tpu.dot_dimension_numbers<[1], [0], [0], [1], [0, 0, 1, 1], [], []>} : vector<8x128xf32>, vector<128x512xf32>, vector<8x512xf32> -> vector<8x512xf32>
    %383 = arith.addf %381, %382 : vector<8x512xf32>
    %384 = vector.extract_strided_slice %383 {offsets = [0, 0], sizes = [8, 128], strides = [1, 1]} : vector<8x512xf32> to vector<8x128xf32>
    %385 = arith.negf %384 : vector<8x128xf32>
    %386 = math.exp %385 : vector<8x128xf32>
    %cst_74 = arith.constant 1.000000e+00 : f32
    %387 = vector.broadcast %cst_74 : f32 to vector<8x128xf32>
    %388 = arith.addf %387, %386 : vector<8x128xf32>
    %389 = arith.divf %387, %388 : vector<8x128xf32>
    %390 = vector.extract_strided_slice %383 {offsets = [0, 128], sizes = [8, 128], strides = [1, 1]} : vector<8x512xf32> to vector<8x128xf32>
    %391 = arith.negf %390 : vector<8x128xf32>
    %392 = math.exp %391 : vector<8x128xf32>
    %cst_75 = arith.constant 1.000000e+00 : f32
    %393 = vector.broadcast %cst_75 : f32 to vector<8x128xf32>
    %394 = arith.addf %393, %392 : vector<8x128xf32>
    %395 = arith.divf %393, %394 : vector<8x128xf32>
    %396 = vector.extract_strided_slice %383 {offsets = [0, 256], sizes = [8, 128], strides = [1, 1]} : vector<8x512xf32> to vector<8x128xf32>
    %397 = math.tanh %396 : vector<8x128xf32>
    %398 = vector.extract_strided_slice %383 {offsets = [0, 384], sizes = [8, 128], strides = [1, 1]} : vector<8x512xf32> to vector<8x128xf32>
    %399 = arith.negf %398 : vector<8x128xf32>
    %400 = math.exp %399 : vector<8x128xf32>
    %cst_76 = arith.constant 1.000000e+00 : f32
    %401 = vector.broadcast %cst_76 : f32 to vector<8x128xf32>
    %402 = arith.addf %401, %400 : vector<8x128xf32>
    %403 = arith.divf %401, %402 : vector<8x128xf32>
    %404 = arith.mulf %395, %345 : vector<8x128xf32>
    %405 = arith.mulf %389, %397 : vector<8x128xf32>
    %406 = arith.addf %404, %405 : vector<8x128xf32>
    %407 = math.tanh %406 : vector<8x128xf32>
    %408 = arith.mulf %403, %407 : vector<8x128xf32>
    %cst_77 = arith.constant dense<0.000000e+00> : vector<8x512xf32>
    %409 = tpu.matmul %408, %2, %cst_77 {dimension_numbers = #tpu.dot_dimension_numbers<[1], [0], [0], [1], [0, 0, 1, 1], [], []>} : vector<8x128xf32>, vector<128x512xf32>, vector<8x512xf32> -> vector<8x512xf32>
    %cst_78 = arith.constant dense<0.000000e+00> : vector<8x512xf32>
    %410 = tpu.matmul %376, %3, %cst_78 {dimension_numbers = #tpu.dot_dimension_numbers<[1], [0], [0], [1], [0, 0, 1, 1], [], []>} : vector<8x128xf32>, vector<128x512xf32>, vector<8x512xf32> -> vector<8x512xf32>
    %411 = arith.addf %409, %410 : vector<8x512xf32>
    %412 = arith.addf %411, %9 : vector<8x512xf32>
    %413 = vector.extract_strided_slice %412 {offsets = [0, 0], sizes = [8, 128], strides = [1, 1]} : vector<8x512xf32> to vector<8x128xf32>
    %414 = arith.negf %413 : vector<8x128xf32>
    %415 = math.exp %414 : vector<8x128xf32>
    %cst_79 = arith.constant 1.000000e+00 : f32
    %416 = vector.broadcast %cst_79 : f32 to vector<8x128xf32>
    %417 = arith.addf %416, %415 : vector<8x128xf32>
    %418 = arith.divf %416, %417 : vector<8x128xf32>
    %419 = vector.extract_strided_slice %412 {offsets = [0, 128], sizes = [8, 128], strides = [1, 1]} : vector<8x512xf32> to vector<8x128xf32>
    %420 = arith.negf %419 : vector<8x128xf32>
    %421 = math.exp %420 : vector<8x128xf32>
    %cst_80 = arith.constant 1.000000e+00 : f32
    %422 = vector.broadcast %cst_80 : f32 to vector<8x128xf32>
    %423 = arith.addf %422, %421 : vector<8x128xf32>
    %424 = arith.divf %422, %423 : vector<8x128xf32>
    %425 = vector.extract_strided_slice %412 {offsets = [0, 256], sizes = [8, 128], strides = [1, 1]} : vector<8x512xf32> to vector<8x128xf32>
    %426 = math.tanh %425 : vector<8x128xf32>
    %427 = vector.extract_strided_slice %412 {offsets = [0, 384], sizes = [8, 128], strides = [1, 1]} : vector<8x512xf32> to vector<8x128xf32>
    %428 = arith.negf %427 : vector<8x128xf32>
    %429 = math.exp %428 : vector<8x128xf32>
    %cst_81 = arith.constant 1.000000e+00 : f32
    %430 = vector.broadcast %cst_81 : f32 to vector<8x128xf32>
    %431 = arith.addf %430, %429 : vector<8x128xf32>
    %432 = arith.divf %430, %431 : vector<8x128xf32>
    %433 = arith.mulf %424, %374 : vector<8x128xf32>
    %434 = arith.mulf %418, %426 : vector<8x128xf32>
    %435 = arith.addf %433, %434 : vector<8x128xf32>
    %436 = math.tanh %435 : vector<8x128xf32>
    %437 = arith.mulf %432, %436 : vector<8x128xf32>
    %c0_82 = arith.constant 0 : index
    %c7 = arith.constant 7 : index
    %438 = vector.load %arg1[%c0_82, %c7] : memref<8x8xf32, #tpu.memory_space<vmem>>, vector<8x1xf32>
    %439 = vector.broadcast %438 : vector<8x1xf32> to vector<8x512xf32>
    %440 = vector.broadcast %0 : vector<1x512xf32> to vector<8x512xf32>
    %441 = arith.mulf %439, %440 : vector<8x512xf32>
    %442 = arith.addf %441, %6 : vector<8x512xf32>
    %cst_83 = arith.constant dense<0.000000e+00> : vector<8x512xf32>
    %443 = tpu.matmul %408, %1, %cst_83 {dimension_numbers = #tpu.dot_dimension_numbers<[1], [0], [0], [1], [0, 0, 1, 1], [], []>} : vector<8x128xf32>, vector<128x512xf32>, vector<8x512xf32> -> vector<8x512xf32>
    %444 = arith.addf %442, %443 : vector<8x512xf32>
    %445 = vector.extract_strided_slice %444 {offsets = [0, 0], sizes = [8, 128], strides = [1, 1]} : vector<8x512xf32> to vector<8x128xf32>
    %446 = arith.negf %445 : vector<8x128xf32>
    %447 = math.exp %446 : vector<8x128xf32>
    %cst_84 = arith.constant 1.000000e+00 : f32
    %448 = vector.broadcast %cst_84 : f32 to vector<8x128xf32>
    %449 = arith.addf %448, %447 : vector<8x128xf32>
    %450 = arith.divf %448, %449 : vector<8x128xf32>
    %451 = vector.extract_strided_slice %444 {offsets = [0, 128], sizes = [8, 128], strides = [1, 1]} : vector<8x512xf32> to vector<8x128xf32>
    %452 = arith.negf %451 : vector<8x128xf32>
    %453 = math.exp %452 : vector<8x128xf32>
    %cst_85 = arith.constant 1.000000e+00 : f32
    %454 = vector.broadcast %cst_85 : f32 to vector<8x128xf32>
    %455 = arith.addf %454, %453 : vector<8x128xf32>
    %456 = arith.divf %454, %455 : vector<8x128xf32>
    %457 = vector.extract_strided_slice %444 {offsets = [0, 256], sizes = [8, 128], strides = [1, 1]} : vector<8x512xf32> to vector<8x128xf32>
    %458 = math.tanh %457 : vector<8x128xf32>
    %459 = vector.extract_strided_slice %444 {offsets = [0, 384], sizes = [8, 128], strides = [1, 1]} : vector<8x512xf32> to vector<8x128xf32>
    %460 = arith.negf %459 : vector<8x128xf32>
    %461 = math.exp %460 : vector<8x128xf32>
    %cst_86 = arith.constant 1.000000e+00 : f32
    %462 = vector.broadcast %cst_86 : f32 to vector<8x128xf32>
    %463 = arith.addf %462, %461 : vector<8x128xf32>
    %464 = arith.divf %462, %463 : vector<8x128xf32>
    %465 = arith.mulf %456, %406 : vector<8x128xf32>
    %466 = arith.mulf %450, %458 : vector<8x128xf32>
    %467 = arith.addf %465, %466 : vector<8x128xf32>
    %468 = math.tanh %467 : vector<8x128xf32>
    %469 = arith.mulf %464, %468 : vector<8x128xf32>
    %cst_87 = arith.constant dense<0.000000e+00> : vector<8x512xf32>
    %470 = tpu.matmul %469, %2, %cst_87 {dimension_numbers = #tpu.dot_dimension_numbers<[1], [0], [0], [1], [0, 0, 1, 1], [], []>} : vector<8x128xf32>, vector<128x512xf32>, vector<8x512xf32> -> vector<8x512xf32>
    %cst_88 = arith.constant dense<0.000000e+00> : vector<8x512xf32>
    %471 = tpu.matmul %437, %3, %cst_88 {dimension_numbers = #tpu.dot_dimension_numbers<[1], [0], [0], [1], [0, 0, 1, 1], [], []>} : vector<8x128xf32>, vector<128x512xf32>, vector<8x512xf32> -> vector<8x512xf32>
    %472 = arith.addf %470, %471 : vector<8x512xf32>
    %473 = arith.addf %472, %9 : vector<8x512xf32>
    %474 = vector.extract_strided_slice %473 {offsets = [0, 0], sizes = [8, 128], strides = [1, 1]} : vector<8x512xf32> to vector<8x128xf32>
    %475 = arith.negf %474 : vector<8x128xf32>
    %476 = math.exp %475 : vector<8x128xf32>
    %cst_89 = arith.constant 1.000000e+00 : f32
    %477 = vector.broadcast %cst_89 : f32 to vector<8x128xf32>
    %478 = arith.addf %477, %476 : vector<8x128xf32>
    %479 = arith.divf %477, %478 : vector<8x128xf32>
    %480 = vector.extract_strided_slice %473 {offsets = [0, 128], sizes = [8, 128], strides = [1, 1]} : vector<8x512xf32> to vector<8x128xf32>
    %481 = arith.negf %480 : vector<8x128xf32>
    %482 = math.exp %481 : vector<8x128xf32>
    %cst_90 = arith.constant 1.000000e+00 : f32
    %483 = vector.broadcast %cst_90 : f32 to vector<8x128xf32>
    %484 = arith.addf %483, %482 : vector<8x128xf32>
    %485 = arith.divf %483, %484 : vector<8x128xf32>
    %486 = vector.extract_strided_slice %473 {offsets = [0, 256], sizes = [8, 128], strides = [1, 1]} : vector<8x512xf32> to vector<8x128xf32>
    %487 = math.tanh %486 : vector<8x128xf32>
    %488 = vector.extract_strided_slice %473 {offsets = [0, 384], sizes = [8, 128], strides = [1, 1]} : vector<8x512xf32> to vector<8x128xf32>
    %489 = arith.negf %488 : vector<8x128xf32>
    %490 = math.exp %489 : vector<8x128xf32>
    %cst_91 = arith.constant 1.000000e+00 : f32
    %491 = vector.broadcast %cst_91 : f32 to vector<8x128xf32>
    %492 = arith.addf %491, %490 : vector<8x128xf32>
    %493 = arith.divf %491, %492 : vector<8x128xf32>
    %494 = arith.mulf %485, %435 : vector<8x128xf32>
    %495 = arith.mulf %479, %487 : vector<8x128xf32>
    %496 = arith.addf %494, %495 : vector<8x128xf32>
    %497 = math.tanh %496 : vector<8x128xf32>
    %498 = arith.mulf %493, %497 : vector<8x128xf32>
    %c0_92 = arith.constant 0 : index
    %c0_93 = arith.constant 0 : index
    %499 = vector.load %arg8[%c0_92, %c0_93] : memref<128x128xf32, #tpu.memory_space<vmem>>, vector<128x128xf32>
    %cst_94 = arith.constant dense<0.000000e+00> : vector<8x128xf32>
    %500 = tpu.matmul %498, %499, %cst_94 {dimension_numbers = #tpu.dot_dimension_numbers<[1], [0], [0], [1], [0, 0, 1, 1], [], []>} : vector<8x128xf32>, vector<128x128xf32>, vector<8x128xf32> -> vector<8x128xf32>
    %c0_95 = arith.constant 0 : index
    %c0_96 = arith.constant 0 : index
    %501 = vector.load %arg9[%c0_95, %c0_96] : memref<1x128xf32, #tpu.memory_space<vmem>>, vector<1x128xf32>
    %502 = vector.broadcast %501 : vector<1x128xf32> to vector<8x128xf32>
    %503 = arith.addf %500, %502 : vector<8x128xf32>
    %c0_97 = arith.constant 0 : index
    %c0_98 = arith.constant 0 : index
    %504 = vector.load %arg10[%c0_97, %c0_98] : memref<8x128xf32, #tpu.memory_space<vmem>>, vector<8x128xf32>
    tpu.vector_store %arg10[%c0_97, %c0_98], %503 {strides = array<i32>} : memref<8x128xf32, #tpu.memory_space<vmem>>, vector<8x128xf32>,
    return
  }
  func.func @transform_0(%arg0: i32) -> (i32, i32) {
    %c0_i32 = arith.constant 0 : i32
    %c0_i32_0 = arith.constant 0 : i32
    return %arg0, %c0_i32 : i32, i32
  }
  func.func @transform_1(%arg0: i32) -> (i32, i32) {
    %c0_i32 = arith.constant 0 : i32
    %c0_i32_0 = arith.constant 0 : i32
    %c0_i32_1 = arith.constant 0 : i32
    return %c0_i32, %c0_i32_0 : i32, i32
  }
  func.func @transform_2(%arg0: i32) -> (i32, i32) {
    %c0_i32 = arith.constant 0 : i32
    %c0_i32_0 = arith.constant 0 : i32
    %c0_i32_1 = arith.constant 0 : i32
    return %c0_i32, %c0_i32_0 : i32, i32
  }
  func.func @transform_3(%arg0: i32) -> (i32, i32) {
    %c0_i32 = arith.constant 0 : i32
    %c0_i32_0 = arith.constant 0 : i32
    %c0_i32_1 = arith.constant 0 : i32
    return %c0_i32, %c0_i32_0 : i32, i32
  }
  func.func @transform_4(%arg0: i32) -> (i32, i32) {
    %c0_i32 = arith.constant 0 : i32
    %c0_i32_0 = arith.constant 0 : i32
    %c0_i32_1 = arith.constant 0 : i32
    return %c0_i32, %c0_i32_0 : i32, i32
  }
  func.func @transform_5(%arg0: i32) -> (i32, i32) {
    %c0_i32 = arith.constant 0 : i32
    %c0_i32_0 = arith.constant 0 : i32
    %c0_i32_1 = arith.constant 0 : i32
    return %c0_i32, %c0_i32_0 : i32, i32
  }
  func.func @transform_6(%arg0: i32) -> (i32, i32) {
    %c0_i32 = arith.constant 0 : i32
    %c0_i32_0 = arith.constant 0 : i32
    %c0_i32_1 = arith.constant 0 : i32
    return %c0_i32, %c0_i32_0 : i32, i32
  }
  func.func @transform_7(%arg0: i32) -> (i32, i32) {
    %c0_i32 = arith.constant 0 : i32
    %c0_i32_0 = arith.constant 0 : i32
    %c0_i32_1 = arith.constant 0 : i32
    return %c0_i32, %c0_i32_0 : i32, i32
  }
  func.func @transform_8(%arg0: i32) -> (i32, i32) {
    %c0_i32 = arith.constant 0 : i32
    %c0_i32_0 = arith.constant 0 : i32
    %c0_i32_1 = arith.constant 0 : i32
    return %c0_i32, %c0_i32_0 : i32, i32
  }
  func.func @transform_9(%arg0: i32) -> (i32, i32) {
    %c0_i32 = arith.constant 0 : i32
    %c0_i32_0 = arith.constant 0 : i32
    return %arg0, %c0_i32 : i32, i32
  }
}

</mosaic_0001>

<bundles_post_ra>
// kernel: lstm_forward.1
= control target key start
LH: loop header
LB: loop body
LE: loop exit
PB: predicated region body
PF: predicated region fallthrough
CT: control target
= control target key end

     0   :  { %v11138_v3 = vmov 0.0   ;;  %vm5306_vm0 = vmmov 0   ;;  %s11128_s2 = inlined_call_operand.vmem [shape: f32[128,512], index: 2, kind: input, shape index: {}]   ;;  %s11129_s5 = inlined_call_operand.vmem [shape: f32[128,512], index: 5, kind: input, shape index: {}]   ;;  %s11130_s0 = inlined_call_operand.vmem [shape: f32[8,8], index: 0, kind: input, shape index: {}]   ;;  %s11131_s4 = inlined_call_operand.vmem [shape: f32[128,512], index: 4, kind: input, shape index: {}]   ;;  %s11132_s1 = inlined_call_operand.vmem [shape: f32[1,512], index: 1, kind: input, shape index: {}]   ;;  %s11133_s3 = inlined_call_operand.vmem [shape: f32[1,512], index: 3, kind: input, shape index: {}]   ;;  %s11134_s6 = inlined_call_operand.vmem [shape: f32[1,512], index: 6, kind: input, shape index: {}]   ;;  %s11135_s7 = inlined_call_operand.vmem [shape: f32[128,128], index: 7, kind: input, shape index: {}]   ;;  %s11136_s8 = inlined_call_operand.vmem [shape: f32[1,128], index: 8, kind: input, shape index: {}]   ;;  %s11137_s9 = inlined_call_operand.vmem [shape: f32[8,128], index: 9, kind: output, shape index: {}]  }
   0x1   :  { %v5360_v0 = vld [vmem:[%s11128_s2 + $0x1e8] sm:$0xff]  ;;  %v5365_v1 = vld [vmem:[%s11128_s2 + $0x1f8] sm:$0xff]  ;;  %v5370_v2 = vld [vmem:[%s11128_s2 + $0x1e0] sm:$0xff]  ;;  %368 = vmatprep.mubr.f32.mxu0 %v11138_v3  ;;  %439 = vmatprep.mubr.f32.mxu1 %v11138_v3 }
   0x2   :  { %304 = vmatprep.subr.mxu0 %v5360_v0  ;;  %375 = vmatprep.subr.mxu1 %v5365_v1  ;;  %v5379_v4 = vld [vmem:[%s11128_s2 + $0x1f0] sm:$0xff]  ;;  %v5384_v5 = vld [vmem:[%s11128_s2 + $0x1c8] sm:$0xff]  ;;  %v5389_v6 = vld [vmem:[%s11128_s2 + $0x1d8] sm:$0xff] }
   0x3   :  { %305 = vmatpush1.msra.mxu0 %v5370_v2  ;;  %376 = vmatpush1.msra.mxu1 %v5379_v4  ;;  %v5396_v7 = vld [vmem:[%s11128_s2 + $0x1c0] sm:$0xff]  ;;  %v5401_v8 = vld [vmem:[%s11128_s2 + $0x1d0] sm:$0xff]  ;;  %v5406_v9 = vld [vmem:[%s11128_s2 + $0x1a8] sm:$0xff] }
   0x4   :  { %306 = vmatprep.subr.mxu0 %v5384_v5  ;;  %377 = vmatprep.subr.mxu1 %v5389_v6  ;;  %v5413_v10 = vld [vmem:[%s11128_s2 + $0x1b8] sm:$0xff]  ;;  %v5418_v11 = vld [vmem:[%s11128_s2 + $0x1a0] sm:$0xff]  ;;  %v5423_v12 = vld [vmem:[%s11128_s2 + $0x1b0] sm:$0xff] }
   0x5   :  { %307 = vmatpush1.msra.mxu0 %v5396_v7  ;;  %378 = vmatpush1.msra.mxu1 %v5401_v8  ;;  %v5430_v13 = vld [vmem:[%s11128_s2 + $0x188] sm:$0xff]  ;;  %v5435_v14 = vld [vmem:[%s11128_s2 + $0x198] sm:$0xff]  ;;  %v5442_v15 = vld [vmem:[%s11128_s2 + $0x180] sm:$0xff] }
   0x6   :  { %308 = vmatprep.subr.mxu0 %v5406_v9  ;;  %379 = vmatprep.subr.mxu1 %v5413_v10  ;;  %v5447_v16 = vld [vmem:[%s11128_s2 + $0x190] sm:$0xff]  ;;  %v5454_v17 = vld [vmem:[%s11128_s2 + $0x168] sm:$0xff]  ;;  %v5459_v18 = vld [vmem:[%s11128_s2 + $0x178] sm:$0xff] }
   0x7   :  { %309 = vmatpush1.msra.mxu0 %v5418_v11  ;;  %380 = vmatpush1.msra.mxu1 %v5423_v12  ;;  %v5466_v19 = vld [vmem:[%s11128_s2 + $0x160] sm:$0xff]  ;;  %v5471_v20 = vld [vmem:[%s11128_s2 + $0x170] sm:$0xff]  ;;  %v5478_v21 = vld [vmem:[%s11128_s2 + $0x148] sm:$0xff] }
   0x8   :  { %310 = vmatprep.subr.mxu0 %v5430_v13  ;;  %381 = vmatprep.subr.mxu1 %v5435_v14  ;;  %v5483_v22 = vld [vmem:[%s11128_s2 + $0x158] sm:$0xff]  ;;  %v5490_v23 = vld [vmem:[%s11128_s2 + $0x140] sm:$0xff]  ;;  %v5495_v24 = vld [vmem:[%s11128_s2 + $0x150] sm:$0xff] }
   0x9   :  { %311 = vmatpush1.msra.mxu0 %v5442_v15  ;;  %382 = vmatpush1.msra.mxu1 %v5447_v16  ;;  %v5502_v25 = vld [vmem:[%s11128_s2 + $0x128] sm:$0xff]  ;;  %v5507_v26 = vld [vmem:[%s11128_s2 + $0x138] sm:$0xff]  ;;  %v5514_v27 = vld [vmem:[%s11128_s2 + $0x120] sm:$0xff] }
   0xa   :  { %312 = vmatprep.subr.mxu0 %v5454_v17  ;;  %383 = vmatprep.subr.mxu1 %v5459_v18  ;;  %v5519_v28 = vld [vmem:[%s11128_s2 + $0x130] sm:$0xff]  ;;  %v5526_v29 = vld [vmem:[%s11128_s2 + $0x108] sm:$0xff]  ;;  %v5531_v30 = vld [vmem:[%s11128_s2 + $0x118] sm:$0xff] }
   0xb   :  { %313 = vmatpush1.msra.mxu0 %v5466_v19  ;;  %384 = vmatpush1.msra.mxu1 %v5471_v20  ;;  %v5538_v31 = vld [vmem:[%s11128_s2 + $0x100] sm:$0xff]  ;;  %v5543_v32 = vld [vmem:[%s11128_s2 + $0x110] sm:$0xff]  ;;  %v5550_v33 = vld [vmem:[%s11128_s2 + $0xe8] sm:$0xff] }
   0xc   :  { %314 = vmatprep.subr.mxu0 %v5478_v21  ;;  %385 = vmatprep.subr.mxu1 %v5483_v22  ;;  %v5555_v34 = vld [vmem:[%s11128_s2 + $0xf8] sm:$0xff]  ;;  %v5562_v35 = vld [vmem:[%s11128_s2 + $0xe0] sm:$0xff]  ;;  %v5567_v36 = vld [vmem:[%s11128_s2 + $0xf0] sm:$0xff] }
   0xd   :  { %315 = vmatpush1.msra.mxu0 %v5490_v23  ;;  %386 = vmatpush1.msra.mxu1 %v5495_v24  ;;  %v5574_v37 = vld [vmem:[%s11128_s2 + $0xc8] sm:$0xff]  ;;  %v5579_v38 = vld [vmem:[%s11128_s2 + $0xd8] sm:$0xff]  ;;  %v5586_v39 = vld [vmem:[%s11128_s2 + $0xc0] sm:$0xff] }
   0xe   :  { %316 = vmatprep.subr.mxu0 %v5502_v25  ;;  %387 = vmatprep.subr.mxu1 %v5507_v26  ;;  %v5591_v40 = vld [vmem:[%s11128_s2 + $0xd0] sm:$0xff]  ;;  %v5598_v41 = vld [vmem:[%s11128_s2 + $0xa8] sm:$0xff]  ;;  %v5603_v42 = vld [vmem:[%s11128_s2 + $0xb8] sm:$0xff] }
   0xf   :  { %317 = vmatpush1.msra.mxu0 %v5514_v27  ;;  %388 = vmatpush1.msra.mxu1 %v5519_v28  ;;  %v5610_v43 = vld [vmem:[%s11128_s2 + $0xa0] sm:$0xff]  ;;  %v5615_v44 = vld [vmem:[%s11128_s2 + $0xb0] sm:$0xff]  ;;  %v5622_v45 = vld [vmem:[%s11128_s2 + $0x88] sm:$0xff] }
  0x10   :  { %318 = vmatprep.subr.mxu0 %v5526_v29  ;;  %389 = vmatprep.subr.mxu1 %v5531_v30  ;;  %v5627_v46 = vld [vmem:[%s11128_s2 + $0x98] sm:$0xff]  ;;  %v5634_v47 = vld [vmem:[%s11128_s2 + $0x80] sm:$0xff]  ;;  %v5639_v48 = vld [vmem:[%s11128_s2 + $0x90] sm:$0xff] }
  0x11   :  { %319 = vmatpush1.msra.mxu0 %v5538_v31  ;;  %390 = vmatpush1.msra.mxu1 %v5543_v32  ;;  %11745 = vst [vmem:[#allocation2_spill] sm:$0xff] %v5627_v46  ;;  %11746 = vst [vmem:[#allocation3_spill] sm:$0xff] %v5634_v47  ;;  %v5646_v49 = vld [vmem:[%s11128_s2 + $0x68] sm:$0xff]  ;;  %v5651_v50 = vld [vmem:[%s11128_s2 + $0x78] sm:$0xff] }
  0x12   :  { %320 = vmatprep.subr.mxu0 %v5550_v33  ;;  %391 = vmatprep.subr.mxu1 %v5555_v34  ;;  %11747 = vst [vmem:[#allocation4_spill] sm:$0xff] %v5639_v48  ;;  %11748 = vst [vmem:[#allocation5_spill] sm:$0xff] %v5646_v49  ;;  %v5658_v51 = vld [vmem:[%s11128_s2 + $0x60] sm:$0xff]  ;;  %v5663_v52 = vld [vmem:[%s11128_s2 + $0x70] sm:$0xff] }
  0x13   :  { %321 = vmatpush1.msra.mxu0 %v5562_v35  ;;  %392 = vmatpush1.msra.mxu1 %v5567_v36  ;;  %11749 = vst [vmem:[#allocation6_spill] sm:$0xff] %v5651_v50  ;;  %11750 = vst [vmem:[#allocation7_spill] sm:$0xff] %v5658_v51  ;;  %v5670_v53 = vld [vmem:[%s11128_s2 + $0x48] sm:$0xff]  ;;  %v5675_v54 = vld [vmem:[%s11128_s2 + $0x58] sm:$0xff] }
  0x14   :  { %322 = vmatprep.subr.mxu0 %v5574_v37  ;;  %393 = vmatprep.subr.mxu1 %v5579_v38  ;;  %11751 = vst [vmem:[#allocation8_spill] sm:$0xff] %v5663_v52  ;;  %11752 = vst [vmem:[#allocation9_spill] sm:$0xff] %v5670_v53  ;;  %v5682_v55 = vld [vmem:[%s11128_s2 + $0x40] sm:$0xff]  ;;  %v5687_v56 = vld [vmem:[%s11128_s2 + $0x50] sm:$0xff] }
  0x15   :  { %323 = vmatpush1.msra.mxu0 %v5586_v39  ;;  %394 = vmatpush1.msra.mxu1 %v5591_v40  ;;  %11753 = vst [vmem:[#allocation10_spill] sm:$0xff] %v5675_v54  ;;  %11754 = vst [vmem:[#allocation11_spill] sm:$0xff] %v5682_v55  ;;  %v5694_v57 = vld [vmem:[%s11128_s2 + $0x28] sm:$0xff]  ;;  %v5699_v58 = vld [vmem:[%s11128_s2 + $0x38] sm:$0xff] }
  0x16   :  { %324 = vmatprep.subr.mxu0 %v5598_v41  ;;  %395 = vmatprep.subr.mxu1 %v5603_v42  ;;  %11755 = vst [vmem:[#allocation12_spill] sm:$0xff] %v5687_v56  ;;  %11756 = vst [vmem:[#allocation13_spill] sm:$0xff] %v5694_v57  ;;  %v5706_v59 = vld [vmem:[%s11128_s2 + $0x20] sm:$0xff]  ;;  %v5711_v60 = vld [vmem:[%s11128_s2 + $0x30] sm:$0xff] }
  0x17   :  { %325 = vmatpush1.msra.mxu0 %v5610_v43  ;;  %396 = vmatpush1.msra.mxu1 %v5615_v44  ;;  %11757 = vst [vmem:[#allocation14_spill] sm:$0xff] %v5699_v58  ;;  %11758 = vst [vmem:[#allocation15_spill] sm:$0xff] %v5706_v59  ;;  %v5718_v61 = vld [vmem:[%s11128_s2 + $0x8] sm:$0xff]  ;;  %v5723_v62 = vld [vmem:[%s11128_s2 + $0x18] sm:$0xff] }
  0x18   :  { %326 = vmatprep.subr.mxu0 %v5622_v45  ;;  %397 = vmatprep.subr.mxu1 %v5627_v46  ;;  %11759 = vst [vmem:[#allocation16_spill] sm:$0xff] %v5711_v60  ;;  %11760 = vst [vmem:[#allocation17_spill] sm:$0xff] %v5718_v61  ;;  %v5730_v63 = vld [vmem:[%s11128_s2] sm:$0xff]  ;;  %v5735_v3 = vld [vmem:[%s11128_s2 + $0x10] sm:$0xff] }
  0x19   :  { %327 = vmatpush1.msra.mxu0 %v5634_v47  ;;  %398 = vmatpush1.msra.mxu1 %v5639_v48  ;;  %11761 = vst [vmem:[#allocation18_spill] sm:$0xff] %v5723_v62  ;;  %11762 = vst [vmem:[#allocation19_spill] sm:$0xff] %v5730_v63 }
  0x1a   :  { %328 = vmatprep.subr.mxu0 %v5646_v49  ;;  %399 = vmatprep.subr.mxu1 %v5651_v50  ;;  %11763 = vst [vmem:[#allocation20_spill] sm:$0xff] %v5735_v3 }
  0x1b   :  { %329 = vmatpush1.msra.mxu0 %v5658_v51  ;;  %400 = vmatpush1.msra.mxu1 %v5663_v52 }
  0x1c   :  { %330 = vmatprep.subr.mxu0 %v5670_v53  ;;  %401 = vmatprep.subr.mxu1 %v5675_v54 }
  0x1d   :  { %331 = vmatpush1.msra.mxu0 %v5682_v55  ;;  %402 = vmatpush1.msra.mxu1 %v5687_v56  ;;  %v5779_v56 = vld [vmem:[%s11129_s5 + $0x1d8] sm:$0xff]  ;;  %v5798_v55 = vld [vmem:[%s11129_s5 + $0x1a8] sm:$0xff] }
  0x1e   :  { %332 = vmatprep.subr.mxu0 %v5694_v57  ;;  %403 = vmatprep.subr.mxu1 %v5699_v58  ;;  %v5744_v58 = vld [vmem:[%s11129_s5 + $0x1e8] sm:$0xff]  ;;  %v5751_v57 = vld [vmem:[%s11130_s0] sm:$0xff]  ;;  %11771 = vst [vmem:[#allocation27_spill] sm:$0xff] %v5779_v56  ;;  %11774 = vst [vmem:[#allocation30_spill] sm:$0xff] %v5798_v55 }
  0x1f   :  { %333 = vmatpush1.msra.mxu0 %v5706_v59  ;;  %404 = vmatpush1.msra.mxu1 %v5711_v60  ;;  %11764 = vst [vmem:[#allocation21_spill] sm:$0xff] %v5744_v58  ;;  %11765 = vst [vmem:[#allocation22_spill] sm:$0xff] %v5751_v57  ;;  %v5298_v60 = vmov 0   ;;  %v5774_v59 = vld [vmem:[%s11129_s5 + $0x1c8] sm:$0xff] }
  0x20   :  { %334 = vmatprep.subr.mxu0 %v5718_v61  ;;  %405 = vmatprep.subr.mxu1 %v5723_v62  ;;  %v5756_v61 = vld [vmem:[%s11129_s5 + $0x1f8] sm:$0xff]  ;;  %v11767_v62 = vmov 0.0   ;;  %11770 = vst [vmem:[#allocation26_spill] sm:$0xff] %v5774_v59 }
  0x21   :  { %335 = vmatpush1.msra.mxu0 %v5730_v63  ;;  %406 = vmatpush1.msra.mxu1 %v5735_v3  ;;  %11766 = vst [vmem:[#allocation23_spill] sm:$0xff] %v5756_v61  ;;  %v5763_v63 = vld [vmem:[%s11129_s5 + $0x1e0] sm:$0xff]  ;;  %v5768_v3 = vld [vmem:[%s11129_s5 + $0x1f0] sm:$0xff] }
  0x22   :  { %369 = vmatmul.mubr.f32.vlgmr.msra.gmra.mxu0 %v11767_v62  ;;  %440 = vmatmul.mubr.f32.vlgmr.msra.gmra.mxu1 %v11767_v62  ;;  %11768 = vst [vmem:[#allocation24_spill] sm:$0xff] %v5763_v63  ;;  %11769 = vst [vmem:[#allocation25_spill] sm:$0xff] %v5768_v3 }
  0x23   :  { %4453 = vset.pattern.permute.xlu0 %v5298_v60  ;;  %474 = vmatprep.subr.mxu0 %v5744_v58  ;;  %v5786_v60 = vld [vmem:[%s11129_s5 + $0x1c0] sm:$0xff]  ;;  %v5791_v58 = vld [vmem:[%s11129_s5 + $0x1d0] sm:$0xff] }
  0x24   :  { %272 = vperm.xlu0 %4453, %v5751_v57   ;;  %545 = vmatprep.subr.mxu1 %v5756_v61  ;;  %11772 = vst [vmem:[#allocation28_spill] sm:$0xff] %v5786_v60  ;;  %11773 = vst [vmem:[#allocation29_spill] sm:$0xff] %v5791_v58  ;;  %v5803_v61 = vld [vmem:[%s11129_s5 + $0x1b8] sm:$0xff] }
  0x25   :  { %475 = vmatpush1.msra.mxu0 %v5763_v63  ;;  %546 = vmatpush1.msra.mxu1 %v5768_v3  ;;  %11775 = vst [vmem:[#allocation31_spill] sm:$0xff] %v5803_v61  ;;  %v5810_v63 = vld [vmem:[%s11129_s5 + $0x1a0] sm:$0xff]  ;;  %v5815_v3 = vld [vmem:[%s11129_s5 + $0x1b0] sm:$0xff] }
  0x26   :  { %476 = vmatprep.subr.mxu0 %v5774_v59  ;;  %547 = vmatprep.subr.mxu1 %v5779_v56  ;;  %11776 = vst [vmem:[#allocation32_spill] sm:$0xff] %v5810_v63  ;;  %11777 = vst [vmem:[#allocation33_spill] sm:$0xff] %v5815_v3  ;;  %v5822_v59 = vld [vmem:[%s11129_s5 + $0x188] sm:$0xff]  ;;  %v5827_v56 = vld [vmem:[%s11129_s5 + $0x198] sm:$0xff] }
  0x27   :  { %477 = vmatpush1.msra.mxu0 %v5786_v60  ;;  %548 = vmatpush1.msra.mxu1 %v5791_v58  ;;  %11778 = vst [vmem:[#allocation34_spill] sm:$0xff] %v5822_v59  ;;  %11779 = vst [vmem:[#allocation35_spill] sm:$0xff] %v5827_v56  ;;  %v5834_v60 = vld [vmem:[%s11129_s5 + $0x180] sm:$0xff]  ;;  %v5839_v58 = vld [vmem:[%s11129_s5 + $0x190] sm:$0xff] }
  0x28   :  { %478 = vmatprep.subr.mxu0 %v5798_v55  ;;  %549 = vmatprep.subr.mxu1 %v5803_v61  ;;  %11780 = vst [vmem:[#allocation36_spill] sm:$0xff] %v5834_v60  ;;  %11781 = vst [vmem:[#allocation37_spill] sm:$0xff] %v5839_v58  ;;  %v5852_v61 = vld [vmem:[%s11129_s5 + $0x168] sm:$0xff]  ;;  %v6371_v55 = vld [vmem:[%s11131_s4 + $0xd0] sm:$0xff] }
  0x29   :  { %479 = vmatpush1.msra.mxu0 %v5810_v63  ;;  %550 = vmatpush1.msra.mxu1 %v5815_v3  ;;  %11782 = vst [vmem:[#allocation38_spill] sm:$0xff] %v5852_v61  ;;  %v5857_v3 = vld [vmem:[%s11129_s5 + $0x178] sm:$0xff]  ;;  %v6354_v63 = vld [vmem:[%s11131_s4 + $0xc8] sm:$0xff]  ;;  %11869 = vst [vmem:[#allocation125_spill] sm:$0xff] %v6371_v55 }
  0x2a   :  { %480 = vmatprep.subr.mxu0 %v5822_v59  ;;  %551 = vmatprep.subr.mxu1 %v5827_v56  ;;  %11783 = vst [vmem:[#allocation39_spill] sm:$0xff] %v5857_v3  ;;  %v6164_v56 = vld [vmem:[%s11131_s4 + $0x1c8] sm:$0xff]  ;;  %v6181_v59 = vld [vmem:[%s11131_s4 + $0x1d0] sm:$0xff]  ;;  %11866 = vst [vmem:[#allocation122_spill] sm:$0xff] %v6354_v63 }
  0x2b   :  { %481 = vmatpush1.msra.mxu0 %v5834_v60  ;;  %552 = vmatpush1.msra.mxu1 %v5839_v58  ;;  %v5864_v58 = vld [vmem:[%s11129_s5 + $0x160] sm:$0xff]  ;;  %v5869_v60 = vld [vmem:[%s11129_s5 + $0x170] sm:$0xff]  ;;  %11834 = vst [vmem:[#allocation90_spill] sm:$0xff] %v6164_v56  ;;  %11837 = vst [vmem:[#allocation93_spill] sm:$0xff] %v6181_v59 }
  0x2c   :  { %538 = vmatprep.mubr.f32.mxu0 %v11767_v62  ;;  %609 = vmatprep.mubr.f32.mxu1 %v11767_v62  ;;  %11784 = vst [vmem:[#allocation40_spill] sm:$0xff] %v5864_v58  ;;  %11785 = vst [vmem:[#allocation41_spill] sm:$0xff] %v5869_v60 }
  0x2d   :  { %482 = vmatprep.subr.mxu0 %v5852_v61  ;;  %553 = vmatprep.subr.mxu1 %v5857_v3  ;;  %v5876_v61 = vld [vmem:[%s11129_s5 + $0x148] sm:$0xff]  ;;  %v5881_v3 = vld [vmem:[%s11129_s5 + $0x158] sm:$0xff] }
  0x2e   :  { %483 = vmatpush1.msra.mxu0 %v5864_v58  ;;  %554 = vmatpush1.msra.mxu1 %v5869_v60  ;;  %11786 = vst [vmem:[#allocation42_spill] sm:$0xff] %v5876_v61  ;;  %11787 = vst [vmem:[#allocation43_spill] sm:$0xff] %v5881_v3  ;;  %v5888_v58 = vld [vmem:[%s11129_s5 + $0x140] sm:$0xff]  ;;  %v5893_v60 = vld [vmem:[%s11129_s5 + $0x150] sm:$0xff] }
  0x2f   :  { %484 = vmatprep.subr.mxu0 %v5876_v61  ;;  %555 = vmatprep.subr.mxu1 %v5881_v3  ;;  %11788 = vst [vmem:[#allocation44_spill] sm:$0xff] %v5888_v58  ;;  %11789 = vst [vmem:[#allocation45_spill] sm:$0xff] %v5893_v60  ;;  %v5900_v61 = vld [vmem:[%s11129_s5 + $0x128] sm:$0xff]  ;;  %v5905_v3 = vld [vmem:[%s11129_s5 + $0x138] sm:$0xff] }
  0x30   :  { %485 = vmatpush1.msra.mxu0 %v5888_v58  ;;  %556 = vmatpush1.msra.mxu1 %v5893_v60  ;;  %11790 = vst [vmem:[#allocation46_spill] sm:$0xff] %v5900_v61  ;;  %11791 = vst [vmem:[#allocation47_spill] sm:$0xff] %v5905_v3  ;;  %v5912_v58 = vld [vmem:[%s11129_s5 + $0x120] sm:$0xff]  ;;  %v5917_v60 = vld [vmem:[%s11129_s5 + $0x130] sm:$0xff] }
  0x31   :  { %486 = vmatprep.subr.mxu0 %v5900_v61  ;;  %557 = vmatprep.subr.mxu1 %v5905_v3  ;;  %11792 = vst [vmem:[#allocation48_spill] sm:$0xff] %v5912_v58  ;;  %11793 = vst [vmem:[#allocation49_spill] sm:$0xff] %v5917_v60  ;;  %v5924_v61 = vld [vmem:[%s11129_s5 + $0x108] sm:$0xff]  ;;  %v5929_v3 = vld [vmem:[%s11129_s5 + $0x118] sm:$0xff] }
  0x32   :  { %487 = vmatpush1.msra.mxu0 %v5912_v58  ;;  %558 = vmatpush1.msra.mxu1 %v5917_v60  ;;  %11794 = vst [vmem:[#allocation50_spill] sm:$0xff] %v5924_v61  ;;  %11795 = vst [vmem:[#allocation51_spill] sm:$0xff] %v5929_v3  ;;  %v5936_v58 = vld [vmem:[%s11129_s5 + $0x100] sm:$0xff]  ;;  %v5941_v60 = vld [vmem:[%s11129_s5 + $0x110] sm:$0xff] }
  0x33   :  { %488 = vmatprep.subr.mxu0 %v5924_v61  ;;  %559 = vmatprep.subr.mxu1 %v5929_v3  ;;  %11796 = vst [vmem:[#allocation52_spill] sm:$0xff] %v5936_v58  ;;  %11797 = vst [vmem:[#allocation53_spill] sm:$0xff] %v5941_v60  ;;  %v5948_v61 = vld [vmem:[%s11129_s5 + $0xe8] sm:$0xff]  ;;  %v5953_v3 = vld [vmem:[%s11129_s5 + $0xf8] sm:$0xff] }
  0x34   :  { %489 = vmatpush1.msra.mxu0 %v5936_v58  ;;  %560 = vmatpush1.msra.mxu1 %v5941_v60  ;;  %11798 = vst [vmem:[#allocation54_spill] sm:$0xff] %v5948_v61  ;;  %11799 = vst [vmem:[#allocation55_spill] sm:$0xff] %v5953_v3  ;;  %v5960_v58 = vld [vmem:[%s11129_s5 + $0xe0] sm:$0xff]  ;;  %v5965_v60 = vld [vmem:[%s11129_s5 + $0xf0] sm:$0xff] }
  0x35   :  { %490 = vmatprep.subr.mxu0 %v5948_v61  ;;  %561 = vmatprep.subr.mxu1 %v5953_v3  ;;  %11800 = vst [vmem:[#allocation56_spill] sm:$0xff] %v5960_v58  ;;  %11801 = vst [vmem:[#allocation57_spill] sm:$0xff] %v5965_v60  ;;  %v5972_v61 = vld [vmem:[%s11129_s5 + $0xc8] sm:$0xff]  ;;  %v5977_v3 = vld [vmem:[%s11129_s5 + $0xd8] sm:$0xff] }
  0x36   :  { %491 = vmatpush1.msra.mxu0 %v5960_v58  ;;  %562 = vmatpush1.msra.mxu1 %v5965_v60  ;;  %11802 = vst [vmem:[#allocation58_spill] sm:$0xff] %v5972_v61  ;;  %11803 = vst [vmem:[#allocation59_spill] sm:$0xff] %v5977_v3  ;;  %v5984_v58 = vld [vmem:[%s11129_s5 + $0xc0] sm:$0xff]  ;;  %v5989_v60 = vld [vmem:[%s11129_s5 + $0xd0] sm:$0xff] }
  0x37   :  { %492 = vmatprep.subr.mxu0 %v5972_v61  ;;  %563 = vmatprep.subr.mxu1 %v5977_v3  ;;  %11804 = vst [vmem:[#allocation60_spill] sm:$0xff] %v5984_v58  ;;  %11805 = vst [vmem:[#allocation61_spill] sm:$0xff] %v5989_v60  ;;  %v5996_v61 = vld [vmem:[%s11129_s5 + $0xa8] sm:$0xff]  ;;  %v6001_v3 = vld [vmem:[%s11129_s5 + $0xb8] sm:$0xff] }
  0x38   :  { %493 = vmatpush1.msra.mxu0 %v5984_v58  ;;  %564 = vmatpush1.msra.mxu1 %v5989_v60  ;;  %11806 = vst [vmem:[#allocation62_spill] sm:$0xff] %v5996_v61  ;;  %11807 = vst [vmem:[#allocation63_spill] sm:$0xff] %v6001_v3  ;;  %v6008_v58 = vld [vmem:[%s11129_s5 + $0xa0] sm:$0xff]  ;;  %v6013_v60 = vld [vmem:[%s11129_s5 + $0xb0] sm:$0xff] }
  0x39   :  { %494 = vmatprep.subr.mxu0 %v5996_v61  ;;  %565 = vmatprep.subr.mxu1 %v6001_v3  ;;  %11808 = vst [vmem:[#allocation64_spill] sm:$0xff] %v6008_v58  ;;  %11809 = vst [vmem:[#allocation65_spill] sm:$0xff] %v6013_v60  ;;  %v6020_v61 = vld [vmem:[%s11129_s5 + $0x88] sm:$0xff]  ;;  %v6025_v3 = vld [vmem:[%s11129_s5 + $0x98] sm:$0xff] }
  0x3a   :  { %495 = vmatpush1.msra.mxu0 %v6008_v58  ;;  %566 = vmatpush1.msra.mxu1 %v6013_v60  ;;  %11810 = vst [vmem:[#allocation66_spill] sm:$0xff] %v6020_v61  ;;  %11811 = vst [vmem:[#allocation67_spill] sm:$0xff] %v6025_v3  ;;  %v6032_v58 = vld [vmem:[%s11129_s5 + $0x80] sm:$0xff]  ;;  %v6037_v60 = vld [vmem:[%s11129_s5 + $0x90] sm:$0xff] }
  0x3b   :  { %496 = vmatprep.subr.mxu0 %v6020_v61  ;;  %567 = vmatprep.subr.mxu1 %v6025_v3  ;;  %11812 = vst [vmem:[#allocation68_spill] sm:$0xff] %v6032_v58  ;;  %11813 = vst [vmem:[#allocation69_spill] sm:$0xff] %v6037_v60  ;;  %v6044_v61 = vld [vmem:[%s11129_s5 + $0x68] sm:$0xff]  ;;  %v6049_v3 = vld [vmem:[%s11129_s5 + $0x78] sm:$0xff] }
  0x3c   :  { %497 = vmatpush1.msra.mxu0 %v6032_v58  ;;  %568 = vmatpush1.msra.mxu1 %v6037_v60  ;;  %11814 = vst [vmem:[#allocation70_spill] sm:$0xff] %v6044_v61  ;;  %11815 = vst [vmem:[#allocation71_spill] sm:$0xff] %v6049_v3  ;;  %v6056_v58 = vld [vmem:[%s11129_s5 + $0x60] sm:$0xff]  ;;  %v6061_v60 = vld [vmem:[%s11129_s5 + $0x70] sm:$0xff] }
  0x3d   :  { %498 = vmatprep.subr.mxu0 %v6044_v61  ;;  %569 = vmatprep.subr.mxu1 %v6049_v3  ;;  %11816 = vst [vmem:[#allocation72_spill] sm:$0xff] %v6056_v58  ;;  %11817 = vst [vmem:[#allocation73_spill] sm:$0xff] %v6061_v60  ;;  %v6068_v61 = vld [vmem:[%s11129_s5 + $0x48] sm:$0xff]  ;;  %v6073_v3 = vld [vmem:[%s11129_s5 + $0x58] sm:$0xff] }
  0x3e   :  { %499 = vmatpush1.msra.mxu0 %v6056_v58  ;;  %570 = vmatpush1.msra.mxu1 %v6061_v60  ;;  %11818 = vst [vmem:[#allocation74_spill] sm:$0xff] %v6068_v61  ;;  %11819 = vst [vmem:[#allocation75_spill] sm:$0xff] %v6073_v3  ;;  %v6080_v58 = vld [vmem:[%s11129_s5 + $0x40] sm:$0xff]  ;;  %v6085_v60 = vld [vmem:[%s11129_s5 + $0x50] sm:$0xff] }
  0x3f   :  { %500 = vmatprep.subr.mxu0 %v6068_v61  ;;  %571 = vmatprep.subr.mxu1 %v6073_v3  ;;  %11820 = vst [vmem:[#allocation76_spill] sm:$0xff] %v6080_v58  ;;  %11821 = vst [vmem:[#allocation77_spill] sm:$0xff] %v6085_v60  ;;  %v6092_v61 = vld [vmem:[%s11129_s5 + $0x28] sm:$0xff]  ;;  %v6097_v3 = vld [vmem:[%s11129_s5 + $0x38] sm:$0xff] }
  0x40   :  { %501 = vmatpush1.msra.mxu0 %v6080_v58  ;;  %572 = vmatpush1.msra.mxu1 %v6085_v60  ;;  %11822 = vst [vmem:[#allocation78_spill] sm:$0xff] %v6092_v61  ;;  %11823 = vst [vmem:[#allocation79_spill] sm:$0xff] %v6097_v3  ;;  %v6104_v58 = vld [vmem:[%s11129_s5 + $0x20] sm:$0xff]  ;;  %v6109_v60 = vld [vmem:[%s11129_s5 + $0x30] sm:$0xff] }
  0x41   :  { %502 = vmatprep.subr.mxu0 %v6092_v61  ;;  %573 = vmatprep.subr.mxu1 %v6097_v3  ;;  %11824 = vst [vmem:[#allocation80_spill] sm:$0xff] %v6104_v58  ;;  %11825 = vst [vmem:[#allocation81_spill] sm:$0xff] %v6109_v60  ;;  %v6116_v61 = vld [vmem:[%s11129_s5 + $0x8] sm:$0xff]  ;;  %v6121_v3 = vld [vmem:[%s11129_s5 + $0x18] sm:$0xff] }
  0x42   :  { %503 = vmatpush1.msra.mxu0 %v6104_v58  ;;  %574 = vmatpush1.msra.mxu1 %v6109_v60  ;;  %11826 = vst [vmem:[#allocation82_spill] sm:$0xff] %v6116_v61  ;;  %11827 = vst [vmem:[#allocation83_spill] sm:$0xff] %v6121_v3  ;;  %v6128_v58 = vld [vmem:[%s11129_s5] sm:$0xff]  ;;  %v6133_v60 = vld [vmem:[%s11129_s5 + $0x10] sm:$0xff] }
  0x43   :  { %504 = vmatprep.subr.mxu0 %v6116_v61  ;;  %575 = vmatprep.subr.mxu1 %v6121_v3  ;;  %11828 = vst [vmem:[#allocation84_spill] sm:$0xff] %v6128_v58  ;;  %11829 = vst [vmem:[#allocation85_spill] sm:$0xff] %v6133_v60  ;;  %v6140_v61 = vld [vmem:[%s11131_s4 + $0x1e8] sm:$0xff]  ;;  %v6145_v3 = vld [vmem:[%s11131_s4 + $0x1f8] sm:$0xff] }
  0x44   :  { %505 = vmatpush1.msra.mxu0 %v6128_v58  ;;  %576 = vmatpush1.msra.mxu1 %v6133_v60  ;;  %11830 = vst [vmem:[#allocation86_spill] sm:$0xff] %v6140_v61  ;;  %11831 = vst [vmem:[#allocation87_spill] sm:$0xff] %v6145_v3  ;;  %v6152_v58 = vld [vmem:[%s11131_s4 + $0x1e0] sm:$0xff]  ;;  %v6157_v60 = vld [vmem:[%s11131_s4 + $0x1f0] sm:$0xff] }
  0x45   :  { %539 = vmatmul.mubr.f32.vlgmr.msra.gmra.mxu0 %v11767_v62  ;;  %616 = vmatprep.subr.mxu0 %v6140_v61  ;;  %11832 = vst [vmem:[#allocation88_spill] sm:$0xff] %v6152_v58  ;;  %11833 = vst [vmem:[#allocation89_spill] sm:$0xff] %v6157_v60  ;;  %v6169_v61 = vld [vmem:[%s11131_s4 + $0x1d8] sm:$0xff] }
  0x46   :  { %687 = vmatprep.subr.mxu1 %v6145_v3  ;;  %610 = vmatmul.mubr.f32.vlgmr.msra.gmra.mxu1 %v11767_v62  ;;  %11835 = vst [vmem:[#allocation91_spill] sm:$0xff] %v6169_v61  ;;  %v6176_v3 = vld [vmem:[%s11131_s4 + $0x1c0] sm:$0xff] }
  0x47   :  { %617 = vmatpush1.msra.mxu0 %v6152_v58  ;;  %688 = vmatpush1.msra.mxu1 %v6157_v60  ;;  %11836 = vst [vmem:[#allocation92_spill] sm:$0xff] %v6176_v3  ;;  %v6188_v58 = vld [vmem:[%s11131_s4 + $0x1a8] sm:$0xff]  ;;  %v6193_v60 = vld [vmem:[%s11131_s4 + $0x1b8] sm:$0xff] }
  0x48   :  { %618 = vmatprep.subr.mxu0 %v6164_v56  ;;  %689 = vmatprep.subr.mxu1 %v6169_v61  ;;  %11838 = vst [vmem:[#allocation94_spill] sm:$0xff] %v6188_v58  ;;  %11839 = vst [vmem:[#allocation95_spill] sm:$0xff] %v6193_v60  ;;  %v6200_v56 = vld [vmem:[%s11131_s4 + $0x1a0] sm:$0xff]  ;;  %v6205_v61 = vld [vmem:[%s11131_s4 + $0x1b0] sm:$0xff] }
  0x49   :  { %619 = vmatpush1.msra.mxu0 %v6176_v3  ;;  %690 = vmatpush1.msra.mxu1 %v6181_v59  ;;  %11840 = vst [vmem:[#allocation96_spill] sm:$0xff] %v6200_v56  ;;  %11841 = vst [vmem:[#allocation97_spill] sm:$0xff] %v6205_v61  ;;  %v6212_v3 = vld [vmem:[%s11131_s4 + $0x188] sm:$0xff]  ;;  %v6217_v59 = vld [vmem:[%s11131_s4 + $0x198] sm:$0xff] }
  0x4a   :  { %620 = vmatprep.subr.mxu0 %v6188_v58  ;;  %691 = vmatprep.subr.mxu1 %v6193_v60  ;;  %11842 = vst [vmem:[#allocation98_spill] sm:$0xff] %v6212_v3  ;;  %11843 = vst [vmem:[#allocation99_spill] sm:$0xff] %v6217_v59  ;;  %v6224_v58 = vld [vmem:[%s11131_s4 + $0x180] sm:$0xff]  ;;  %v6229_v60 = vld [vmem:[%s11131_s4 + $0x190] sm:$0xff] }
  0x4b   :  { %621 = vmatpush1.msra.mxu0 %v6200_v56  ;;  %692 = vmatpush1.msra.mxu1 %v6205_v61  ;;  %11844 = vst [vmem:[#allocation100_spill] sm:$0xff] %v6224_v58  ;;  %11845 = vst [vmem:[#allocation101_spill] sm:$0xff] %v6229_v60  ;;  %v6236_v56 = vld [vmem:[%s11131_s4 + $0x168] sm:$0xff]  ;;  %v6241_v61 = vld [vmem:[%s11131_s4 + $0x178] sm:$0xff] }
  0x4c   :  { %622 = vmatprep.subr.mxu0 %v6212_v3  ;;  %693 = vmatprep.subr.mxu1 %v6217_v59  ;;  %11846 = vst [vmem:[#allocation102_spill] sm:$0xff] %v6236_v56  ;;  %11847 = vst [vmem:[#allocation103_spill] sm:$0xff] %v6241_v61  ;;  %v6248_v3 = vld [vmem:[%s11131_s4 + $0x160] sm:$0xff]  ;;  %v6253_v59 = vld [vmem:[%s11131_s4 + $0x170] sm:$0xff] }
  0x4d   :  { %623 = vmatpush1.msra.mxu0 %v6224_v58  ;;  %694 = vmatpush1.msra.mxu1 %v6229_v60  ;;  %11848 = vst [vmem:[#allocation104_spill] sm:$0xff] %v6248_v3  ;;  %11849 = vst [vmem:[#allocation105_spill] sm:$0xff] %v6253_v59  ;;  %v6260_v58 = vld [vmem:[%s11131_s4 + $0x148] sm:$0xff]  ;;  %v6265_v60 = vld [vmem:[%s11131_s4 + $0x158] sm:$0xff] }
  0x4e   :  { %624 = vmatprep.subr.mxu0 %v6236_v56  ;;  %695 = vmatprep.subr.mxu1 %v6241_v61  ;;  %11850 = vst [vmem:[#allocation106_spill] sm:$0xff] %v6260_v58  ;;  %11851 = vst [vmem:[#allocation107_spill] sm:$0xff] %v6265_v60  ;;  %v6272_v56 = vld [vmem:[%s11131_s4 + $0x140] sm:$0xff]  ;;  %v6277_v61 = vld [vmem:[%s11131_s4 + $0x150] sm:$0xff] }
  0x4f   :  { %625 = vmatpush1.msra.mxu0 %v6248_v3  ;;  %696 = vmatpush1.msra.mxu1 %v6253_v59  ;;  %11852 = vst [vmem:[#allocation108_spill] sm:$0xff] %v6272_v56  ;;  %11853 = vst [vmem:[#allocation109_spill] sm:$0xff] %v6277_v61  ;;  %v6284_v3 = vld [vmem:[%s11131_s4 + $0x128] sm:$0xff]  ;;  %v6289_v59 = vld [vmem:[%s11131_s4 + $0x138] sm:$0xff] }
  0x50   :  { %626 = vmatprep.subr.mxu0 %v6260_v58  ;;  %697 = vmatprep.subr.mxu1 %v6265_v60  ;;  %11854 = vst [vmem:[#allocation110_spill] sm:$0xff] %v6284_v3  ;;  %11855 = vst [vmem:[#allocation111_spill] sm:$0xff] %v6289_v59  ;;  %v6296_v58 = vld [vmem:[%s11131_s4 + $0x120] sm:$0xff]  ;;  %v6301_v60 = vld [vmem:[%s11131_s4 + $0x130] sm:$0xff] }
  0x51   :  { %627 = vmatpush1.msra.mxu0 %v6272_v56  ;;  %698 = vmatpush1.msra.mxu1 %v6277_v61  ;;  %11856 = vst [vmem:[#allocation112_spill] sm:$0xff] %v6296_v58  ;;  %11857 = vst [vmem:[#allocation113_spill] sm:$0xff] %v6301_v60  ;;  %v6308_v56 = vld [vmem:[%s11131_s4 + $0x108] sm:$0xff]  ;;  %v6313_v61 = vld [vmem:[%s11131_s4 + $0x118] sm:$0xff] }
  0x52   :  { %628 = vmatprep.subr.mxu0 %v6284_v3  ;;  %699 = vmatprep.subr.mxu1 %v6289_v59  ;;  %11858 = vst [vmem:[#allocation114_spill] sm:$0xff] %v6308_v56  ;;  %11859 = vst [vmem:[#allocation115_spill] sm:$0xff] %v6313_v61  ;;  %v6320_v3 = vld [vmem:[%s11131_s4 + $0x100] sm:$0xff]  ;;  %v6325_v59 = vld [vmem:[%s11131_s4 + $0x110] sm:$0xff] }
  0x53   :  { %629 = vmatpush1.msra.mxu0 %v6296_v58  ;;  %700 = vmatpush1.msra.mxu1 %v6301_v60  ;;  %11860 = vst [vmem:[#allocation116_spill] sm:$0xff] %v6320_v3  ;;  %11861 = vst [vmem:[#allocation117_spill] sm:$0xff] %v6325_v59  ;;  %v6332_v58 = vld [vmem:[%s11131_s4 + $0xe8] sm:$0xff]  ;;  %v6337_v60 = vld [vmem:[%s11131_s4 + $0xf8] sm:$0xff] }
  0x54   :  { %630 = vmatprep.subr.mxu0 %v6308_v56  ;;  %701 = vmatprep.subr.mxu1 %v6313_v61  ;;  %11862 = vst [vmem:[#allocation118_spill] sm:$0xff] %v6332_v58  ;;  %11863 = vst [vmem:[#allocation119_spill] sm:$0xff] %v6337_v60  ;;  %v6344_v56 = vld [vmem:[%s11131_s4 + $0xe0] sm:$0xff]  ;;  %v6349_v61 = vld [vmem:[%s11131_s4 + $0xf0] sm:$0xff] }
  0x55   :  { %631 = vmatpush1.msra.mxu0 %v6320_v3  ;;  %702 = vmatpush1.msra.mxu1 %v6325_v59  ;;  %11864 = vst [vmem:[#allocation120_spill] sm:$0xff] %v6344_v56  ;;  %11865 = vst [vmem:[#allocation121_spill] sm:$0xff] %v6349_v61  ;;  %v6361_v59 = vld [vmem:[%s11131_s4 + $0xd8] sm:$0xff]  ;;  %v6366_v3 = vld [vmem:[%s11131_s4 + $0xc0] sm:$0xff] }
  0x56   :  { %632 = vmatprep.subr.mxu0 %v6332_v58  ;;  %703 = vmatprep.subr.mxu1 %v6337_v60  ;;  %11867 = vst [vmem:[#allocation123_spill] sm:$0xff] %v6361_v59  ;;  %11868 = vst [vmem:[#allocation124_spill] sm:$0xff] %v6366_v3  ;;  %v6378_v60 = vld [vmem:[%s11131_s4 + $0xa8] sm:$0xff]  ;;  %v6383_v58 = vld [vmem:[%s11131_s4 + $0xb8] sm:$0xff] }
  0x57   :  { %633 = vmatpush1.msra.mxu0 %v6344_v56  ;;  %704 = vmatpush1.msra.mxu1 %v6349_v61  ;;  %11870 = vst [vmem:[#allocation126_spill] sm:$0xff] %v6378_v60  ;;  %11871 = vst [vmem:[#allocation127_spill] sm:$0xff] %v6383_v58  ;;  %v6390_v56 = vld [vmem:[%s11131_s4 + $0xa0] sm:$0xff]  ;;  %v6395_v61 = vld [vmem:[%s11131_s4 + $0xb0] sm:$0xff] }
  0x58   :  { %634 = vmatprep.subr.mxu0 %v6354_v63  ;;  %705 = vmatprep.subr.mxu1 %v6361_v59  ;;  %11872 = vst [vmem:[#allocation128_spill] sm:$0xff] %v6390_v56  ;;  %11873 = vst [vmem:[#allocation129_spill] sm:$0xff] %v6395_v61  ;;  %v6402_v63 = vld [vmem:[%s11131_s4 + $0x88] sm:$0xff]  ;;  %v6407_v59 = vld [vmem:[%s11131_s4 + $0x98] sm:$0xff] }
  0x59   :  { %635 = vmatpush1.msra.mxu0 %v6366_v3  ;;  %706 = vmatpush1.msra.mxu1 %v6371_v55  ;;  %11874 = vst [vmem:[#allocation130_spill] sm:$0xff] %v6402_v63  ;;  %11875 = vst [vmem:[#allocation131_spill] sm:$0xff] %v6407_v59  ;;  %v6414_v3 = vld [vmem:[%s11131_s4 + $0x80] sm:$0xff]  ;;  %v6419_v55 = vld [vmem:[%s11131_s4 + $0x90] sm:$0xff] }
  0x5a   :  { %636 = vmatprep.subr.mxu0 %v6378_v60  ;;  %707 = vmatprep.subr.mxu1 %v6383_v58  ;;  %11876 = vst [vmem:[#allocation132_spill] sm:$0xff] %v6414_v3  ;;  %11877 = vst [vmem:[#allocation133_spill] sm:$0xff] %v6419_v55  ;;  %v6426_v60 = vld [vmem:[%s11131_s4 + $0x68] sm:$0xff]  ;;  %v6431_v58 = vld [vmem:[%s11131_s4 + $0x78] sm:$0xff] }
  0x5b   :  { %637 = vmatpush1.msra.mxu0 %v6390_v56  ;;  %708 = vmatpush1.msra.mxu1 %v6395_v61  ;;  %11878 = vst [vmem:[#allocation134_spill] sm:$0xff] %v6426_v60  ;;  %11879 = vst [vmem:[#allocation135_spill] sm:$0xff] %v6431_v58  ;;  %v6438_v56 = vld [vmem:[%s11131_s4 + $0x60] sm:$0xff]  ;;  %v6443_v61 = vld [vmem:[%s11131_s4 + $0x70] sm:$0xff] }
  0x5c   :  { %638 = vmatprep.subr.mxu0 %v6402_v63  ;;  %709 = vmatprep.subr.mxu1 %v6407_v59  ;;  %11880 = vst [vmem:[#allocation136_spill] sm:$0xff] %v6438_v56  ;;  %11881 = vst [vmem:[#allocation137_spill] sm:$0xff] %v6443_v61  ;;  %v6450_v63 = vld [vmem:[%s11131_s4 + $0x48] sm:$0xff]  ;;  %v6455_v59 = vld [vmem:[%s11131_s4 + $0x58] sm:$0xff] }
  0x5d   :  { %639 = vmatpush1.msra.mxu0 %v6414_v3  ;;  %710 = vmatpush1.msra.mxu1 %v6419_v55  ;;  %11882 = vst [vmem:[#allocation138_spill] sm:$0xff] %v6450_v63  ;;  %11883 = vst [vmem:[#allocation139_spill] sm:$0xff] %v6455_v59  ;;  %v6462_v3 = vld [vmem:[%s11131_s4 + $0x40] sm:$0xff]  ;;  %v6467_v55 = vld [vmem:[%s11131_s4 + $0x50] sm:$0xff] }
  0x5e   :  { %640 = vmatprep.subr.mxu0 %v6426_v60  ;;  %711 = vmatprep.subr.mxu1 %v6431_v58  ;;  %11884 = vst [vmem:[#allocation140_spill] sm:$0xff] %v6462_v3  ;;  %11885 = vst [vmem:[#allocation141_spill] sm:$0xff] %v6467_v55  ;;  %v6474_v60 = vld [vmem:[%s11131_s4 + $0x28] sm:$0xff]  ;;  %v6479_v58 = vld [vmem:[%s11131_s4 + $0x38] sm:$0xff] }
  0x5f   :  { %641 = vmatpush1.msra.mxu0 %v6438_v56  ;;  %712 = vmatpush1.msra.mxu1 %v6443_v61  ;;  %11886 = vst [vmem:[#allocation142_spill] sm:$0xff] %v6474_v60  ;;  %11887 = vst [vmem:[#allocation143_spill] sm:$0xff] %v6479_v58  ;;  %v6486_v56 = vld [vmem:[%s11131_s4 + $0x20] sm:$0xff]  ;;  %v6491_v61 = vld [vmem:[%s11131_s4 + $0x30] sm:$0xff] }
  0x60   :  { %642 = vmatprep.subr.mxu0 %v6450_v63  ;;  %713 = vmatprep.subr.mxu1 %v6455_v59  ;;  %11888 = vst [vmem:[#allocation144_spill] sm:$0xff] %v6486_v56  ;;  %11889 = vst [vmem:[#allocation145_spill] sm:$0xff] %v6491_v61  ;;  %v6498_v63 = vld [vmem:[%s11131_s4 + $0x8] sm:$0xff]  ;;  %v6503_v59 = vld [vmem:[%s11131_s4 + $0x18] sm:$0xff] }
  0x61   :  { %643 = vmatpush1.msra.mxu0 %v6462_v3  ;;  %714 = vmatpush1.msra.mxu1 %v6467_v55  ;;  %11890 = vst [vmem:[#allocation146_spill] sm:$0xff] %v6498_v63  ;;  %11891 = vst [vmem:[#allocation147_spill] sm:$0xff] %v6503_v59  ;;  %v6510_v3 = vld [vmem:[%s11131_s4] sm:$0xff]  ;;  %v6515_v55 = vld [vmem:[%s11131_s4 + $0x10] sm:$0xff] }
  0x62   :  { %644 = vmatprep.subr.mxu0 %v6474_v60  ;;  %715 = vmatprep.subr.mxu1 %v6479_v58  ;;  %11892 = vst [vmem:[#allocation148_spill] sm:$0xff] %v6510_v3  ;;  %11893 = vst [vmem:[#allocation149_spill] sm:$0xff] %v6515_v55  ;;  %v5299_v58 = vmov 1  }
  0x63   :  { %645 = vmatpush1.msra.mxu0 %v6486_v56  ;;  %716 = vmatpush1.msra.mxu1 %v6491_v61  ;;  %v227_v61 = vlaneseq }
  0x64   :  { %646 = vmatprep.subr.mxu0 %v6498_v63  ;;  %717 = vmatprep.subr.mxu1 %v6503_v59 }
  0x65   :  { %647 = vmatpush1.msra.mxu0 %v6510_v3  ;;  %718 = vmatpush1.msra.mxu1 %v6515_v55  ;;  %v228_v63 = vshrl.u32 %v227_v61, 7  ;;  %v32_v55 = vld [vmem:[%s11132_s1] sm:$0xf] }
  0x66   :  { %680 = vmatprep.mubr.f32.mxu0 %v11767_v62  ;;  %751 = vmatprep.mubr.f32.mxu1 %v11767_v62 }
  0x67   :  { %798 = vmatprep.subr.mxu0 %v5360_v0  ;;  %869 = vmatprep.subr.mxu1 %v5365_v1  ;;  %v6528_v56 = vsub.s32 0, %v228_v63  ;;  %v6533_v3 = vsub.s32 1, %v228_v63  ;;  %v225_v1 = vld [vmem:[%s11133_s3] sm:$0xf]  ;;  %v6552_v54 = vsub.s32 3, %v228_v63 }
  0x68   :  { %4454 = vset.pattern.permute.xlu0 %v5299_v58 }
  0x69   :  { %787 = vperm.xlu0 %4454, %v5751_v57   ;;  %11894 = vst [vmem:[#allocation150_spill] sm:$0xff] %v6528_v56  ;;  %11895 = vst [vmem:[#allocation151_spill] sm:$0xff] %v6533_v3  ;;  %v6536_v59 = vrot.slane %v32_v55, %v6528_v56  ;;  %v6542_v58 = vrot.slane %v32_v55, %v6533_v3  ;;  %v6545_v61 = vrot.slane %v225_v1, %v6528_v56 }
  0x6a   :  { %v6549_v57 = vrot.slane %v225_v1, %v6533_v3  ;;  %11900 = vst [vmem:[#allocation156_spill] sm:$0xff] %v6552_v54  ;;  %v6557_v50 = vrot.slane %v32_v55, %v6552_v54  ;;  %v6559_v56 = vsub.s32 2, %v228_v63  ;;  %v6562_v3 = vrot.slane %v225_v1, %v6552_v54 }
  0x6b   :  { %11896 = vst [vmem:[#allocation152_spill] sm:$0xff] %v6536_v59  ;;  %11897 = vst [vmem:[#allocation153_spill] sm:$0xff] %v6542_v58 }
  0x6c   :  { %11898 = vst [vmem:[#allocation154_spill] sm:$0xff] %v6545_v61  ;;  %11899 = vst [vmem:[#allocation155_spill] sm:$0xff] %v6549_v57 }
  0x6d   :  { %11901 = vst [vmem:[#allocation157_spill] sm:$0xff] %v6557_v50  ;;  %11902 = vst [vmem:[#allocation158_spill] sm:$0xff] %v6559_v56 }
  0x6e   :  { %11903 = vst [vmem:[#allocation159_spill] sm:$0xff] %v6562_v3 }
  0x9f   :  { %v273_v0 = vpop.permute.xlu0 %272 }
  0xa0   :  { %v296_v60 = vmul.f32 %v6536_v59, %v273_v0  ;;  %v297_v62 = vmul.f32 %v6542_v58, %v273_v0  ;;  %v299_v58 = vmul.f32 %v6557_v50, %v273_v0 }
  0xa2   :  { %v300_v53 = vadd.f32 %v296_v60, %v6545_v61  ;;  %v301_v52 = vadd.f32 %v297_v62, %v6549_v57  ;;  %v6566_v62 = vrot.slane %v32_v55, %v6559_v56  ;;  %v303_v57 = vadd.f32 %v299_v58, %v6562_v3 }
  0xe2   :  { %v370_v51 = vpop.f32.mrf.mxu0  ;;  %v441_v46 = vpop.f32.mrf.mxu1 }
  0xe3   :  { %v446_v49 = vadd.f32 %v370_v51, %v300_v53  ;;  %v6570_v53 = vrot.slane %v225_v1, %v6559_v56 }
  0xe4   :  { %v372_v48 = vpop.f32.mrf.mxu0  ;;  %v443_v51 = vpop.f32.mrf.mxu1 }
  0xe5   :  { %v4342_v59 = vmul.f32 -1.442695, %v446_v49  ;;  %v447_v47 = vadd.f32 %v372_v48, %v301_v52  ;;  %v298_v48 = vmul.f32 %v6566_v62, %v273_v0  ;;  %v449_v49 = vadd.f32 %v443_v51, %v303_v57 }
  0xe7   :  { %4462 = vpow2.f32 %v4342_v59  ;;  %v4343_v60 = vmul.f32 -1.442695, %v447_v47  ;;  %v302_v52 = vadd.f32 %v298_v48, %v6570_v53  ;;  %v4344_v63 = vmul.f32 -1.442695, %v449_v49  ;;  %v11951_v48 = vld [vmem:[#allocation49_spill] sm:$0xff]  ;;  %v11952_v49 = vld [vmem:[#allocation50_spill] sm:$0xff] }
  0xe9   :  { %4464 = vpow2.f32 %v4343_v60  ;;  %v448_v59 = vadd.f32 %v441_v46, %v302_v52  ;;  %v11953_v52 = vld [vmem:[#allocation51_spill] sm:$0xff] }
  0xea   :  { %4466 = vpow2.f32 %v4344_v63  ;;  %v11954_v63 = vld [vmem:[#allocation52_spill] sm:$0xff] }
  0xf4   :  { %v4463_v50 = vpop.eup %4462 }
  0xf5   :  { %v453_v61 = vadd.f32 1.0, %v4463_v50 }
  0xf6   :  { %v4465_v47 = vpop.eup %4464 }
  0xf7   :  { %4468 = vrcp.f32 %v453_v61  ;;  %v459_v55 = vadd.f32 1.0, %v4465_v47  ;;  %v4467_v58 = vpop.eup %4466  ;;  %v11950_v61 = vld [vmem:[#allocation48_spill] sm:$0xff]  ;;  %v11956_v47 = vld [vmem:[#allocation54_spill] sm:$0xff] }
  0xf8   :  { %4470 = vtanh.f32 %v448_v59  ;;  %v466_v56 = vadd.f32 1.0, %v4467_v58  ;;  %v11955_v59 = vld [vmem:[#allocation53_spill] sm:$0xff]  ;;  %v11958_v58 = vld [vmem:[#allocation56_spill] sm:$0xff] }
  0xf9   :  { %4472 = vrcp.f32 %v459_v55  ;;  %v11957_v55 = vld [vmem:[#allocation55_spill] sm:$0xff] }
  0xfa   :  { %4474 = vrcp.f32 %v466_v56  ;;  %v11949_v56 = vld [vmem:[#allocation47_spill] sm:$0xff] }
 0x104   :  { %v4469_v60 = vpop.eup %4468 }
 0x105   :  { %v4471_v3 = vpop.eup %4470 }
 0x106   :  { %v4473_v1 = vpop.eup %4472  ;;  %v470_v0 = vmul.f32 %v4471_v3, %v4469_v60  ;;  %v11905_v3 = vld [vmem:[#allocation3_spill] sm:$0xff]  ;;  %v11959_v60 = vld [vmem:[#allocation57_spill] sm:$0xff] }
 0x107   :  { %v469_v54 = vmul.f32 0.0, %v4473_v1  ;;  %v4475_v46 = vpop.eup %4474  ;;  %v11960_v1 = vld [vmem:[#allocation58_spill] sm:$0xff] }
 0x109   :  { %v6574_v57 = vadd.f32 %v470_v0, %v469_v54  ;;  %v11948_v54 = vld [vmem:[#allocation46_spill] sm:$0xff]  ;;  %v11961_v0 = vld [vmem:[#allocation59_spill] sm:$0xff] }
 0x10b   :  { %4476 = vtanh.f32 %v6574_v57 }
 0x118   :  { %v4477_v50 = vpop.eup %4476 }
 0x119   :  { %v6577_v51 = vmul.f32 %v4477_v50, %v4475_v46  ;;  %v11962_v46 = vld [vmem:[#allocation60_spill] sm:$0xff]  ;;  %v11963_v50 = vld [vmem:[#allocation61_spill] sm:$0xff] }
 0x11b   :  { %681 = vmatmul.mubr.f32.vlgmr.msra.gmra.mxu0 %v6577_v51  ;;  %752 = vmatmul.mubr.f32.vlgmr.msra.gmra.mxu1 %v6577_v51 }
 0x11c   :  { %799 = vmatpush1.msra.mxu0 %v5370_v2  ;;  %870 = vmatpush1.msra.mxu1 %v5379_v4  ;;  %v11904_v2 = vld [vmem:[#allocation2_spill] sm:$0xff]  ;;  %v11906_v4 = vld [vmem:[#allocation4_spill] sm:$0xff] }
 0x11d   :  { %800 = vmatprep.subr.mxu0 %v5384_v5  ;;  %871 = vmatprep.subr.mxu1 %v5389_v6  ;;  %v11907_v5 = vld [vmem:[#allocation5_spill] sm:$0xff]  ;;  %v11908_v6 = vld [vmem:[#allocation6_spill] sm:$0xff] }
 0x11e   :  { %801 = vmatpush1.msra.mxu0 %v5396_v7  ;;  %872 = vmatpush1.msra.mxu1 %v5401_v8  ;;  %v11909_v7 = vld [vmem:[#allocation7_spill] sm:$0xff]  ;;  %v11910_v8 = vld [vmem:[#allocation8_spill] sm:$0xff] }
 0x11f   :  { %802 = vmatprep.subr.mxu0 %v5406_v9  ;;  %873 = vmatprep.subr.mxu1 %v5413_v10  ;;  %v11911_v9 = vld [vmem:[#allocation9_spill] sm:$0xff]  ;;  %v11912_v10 = vld [vmem:[#allocation10_spill] sm:$0xff] }
 0x120   :  { %803 = vmatpush1.msra.mxu0 %v5418_v11  ;;  %874 = vmatpush1.msra.mxu1 %v5423_v12  ;;  %v11913_v11 = vld [vmem:[#allocation11_spill] sm:$0xff]  ;;  %v11914_v12 = vld [vmem:[#allocation12_spill] sm:$0xff] }
 0x121   :  { %804 = vmatprep.subr.mxu0 %v5430_v13  ;;  %875 = vmatprep.subr.mxu1 %v5435_v14  ;;  %v11915_v13 = vld [vmem:[#allocation13_spill] sm:$0xff]  ;;  %v11916_v14 = vld [vmem:[#allocation14_spill] sm:$0xff] }
 0x122   :  { %805 = vmatpush1.msra.mxu0 %v5442_v15  ;;  %876 = vmatpush1.msra.mxu1 %v5447_v16  ;;  %v11917_v15 = vld [vmem:[#allocation15_spill] sm:$0xff]  ;;  %v11918_v16 = vld [vmem:[#allocation16_spill] sm:$0xff] }
 0x123   :  { %806 = vmatprep.subr.mxu0 %v5454_v17  ;;  %877 = vmatprep.subr.mxu1 %v5459_v18  ;;  %v11919_v17 = vld [vmem:[#allocation17_spill] sm:$0xff]  ;;  %v11920_v18 = vld [vmem:[#allocation18_spill] sm:$0xff] }
 0x124   :  { %807 = vmatpush1.msra.mxu0 %v5466_v19  ;;  %878 = vmatpush1.msra.mxu1 %v5471_v20  ;;  %v11921_v19 = vld [vmem:[#allocation19_spill] sm:$0xff]  ;;  %v11922_v20 = vmov 0.0  }
 0x125   :  { %808 = vmatprep.subr.mxu0 %v5478_v21  ;;  %879 = vmatprep.subr.mxu1 %v5483_v22  ;;  %v11923_v21 = vld [vmem:[#allocation20_spill] sm:$0xff]  ;;  %v11924_v22 = vld [vmem:[#allocation21_spill] sm:$0xff] }
 0x126   :  { %809 = vmatpush1.msra.mxu0 %v5490_v23  ;;  %880 = vmatpush1.msra.mxu1 %v5495_v24  ;;  %v11925_v23 = vld [vmem:[#allocation23_spill] sm:$0xff]  ;;  %v11926_v24 = vld [vmem:[#allocation24_spill] sm:$0xff] }
 0x127   :  { %810 = vmatprep.subr.mxu0 %v5502_v25  ;;  %881 = vmatprep.subr.mxu1 %v5507_v26  ;;  %v11927_v25 = vld [vmem:[#allocation25_spill] sm:$0xff]  ;;  %v11928_v26 = vld [vmem:[#allocation26_spill] sm:$0xff] }
 0x128   :  { %811 = vmatpush1.msra.mxu0 %v5514_v27  ;;  %882 = vmatpush1.msra.mxu1 %v5519_v28  ;;  %v11929_v27 = vld [vmem:[#allocation27_spill] sm:$0xff]  ;;  %v11930_v28 = vld [vmem:[#allocation28_spill] sm:$0xff] }
 0x129   :  { %812 = vmatprep.subr.mxu0 %v5526_v29  ;;  %883 = vmatprep.subr.mxu1 %v5531_v30  ;;  %v11931_v29 = vld [vmem:[#allocation29_spill] sm:$0xff]  ;;  %v11932_v30 = vld [vmem:[#allocation30_spill] sm:$0xff] }
 0x12a   :  { %813 = vmatpush1.msra.mxu0 %v5538_v31  ;;  %884 = vmatpush1.msra.mxu1 %v5543_v32  ;;  %v11933_v31 = vld [vmem:[#allocation31_spill] sm:$0xff]  ;;  %v11934_v32 = vld [vmem:[#allocation32_spill] sm:$0xff] }
 0x12b   :  { %814 = vmatprep.subr.mxu0 %v5550_v33  ;;  %885 = vmatprep.subr.mxu1 %v5555_v34  ;;  %v11935_v33 = vld [vmem:[#allocation33_spill] sm:$0xff]  ;;  %v11936_v34 = vld [vmem:[#allocation34_spill] sm:$0xff] }
 0x12c   :  { %815 = vmatpush1.msra.mxu0 %v5562_v35  ;;  %886 = vmatpush1.msra.mxu1 %v5567_v36  ;;  %v11937_v35 = vld [vmem:[#allocation35_spill] sm:$0xff]  ;;  %v11938_v36 = vld [vmem:[#allocation36_spill] sm:$0xff] }
 0x12d   :  { %816 = vmatprep.subr.mxu0 %v5574_v37  ;;  %887 = vmatprep.subr.mxu1 %v5579_v38  ;;  %v11939_v37 = vld [vmem:[#allocation37_spill] sm:$0xff]  ;;  %v11940_v38 = vld [vmem:[#allocation38_spill] sm:$0xff] }
 0x12e   :  { %817 = vmatpush1.msra.mxu0 %v5586_v39  ;;  %888 = vmatpush1.msra.mxu1 %v5591_v40  ;;  %v11941_v39 = vld [vmem:[#allocation39_spill] sm:$0xff]  ;;  %v11942_v40 = vld [vmem:[#allocation40_spill] sm:$0xff] }
 0x12f   :  { %818 = vmatprep.subr.mxu0 %v5598_v41  ;;  %889 = vmatprep.subr.mxu1 %v5603_v42  ;;  %v11943_v41 = vld [vmem:[#allocation41_spill] sm:$0xff]  ;;  %v11944_v42 = vld [vmem:[#allocation42_spill] sm:$0xff] }
 0x130   :  { %819 = vmatpush1.msra.mxu0 %v5610_v43  ;;  %890 = vmatpush1.msra.mxu1 %v5615_v44  ;;  %v11945_v43 = vld [vmem:[#allocation43_spill] sm:$0xff]  ;;  %v11946_v44 = vld [vmem:[#allocation44_spill] sm:$0xff] }
 0x131   :  { %820 = vmatprep.subr.mxu0 %v5622_v45  ;;  %891 = vmatprep.subr.mxu1 %v11904_v2  ;;  %v11947_v45 = vld [vmem:[#allocation45_spill] sm:$0xff]  ;;  %v11965_v2 = vld [vmem:[#allocation63_spill] sm:$0xff] }
 0x132   :  { %821 = vmatpush1.msra.mxu0 %v11905_v3  ;;  %892 = vmatpush1.msra.mxu1 %v11906_v4  ;;  %v11966_v3 = vld [vmem:[#allocation64_spill] sm:$0xff]  ;;  %v11967_v4 = vld [vmem:[#allocation65_spill] sm:$0xff] }
 0x133   :  { %822 = vmatprep.subr.mxu0 %v11907_v5  ;;  %893 = vmatprep.subr.mxu1 %v11908_v6  ;;  %v11968_v5 = vld [vmem:[#allocation66_spill] sm:$0xff]  ;;  %v11969_v6 = vld [vmem:[#allocation67_spill] sm:$0xff] }
 0x134   :  { %823 = vmatpush1.msra.mxu0 %v11909_v7  ;;  %894 = vmatpush1.msra.mxu1 %v11910_v8  ;;  %v11970_v7 = vld [vmem:[#allocation68_spill] sm:$0xff]  ;;  %v11971_v8 = vld [vmem:[#allocation69_spill] sm:$0xff] }
 0x135   :  { %824 = vmatprep.subr.mxu0 %v11911_v9  ;;  %895 = vmatprep.subr.mxu1 %v11912_v10  ;;  %v11972_v9 = vld [vmem:[#allocation70_spill] sm:$0xff]  ;;  %v11973_v10 = vld [vmem:[#allocation71_spill] sm:$0xff] }
 0x136   :  { %825 = vmatpush1.msra.mxu0 %v11913_v11  ;;  %896 = vmatpush1.msra.mxu1 %v11914_v12  ;;  %v11974_v11 = vld [vmem:[#allocation72_spill] sm:$0xff]  ;;  %v11975_v12 = vld [vmem:[#allocation73_spill] sm:$0xff] }
 0x137   :  { %826 = vmatprep.subr.mxu0 %v11915_v13  ;;  %897 = vmatprep.subr.mxu1 %v11916_v14  ;;  %v11976_v13 = vld [vmem:[#allocation74_spill] sm:$0xff]  ;;  %v11977_v14 = vld [vmem:[#allocation75_spill] sm:$0xff] }
 0x138   :  { %827 = vmatpush1.msra.mxu0 %v11917_v15  ;;  %898 = vmatpush1.msra.mxu1 %v11918_v16  ;;  %v11978_v15 = vld [vmem:[#allocation76_spill] sm:$0xff]  ;;  %v11979_v16 = vld [vmem:[#allocation77_spill] sm:$0xff] }
 0x139   :  { %828 = vmatprep.subr.mxu0 %v11919_v17  ;;  %899 = vmatprep.subr.mxu1 %v11920_v18  ;;  %v11980_v17 = vld [vmem:[#allocation78_spill] sm:$0xff]  ;;  %v11981_v18 = vld [vmem:[#allocation79_spill] sm:$0xff] }
 0x13a   :  { %829 = vmatpush1.msra.mxu0 %v11921_v19  ;;  %862 = vmatprep.mubr.f32.mxu0 %v11922_v20  ;;  %v11982_v19 = vld [vmem:[#allocation80_spill] sm:$0xff] }
 0x13b   :  { %900 = vmatpush1.msra.mxu1 %v11923_v21  ;;  %933 = vmatprep.mubr.f32.mxu1 %v11922_v20  ;;  %v11983_v21 = vld [vmem:[#allocation81_spill] sm:$0xff] }
 0x13c   :  { %863 = vmatmul.mubr.f32.vlgmr.msra.gmra.mxu0 %v6577_v51  ;;  %934 = vmatmul.mubr.f32.vlgmr.msra.gmra.mxu1 %v6577_v51  ;;  %v11964_v51 = vld [vmem:[#allocation62_spill] sm:$0xff] }
 0x13d   :  { %968 = vmatprep.subr.mxu0 %v11924_v22  ;;  %1039 = vmatprep.subr.mxu1 %v11925_v23  ;;  %v11984_v22 = vld [vmem:[#allocation82_spill] sm:$0xff]  ;;  %v11985_v23 = vld [vmem:[#allocation83_spill] sm:$0xff] }
 0x13e   :  { %969 = vmatpush1.msra.mxu0 %v11926_v24  ;;  %1040 = vmatpush1.msra.mxu1 %v11927_v25  ;;  %v11986_v24 = vld [vmem:[#allocation84_spill] sm:$0xff]  ;;  %v11987_v25 = vld [vmem:[#allocation85_spill] sm:$0xff] }
 0x13f   :  { %970 = vmatprep.subr.mxu0 %v11928_v26  ;;  %1041 = vmatprep.subr.mxu1 %v11929_v27  ;;  %v11988_v26 = vld [vmem:[#allocation86_spill] sm:$0xff]  ;;  %v11989_v27 = vld [vmem:[#allocation87_spill] sm:$0xff] }
 0x140   :  { %971 = vmatpush1.msra.mxu0 %v11930_v28  ;;  %1042 = vmatpush1.msra.mxu1 %v11931_v29  ;;  %v540_v28 = vpop.f32.mrf.mxu0  ;;  %v247_v29 = vld [vmem:[%s11134_s6] sm:$0xf] }
 0x141   :  { %972 = vmatprep.subr.mxu0 %v11932_v30  ;;  %1043 = vmatprep.subr.mxu1 %v11933_v31  ;;  %v611_v30 = vpop.f32.mrf.mxu1 }
 0x142   :  { %973 = vmatpush1.msra.mxu0 %v11934_v32  ;;  %1044 = vmatpush1.msra.mxu1 %v11935_v33  ;;  %v542_v31 = vpop.f32.mrf.mxu0  ;;  %v11990_v32 = vld [vmem:[#allocation150_spill] sm:$0xff] }
 0x143   :  { %974 = vmatprep.subr.mxu0 %v11936_v34  ;;  %1045 = vmatprep.subr.mxu1 %v11937_v35  ;;  %v6719_v33 = vrot.slane %v247_v29, %v11990_v32  ;;  %v5300_v34 = vmov 2  }
 0x144   :  { %975 = vmatpush1.msra.mxu0 %v11938_v36  ;;  %1046 = vmatpush1.msra.mxu1 %v11939_v37  ;;  %v11991_v36 = vld [vmem:[#allocation22_spill] sm:$0xff]  ;;  %v613_v37 = vpop.f32.mrf.mxu1 }
 0x145   :  { %976 = vmatprep.subr.mxu0 %v11940_v38  ;;  %1047 = vmatprep.subr.mxu1 %v11941_v39  ;;  %v11992_v39 = vld [vmem:[#allocation151_spill] sm:$0xff] }
 0x146   :  { %977 = vmatpush1.msra.mxu0 %v11942_v40  ;;  %1048 = vmatpush1.msra.mxu1 %v11943_v41  ;;  %v6723_v40 = vrot.slane %v247_v29, %v11992_v39 }
 0x147   :  { %978 = vmatprep.subr.mxu0 %v11944_v42  ;;  %1049 = vmatprep.subr.mxu1 %v11945_v43 }
 0x148   :  { %979 = vmatpush1.msra.mxu0 %v11946_v44  ;;  %1050 = vmatpush1.msra.mxu1 %v11947_v45 }
 0x149   :  { %980 = vmatprep.subr.mxu0 %v11948_v54  ;;  %1051 = vmatprep.subr.mxu1 %v11949_v56 }
 0x14a   :  { %981 = vmatpush1.msra.mxu0 %v11950_v61  ;;  %1052 = vmatpush1.msra.mxu1 %v11951_v48  ;;  %v11993_v48 = vld [vmem:[#allocation156_spill] sm:$0xff] }
 0x14b   :  { %982 = vmatprep.subr.mxu0 %v11952_v49  ;;  %1053 = vmatprep.subr.mxu1 %v11953_v52  ;;  %v6728_v49 = vrot.slane %v247_v29, %v11993_v48  ;;  %v12005_v48 = vld [vmem:[#allocation92_spill] sm:$0xff] }
 0x14c   :  { %983 = vmatpush1.msra.mxu0 %v11954_v63  ;;  %1054 = vmatpush1.msra.mxu1 %v11955_v59  ;;  %v11994_v59 = vld [vmem:[#allocation158_spill] sm:$0xff] }
 0x14d   :  { %984 = vmatprep.subr.mxu0 %v11956_v47  ;;  %1055 = vmatprep.subr.mxu1 %v11957_v55  ;;  %v6732_v47 = vrot.slane %v247_v29, %v11994_v59  ;;  %v12000_v29 = vld [vmem:[#allocation159_spill] sm:$0xff] }
 0x14e   :  { %985 = vmatpush1.msra.mxu0 %v11958_v58  ;;  %1056 = vmatpush1.msra.mxu1 %v11959_v60  ;;  %v12008_v59 = vld [vmem:[#allocation95_spill] sm:$0xff] }
 0x14f   :  { %986 = vmatprep.subr.mxu0 %v11960_v1  ;;  %1057 = vmatprep.subr.mxu1 %v11961_v0 }
 0x150   :  { %987 = vmatpush1.msra.mxu0 %v11962_v46  ;;  %1058 = vmatpush1.msra.mxu1 %v11963_v50 }
 0x151   :  { %988 = vmatprep.subr.mxu0 %v11964_v51  ;;  %1059 = vmatprep.subr.mxu1 %v11965_v2  ;;  %v788_v51 = vpop.permute.xlu0 %787  ;;  %v11995_v2 = vld [vmem:[#allocation152_spill] sm:$0xff] }
 0x152   :  { %989 = vmatpush1.msra.mxu0 %v11966_v3  ;;  %1060 = vmatpush1.msra.mxu1 %v11967_v4  ;;  %v790_v3 = vmul.f32 %v788_v51, %v11995_v2  ;;  %v11996_v4 = vld [vmem:[#allocation153_spill] sm:$0xff] }
 0x153   :  { %990 = vmatprep.subr.mxu0 %v11968_v5  ;;  %1061 = vmatprep.subr.mxu1 %v11969_v6  ;;  %v791_v5 = vmul.f32 %v788_v51, %v11996_v4  ;;  %v11997_v6 = vld [vmem:[#allocation154_spill] sm:$0xff] }
 0x154   :  { %991 = vmatpush1.msra.mxu0 %v11970_v7  ;;  %1062 = vmatpush1.msra.mxu1 %v11971_v8  ;;  %v794_v7 = vadd.f32 %v790_v3, %v11997_v6  ;;  %v11998_v8 = vld [vmem:[#allocation155_spill] sm:$0xff]  ;;  %v12015_v3 = vld [vmem:[#allocation102_spill] sm:$0xff] }
 0x155   :  { %992 = vmatprep.subr.mxu0 %v11972_v9  ;;  %1063 = vmatprep.subr.mxu1 %v11973_v10  ;;  %v795_v9 = vadd.f32 %v791_v5, %v11998_v8  ;;  %v12016_v5 = vld [vmem:[#allocation103_spill] sm:$0xff] }
 0x156   :  { %993 = vmatpush1.msra.mxu0 %v11974_v11  ;;  %1064 = vmatpush1.msra.mxu1 %v11975_v12 }
 0x157   :  { %994 = vmatprep.subr.mxu0 %v11976_v13  ;;  %1065 = vmatprep.subr.mxu1 %v11977_v14 }
 0x158   :  { %995 = vmatpush1.msra.mxu0 %v11978_v15  ;;  %1066 = vmatpush1.msra.mxu1 %v11979_v16 }
 0x159   :  { %996 = vmatprep.subr.mxu0 %v11980_v17  ;;  %1067 = vmatprep.subr.mxu1 %v11981_v18 }
 0x15a   :  { %997 = vmatpush1.msra.mxu0 %v11982_v19  ;;  %1068 = vmatpush1.msra.mxu1 %v11983_v21 }
 0x15b   :  { %998 = vmatprep.subr.mxu0 %v11984_v22  ;;  %1069 = vmatprep.subr.mxu1 %v11985_v23 }
 0x15c   :  { %999 = vmatpush1.msra.mxu0 %v11986_v24  ;;  %1070 = vmatpush1.msra.mxu1 %v11987_v25  ;;  %v11999_v24 = vld [vmem:[#allocation157_spill] sm:$0xff] }
 0x15d   :  { %1032 = vmatprep.mubr.f32.mxu0 %v11922_v20  ;;  %1103 = vmatprep.mubr.f32.mxu1 %v11922_v20  ;;  %v793_v25 = vmul.f32 %v788_v51, %v11999_v24 }
 0x15e   :  { %1110 = vmatprep.subr.mxu0 %v11988_v26  ;;  %1181 = vmatprep.subr.mxu1 %v11989_v27 }
 0x15f   :  { %4455 = vset.pattern.permute.xlu1 %v5300_v34 }
 0x160   :  { %1281 = vperm.xlu1 %4455, %v11991_v36  }
 0x1db   :  { %v682_v35 = vpop.f32.mrf.mxu0  ;;  %v753_v43 = vpop.f32.mrf.mxu1 }
 0x1dc   :  { %v683_v38 = vadd.f32 %v682_v35, %v540_v28  ;;  %v754_v55 = vadd.f32 %v753_v43, %v611_v30  ;;  %v792_v28 = vmul.f32 %v788_v51, %v6566_v62  ;;  %v797_v30 = vadd.f32 %v793_v25, %v12000_v29  ;;  %v12026_v25 = vld [vmem:[#allocation113_spill] sm:$0xff] }
 0x1dd   :  { %v684_v41 = vpop.f32.mrf.mxu0  ;;  %v755_v61 = vpop.f32.mrf.mxu1 }
 0x1de   :  { %v758_v42 = vadd.f32 %v683_v38, %v6719_v33  ;;  %v685_v44 = vadd.f32 %v684_v41, %v542_v31  ;;  %v756_v52 = vadd.f32 %v755_v61, %v613_v37  ;;  %v760_v1 = vadd.f32 %v754_v55, %v6732_v47  ;;  %v12004_v61 = vld [vmem:[#allocation91_spill] sm:$0xff]  ;;  %v12009_v55 = vld [vmem:[#allocation96_spill] sm:$0xff] }
 0x1df   :  { %v796_v32 = vadd.f32 %v792_v28, %v6570_v53  ;;  %v12028_v28 = vld [vmem:[#allocation115_spill] sm:$0xff] }
 0x1e0   :  { %v4345_v45 = vmul.f32 -1.442695, %v758_v42  ;;  %v759_v54 = vadd.f32 %v685_v44, %v6723_v40  ;;  %v761_v63 = vadd.f32 %v756_v52, %v6728_v49  ;;  %v12006_v52 = vld [vmem:[#allocation93_spill] sm:$0xff] }
 0x1e2   :  { %4478 = vpow2.f32 %v4345_v45  ;;  %v4346_v56 = vmul.f32 -1.442695, %v759_v54  ;;  %v4347_v58 = vmul.f32 -1.442695, %v761_v63  ;;  %v12001_v45 = vld [vmem:[#allocation88_spill] sm:$0xff]  ;;  %v12002_v54 = vld [vmem:[#allocation89_spill] sm:$0xff] }
 0x1e3   :  { %v12007_v63 = vld [vmem:[#allocation94_spill] sm:$0xff] }
 0x1e4   :  { %4480 = vpow2.f32 %v4346_v56  ;;  %v12003_v56 = vld [vmem:[#allocation90_spill] sm:$0xff] }
 0x1e5   :  { %4482 = vpow2.f32 %v4347_v58  ;;  %v12010_v58 = vld [vmem:[#allocation97_spill] sm:$0xff] }
 0x1ef   :  { %v4479_v60 = vpop.eup %4478 }
 0x1f0   :  { %v765_v0 = vadd.f32 1.0, %v4479_v60  ;;  %v12011_v60 = vld [vmem:[#allocation98_spill] sm:$0xff] }
 0x1f1   :  { %v4481_v46 = vpop.eup %4480 }
 0x1f2   :  { %4484 = vrcp.f32 %v765_v0  ;;  %v771_v50 = vadd.f32 1.0, %v4481_v46  ;;  %v4483_v12 = vpop.eup %4482  ;;  %v12013_v46 = vld [vmem:[#allocation100_spill] sm:$0xff] }
 0x1f3   :  { %4486 = vtanh.f32 %v760_v1  ;;  %v778_v19 = vadd.f32 1.0, %v4483_v12  ;;  %v12012_v1 = vld [vmem:[#allocation99_spill] sm:$0xff]  ;;  %v12019_v12 = vld [vmem:[#allocation106_spill] sm:$0xff] }
 0x1f4   :  { %4488 = vrcp.f32 %v771_v50  ;;  %v12014_v50 = vld [vmem:[#allocation101_spill] sm:$0xff] }
 0x1fc   :  { %v864_v10 = vpop.f32.mrf.mxu0  ;;  %v935_v26 = vpop.f32.mrf.mxu1 }
 0x1fd   :  { %v940_v11 = vadd.f32 %v864_v10, %v794_v7  ;;  %v942_v35 = vadd.f32 %v935_v26, %v796_v32  ;;  %v12018_v10 = vld [vmem:[#allocation105_spill] sm:$0xff]  ;;  %v12027_v26 = vld [vmem:[#allocation114_spill] sm:$0xff]  ;;  %v12032_v32 = vld [vmem:[#allocation119_spill] sm:$0xff] }
 0x1fe   :  { %v866_v13 = vpop.f32.mrf.mxu0  ;;  %v937_v31 = vpop.f32.mrf.mxu1 }
 0x1ff   :  { %v4485_v14 = vpop.eup %4484  ;;  %v4348_v15 = vmul.f32 -1.442695, %v940_v11  ;;  %v941_v16 = vadd.f32 %v866_v13, %v795_v9  ;;  %v943_v34 = vadd.f32 %v937_v31, %v797_v30  ;;  %v12017_v9 = vld [vmem:[#allocation104_spill] sm:$0xff]  ;;  %v12020_v13 = vld [vmem:[#allocation107_spill] sm:$0xff]  ;;  %v12030_v30 = vld [vmem:[#allocation117_spill] sm:$0xff] }
 0x200   :  { %v4487_v17 = vpop.eup %4486  ;;  %v12031_v31 = vld [vmem:[#allocation118_spill] sm:$0xff] }
 0x201   :  { %v4489_v18 = vpop.eup %4488  ;;  %4490 = vpow2.f32 %v4348_v15  ;;  %v4349_v21 = vmul.f32 -1.442695, %v941_v16  ;;  %v782_v23 = vmul.f32 %v4487_v17, %v4485_v14  ;;  %v4350_v37 = vmul.f32 -1.442695, %v943_v34  ;;  %v12021_v16 = vld [vmem:[#allocation108_spill] sm:$0xff]  ;;  %v12022_v17 = vld [vmem:[#allocation109_spill] sm:$0xff] }
 0x202   :  { %v781_v22 = vmul.f32 0.0, %v4489_v18  ;;  %v12023_v18 = vld [vmem:[#allocation110_spill] sm:$0xff]  ;;  %v12033_v34 = vld [vmem:[#allocation120_spill] sm:$0xff] }
 0x203   :  { %4492 = vpow2.f32 %v4349_v21 }
 0x204   :  { %v6740_v27 = vadd.f32 %v782_v23, %v781_v22  ;;  %4494 = vrcp.f32 %v778_v19  ;;  %v12024_v19 = vld [vmem:[#allocation111_spill] sm:$0xff]  ;;  %v12025_v23 = vld [vmem:[#allocation112_spill] sm:$0xff] }
 0x206   :  { %4496 = vtanh.f32 %v6740_v27 }
 0x207   :  { %4498 = vtanh.f32 %v942_v35  ;;  %v12034_v35 = vld [vmem:[#allocation121_spill] sm:$0xff] }
 0x20e   :  { %v4491_v36 = vpop.eup %4490 }
 0x20f   :  { %v947_v38 = vadd.f32 1.0, %v4491_v36  ;;  %v12035_v36 = vld [vmem:[#allocation122_spill] sm:$0xff] }
 0x210   :  { %v4493_v39 = vpop.eup %4492 }
 0x211   :  { %4500 = vrcp.f32 %v947_v38  ;;  %v953_v41 = vadd.f32 1.0, %v4493_v39  ;;  %v4495_v42 = vpop.eup %4494  ;;  %v12037_v38 = vld [vmem:[#allocation124_spill] sm:$0xff]  ;;  %v12038_v39 = vld [vmem:[#allocation125_spill] sm:$0xff] }
 0x212   :  { %4502 = vpow2.f32 %v4350_v37  ;;  %v12036_v37 = vld [vmem:[#allocation123_spill] sm:$0xff] }
 0x213   :  { %v4497_v43 = vpop.eup %4496  ;;  %4504 = vrcp.f32 %v953_v41  ;;  %v12039_v41 = vld [vmem:[#allocation126_spill] sm:$0xff] }
 0x214   :  { %v785_v44 = vmul.f32 %v4497_v43, %v4495_v42  ;;  %v4499_v0 = vpop.eup %4498  ;;  %v12040_v42 = vld [vmem:[#allocation127_spill] sm:$0xff]  ;;  %v12041_v43 = vld [vmem:[#allocation128_spill] sm:$0xff] }
 0x216   :  { %1033 = vmatmul.mubr.f32.vlgmr.msra.gmra.mxu0 %v785_v44  ;;  %1104 = vmatmul.mubr.f32.vlgmr.msra.gmra.mxu1 %v785_v44  ;;  %v12042_v44 = vld [vmem:[#allocation129_spill] sm:$0xff] }
 0x217   :  { %1111 = vmatpush1.msra.mxu0 %v12001_v45  ;;  %1182 = vmatpush1.msra.mxu1 %v12002_v54  ;;  %v12043_v45 = vld [vmem:[#allocation130_spill] sm:$0xff]  ;;  %v12044_v54 = vld [vmem:[#allocation131_spill] sm:$0xff] }
 0x218   :  { %1112 = vmatprep.subr.mxu0 %v12003_v56  ;;  %1183 = vmatprep.subr.mxu1 %v12004_v61  ;;  %v12045_v56 = vld [vmem:[#allocation132_spill] sm:$0xff]  ;;  %v12046_v61 = vld [vmem:[#allocation133_spill] sm:$0xff] }
 0x219   :  { %1113 = vmatpush1.msra.mxu0 %v12005_v48  ;;  %1184 = vmatpush1.msra.mxu1 %v12006_v52  ;;  %v12047_v48 = vld [vmem:[#allocation134_spill] sm:$0xff]  ;;  %v12048_v52 = vld [vmem:[#allocation135_spill] sm:$0xff] }
 0x21a   :  { %1114 = vmatprep.subr.mxu0 %v12007_v63  ;;  %1185 = vmatprep.subr.mxu1 %v12008_v59  ;;  %v12049_v63 = vld [vmem:[#allocation136_spill] sm:$0xff]  ;;  %v12050_v59 = vld [vmem:[#allocation137_spill] sm:$0xff] }
 0x21b   :  { %1115 = vmatpush1.msra.mxu0 %v12009_v55  ;;  %1186 = vmatpush1.msra.mxu1 %v12010_v58  ;;  %v12051_v55 = vld [vmem:[#allocation138_spill] sm:$0xff]  ;;  %v12052_v58 = vld [vmem:[#allocation139_spill] sm:$0xff] }
 0x21c   :  { %1116 = vmatprep.subr.mxu0 %v12011_v60  ;;  %1187 = vmatprep.subr.mxu1 %v12012_v1  ;;  %v12053_v60 = vld [vmem:[#allocation140_spill] sm:$0xff]  ;;  %v12054_v1 = vld [vmem:[#allocation141_spill] sm:$0xff] }
 0x21d   :  { %1117 = vmatpush1.msra.mxu0 %v12013_v46  ;;  %1188 = vmatpush1.msra.mxu1 %v12014_v50  ;;  %v12055_v46 = vld [vmem:[#allocation142_spill] sm:$0xff]  ;;  %v12056_v50 = vld [vmem:[#allocation143_spill] sm:$0xff] }
 0x21e   :  { %v4501_v51 = vpop.eup %4500  ;;  %1118 = vmatprep.subr.mxu0 %v12015_v3  ;;  %1189 = vmatprep.subr.mxu1 %v12016_v5  ;;  %v12058_v3 = vld [vmem:[#allocation145_spill] sm:$0xff] }
 0x21f   :  { %v4503_v7 = vpop.eup %4502  ;;  %1119 = vmatpush1.msra.mxu0 %v12017_v9  ;;  %1190 = vmatpush1.msra.mxu1 %v12018_v10  ;;  %v964_v14 = vmul.f32 %v4501_v51, %v4499_v0  ;;  %v12057_v51 = vld [vmem:[#allocation144_spill] sm:$0xff]  ;;  %v12060_v9 = vld [vmem:[#allocation147_spill] sm:$0xff] }
 0x220   :  { %v4505_v11 = vpop.eup %4504  ;;  %1120 = vmatprep.subr.mxu0 %v12019_v12  ;;  %1191 = vmatprep.subr.mxu1 %v12020_v13  ;;  %v960_v22 = vadd.f32 1.0, %v4503_v7  ;;  %v12059_v7 = vld [vmem:[#allocation146_spill] sm:$0xff]  ;;  %v12061_v10 = vld [vmem:[#allocation148_spill] sm:$0xff]  ;;  %v12062_v12 = vld [vmem:[#allocation149_spill] sm:$0xff] }
 0x221   :  { %v963_v15 = vmul.f32 %v4505_v11, %v6574_v57  ;;  %1121 = vmatpush1.msra.mxu0 %v12021_v16  ;;  %1192 = vmatpush1.msra.mxu1 %v12022_v17  ;;  %v12029_v57 = vld [vmem:[#allocation116_spill] sm:$0xff]  ;;  %v6821_v13 = vld [vmem:[%s11128_s2 + $0x1e8] sm:$0xff] }
 0x222   :  { %1122 = vmatprep.subr.mxu0 %v12023_v18  ;;  %1193 = vmatprep.subr.mxu1 %v12024_v19  ;;  %v6839_v16 = vld [vmem:[%s11128_s2 + $0x1f0] sm:$0xff]  ;;  %v6845_v17 = vld [vmem:[%s11128_s2 + $0x1c8] sm:$0xff]  ;;  %v6851_v18 = vld [vmem:[%s11128_s2 + $0x1d8] sm:$0xff] }
 0x223   :  { %v6771_v21 = vadd.f32 %v964_v14, %v963_v15  ;;  %1123 = vmatpush1.msra.mxu0 %v12025_v23  ;;  %1194 = vmatpush1.msra.mxu1 %v12026_v25  ;;  %v6827_v14 = vld [vmem:[%s11128_s2 + $0x1f8] sm:$0xff]  ;;  %v6833_v15 = vld [vmem:[%s11128_s2 + $0x1e0] sm:$0xff]  ;;  %v6869_v23 = vld [vmem:[%s11128_s2 + $0x1a8] sm:$0xff] }
 0x224   :  { %1124 = vmatprep.subr.mxu0 %v12027_v26  ;;  %1195 = vmatprep.subr.mxu1 %v12028_v28  ;;  %v6857_v19 = vld [vmem:[%s11128_s2 + $0x1c0] sm:$0xff]  ;;  %v6875_v25 = vld [vmem:[%s11128_s2 + $0x1b8] sm:$0xff]  ;;  %v6887_v28 = vld [vmem:[%s11128_s2 + $0x1b0] sm:$0xff] }
 0x225   :  { %1125 = vmatpush1.msra.mxu0 %v12029_v57  ;;  %1196 = vmatpush1.msra.mxu1 %v12030_v30  ;;  %4506 = vtanh.f32 %v6771_v21  ;;  %v6881_v26 = vld [vmem:[%s11128_s2 + $0x1a0] sm:$0xff]  ;;  %v6893_v57 = vld [vmem:[%s11128_s2 + $0x188] sm:$0xff]  ;;  %v6899_v30 = vld [vmem:[%s11128_s2 + $0x198] sm:$0xff] }
 0x226   :  { %1126 = vmatprep.subr.mxu0 %v12031_v31  ;;  %1197 = vmatprep.subr.mxu1 %v12032_v32  ;;  %4508 = vrcp.f32 %v960_v22  ;;  %v6863_v22 = vld [vmem:[%s11128_s2 + $0x1d0] sm:$0xff]  ;;  %v6905_v31 = vld [vmem:[%s11128_s2 + $0x180] sm:$0xff] }
 0x227   :  { %1127 = vmatpush1.msra.mxu0 %v12033_v34  ;;  %1198 = vmatpush1.msra.mxu1 %v12034_v35  ;;  %v6911_v32 = vld [vmem:[%s11128_s2 + $0x190] sm:$0xff]  ;;  %v6917_v34 = vld [vmem:[%s11128_s2 + $0x168] sm:$0xff]  ;;  %v6923_v35 = vld [vmem:[%s11128_s2 + $0x178] sm:$0xff] }
 0x228   :  { %1128 = vmatprep.subr.mxu0 %v12035_v36  ;;  %1199 = vmatprep.subr.mxu1 %v12036_v37  ;;  %v6929_v36 = vld [vmem:[%s11128_s2 + $0x160] sm:$0xff]  ;;  %v6935_v37 = vld [vmem:[%s11128_s2 + $0x170] sm:$0xff] }
 0x229   :  { %1129 = vmatpush1.msra.mxu0 %v12037_v38  ;;  %1200 = vmatpush1.msra.mxu1 %v12038_v39  ;;  %v6941_v38 = vld [vmem:[%s11128_s2 + $0x148] sm:$0xff]  ;;  %v6947_v39 = vld [vmem:[%s11128_s2 + $0x158] sm:$0xff] }
 0x22a   :  { %1130 = vmatprep.subr.mxu0 %v12039_v41  ;;  %1201 = vmatprep.subr.mxu1 %v12040_v42  ;;  %v6953_v41 = vld [vmem:[%s11128_s2 + $0x140] sm:$0xff]  ;;  %v6959_v42 = vld [vmem:[%s11128_s2 + $0x150] sm:$0xff] }
 0x22b   :  { %1131 = vmatpush1.msra.mxu0 %v12041_v43  ;;  %1202 = vmatpush1.msra.mxu1 %v12042_v44  ;;  %v6965_v43 = vld [vmem:[%s11128_s2 + $0x128] sm:$0xff]  ;;  %v6971_v44 = vld [vmem:[%s11128_s2 + $0x138] sm:$0xff] }
 0x22c   :  { %1132 = vmatprep.subr.mxu0 %v12043_v45  ;;  %1203 = vmatprep.subr.mxu1 %v12044_v54  ;;  %v6977_v45 = vld [vmem:[%s11128_s2 + $0x120] sm:$0xff]  ;;  %v6983_v54 = vld [vmem:[%s11128_s2 + $0x130] sm:$0xff] }
 0x22d   :  { %1133 = vmatpush1.msra.mxu0 %v12045_v56  ;;  %1204 = vmatpush1.msra.mxu1 %v12046_v61  ;;  %v6989_v56 = vld [vmem:[%s11128_s2 + $0x108] sm:$0xff]  ;;  %v6995_v61 = vld [vmem:[%s11128_s2 + $0x118] sm:$0xff] }
 0x22e   :  { %1134 = vmatprep.subr.mxu0 %v12047_v48  ;;  %1205 = vmatprep.subr.mxu1 %v12048_v52  ;;  %12063 = vst [vmem:[#allocation2_spill] sm:$0xff] %v6995_v61  ;;  %v7001_v48 = vld [vmem:[%s11128_s2 + $0x100] sm:$0xff]  ;;  %v7007_v52 = vld [vmem:[%s11128_s2 + $0x110] sm:$0xff] }
 0x22f   :  { %1135 = vmatpush1.msra.mxu0 %v12049_v63  ;;  %1206 = vmatpush1.msra.mxu1 %v12050_v59  ;;  %12064 = vst [vmem:[#allocation3_spill] sm:$0xff] %v7001_v48  ;;  %12065 = vst [vmem:[#allocation4_spill] sm:$0xff] %v7007_v52  ;;  %v7013_v63 = vld [vmem:[%s11128_s2 + $0xe8] sm:$0xff]  ;;  %v7019_v59 = vld [vmem:[%s11128_s2 + $0xf8] sm:$0xff] }
 0x230   :  { %1136 = vmatprep.subr.mxu0 %v12051_v55  ;;  %1207 = vmatprep.subr.mxu1 %v12052_v58  ;;  %12066 = vst [vmem:[#allocation5_spill] sm:$0xff] %v7013_v63  ;;  %12067 = vst [vmem:[#allocation6_spill] sm:$0xff] %v7019_v59  ;;  %v7025_v55 = vld [vmem:[%s11128_s2 + $0xe0] sm:$0xff]  ;;  %v7031_v58 = vld [vmem:[%s11128_s2 + $0xf0] sm:$0xff] }
 0x231   :  { %1137 = vmatpush1.msra.mxu0 %v12053_v60  ;;  %1208 = vmatpush1.msra.mxu1 %v12054_v1  ;;  %12068 = vst [vmem:[#allocation7_spill] sm:$0xff] %v7025_v55  ;;  %12069 = vst [vmem:[#allocation8_spill] sm:$0xff] %v7031_v58  ;;  %v7037_v60 = vld [vmem:[%s11128_s2 + $0xc8] sm:$0xff]  ;;  %v7043_v1 = vld [vmem:[%s11128_s2 + $0xd8] sm:$0xff] }
 0x232   :  { %v4507_v0 = vpop.eup %4506  ;;  %1138 = vmatprep.subr.mxu0 %v12055_v46  ;;  %1209 = vmatprep.subr.mxu1 %v12056_v50  ;;  %12070 = vst [vmem:[#allocation9_spill] sm:$0xff] %v7037_v60  ;;  %12071 = vst [vmem:[#allocation10_spill] sm:$0xff] %v7043_v1  ;;  %v7055_v46 = vld [vmem:[%s11128_s2 + $0xd0] sm:$0xff]  ;;  %v7061_v50 = vld [vmem:[%s11128_s2 + $0xa8] sm:$0xff] }
 0x233   :  { %1139 = vmatpush1.msra.mxu0 %v12057_v51  ;;  %1210 = vmatpush1.msra.mxu1 %v12058_v3  ;;  %v4509_v5 = vpop.eup %4508  ;;  %12073 = vst [vmem:[#allocation12_spill] sm:$0xff] %v7055_v46  ;;  %12074 = vst [vmem:[#allocation13_spill] sm:$0xff] %v7061_v50  ;;  %v7067_v51 = vld [vmem:[%s11128_s2 + $0xb8] sm:$0xff]  ;;  %v7073_v3 = vld [vmem:[%s11128_s2 + $0xa0] sm:$0xff] }
 0x234   :  { %1140 = vmatprep.subr.mxu0 %v12059_v7  ;;  %1211 = vmatprep.subr.mxu1 %v12060_v9  ;;  %v6812_v11 = vmul.f32 %v4509_v5, %v4507_v0  ;;  %v7049_v0 = vld [vmem:[%s11128_s2 + $0xc0] sm:$0xff]  ;;  %12075 = vst [vmem:[#allocation14_spill] sm:$0xff] %v7067_v51  ;;  %12076 = vst [vmem:[#allocation15_spill] sm:$0xff] %v7073_v3  ;;  %v7079_v5 = vld [vmem:[%s11128_s2 + $0xb0] sm:$0xff] }
 0x235   :  { %1141 = vmatpush1.msra.mxu0 %v12061_v10  ;;  %1174 = vmatprep.mubr.f32.mxu0 %v11922_v20  ;;  %12072 = vst [vmem:[#allocation11_spill] sm:$0xff] %v7049_v0  ;;  %12077 = vst [vmem:[#allocation16_spill] sm:$0xff] %v7079_v5  ;;  %v7085_v7 = vld [vmem:[%s11128_s2 + $0x88] sm:$0xff]  ;;  %v7091_v9 = vld [vmem:[%s11128_s2 + $0x98] sm:$0xff] }
 0x236   :  { %1212 = vmatpush1.msra.mxu1 %v12062_v12  ;;  %1245 = vmatprep.mubr.f32.mxu1 %v11922_v20  ;;  %12078 = vst [vmem:[#allocation17_spill] sm:$0xff] %v7085_v7  ;;  %12079 = vst [vmem:[#allocation18_spill] sm:$0xff] %v7091_v9  ;;  %v7097_v10 = vld [vmem:[%s11128_s2 + $0x80] sm:$0xff]  ;;  %v7103_v12 = vld [vmem:[%s11128_s2 + $0x90] sm:$0xff] }
 0x237   :  { %1175 = vmatmul.mubr.f32.vlgmr.msra.gmra.mxu0 %v6812_v11  ;;  %1246 = vmatmul.mubr.f32.vlgmr.msra.gmra.mxu1 %v6812_v11  ;;  %12080 = vst [vmem:[#allocation19_spill] sm:$0xff] %v7097_v10  ;;  %12081 = vst [vmem:[#allocation20_spill] sm:$0xff] %v7103_v12 }
 0x238   :  { %1292 = vmatprep.subr.mxu0 %v6821_v13  ;;  %1363 = vmatprep.subr.mxu1 %v6827_v14 }
 0x239   :  { %1293 = vmatpush1.msra.mxu0 %v6833_v15  ;;  %1364 = vmatpush1.msra.mxu1 %v6839_v16 }
 0x23a   :  { %1294 = vmatprep.subr.mxu0 %v6845_v17  ;;  %1365 = vmatprep.subr.mxu1 %v6851_v18 }
 0x23b   :  { %1295 = vmatpush1.msra.mxu0 %v6857_v19  ;;  %1366 = vmatpush1.msra.mxu1 %v6863_v22 }
 0x23c   :  { %1296 = vmatprep.subr.mxu0 %v6869_v23  ;;  %1367 = vmatprep.subr.mxu1 %v6875_v25 }
 0x23d   :  { %1297 = vmatpush1.msra.mxu0 %v6881_v26  ;;  %1368 = vmatpush1.msra.mxu1 %v6887_v28 }
 0x23e   :  { %1298 = vmatprep.subr.mxu0 %v6893_v57  ;;  %1369 = vmatprep.subr.mxu1 %v6899_v30 }
 0x23f   :  { %1299 = vmatpush1.msra.mxu0 %v6905_v31  ;;  %1370 = vmatpush1.msra.mxu1 %v6911_v32 }
 0x240   :  { %1300 = vmatprep.subr.mxu0 %v6917_v34  ;;  %1371 = vmatprep.subr.mxu1 %v6923_v35 }
 0x241   :  { %1301 = vmatpush1.msra.mxu0 %v6929_v36  ;;  %1372 = vmatpush1.msra.mxu1 %v6935_v37 }
 0x242   :  { %1302 = vmatprep.subr.mxu0 %v6941_v38  ;;  %1373 = vmatprep.subr.mxu1 %v6947_v39 }
 0x243   :  { %1303 = vmatpush1.msra.mxu0 %v6953_v41  ;;  %1374 = vmatpush1.msra.mxu1 %v6959_v42 }
 0x244   :  { %1304 = vmatprep.subr.mxu0 %v6965_v43  ;;  %1375 = vmatprep.subr.mxu1 %v6971_v44 }
 0x245   :  { %1305 = vmatpush1.msra.mxu0 %v6977_v45  ;;  %1376 = vmatpush1.msra.mxu1 %v6983_v54 }
 0x246   :  { %1306 = vmatprep.subr.mxu0 %v6989_v56  ;;  %1377 = vmatprep.subr.mxu1 %v6995_v61 }
 0x247   :  { %1307 = vmatpush1.msra.mxu0 %v7001_v48  ;;  %1378 = vmatpush1.msra.mxu1 %v7007_v52 }
 0x248   :  { %1308 = vmatprep.subr.mxu0 %v7013_v63  ;;  %1379 = vmatprep.subr.mxu1 %v7019_v59 }
 0x249   :  { %1309 = vmatpush1.msra.mxu0 %v7025_v55  ;;  %1380 = vmatpush1.msra.mxu1 %v7031_v58 }
 0x24a   :  { %1310 = vmatprep.subr.mxu0 %v7037_v60  ;;  %1381 = vmatprep.subr.mxu1 %v7043_v1 }
 0x24b   :  { %1311 = vmatpush1.msra.mxu0 %v7049_v0  ;;  %1382 = vmatpush1.msra.mxu1 %v7055_v46 }
 0x24c   :  { %1312 = vmatprep.subr.mxu0 %v7061_v50  ;;  %1383 = vmatprep.subr.mxu1 %v7067_v51  ;;  %v7607_v51 = vld [vmem:[%s11130_s0] sm:$0xff] }
 0x24d   :  { %1313 = vmatpush1.msra.mxu0 %v7073_v3  ;;  %1384 = vmatpush1.msra.mxu1 %v7079_v5  ;;  %v5301_v5 = vmov 3   ;;  %12164 = vst [vmem:[#allocation93_spill] sm:$0xff] %v7607_v51 }
 0x24e   :  { %1314 = vmatprep.subr.mxu0 %v7085_v7  ;;  %1385 = vmatprep.subr.mxu1 %v7091_v9  ;;  %v7109_v7 = vld [vmem:[%s11128_s2 + $0x68] sm:$0xff]  ;;  %v7115_v9 = vld [vmem:[%s11128_s2 + $0x78] sm:$0xff] }
 0x24f   :  { %1315 = vmatpush1.msra.mxu0 %v7097_v10  ;;  %1386 = vmatpush1.msra.mxu1 %v7103_v12  ;;  %12082 = vst [vmem:[#allocation21_spill] sm:$0xff] %v7109_v7  ;;  %12083 = vst [vmem:[#allocation23_spill] sm:$0xff] %v7115_v9  ;;  %v7121_v10 = vld [vmem:[%s11128_s2 + $0x60] sm:$0xff]  ;;  %v7127_v12 = vld [vmem:[%s11128_s2 + $0x70] sm:$0xff] }
 0x250   :  { %1316 = vmatprep.subr.mxu0 %v7109_v7  ;;  %1387 = vmatprep.subr.mxu1 %v7115_v9  ;;  %12084 = vst [vmem:[#allocation24_spill] sm:$0xff] %v7121_v10  ;;  %12085 = vst [vmem:[#allocation25_spill] sm:$0xff] %v7127_v12  ;;  %v7133_v7 = vld [vmem:[%s11128_s2 + $0x48] sm:$0xff]  ;;  %v7139_v9 = vld [vmem:[%s11128_s2 + $0x58] sm:$0xff] }
 0x251   :  { %1317 = vmatpush1.msra.mxu0 %v7121_v10  ;;  %1388 = vmatpush1.msra.mxu1 %v7127_v12  ;;  %12086 = vst [vmem:[#allocation26_spill] sm:$0xff] %v7133_v7  ;;  %12087 = vst [vmem:[#allocation27_spill] sm:$0xff] %v7139_v9  ;;  %v7145_v10 = vld [vmem:[%s11128_s2 + $0x40] sm:$0xff]  ;;  %v7151_v12 = vld [vmem:[%s11128_s2 + $0x50] sm:$0xff] }
 0x252   :  { %1318 = vmatprep.subr.mxu0 %v7133_v7  ;;  %1389 = vmatprep.subr.mxu1 %v7139_v9  ;;  %12088 = vst [vmem:[#allocation28_spill] sm:$0xff] %v7145_v10  ;;  %12089 = vst [vmem:[#allocation29_spill] sm:$0xff] %v7151_v12  ;;  %v7157_v7 = vld [vmem:[%s11128_s2 + $0x28] sm:$0xff]  ;;  %v7163_v9 = vld [vmem:[%s11128_s2 + $0x38] sm:$0xff] }
 0x253   :  { %1319 = vmatpush1.msra.mxu0 %v7145_v10  ;;  %1390 = vmatpush1.msra.mxu1 %v7151_v12  ;;  %12090 = vst [vmem:[#allocation30_spill] sm:$0xff] %v7157_v7  ;;  %12091 = vst [vmem:[#allocation31_spill] sm:$0xff] %v7163_v9  ;;  %v7169_v10 = vld [vmem:[%s11128_s2 + $0x20] sm:$0xff]  ;;  %v7175_v12 = vld [vmem:[%s11128_s2 + $0x30] sm:$0xff] }
 0x254   :  { %1320 = vmatprep.subr.mxu0 %v7157_v7  ;;  %1391 = vmatprep.subr.mxu1 %v7163_v9  ;;  %12092 = vst [vmem:[#allocation32_spill] sm:$0xff] %v7169_v10  ;;  %12093 = vst [vmem:[#allocation33_spill] sm:$0xff] %v7175_v12  ;;  %v7181_v7 = vld [vmem:[%s11128_s2 + $0x8] sm:$0xff]  ;;  %v7187_v9 = vld [vmem:[%s11128_s2 + $0x18] sm:$0xff] }
 0x255   :  { %1321 = vmatpush1.msra.mxu0 %v7169_v10  ;;  %1392 = vmatpush1.msra.mxu1 %v7175_v12  ;;  %12094 = vst [vmem:[#allocation34_spill] sm:$0xff] %v7181_v7  ;;  %12095 = vst [vmem:[#allocation35_spill] sm:$0xff] %v7187_v9  ;;  %v7193_v10 = vld [vmem:[%s11128_s2] sm:$0xff] }
 0x256   :  { %1322 = vmatprep.subr.mxu0 %v7181_v7  ;;  %1393 = vmatprep.subr.mxu1 %v7187_v9  ;;  %12096 = vst [vmem:[#allocation36_spill] sm:$0xff] %v7193_v10  ;;  %v7200_v7 = vld [vmem:[%s11128_s2 + $0x10] sm:$0xff]  ;;  %v7209_v9 = vld [vmem:[%s11129_s5 + $0x1e8] sm:$0xff] }
 0x257   :  { %1323 = vmatpush1.msra.mxu0 %v7193_v10  ;;  %1356 = vmatprep.mubr.f32.mxu0 %v11922_v20  ;;  %12097 = vst [vmem:[#allocation37_spill] sm:$0xff] %v7200_v7  ;;  %12098 = vst [vmem:[#allocation38_spill] sm:$0xff] %v7209_v9  ;;  %v7215_v10 = vld [vmem:[%s11129_s5 + $0x1f8] sm:$0xff] }
 0x258   :  { %1394 = vmatpush1.msra.mxu1 %v7200_v7  ;;  %1427 = vmatprep.mubr.f32.mxu1 %v11922_v20  ;;  %12099 = vst [vmem:[#allocation39_spill] sm:$0xff] %v7215_v10  ;;  %v7221_v7 = vld [vmem:[%s11129_s5 + $0x1e0] sm:$0xff] }
 0x259   :  { %1357 = vmatmul.mubr.f32.vlgmr.msra.gmra.mxu0 %v6812_v11  ;;  %1428 = vmatmul.mubr.f32.vlgmr.msra.gmra.mxu1 %v6812_v11  ;;  %12100 = vst [vmem:[#allocation40_spill] sm:$0xff] %v7221_v7  ;;  %v7227_v11 = vld [vmem:[%s11129_s5 + $0x1f0] sm:$0xff] }
 0x25a   :  { %1462 = vmatprep.subr.mxu0 %v7209_v9  ;;  %1533 = vmatprep.subr.mxu1 %v7215_v10  ;;  %12101 = vst [vmem:[#allocation41_spill] sm:$0xff] %v7227_v11  ;;  %v7233_v9 = vld [vmem:[%s11129_s5 + $0x1c8] sm:$0xff]  ;;  %v7239_v10 = vld [vmem:[%s11129_s5 + $0x1d8] sm:$0xff] }
 0x25b   :  { %1463 = vmatpush1.msra.mxu0 %v7221_v7  ;;  %1534 = vmatpush1.msra.mxu1 %v7227_v11  ;;  %12102 = vst [vmem:[#allocation42_spill] sm:$0xff] %v7233_v9  ;;  %12103 = vst [vmem:[#allocation43_spill] sm:$0xff] %v7239_v10  ;;  %v7245_v7 = vld [vmem:[%s11129_s5 + $0x1c0] sm:$0xff]  ;;  %v7251_v11 = vld [vmem:[%s11129_s5 + $0x1d0] sm:$0xff] }
 0x25c   :  { %1464 = vmatprep.subr.mxu0 %v7233_v9  ;;  %1535 = vmatprep.subr.mxu1 %v7239_v10  ;;  %12104 = vst [vmem:[#allocation44_spill] sm:$0xff] %v7245_v7  ;;  %12105 = vst [vmem:[#allocation45_spill] sm:$0xff] %v7251_v11  ;;  %v7257_v9 = vld [vmem:[%s11129_s5 + $0x1a8] sm:$0xff]  ;;  %v7263_v10 = vld [vmem:[%s11129_s5 + $0x1b8] sm:$0xff] }
 0x25d   :  { %1465 = vmatpush1.msra.mxu0 %v7245_v7  ;;  %1536 = vmatpush1.msra.mxu1 %v7251_v11  ;;  %12106 = vst [vmem:[#allocation46_spill] sm:$0xff] %v7257_v9  ;;  %12107 = vst [vmem:[#allocation47_spill] sm:$0xff] %v7263_v10  ;;  %v7269_v7 = vld [vmem:[%s11129_s5 + $0x1a0] sm:$0xff]  ;;  %v7275_v11 = vld [vmem:[%s11129_s5 + $0x1b0] sm:$0xff] }
 0x25e   :  { %1466 = vmatprep.subr.mxu0 %v7257_v9  ;;  %1537 = vmatprep.subr.mxu1 %v7263_v10  ;;  %12108 = vst [vmem:[#allocation48_spill] sm:$0xff] %v7269_v7  ;;  %12109 = vst [vmem:[#allocation49_spill] sm:$0xff] %v7275_v11  ;;  %v7281_v9 = vld [vmem:[%s11129_s5 + $0x188] sm:$0xff]  ;;  %v7287_v10 = vld [vmem:[%s11129_s5 + $0x198] sm:$0xff] }
 0x25f   :  { %1467 = vmatpush1.msra.mxu0 %v7269_v7  ;;  %1538 = vmatpush1.msra.mxu1 %v7275_v11  ;;  %12110 = vst [vmem:[#allocation50_spill] sm:$0xff] %v7281_v9  ;;  %12111 = vst [vmem:[#allocation51_spill] sm:$0xff] %v7287_v10  ;;  %v7293_v7 = vld [vmem:[%s11129_s5 + $0x180] sm:$0xff]  ;;  %v7299_v11 = vld [vmem:[%s11129_s5 + $0x190] sm:$0xff] }
 0x260   :  { %1468 = vmatprep.subr.mxu0 %v7281_v9  ;;  %1539 = vmatprep.subr.mxu1 %v7287_v10  ;;  %12112 = vst [vmem:[#allocation52_spill] sm:$0xff] %v7293_v7  ;;  %12113 = vst [vmem:[#allocation53_spill] sm:$0xff] %v7299_v11  ;;  %v7305_v9 = vld [vmem:[%s11129_s5 + $0x168] sm:$0xff]  ;;  %v7311_v10 = vld [vmem:[%s11129_s5 + $0x178] sm:$0xff] }
 0x261   :  { %1469 = vmatpush1.msra.mxu0 %v7293_v7  ;;  %1540 = vmatpush1.msra.mxu1 %v7299_v11  ;;  %12114 = vst [vmem:[#allocation54_spill] sm:$0xff] %v7305_v9  ;;  %12115 = vst [vmem:[#allocation55_spill] sm:$0xff] %v7311_v10  ;;  %v7317_v7 = vld [vmem:[%s11129_s5 + $0x160] sm:$0xff]  ;;  %v7323_v11 = vld [vmem:[%s11129_s5 + $0x170] sm:$0xff] }
 0x262   :  { %1470 = vmatprep.subr.mxu0 %v7305_v9  ;;  %1541 = vmatprep.subr.mxu1 %v7311_v10  ;;  %12116 = vst [vmem:[#allocation56_spill] sm:$0xff] %v7317_v7  ;;  %12117 = vst [vmem:[#allocation57_spill] sm:$0xff] %v7323_v11  ;;  %v7329_v9 = vld [vmem:[%s11129_s5 + $0x148] sm:$0xff]  ;;  %v7335_v10 = vld [vmem:[%s11129_s5 + $0x158] sm:$0xff] }
 0x263   :  { %1471 = vmatpush1.msra.mxu0 %v7317_v7  ;;  %1542 = vmatpush1.msra.mxu1 %v7323_v11  ;;  %12118 = vst [vmem:[#allocation58_spill] sm:$0xff] %v7329_v9  ;;  %12119 = vst [vmem:[#allocation59_spill] sm:$0xff] %v7335_v10  ;;  %v7341_v7 = vld [vmem:[%s11129_s5 + $0x140] sm:$0xff]  ;;  %v7347_v11 = vld [vmem:[%s11129_s5 + $0x150] sm:$0xff] }
 0x264   :  { %1472 = vmatprep.subr.mxu0 %v7329_v9  ;;  %1543 = vmatprep.subr.mxu1 %v7335_v10  ;;  %12120 = vst [vmem:[#allocation60_spill] sm:$0xff] %v7341_v7  ;;  %12121 = vst [vmem:[#allocation61_spill] sm:$0xff] %v7347_v11  ;;  %v7353_v9 = vld [vmem:[%s11129_s5 + $0x128] sm:$0xff]  ;;  %v7359_v10 = vld [vmem:[%s11129_s5 + $0x138] sm:$0xff] }
 0x265   :  { %1473 = vmatpush1.msra.mxu0 %v7341_v7  ;;  %1544 = vmatpush1.msra.mxu1 %v7347_v11  ;;  %12122 = vst [vmem:[#allocation62_spill] sm:$0xff] %v7353_v9  ;;  %12123 = vst [vmem:[#allocation63_spill] sm:$0xff] %v7359_v10  ;;  %v7365_v7 = vld [vmem:[%s11129_s5 + $0x120] sm:$0xff]  ;;  %v7371_v11 = vld [vmem:[%s11129_s5 + $0x130] sm:$0xff] }
 0x266   :  { %1474 = vmatprep.subr.mxu0 %v7353_v9  ;;  %1545 = vmatprep.subr.mxu1 %v7359_v10  ;;  %12124 = vst [vmem:[#allocation64_spill] sm:$0xff] %v7365_v7  ;;  %12125 = vst [vmem:[#allocation65_spill] sm:$0xff] %v7371_v11  ;;  %v7377_v9 = vld [vmem:[%s11129_s5 + $0x108] sm:$0xff]  ;;  %v7383_v10 = vld [vmem:[%s11129_s5 + $0x118] sm:$0xff] }
 0x267   :  { %1475 = vmatpush1.msra.mxu0 %v7365_v7  ;;  %1546 = vmatpush1.msra.mxu1 %v7371_v11  ;;  %12126 = vst [vmem:[#allocation66_spill] sm:$0xff] %v7377_v9  ;;  %12127 = vst [vmem:[#allocation67_spill] sm:$0xff] %v7383_v10  ;;  %v7389_v7 = vld [vmem:[%s11129_s5 + $0x100] sm:$0xff]  ;;  %v7395_v11 = vld [vmem:[%s11129_s5 + $0x110] sm:$0xff] }
 0x268   :  { %1476 = vmatprep.subr.mxu0 %v7377_v9  ;;  %1547 = vmatprep.subr.mxu1 %v7383_v10  ;;  %12128 = vst [vmem:[#allocation68_spill] sm:$0xff] %v7389_v7  ;;  %12129 = vst [vmem:[#allocation69_spill] sm:$0xff] %v7395_v11  ;;  %v7401_v9 = vld [vmem:[%s11129_s5 + $0xe8] sm:$0xff]  ;;  %v7407_v10 = vld [vmem:[%s11129_s5 + $0xf8] sm:$0xff] }
 0x269   :  { %1477 = vmatpush1.msra.mxu0 %v7389_v7  ;;  %1548 = vmatpush1.msra.mxu1 %v7395_v11  ;;  %12130 = vst [vmem:[#allocation70_spill] sm:$0xff] %v7401_v9  ;;  %12131 = vst [vmem:[#allocation71_spill] sm:$0xff] %v7407_v10  ;;  %v7413_v7 = vld [vmem:[%s11129_s5 + $0xe0] sm:$0xff]  ;;  %v7419_v11 = vld [vmem:[%s11129_s5 + $0xf0] sm:$0xff] }
 0x26a   :  { %1478 = vmatprep.subr.mxu0 %v7401_v9  ;;  %1549 = vmatprep.subr.mxu1 %v7407_v10  ;;  %12132 = vst [vmem:[#allocation72_spill] sm:$0xff] %v7413_v7  ;;  %12133 = vst [vmem:[#allocation73_spill] sm:$0xff] %v7419_v11  ;;  %v7425_v9 = vld [vmem:[%s11129_s5 + $0xc8] sm:$0xff]  ;;  %v7431_v10 = vld [vmem:[%s11129_s5 + $0xd8] sm:$0xff] }
 0x26b   :  { %1479 = vmatpush1.msra.mxu0 %v7413_v7  ;;  %1550 = vmatpush1.msra.mxu1 %v7419_v11  ;;  %12134 = vst [vmem:[#allocation74_spill] sm:$0xff] %v7425_v9  ;;  %12135 = vst [vmem:[#allocation75_spill] sm:$0xff] %v7431_v10  ;;  %v7437_v7 = vld [vmem:[%s11129_s5 + $0xc0] sm:$0xff]  ;;  %v7443_v11 = vld [vmem:[%s11129_s5 + $0xd0] sm:$0xff] }
 0x26c   :  { %1480 = vmatprep.subr.mxu0 %v7425_v9  ;;  %1551 = vmatprep.subr.mxu1 %v7431_v10  ;;  %12136 = vst [vmem:[#allocation76_spill] sm:$0xff] %v7437_v7  ;;  %12137 = vst [vmem:[#allocation77_spill] sm:$0xff] %v7443_v11  ;;  %v7449_v9 = vld [vmem:[%s11129_s5 + $0xa8] sm:$0xff]  ;;  %v7455_v10 = vld [vmem:[%s11129_s5 + $0xb8] sm:$0xff] }
 0x26d   :  { %1481 = vmatpush1.msra.mxu0 %v7437_v7  ;;  %1552 = vmatpush1.msra.mxu1 %v7443_v11  ;;  %12138 = vst [vmem:[#allocation78_spill] sm:$0xff] %v7449_v9  ;;  %12139 = vst [vmem:[#allocation79_spill] sm:$0xff] %v7455_v10  ;;  %v7461_v7 = vld [vmem:[%s11129_s5 + $0xa0] sm:$0xff]  ;;  %v7467_v11 = vld [vmem:[%s11129_s5 + $0xb0] sm:$0xff] }
 0x26e   :  { %1482 = vmatprep.subr.mxu0 %v7449_v9  ;;  %1553 = vmatprep.subr.mxu1 %v7455_v10  ;;  %12140 = vst [vmem:[#allocation80_spill] sm:$0xff] %v7461_v7  ;;  %12141 = vst [vmem:[#allocation81_spill] sm:$0xff] %v7467_v11  ;;  %v7473_v9 = vld [vmem:[%s11129_s5 + $0x88] sm:$0xff]  ;;  %v7479_v10 = vld [vmem:[%s11129_s5 + $0x98] sm:$0xff] }
 0x26f   :  { %1483 = vmatpush1.msra.mxu0 %v7461_v7  ;;  %1554 = vmatpush1.msra.mxu1 %v7467_v11  ;;  %12142 = vst [vmem:[#allocation82_spill] sm:$0xff] %v7473_v9  ;;  %12143 = vst [vmem:[#allocation83_spill] sm:$0xff] %v7479_v10  ;;  %v7485_v7 = vld [vmem:[%s11129_s5 + $0x80] sm:$0xff]  ;;  %v7491_v11 = vld [vmem:[%s11129_s5 + $0x90] sm:$0xff] }
 0x270   :  { %1484 = vmatprep.subr.mxu0 %v7473_v9  ;;  %1555 = vmatprep.subr.mxu1 %v7479_v10  ;;  %12144 = vst [vmem:[#allocation84_spill] sm:$0xff] %v7485_v7  ;;  %12145 = vst [vmem:[#allocation85_spill] sm:$0xff] %v7491_v11  ;;  %v7497_v9 = vld [vmem:[%s11129_s5 + $0x68] sm:$0xff]  ;;  %v7503_v10 = vld [vmem:[%s11129_s5 + $0x78] sm:$0xff] }
 0x271   :  { %1485 = vmatpush1.msra.mxu0 %v7485_v7  ;;  %1556 = vmatpush1.msra.mxu1 %v7491_v11  ;;  %12146 = vst [vmem:[#allocation86_spill] sm:$0xff] %v7497_v9  ;;  %12147 = vst [vmem:[#allocation87_spill] sm:$0xff] %v7503_v10  ;;  %v7509_v7 = vld [vmem:[%s11129_s5 + $0x60] sm:$0xff]  ;;  %v7515_v11 = vld [vmem:[%s11129_s5 + $0x70] sm:$0xff] }
 0x272   :  { %1486 = vmatprep.subr.mxu0 %v7497_v9  ;;  %1557 = vmatprep.subr.mxu1 %v7503_v10  ;;  %12148 = vst [vmem:[#allocation150_spill] sm:$0xff] %v7509_v7  ;;  %12149 = vst [vmem:[#allocation22_spill] sm:$0xff] %v7515_v11  ;;  %v7521_v9 = vld [vmem:[%s11129_s5 + $0x48] sm:$0xff]  ;;  %v7527_v10 = vld [vmem:[%s11129_s5 + $0x58] sm:$0xff] }
 0x273   :  { %1487 = vmatpush1.msra.mxu0 %v7509_v7  ;;  %1558 = vmatpush1.msra.mxu1 %v7515_v11  ;;  %12150 = vst [vmem:[#allocation151_spill] sm:$0xff] %v7521_v9  ;;  %12151 = vst [vmem:[#allocation156_spill] sm:$0xff] %v7527_v10  ;;  %v7533_v7 = vld [vmem:[%s11129_s5 + $0x40] sm:$0xff]  ;;  %v7539_v11 = vld [vmem:[%s11129_s5 + $0x50] sm:$0xff] }
 0x274   :  { %1488 = vmatprep.subr.mxu0 %v7521_v9  ;;  %1559 = vmatprep.subr.mxu1 %v7527_v10  ;;  %12152 = vst [vmem:[#allocation158_spill] sm:$0xff] %v7533_v7  ;;  %12153 = vst [vmem:[#allocation152_spill] sm:$0xff] %v7539_v11  ;;  %v7545_v9 = vld [vmem:[%s11129_s5 + $0x28] sm:$0xff]  ;;  %v7551_v10 = vld [vmem:[%s11129_s5 + $0x38] sm:$0xff] }
 0x275   :  { %1489 = vmatpush1.msra.mxu0 %v7533_v7  ;;  %1560 = vmatpush1.msra.mxu1 %v7539_v11  ;;  %12154 = vst [vmem:[#allocation153_spill] sm:$0xff] %v7545_v9  ;;  %12155 = vst [vmem:[#allocation154_spill] sm:$0xff] %v7551_v10  ;;  %v7557_v7 = vld [vmem:[%s11129_s5 + $0x20] sm:$0xff]  ;;  %v7563_v11 = vld [vmem:[%s11129_s5 + $0x30] sm:$0xff] }
 0x276   :  { %1490 = vmatprep.subr.mxu0 %v7545_v9  ;;  %1561 = vmatprep.subr.mxu1 %v7551_v10  ;;  %12156 = vst [vmem:[#allocation155_spill] sm:$0xff] %v7557_v7  ;;  %12157 = vst [vmem:[#allocation157_spill] sm:$0xff] %v7563_v11  ;;  %v7569_v9 = vld [vmem:[%s11129_s5 + $0x8] sm:$0xff]  ;;  %v7575_v10 = vld [vmem:[%s11129_s5 + $0x18] sm:$0xff] }
 0x277   :  { %1491 = vmatpush1.msra.mxu0 %v7557_v7  ;;  %1562 = vmatpush1.msra.mxu1 %v7563_v11  ;;  %12158 = vst [vmem:[#allocation159_spill] sm:$0xff] %v7569_v9  ;;  %12159 = vst [vmem:[#allocation88_spill] sm:$0xff] %v7575_v10  ;;  %v7581_v7 = vld [vmem:[%s11129_s5] sm:$0xff]  ;;  %v7587_v11 = vld [vmem:[%s11129_s5 + $0x10] sm:$0xff] }
 0x278   :  { %1492 = vmatprep.subr.mxu0 %v7569_v9  ;;  %1563 = vmatprep.subr.mxu1 %v7575_v10  ;;  %12160 = vst [vmem:[#allocation89_spill] sm:$0xff] %v7581_v7  ;;  %12161 = vst [vmem:[#allocation90_spill] sm:$0xff] %v7587_v11  ;;  %v7595_v10 = vld [vmem:[%s11131_s4 + $0x1e8] sm:$0xff] }
 0x279   :  { %1493 = vmatpush1.msra.mxu0 %v7581_v7  ;;  %1564 = vmatpush1.msra.mxu1 %v7587_v11  ;;  %12162 = vst [vmem:[#allocation91_spill] sm:$0xff] %v7595_v10  ;;  %v7601_v7 = vld [vmem:[%s11131_s4 + $0x1f8] sm:$0xff] }
 0x27a   :  { %1526 = vmatprep.mubr.f32.mxu0 %v11922_v20  ;;  %1597 = vmatprep.mubr.f32.mxu1 %v11922_v20  ;;  %12163 = vst [vmem:[#allocation92_spill] sm:$0xff] %v7601_v7 }
 0x27b   :  { %1604 = vmatprep.subr.mxu0 %v7595_v10  ;;  %1675 = vmatprep.subr.mxu1 %v7601_v7 }
 0x27c   :  { %4456 = vset.pattern.permute.xlu1 %v5301_v5 }
 0x27d   :  { %1775 = vperm.xlu1 %4456, %v7607_v51  }
 0x2d6   :  { %v1034_v9 = vpop.f32.mrf.mxu0  ;;  %v1105_v11 = vpop.f32.mrf.mxu1 }
 0x2d8   :  { %v1036_v12 = vpop.f32.mrf.mxu0  ;;  %v1107_v10 = vpop.f32.mrf.mxu1 }
 0x2f7   :  { %v1176_v3 = vpop.f32.mrf.mxu0  ;;  %v1247_v1 = vpop.f32.mrf.mxu1 }
 0x2f8   :  { %v1177_v50 = vadd.f32 %v1176_v3, %v1034_v9  ;;  %v1248_v52 = vadd.f32 %v1247_v1, %v1105_v11 }
 0x2f9   :  { %v1178_v46 = vpop.f32.mrf.mxu0  ;;  %v1249_v55 = vpop.f32.mrf.mxu1 }
 0x2fa   :  { %v1252_v0 = vadd.f32 %v1177_v50, %v6719_v33  ;;  %v1179_v7 = vadd.f32 %v1178_v46, %v1036_v12  ;;  %v1250_v59 = vadd.f32 %v1249_v55, %v1107_v10  ;;  %v1254_v3 = vadd.f32 %v1248_v52, %v6732_v47 }
 0x2fc   :  { %v4351_v60 = vmul.f32 -1.442695, %v1252_v0  ;;  %v1253_v58 = vadd.f32 %v1179_v7, %v6723_v40  ;;  %v1255_v63 = vadd.f32 %v1250_v59, %v6728_v49  ;;  %v1282_v0 = vpop.permute.xlu1 %1281 }
 0x2fd   :  { %v1287_v11 = vmul.f32 %v1282_v0, %v11999_v24 }
 0x2fe   :  { %4510 = vpow2.f32 %v4351_v60  ;;  %v4352_v5 = vmul.f32 -1.442695, %v1253_v58  ;;  %v4353_v48 = vmul.f32 -1.442695, %v1255_v63  ;;  %v1284_v58 = vmul.f32 %v1282_v0, %v11995_v2 }
 0x2ff   :  { %v1285_v60 = vmul.f32 %v1282_v0, %v11996_v4 }
 0x300   :  { %4512 = vpow2.f32 %v4352_v5  ;;  %v1288_v55 = vadd.f32 %v1284_v58, %v11997_v6 }
 0x301   :  { %4514 = vpow2.f32 %v4353_v48  ;;  %v1289_v59 = vadd.f32 %v1285_v60, %v11998_v8  ;;  %v1291_v60 = vadd.f32 %v1287_v11, %v12000_v29  ;;  %v7635_v11 = vld [vmem:[%s11131_s4 + $0x1f0] sm:$0xff] }
 0x30b   :  { %v4511_v51 = vpop.eup %4510 }
 0x30c   :  { %v1259_v9 = vadd.f32 1.0, %v4511_v51 }
 0x30d   :  { %v4513_v61 = vpop.eup %4512 }
 0x30e   :  { %4516 = vrcp.f32 %v1259_v9  ;;  %v1265_v46 = vadd.f32 1.0, %v4513_v61  ;;  %v4515_v1 = vpop.eup %4514 }
 0x30f   :  { %4518 = vtanh.f32 %v1254_v3  ;;  %v1272_v12 = vadd.f32 1.0, %v4515_v1 }
 0x310   :  { %4520 = vrcp.f32 %v1265_v46 }
 0x319   :  { %v1358_v63 = vpop.f32.mrf.mxu0  ;;  %v1429_v9 = vpop.f32.mrf.mxu1 }
 0x31a   :  { %v1434_v50 = vadd.f32 %v1358_v63, %v1288_v55 }
 0x31b   :  { %v4517_v52 = vpop.eup %4516  ;;  %v1360_v51 = vpop.f32.mrf.mxu0 }
 0x31c   :  { %v4519_v7 = vpop.eup %4518  ;;  %v4354_v48 = vmul.f32 -1.442695, %v1434_v50  ;;  %v1435_v10 = vadd.f32 %v1360_v51, %v1289_v59  ;;  %v1431_v55 = vpop.f32.mrf.mxu1  ;;  %v1286_v59 = vmul.f32 %v1282_v0, %v6566_v62  ;;  %v7629_v0 = vld [vmem:[%s11131_s4 + $0x1e0] sm:$0xff] }
 0x31d   :  { %v4521_v61 = vpop.eup %4520  ;;  %v1276_v5 = vmul.f32 %v4519_v7, %v4517_v52  ;;  %v1437_v63 = vadd.f32 %v1431_v55, %v1291_v60  ;;  %v7665_v60 = vld [vmem:[%s11131_s4 + $0x1a8] sm:$0xff]  ;;  %v7671_v55 = vld [vmem:[%s11131_s4 + $0x1b8] sm:$0xff] }
 0x31e   :  { %v1275_v3 = vmul.f32 %v4521_v61, %v6740_v27  ;;  %4522 = vpow2.f32 %v4354_v48  ;;  %v4355_v46 = vmul.f32 -1.442695, %v1435_v10  ;;  %v1290_v1 = vadd.f32 %v1286_v59, %v6570_v53  ;;  %v7677_v59 = vld [vmem:[%s11131_s4 + $0x1a0] sm:$0xff] }
 0x31f   :  { %v4356_v50 = vmul.f32 -1.442695, %v1437_v63  ;;  %v7683_v63 = vld [vmem:[%s11131_s4 + $0x1b0] sm:$0xff] }
 0x320   :  { %4524 = vpow2.f32 %v4355_v46  ;;  %v7620_v58 = vadd.f32 %v1276_v5, %v1275_v3  ;;  %v1436_v27 = vadd.f32 %v1429_v9, %v1290_v1  ;;  %v7641_v5 = vld [vmem:[%s11131_s4 + $0x1c8] sm:$0xff]  ;;  %v7647_v3 = vld [vmem:[%s11131_s4 + $0x1d8] sm:$0xff]  ;;  %v7653_v9 = vld [vmem:[%s11131_s4 + $0x1c0] sm:$0xff] }
 0x321   :  { %4526 = vrcp.f32 %v1272_v12  ;;  %v7659_v46 = vld [vmem:[%s11131_s4 + $0x1d0] sm:$0xff]  ;;  %v7689_v1 = vld [vmem:[%s11131_s4 + $0x188] sm:$0xff] }
 0x322   :  { %4528 = vtanh.f32 %v7620_v58  ;;  %12165 = vst [vmem:[#allocation94_spill] sm:$0xff] %v7689_v1 }
 0x323   :  { %4530 = vpow2.f32 %v4356_v50  ;;  %v7695_v50 = vld [vmem:[%s11131_s4 + $0x198] sm:$0xff] }
 0x324   :  { %12166 = vst [vmem:[#allocation95_spill] sm:$0xff] %v7695_v50 }
 0x32b   :  { %v4523_v52 = vpop.eup %4522 }
 0x32c   :  { %v1441_v51 = vadd.f32 1.0, %v4523_v52  ;;  %v7701_v52 = vld [vmem:[%s11131_s4 + $0x180] sm:$0xff] }
 0x32d   :  { %v4525_v7 = vpop.eup %4524  ;;  %12167 = vst [vmem:[#allocation96_spill] sm:$0xff] %v7701_v52 }
 0x32e   :  { %v4527_v48 = vpop.eup %4526  ;;  %4532 = vrcp.f32 %v1441_v51  ;;  %v1447_v10 = vadd.f32 1.0, %v4525_v7  ;;  %v7713_v7 = vld [vmem:[%s11131_s4 + $0x168] sm:$0xff] }
 0x32f   :  { %v4529_v61 = vpop.eup %4528  ;;  %4534 = vtanh.f32 %v1436_v27  ;;  %v7707_v27 = vld [vmem:[%s11131_s4 + $0x190] sm:$0xff]  ;;  %12169 = vst [vmem:[#allocation98_spill] sm:$0xff] %v7713_v7 }
 0x330   :  { %4536 = vrcp.f32 %v1447_v10  ;;  %v1279_v12 = vmul.f32 %v4529_v61, %v4527_v48  ;;  %12168 = vst [vmem:[#allocation97_spill] sm:$0xff] %v7707_v27  ;;  %v4531_v51 = vpop.eup %4530  ;;  %v7719_v48 = vld [vmem:[%s11131_s4 + $0x178] sm:$0xff]  ;;  %v7725_v61 = vld [vmem:[%s11131_s4 + $0x160] sm:$0xff] }
 0x331   :  { %12170 = vst [vmem:[#allocation99_spill] sm:$0xff] %v7719_v48  ;;  %12171 = vst [vmem:[#allocation100_spill] sm:$0xff] %v7725_v61 }
 0x332   :  { %1527 = vmatmul.mubr.f32.vlgmr.msra.gmra.mxu0 %v1279_v12  ;;  %1598 = vmatmul.mubr.f32.vlgmr.msra.gmra.mxu1 %v1279_v12  ;;  %v7731_v12 = vld [vmem:[%s11131_s4 + $0x170] sm:$0xff] }
 0x333   :  { %1605 = vmatpush1.msra.mxu0 %v7629_v0  ;;  %1676 = vmatpush1.msra.mxu1 %v7635_v11  ;;  %12172 = vst [vmem:[#allocation101_spill] sm:$0xff] %v7731_v12 }
 0x334   :  { %1606 = vmatprep.subr.mxu0 %v7641_v5  ;;  %1677 = vmatprep.subr.mxu1 %v7647_v3 }
 0x335   :  { %1607 = vmatpush1.msra.mxu0 %v7653_v9  ;;  %1678 = vmatpush1.msra.mxu1 %v7659_v46 }
 0x336   :  { %1608 = vmatprep.subr.mxu0 %v7665_v60  ;;  %1679 = vmatprep.subr.mxu1 %v7671_v55 }
 0x337   :  { %1609 = vmatpush1.msra.mxu0 %v7677_v59  ;;  %1680 = vmatpush1.msra.mxu1 %v7683_v63 }
 0x338   :  { %1610 = vmatprep.subr.mxu0 %v7689_v1  ;;  %1681 = vmatprep.subr.mxu1 %v7695_v50 }
 0x339   :  { %1611 = vmatpush1.msra.mxu0 %v7701_v52  ;;  %1682 = vmatpush1.msra.mxu1 %v7707_v27  ;;  %v7743_v27 = vld [vmem:[%s11131_s4 + $0x158] sm:$0xff]  ;;  %v1454_v52 = vadd.f32 1.0, %v4531_v51  ;;  %v7762_v51 = vld [vmem:[%s11131_s4 + $0x128] sm:$0xff] }
 0x33a   :  { %1612 = vmatprep.subr.mxu0 %v7713_v7  ;;  %1683 = vmatprep.subr.mxu1 %v7719_v48  ;;  %v7737_v48 = vld [vmem:[%s11131_s4 + $0x148] sm:$0xff] }
 0x33b   :  { %v4533_v10 = vpop.eup %4532  ;;  %1613 = vmatpush1.msra.mxu0 %v7725_v61  ;;  %1684 = vmatpush1.msra.mxu1 %v7731_v12  ;;  %12173 = vst [vmem:[#allocation102_spill] sm:$0xff] %v7737_v48  ;;  %v7749_v12 = vld [vmem:[%s11131_s4 + $0x140] sm:$0xff]  ;;  %4538 = vrcp.f32 %v1454_v52  ;;  %v7818_v52 = vld [vmem:[%s11131_s4 + $0xf8] sm:$0xff] }
 0x33c   :  { %v4535_v7 = vpop.eup %4534  ;;  %1614 = vmatprep.subr.mxu0 %v7737_v48  ;;  %1685 = vmatprep.subr.mxu1 %v7743_v27  ;;  %12174 = vst [vmem:[#allocation103_spill] sm:$0xff] %v7749_v12  ;;  %v7755_v48 = vld [vmem:[%s11131_s4 + $0x150] sm:$0xff]  ;;  %12182 = vst [vmem:[#allocation111_spill] sm:$0xff] %v7818_v52 }
 0x33d   :  { %v4537_v61 = vpop.eup %4536  ;;  %1615 = vmatpush1.msra.mxu0 %v7749_v12  ;;  %1686 = vmatpush1.msra.mxu1 %v7755_v48  ;;  %v1458_v50 = vmul.f32 %v4535_v7, %v4533_v10  ;;  %v7768_v12 = vld [vmem:[%s11131_s4 + $0x138] sm:$0xff]  ;;  %v7774_v7 = vld [vmem:[%s11131_s4 + $0x120] sm:$0xff] }
 0x33e   :  { %v1457_v1 = vmul.f32 %v4537_v61, %v6771_v21  ;;  %1616 = vmatprep.subr.mxu0 %v7762_v51  ;;  %1687 = vmatprep.subr.mxu1 %v7768_v12  ;;  %12175 = vst [vmem:[#allocation104_spill] sm:$0xff] %v7774_v7  ;;  %v7780_v21 = vld [vmem:[%s11131_s4 + $0x130] sm:$0xff]  ;;  %v7788_v61 = vld [vmem:[%s11131_s4 + $0x108] sm:$0xff] }
 0x33f   :  { %1617 = vmatpush1.msra.mxu0 %v7774_v7  ;;  %12176 = vst [vmem:[#allocation105_spill] sm:$0xff] %v7780_v21  ;;  %1688 = vmatpush1.msra.mxu1 %v7780_v21  ;;  %12177 = vst [vmem:[#allocation106_spill] sm:$0xff] %v7788_v61  ;;  %v7794_v7 = vld [vmem:[%s11131_s4 + $0x118] sm:$0xff]  ;;  %v7975_v21 = vld [vmem:[%s11131_s4 + $0x30] sm:$0xff] }
 0x340   :  { %v7783_v10 = vadd.f32 %v1458_v50, %v1457_v1  ;;  %1618 = vmatprep.subr.mxu0 %v7788_v61  ;;  %12178 = vst [vmem:[#allocation107_spill] sm:$0xff] %v7794_v7  ;;  %1689 = vmatprep.subr.mxu1 %v7794_v7  ;;  %v7800_v1 = vld [vmem:[%s11131_s4 + $0x100] sm:$0xff]  ;;  %v7806_v50 = vld [vmem:[%s11131_s4 + $0x110] sm:$0xff]  ;;  %v7812_v61 = vld [vmem:[%s11131_s4 + $0xe8] sm:$0xff] }
 0x341   :  { %12179 = vst [vmem:[#allocation108_spill] sm:$0xff] %v7800_v1  ;;  %1619 = vmatpush1.msra.mxu0 %v7800_v1  ;;  %12180 = vst [vmem:[#allocation109_spill] sm:$0xff] %v7806_v50  ;;  %1690 = vmatpush1.msra.mxu1 %v7806_v50  ;;  %v7825_v50 = vld [vmem:[%s11131_s4 + $0xe0] sm:$0xff]  ;;  %v7843_v1 = vld [vmem:[%s11131_s4 + $0xd8] sm:$0xff] }
 0x342   :  { %12181 = vst [vmem:[#allocation110_spill] sm:$0xff] %v7812_v61  ;;  %1620 = vmatprep.subr.mxu0 %v7812_v61  ;;  %1691 = vmatprep.subr.mxu1 %v7818_v52  ;;  %4540 = vtanh.f32 %v7783_v10  ;;  %12183 = vst [vmem:[#allocation112_spill] sm:$0xff] %v7825_v50  ;;  %v7831_v61 = vld [vmem:[%s11131_s4 + $0xf0] sm:$0xff]  ;;  %v7837_v52 = vld [vmem:[%s11131_s4 + $0xc8] sm:$0xff] }
 0x343   :  { %1621 = vmatpush1.msra.mxu0 %v7825_v50  ;;  %12184 = vst [vmem:[#allocation113_spill] sm:$0xff] %v7831_v61  ;;  %1692 = vmatpush1.msra.mxu1 %v7831_v61  ;;  %12185 = vst [vmem:[#allocation114_spill] sm:$0xff] %v7837_v52  ;;  %v7849_v50 = vld [vmem:[%s11131_s4 + $0xc0] sm:$0xff]  ;;  %v7855_v61 = vld [vmem:[%s11131_s4 + $0xd0] sm:$0xff] }
 0x344   :  { %1622 = vmatprep.subr.mxu0 %v7837_v52  ;;  %12186 = vst [vmem:[#allocation115_spill] sm:$0xff] %v7843_v1  ;;  %1693 = vmatprep.subr.mxu1 %v7843_v1  ;;  %12187 = vst [vmem:[#allocation116_spill] sm:$0xff] %v7849_v50  ;;  %v7861_v52 = vld [vmem:[%s11131_s4 + $0xa8] sm:$0xff]  ;;  %v7867_v1 = vld [vmem:[%s11131_s4 + $0xb8] sm:$0xff] }
 0x345   :  { %1623 = vmatpush1.msra.mxu0 %v7849_v50  ;;  %12188 = vst [vmem:[#allocation117_spill] sm:$0xff] %v7855_v61  ;;  %1694 = vmatpush1.msra.mxu1 %v7855_v61  ;;  %12189 = vst [vmem:[#allocation118_spill] sm:$0xff] %v7861_v52  ;;  %v7873_v50 = vld [vmem:[%s11131_s4 + $0xa0] sm:$0xff]  ;;  %v7879_v61 = vld [vmem:[%s11131_s4 + $0xb0] sm:$0xff] }
 0x346   :  { %1624 = vmatprep.subr.mxu0 %v7861_v52  ;;  %12190 = vst [vmem:[#allocation119_spill] sm:$0xff] %v7867_v1  ;;  %1695 = vmatprep.subr.mxu1 %v7867_v1  ;;  %12191 = vst [vmem:[#allocation120_spill] sm:$0xff] %v7873_v50  ;;  %v7885_v52 = vld [vmem:[%s11131_s4 + $0x88] sm:$0xff]  ;;  %v7891_v1 = vld [vmem:[%s11131_s4 + $0x98] sm:$0xff] }
 0x347   :  { %1625 = vmatpush1.msra.mxu0 %v7873_v50  ;;  %12192 = vst [vmem:[#allocation121_spill] sm:$0xff] %v7879_v61  ;;  %1696 = vmatpush1.msra.mxu1 %v7879_v61  ;;  %12193 = vst [vmem:[#allocation122_spill] sm:$0xff] %v7885_v52  ;;  %v7897_v50 = vld [vmem:[%s11131_s4 + $0x80] sm:$0xff]  ;;  %v7903_v61 = vld [vmem:[%s11131_s4 + $0x90] sm:$0xff] }
 0x348   :  { %1626 = vmatprep.subr.mxu0 %v7885_v52  ;;  %12194 = vst [vmem:[#allocation123_spill] sm:$0xff] %v7891_v1  ;;  %1697 = vmatprep.subr.mxu1 %v7891_v1  ;;  %12195 = vst [vmem:[#allocation124_spill] sm:$0xff] %v7897_v50  ;;  %v7909_v52 = vld [vmem:[%s11131_s4 + $0x68] sm:$0xff]  ;;  %v7915_v1 = vld [vmem:[%s11131_s4 + $0x78] sm:$0xff] }
 0x349   :  { %1627 = vmatpush1.msra.mxu0 %v7897_v50  ;;  %12196 = vst [vmem:[#allocation125_spill] sm:$0xff] %v7903_v61  ;;  %1698 = vmatpush1.msra.mxu1 %v7903_v61  ;;  %12197 = vst [vmem:[#allocation126_spill] sm:$0xff] %v7909_v52  ;;  %v7921_v50 = vld [vmem:[%s11131_s4 + $0x60] sm:$0xff]  ;;  %v7927_v61 = vld [vmem:[%s11131_s4 + $0x70] sm:$0xff] }
 0x34a   :  { %1628 = vmatprep.subr.mxu0 %v7909_v52  ;;  %12198 = vst [vmem:[#allocation127_spill] sm:$0xff] %v7915_v1  ;;  %1699 = vmatprep.subr.mxu1 %v7915_v1  ;;  %12199 = vst [vmem:[#allocation128_spill] sm:$0xff] %v7921_v50  ;;  %v7933_v52 = vld [vmem:[%s11131_s4 + $0x48] sm:$0xff]  ;;  %v7939_v1 = vld [vmem:[%s11131_s4 + $0x58] sm:$0xff] }
 0x34b   :  { %1629 = vmatpush1.msra.mxu0 %v7921_v50  ;;  %12200 = vst [vmem:[#allocation129_spill] sm:$0xff] %v7927_v61  ;;  %1700 = vmatpush1.msra.mxu1 %v7927_v61  ;;  %12201 = vst [vmem:[#allocation130_spill] sm:$0xff] %v7933_v52  ;;  %v7945_v50 = vld [vmem:[%s11131_s4 + $0x40] sm:$0xff]  ;;  %v7951_v61 = vld [vmem:[%s11131_s4 + $0x50] sm:$0xff] }
 0x34c   :  { %1630 = vmatprep.subr.mxu0 %v7933_v52  ;;  %12202 = vst [vmem:[#allocation131_spill] sm:$0xff] %v7939_v1  ;;  %1701 = vmatprep.subr.mxu1 %v7939_v1  ;;  %12203 = vst [vmem:[#allocation132_spill] sm:$0xff] %v7945_v50  ;;  %v4539_v52 = vpop.eup %4538  ;;  %v7957_v7 = vld [vmem:[%s11131_s4 + $0x28] sm:$0xff]  ;;  %v7963_v1 = vld [vmem:[%s11131_s4 + $0x38] sm:$0xff] }
 0x34d   :  { %1631 = vmatpush1.msra.mxu0 %v7945_v50  ;;  %12204 = vst [vmem:[#allocation133_spill] sm:$0xff] %v7951_v61  ;;  %1702 = vmatpush1.msra.mxu1 %v7951_v61  ;;  %12205 = vst [vmem:[#allocation134_spill] sm:$0xff] %v7957_v7  ;;  %v7969_v61 = vld [vmem:[%s11131_s4 + $0x20] sm:$0xff] }
 0x34e   :  { %1632 = vmatprep.subr.mxu0 %v7957_v7  ;;  %12206 = vst [vmem:[#allocation135_spill] sm:$0xff] %v7963_v1  ;;  %1703 = vmatprep.subr.mxu1 %v7963_v1  ;;  %12207 = vst [vmem:[#allocation136_spill] sm:$0xff] %v7969_v61  ;;  %v7981_v7 = vld [vmem:[%s11131_s4 + $0x8] sm:$0xff]  ;;  %v7987_v1 = vld [vmem:[%s11131_s4 + $0x18] sm:$0xff] }
 0x34f   :  { %v4541_v50 = vpop.eup %4540  ;;  %1633 = vmatpush1.msra.mxu0 %v7969_v61  ;;  %12208 = vst [vmem:[#allocation137_spill] sm:$0xff] %v7975_v21  ;;  %1704 = vmatpush1.msra.mxu1 %v7975_v21  ;;  %12209 = vst [vmem:[#allocation138_spill] sm:$0xff] %v7981_v7  ;;  %v7995_v21 = vld [vmem:[%s11131_s4] sm:$0xff] }
 0x350   :  { %1634 = vmatprep.subr.mxu0 %v7981_v7  ;;  %1705 = vmatprep.subr.mxu1 %v7987_v1  ;;  %v7990_v61 = vmul.f32 %v4541_v50, %v4539_v52  ;;  %v8002_v7 = vld [vmem:[%s11131_s4 + $0x10] sm:$0xff]  ;;  %v12240_v52 = vld [vmem:[#allocation33_spill] sm:$0xff] }
 0x351   :  { %1635 = vmatpush1.msra.mxu0 %v7995_v21  ;;  %1668 = vmatprep.mubr.f32.mxu0 %v11922_v20  ;;  %v12239_v50 = vld [vmem:[#allocation32_spill] sm:$0xff] }
 0x352   :  { %1706 = vmatpush1.msra.mxu1 %v8002_v7  ;;  %1739 = vmatprep.mubr.f32.mxu1 %v11922_v20 }
 0x353   :  { %1669 = vmatmul.mubr.f32.vlgmr.msra.gmra.mxu0 %v7990_v61  ;;  %1740 = vmatmul.mubr.f32.vlgmr.msra.gmra.mxu1 %v7990_v61 }
 0x354   :  { %1786 = vmatprep.subr.mxu0 %v6821_v13  ;;  %1857 = vmatprep.subr.mxu1 %v6827_v14  ;;  %v12210_v13 = vld [vmem:[#allocation2_spill] sm:$0xff]  ;;  %v12211_v14 = vld [vmem:[#allocation3_spill] sm:$0xff] }
 0x355   :  { %1787 = vmatpush1.msra.mxu0 %v6833_v15  ;;  %1858 = vmatpush1.msra.mxu1 %v6839_v16  ;;  %v12212_v15 = vld [vmem:[#allocation4_spill] sm:$0xff]  ;;  %v12213_v16 = vld [vmem:[#allocation5_spill] sm:$0xff] }
 0x356   :  { %1788 = vmatprep.subr.mxu0 %v6845_v17  ;;  %1859 = vmatprep.subr.mxu1 %v6851_v18  ;;  %v12214_v17 = vld [vmem:[#allocation6_spill] sm:$0xff]  ;;  %v12215_v18 = vld [vmem:[#allocation7_spill] sm:$0xff] }
 0x357   :  { %1789 = vmatpush1.msra.mxu0 %v6857_v19  ;;  %1860 = vmatpush1.msra.mxu1 %v6863_v22  ;;  %v12216_v19 = vld [vmem:[#allocation8_spill] sm:$0xff]  ;;  %v12217_v22 = vld [vmem:[#allocation9_spill] sm:$0xff] }
 0x358   :  { %1790 = vmatprep.subr.mxu0 %v6869_v23  ;;  %1861 = vmatprep.subr.mxu1 %v6875_v25  ;;  %v12218_v23 = vld [vmem:[#allocation10_spill] sm:$0xff]  ;;  %v12219_v25 = vld [vmem:[#allocation11_spill] sm:$0xff] }
 0x359   :  { %1791 = vmatpush1.msra.mxu0 %v6881_v26  ;;  %1862 = vmatpush1.msra.mxu1 %v6887_v28  ;;  %v12220_v26 = vld [vmem:[#allocation12_spill] sm:$0xff]  ;;  %v12221_v28 = vld [vmem:[#allocation13_spill] sm:$0xff] }
 0x35a   :  { %1792 = vmatprep.subr.mxu0 %v6893_v57  ;;  %1863 = vmatprep.subr.mxu1 %v6899_v30  ;;  %v12222_v57 = vld [vmem:[#allocation14_spill] sm:$0xff]  ;;  %v12223_v30 = vld [vmem:[#allocation15_spill] sm:$0xff] }
 0x35b   :  { %1793 = vmatpush1.msra.mxu0 %v6905_v31  ;;  %1864 = vmatpush1.msra.mxu1 %v6911_v32  ;;  %v12224_v31 = vld [vmem:[#allocation16_spill] sm:$0xff]  ;;  %v12225_v32 = vld [vmem:[#allocation17_spill] sm:$0xff] }
 0x35c   :  { %1794 = vmatprep.subr.mxu0 %v6917_v34  ;;  %1865 = vmatprep.subr.mxu1 %v6923_v35  ;;  %v12226_v34 = vld [vmem:[#allocation18_spill] sm:$0xff]  ;;  %v12227_v35 = vld [vmem:[#allocation19_spill] sm:$0xff] }
 0x35d   :  { %1795 = vmatpush1.msra.mxu0 %v6929_v36  ;;  %1866 = vmatpush1.msra.mxu1 %v6935_v37  ;;  %v12228_v36 = vld [vmem:[#allocation20_spill] sm:$0xff]  ;;  %v12229_v37 = vld [vmem:[#allocation21_spill] sm:$0xff] }
 0x35e   :  { %1796 = vmatprep.subr.mxu0 %v6941_v38  ;;  %1867 = vmatprep.subr.mxu1 %v6947_v39  ;;  %v12230_v38 = vld [vmem:[#allocation23_spill] sm:$0xff]  ;;  %v12231_v39 = vld [vmem:[#allocation24_spill] sm:$0xff] }
 0x35f   :  { %1797 = vmatpush1.msra.mxu0 %v6953_v41  ;;  %1868 = vmatpush1.msra.mxu1 %v6959_v42  ;;  %v12232_v41 = vld [vmem:[#allocation25_spill] sm:$0xff]  ;;  %v12233_v42 = vld [vmem:[#allocation26_spill] sm:$0xff] }
 0x360   :  { %1798 = vmatprep.subr.mxu0 %v6965_v43  ;;  %1869 = vmatprep.subr.mxu1 %v6971_v44  ;;  %v12234_v43 = vld [vmem:[#allocation27_spill] sm:$0xff]  ;;  %v12235_v44 = vld [vmem:[#allocation28_spill] sm:$0xff] }
 0x361   :  { %1799 = vmatpush1.msra.mxu0 %v6977_v45  ;;  %1870 = vmatpush1.msra.mxu1 %v6983_v54  ;;  %v12236_v45 = vld [vmem:[#allocation29_spill] sm:$0xff]  ;;  %v12237_v54 = vld [vmem:[#allocation30_spill] sm:$0xff] }
 0x362   :  { %1800 = vmatprep.subr.mxu0 %v6989_v56  ;;  %1871 = vmatprep.subr.mxu1 %v12210_v13  ;;  %v12238_v56 = vld [vmem:[#allocation31_spill] sm:$0xff]  ;;  %v12241_v13 = vld [vmem:[#allocation34_spill] sm:$0xff] }
 0x363   :  { %1801 = vmatpush1.msra.mxu0 %v12211_v14  ;;  %1872 = vmatpush1.msra.mxu1 %v12212_v15  ;;  %v12242_v14 = vld [vmem:[#allocation35_spill] sm:$0xff]  ;;  %v12243_v15 = vld [vmem:[#allocation36_spill] sm:$0xff] }
 0x364   :  { %1802 = vmatprep.subr.mxu0 %v12213_v16  ;;  %1873 = vmatprep.subr.mxu1 %v12214_v17  ;;  %v12244_v16 = vld [vmem:[#allocation37_spill] sm:$0xff]  ;;  %v12245_v17 = vld [vmem:[#allocation38_spill] sm:$0xff] }
 0x365   :  { %1803 = vmatpush1.msra.mxu0 %v12215_v18  ;;  %1874 = vmatpush1.msra.mxu1 %v12216_v19  ;;  %v12246_v18 = vld [vmem:[#allocation39_spill] sm:$0xff]  ;;  %v12247_v19 = vld [vmem:[#allocation40_spill] sm:$0xff] }
 0x366   :  { %1804 = vmatprep.subr.mxu0 %v12217_v22  ;;  %1875 = vmatprep.subr.mxu1 %v12218_v23  ;;  %v12248_v22 = vld [vmem:[#allocation41_spill] sm:$0xff]  ;;  %v12249_v23 = vld [vmem:[#allocation42_spill] sm:$0xff] }
 0x367   :  { %1805 = vmatpush1.msra.mxu0 %v12219_v25  ;;  %1876 = vmatpush1.msra.mxu1 %v12220_v26  ;;  %v12250_v25 = vld [vmem:[#allocation43_spill] sm:$0xff]  ;;  %v12251_v26 = vld [vmem:[#allocation44_spill] sm:$0xff] }
 0x368   :  { %1806 = vmatprep.subr.mxu0 %v12221_v28  ;;  %1877 = vmatprep.subr.mxu1 %v12222_v57  ;;  %v12252_v28 = vld [vmem:[#allocation45_spill] sm:$0xff]  ;;  %v12253_v57 = vld [vmem:[#allocation46_spill] sm:$0xff] }
 0x369   :  { %1807 = vmatpush1.msra.mxu0 %v12223_v30  ;;  %1878 = vmatpush1.msra.mxu1 %v12224_v31  ;;  %v12254_v30 = vld [vmem:[#allocation47_spill] sm:$0xff]  ;;  %v12256_v31 = vld [vmem:[#allocation49_spill] sm:$0xff] }
 0x36a   :  { %1808 = vmatprep.subr.mxu0 %v12225_v32  ;;  %1879 = vmatprep.subr.mxu1 %v12226_v34  ;;  %v12257_v32 = vld [vmem:[#allocation50_spill] sm:$0xff]  ;;  %v12258_v34 = vld [vmem:[#allocation51_spill] sm:$0xff] }
 0x36b   :  { %1809 = vmatpush1.msra.mxu0 %v12227_v35  ;;  %1880 = vmatpush1.msra.mxu1 %v12228_v36  ;;  %v12259_v35 = vld [vmem:[#allocation52_spill] sm:$0xff]  ;;  %v12260_v36 = vld [vmem:[#allocation53_spill] sm:$0xff] }
 0x36c   :  { %1810 = vmatprep.subr.mxu0 %v12229_v37  ;;  %1881 = vmatprep.subr.mxu1 %v12230_v38  ;;  %v12261_v37 = vld [vmem:[#allocation54_spill] sm:$0xff]  ;;  %v12262_v38 = vld [vmem:[#allocation55_spill] sm:$0xff] }
 0x36d   :  { %1811 = vmatpush1.msra.mxu0 %v12231_v39  ;;  %1882 = vmatpush1.msra.mxu1 %v12232_v41  ;;  %v12263_v39 = vld [vmem:[#allocation56_spill] sm:$0xff]  ;;  %v12264_v41 = vld [vmem:[#allocation57_spill] sm:$0xff] }
 0x36e   :  { %1812 = vmatprep.subr.mxu0 %v12233_v42  ;;  %1883 = vmatprep.subr.mxu1 %v12234_v43  ;;  %v12265_v42 = vld [vmem:[#allocation58_spill] sm:$0xff]  ;;  %v12266_v43 = vld [vmem:[#allocation59_spill] sm:$0xff] }
 0x36f   :  { %1813 = vmatpush1.msra.mxu0 %v12235_v44  ;;  %1884 = vmatpush1.msra.mxu1 %v12236_v45  ;;  %v12267_v44 = vld [vmem:[#allocation60_spill] sm:$0xff]  ;;  %v12268_v45 = vld [vmem:[#allocation61_spill] sm:$0xff] }
 0x370   :  { %1814 = vmatprep.subr.mxu0 %v12237_v54  ;;  %1885 = vmatprep.subr.mxu1 %v12238_v56  ;;  %v12269_v54 = vld [vmem:[#allocation62_spill] sm:$0xff]  ;;  %v12270_v56 = vld [vmem:[#allocation63_spill] sm:$0xff] }
 0x371   :  { %1815 = vmatpush1.msra.mxu0 %v12239_v50  ;;  %1886 = vmatpush1.msra.mxu1 %v12240_v52  ;;  %v12271_v50 = vld [vmem:[#allocation64_spill] sm:$0xff]  ;;  %v12272_v52 = vld [vmem:[#allocation65_spill] sm:$0xff] }
 0x372   :  { %1816 = vmatprep.subr.mxu0 %v12241_v13  ;;  %1887 = vmatprep.subr.mxu1 %v12242_v14  ;;  %v12273_v13 = vld [vmem:[#allocation66_spill] sm:$0xff]  ;;  %v12274_v14 = vld [vmem:[#allocation67_spill] sm:$0xff] }
 0x373   :  { %1817 = vmatpush1.msra.mxu0 %v12243_v15  ;;  %1850 = vmatprep.mubr.f32.mxu0 %v11922_v20  ;;  %v12275_v15 = vld [vmem:[#allocation68_spill] sm:$0xff] }
 0x374   :  { %1888 = vmatpush1.msra.mxu1 %v12244_v16  ;;  %1921 = vmatprep.mubr.f32.mxu1 %v11922_v20  ;;  %v12276_v16 = vld [vmem:[#allocation69_spill] sm:$0xff] }
 0x375   :  { %1851 = vmatmul.mubr.f32.vlgmr.msra.gmra.mxu0 %v7990_v61  ;;  %1922 = vmatmul.mubr.f32.vlgmr.msra.gmra.mxu1 %v7990_v61  ;;  %v12255_v61 = vld [vmem:[#allocation48_spill] sm:$0xff] }
 0x376   :  { %1956 = vmatprep.subr.mxu0 %v12245_v17  ;;  %2027 = vmatprep.subr.mxu1 %v12246_v18  ;;  %v12277_v17 = vld [vmem:[#allocation70_spill] sm:$0xff]  ;;  %v12278_v18 = vld [vmem:[#allocation71_spill] sm:$0xff] }
 0x377   :  { %1957 = vmatpush1.msra.mxu0 %v12247_v19  ;;  %2028 = vmatpush1.msra.mxu1 %v12248_v22  ;;  %v12279_v19 = vld [vmem:[#allocation72_spill] sm:$0xff]  ;;  %v12280_v22 = vld [vmem:[#allocation73_spill] sm:$0xff] }
 0x378   :  { %1958 = vmatprep.subr.mxu0 %v12249_v23  ;;  %2029 = vmatprep.subr.mxu1 %v12250_v25  ;;  %v12281_v23 = vld [vmem:[#allocation74_spill] sm:$0xff]  ;;  %v12282_v25 = vld [vmem:[#allocation75_spill] sm:$0xff] }
 0x379   :  { %1959 = vmatpush1.msra.mxu0 %v12251_v26  ;;  %2030 = vmatpush1.msra.mxu1 %v12252_v28  ;;  %v12283_v26 = vld [vmem:[#allocation76_spill] sm:$0xff]  ;;  %v12284_v28 = vld [vmem:[#allocation77_spill] sm:$0xff] }
 0x37a   :  { %1960 = vmatprep.subr.mxu0 %v12253_v57  ;;  %2031 = vmatprep.subr.mxu1 %v12254_v30  ;;  %v12285_v57 = vld [vmem:[#allocation78_spill] sm:$0xff]  ;;  %v12286_v30 = vld [vmem:[#allocation79_spill] sm:$0xff] }
 0x37b   :  { %1961 = vmatpush1.msra.mxu0 %v12255_v61  ;;  %2032 = vmatpush1.msra.mxu1 %v12256_v31  ;;  %v12287_v61 = vld [vmem:[#allocation80_spill] sm:$0xff]  ;;  %v12288_v31 = vld [vmem:[#allocation81_spill] sm:$0xff] }
 0x37c   :  { %1962 = vmatprep.subr.mxu0 %v12257_v32  ;;  %2033 = vmatprep.subr.mxu1 %v12258_v34  ;;  %v12289_v32 = vld [vmem:[#allocation82_spill] sm:$0xff]  ;;  %v12290_v34 = vld [vmem:[#allocation83_spill] sm:$0xff] }
 0x37d   :  { %1963 = vmatpush1.msra.mxu0 %v12259_v35  ;;  %2034 = vmatpush1.msra.mxu1 %v12260_v36  ;;  %v12291_v35 = vld [vmem:[#allocation84_spill] sm:$0xff]  ;;  %v12292_v36 = vld [vmem:[#allocation85_spill] sm:$0xff] }
 0x37e   :  { %1964 = vmatprep.subr.mxu0 %v12261_v37  ;;  %2035 = vmatprep.subr.mxu1 %v12262_v38  ;;  %v12293_v37 = vld [vmem:[#allocation86_spill] sm:$0xff]  ;;  %v12294_v38 = vld [vmem:[#allocation87_spill] sm:$0xff] }
 0x37f   :  { %1965 = vmatpush1.msra.mxu0 %v12263_v39  ;;  %2036 = vmatpush1.msra.mxu1 %v12264_v41  ;;  %v12295_v39 = vld [vmem:[#allocation150_spill] sm:$0xff] }
 0x380   :  { %1966 = vmatprep.subr.mxu0 %v12265_v42  ;;  %2037 = vmatprep.subr.mxu1 %v12266_v43  ;;  %v12296_v41 = vld [vmem:[#allocation22_spill] sm:$0xff]  ;;  %v12297_v42 = vld [vmem:[#allocation151_spill] sm:$0xff]  ;;  %v12298_v43 = vld [vmem:[#allocation156_spill] sm:$0xff] }
 0x381   :  { %1967 = vmatpush1.msra.mxu0 %v12267_v44  ;;  %2038 = vmatpush1.msra.mxu1 %v12268_v45  ;;  %v12299_v44 = vld [vmem:[#allocation158_spill] sm:$0xff]  ;;  %v12300_v45 = vld [vmem:[#allocation152_spill] sm:$0xff] }
 0x382   :  { %1968 = vmatprep.subr.mxu0 %v12269_v54  ;;  %2039 = vmatprep.subr.mxu1 %v12270_v56  ;;  %v12301_v54 = vld [vmem:[#allocation153_spill] sm:$0xff]  ;;  %v12302_v56 = vld [vmem:[#allocation154_spill] sm:$0xff] }
 0x383   :  { %1969 = vmatpush1.msra.mxu0 %v12271_v50  ;;  %2040 = vmatpush1.msra.mxu1 %v12272_v52  ;;  %v12303_v50 = vld [vmem:[#allocation155_spill] sm:$0xff]  ;;  %v12304_v52 = vld [vmem:[#allocation157_spill] sm:$0xff] }
 0x384   :  { %1970 = vmatprep.subr.mxu0 %v12273_v13  ;;  %2041 = vmatprep.subr.mxu1 %v12274_v14  ;;  %v12305_v13 = vld [vmem:[#allocation159_spill] sm:$0xff]  ;;  %v12306_v14 = vld [vmem:[#allocation88_spill] sm:$0xff] }
 0x385   :  { %1971 = vmatpush1.msra.mxu0 %v12275_v15  ;;  %2042 = vmatpush1.msra.mxu1 %v12276_v16  ;;  %v12307_v15 = vld [vmem:[#allocation89_spill] sm:$0xff]  ;;  %v12308_v16 = vld [vmem:[#allocation90_spill] sm:$0xff] }
 0x386   :  { %1972 = vmatprep.subr.mxu0 %v12277_v17  ;;  %2043 = vmatprep.subr.mxu1 %v12278_v18  ;;  %v12309_v17 = vld [vmem:[#allocation91_spill] sm:$0xff]  ;;  %v12310_v18 = vld [vmem:[#allocation92_spill] sm:$0xff] }
 0x387   :  { %1973 = vmatpush1.msra.mxu0 %v12279_v19  ;;  %2044 = vmatpush1.msra.mxu1 %v12280_v22 }
 0x388   :  { %1974 = vmatprep.subr.mxu0 %v12281_v23  ;;  %2045 = vmatprep.subr.mxu1 %v12282_v25  ;;  %v5302_v25 = vmov 4  }
 0x389   :  { %1975 = vmatpush1.msra.mxu0 %v12283_v26  ;;  %2046 = vmatpush1.msra.mxu1 %v12284_v28  ;;  %v12311_v28 = vld [vmem:[#allocation93_spill] sm:$0xff] }
 0x38a   :  { %1976 = vmatprep.subr.mxu0 %v12285_v57  ;;  %2047 = vmatprep.subr.mxu1 %v12286_v30 }
 0x38b   :  { %1977 = vmatpush1.msra.mxu0 %v12287_v61  ;;  %2048 = vmatpush1.msra.mxu1 %v12288_v31 }
 0x38c   :  { %1978 = vmatprep.subr.mxu0 %v12289_v32  ;;  %2049 = vmatprep.subr.mxu1 %v12290_v34 }
 0x38d   :  { %1979 = vmatpush1.msra.mxu0 %v12291_v35  ;;  %2050 = vmatpush1.msra.mxu1 %v12292_v36 }
 0x38e   :  { %1980 = vmatprep.subr.mxu0 %v12293_v37  ;;  %2051 = vmatprep.subr.mxu1 %v12294_v38 }
 0x38f   :  { %1981 = vmatpush1.msra.mxu0 %v12295_v39  ;;  %2052 = vmatpush1.msra.mxu1 %v12296_v41 }
 0x390   :  { %1982 = vmatprep.subr.mxu0 %v12297_v42  ;;  %2053 = vmatprep.subr.mxu1 %v12298_v43 }
 0x391   :  { %1983 = vmatpush1.msra.mxu0 %v12299_v44  ;;  %2054 = vmatpush1.msra.mxu1 %v12300_v45 }
 0x392   :  { %1984 = vmatprep.subr.mxu0 %v12301_v54  ;;  %2055 = vmatprep.subr.mxu1 %v12302_v56 }
 0x393   :  { %1985 = vmatpush1.msra.mxu0 %v12303_v50  ;;  %2056 = vmatpush1.msra.mxu1 %v12304_v52  ;;  %v1776_v52 = vpop.permute.xlu1 %1775 }
 0x394   :  { %1986 = vmatprep.subr.mxu0 %v12305_v13  ;;  %2057 = vmatprep.subr.mxu1 %v12306_v14  ;;  %v1778_v13 = vmul.f32 %v1776_v52, %v11995_v2  ;;  %v1779_v14 = vmul.f32 %v1776_v52, %v11996_v4 }
 0x395   :  { %1987 = vmatpush1.msra.mxu0 %v12307_v15  ;;  %2058 = vmatpush1.msra.mxu1 %v12308_v16 }
 0x396   :  { %2020 = vmatprep.mubr.f32.mxu0 %v11922_v20  ;;  %2091 = vmatprep.mubr.f32.mxu1 %v11922_v20  ;;  %v1782_v15 = vadd.f32 %v1778_v13, %v11997_v6  ;;  %v1783_v16 = vadd.f32 %v1779_v14, %v11998_v8 }
 0x397   :  { %2098 = vmatprep.subr.mxu0 %v12309_v17  ;;  %2169 = vmatprep.subr.mxu1 %v12310_v18 }
 0x398   :  { %4457 = vset.pattern.permute.xlu1 %v5302_v25 }
 0x399   :  { %2269 = vperm.xlu1 %4457, %v12311_v28  }
 0x3f2   :  { %v1528_v19 = vpop.f32.mrf.mxu0  ;;  %v1599_v22 = vpop.f32.mrf.mxu1 }
 0x3f4   :  { %v1530_v23 = vpop.f32.mrf.mxu0  ;;  %v1601_v57 = vpop.f32.mrf.mxu1 }
 0x413   :  { %v1670_v26 = vpop.f32.mrf.mxu0  ;;  %v1741_v32 = vpop.f32.mrf.mxu1 }
 0x414   :  { %v1671_v30 = vadd.f32 %v1670_v26, %v1528_v19  ;;  %v1742_v42 = vadd.f32 %v1741_v32, %v1599_v22 }
 0x415   :  { %v1672_v61 = vpop.f32.mrf.mxu0  ;;  %v1743_v38 = vpop.f32.mrf.mxu1 }
 0x416   :  { %v1746_v31 = vadd.f32 %v1671_v30, %v6719_v33  ;;  %v1673_v34 = vadd.f32 %v1672_v61, %v1530_v23  ;;  %v1744_v39 = vadd.f32 %v1743_v38, %v1601_v57  ;;  %v1748_v45 = vadd.f32 %v1742_v42, %v6732_v47 }
 0x417   :  { %v1781_v61 = vmul.f32 %v1776_v52, %v11999_v24 }
 0x418   :  { %v4357_v35 = vmul.f32 -1.442695, %v1746_v31  ;;  %v1747_v36 = vadd.f32 %v1673_v34, %v6723_v40  ;;  %v1749_v41 = vadd.f32 %v1744_v39, %v6728_v49  ;;  %v1780_v39 = vmul.f32 %v1776_v52, %v6566_v62  ;;  %v12312_v52 = vld [vmem:[#allocation94_spill] sm:$0xff] }
 0x41a   :  { %4542 = vpow2.f32 %v4357_v35  ;;  %v4358_v37 = vmul.f32 -1.442695, %v1747_v36  ;;  %v4359_v43 = vmul.f32 -1.442695, %v1749_v41  ;;  %v1784_v42 = vadd.f32 %v1780_v39, %v6570_v53  ;;  %v12339_v39 = vld [vmem:[#allocation121_spill] sm:$0xff] }
 0x41c   :  { %4544 = vpow2.f32 %v4358_v37  ;;  %v1785_v37 = vadd.f32 %v1781_v61, %v12000_v29  ;;  %v12332_v61 = vld [vmem:[#allocation114_spill] sm:$0xff] }
 0x41d   :  { %4546 = vpow2.f32 %v4359_v43 }
 0x427   :  { %v4543_v44 = vpop.eup %4542 }
 0x428   :  { %v1753_v54 = vadd.f32 1.0, %v4543_v44 }
 0x429   :  { %v4545_v56 = vpop.eup %4544 }
 0x42a   :  { %4548 = vrcp.f32 %v1753_v54  ;;  %v1759_v50 = vadd.f32 1.0, %v4545_v56  ;;  %v4547_v18 = vpop.eup %4546 }
 0x42b   :  { %4550 = vtanh.f32 %v1748_v45  ;;  %v1766_v30 = vadd.f32 1.0, %v4547_v18  ;;  %v12321_v18 = vld [vmem:[#allocation103_spill] sm:$0xff] }
 0x42c   :  { %4552 = vrcp.f32 %v1759_v50 }
 0x435   :  { %v1852_v17 = vpop.f32.mrf.mxu0  ;;  %v1923_v34 = vpop.f32.mrf.mxu1 }
 0x436   :  { %v1928_v19 = vadd.f32 %v1852_v17, %v1782_v15  ;;  %v12318_v15 = vld [vmem:[#allocation100_spill] sm:$0xff] }
 0x437   :  { %v4549_v22 = vpop.eup %4548  ;;  %v1854_v23 = vpop.f32.mrf.mxu0 }
 0x438   :  { %v4551_v25 = vpop.eup %4550  ;;  %v4360_v26 = vmul.f32 -1.442695, %v1928_v19  ;;  %v1929_v28 = vadd.f32 %v1854_v23, %v1783_v16  ;;  %v1925_v38 = vpop.f32.mrf.mxu1  ;;  %v12322_v23 = vld [vmem:[#allocation104_spill] sm:$0xff] }
 0x439   :  { %v4553_v57 = vpop.eup %4552  ;;  %v1770_v31 = vmul.f32 %v4551_v25, %v4549_v22  ;;  %v1931_v41 = vadd.f32 %v1925_v38, %v1785_v37  ;;  %v12323_v25 = vld [vmem:[#allocation105_spill] sm:$0xff]  ;;  %v12337_v37 = vld [vmem:[#allocation119_spill] sm:$0xff]  ;;  %v12338_v38 = vld [vmem:[#allocation120_spill] sm:$0xff] }
 0x43a   :  { %v1769_v32 = vmul.f32 %v4553_v57, %v7620_v58  ;;  %4554 = vpow2.f32 %v4360_v26  ;;  %v4361_v35 = vmul.f32 -1.442695, %v1929_v28  ;;  %v1930_v58 = vadd.f32 %v1923_v34, %v1784_v42  ;;  %v12325_v28 = vld [vmem:[#allocation107_spill] sm:$0xff]  ;;  %v12326_v57 = vld [vmem:[#allocation108_spill] sm:$0xff]  ;;  %v12335_v34 = vld [vmem:[#allocation117_spill] sm:$0xff] }
 0x43b   :  { %v4362_v43 = vmul.f32 -1.442695, %v1931_v41  ;;  %v12340_v41 = vld [vmem:[#allocation122_spill] sm:$0xff]  ;;  %v12341_v42 = vld [vmem:[#allocation123_spill] sm:$0xff] }
 0x43c   :  { %4556 = vpow2.f32 %v4361_v35  ;;  %v8155_v36 = vadd.f32 %v1770_v31, %v1769_v32  ;;  %v12333_v31 = vld [vmem:[#allocation115_spill] sm:$0xff]  ;;  %v12334_v32 = vld [vmem:[#allocation116_spill] sm:$0xff]  ;;  %v12336_v35 = vld [vmem:[#allocation118_spill] sm:$0xff] }
 0x43d   :  { %4558 = vrcp.f32 %v1766_v30  ;;  %v12331_v30 = vld [vmem:[#allocation113_spill] sm:$0xff] }
 0x43e   :  { %4560 = vtanh.f32 %v8155_v36 }
 0x43f   :  { %4562 = vpow2.f32 %v4362_v43  ;;  %v12342_v43 = vld [vmem:[#allocation124_spill] sm:$0xff] }
 0x447   :  { %v4555_v44 = vpop.eup %4554 }
 0x448   :  { %v1935_v45 = vadd.f32 1.0, %v4555_v44  ;;  %v12343_v44 = vld [vmem:[#allocation125_spill] sm:$0xff] }
 0x449   :  { %v4557_v54 = vpop.eup %4556 }
 0x44a   :  { %v4559_v56 = vpop.eup %4558  ;;  %4564 = vrcp.f32 %v1935_v45  ;;  %v1941_v50 = vadd.f32 1.0, %v4557_v54  ;;  %v12345_v45 = vld [vmem:[#allocation127_spill] sm:$0xff]  ;;  %v12346_v54 = vld [vmem:[#allocation128_spill] sm:$0xff] }
 0x44b   :  { %v4561_v13 = vpop.eup %4560  ;;  %4566 = vtanh.f32 %v1930_v58  ;;  %v12344_v58 = vld [vmem:[#allocation126_spill] sm:$0xff] }
 0x44c   :  { %4568 = vrcp.f32 %v1941_v50  ;;  %v1773_v14 = vmul.f32 %v4561_v13, %v4559_v56  ;;  %v12347_v56 = vld [vmem:[#allocation129_spill] sm:$0xff]  ;;  %v12348_v50 = vld [vmem:[#allocation130_spill] sm:$0xff]  ;;  %v12349_v13 = vld [vmem:[#allocation131_spill] sm:$0xff] }
 0x44e   :  { %2021 = vmatmul.mubr.f32.vlgmr.msra.gmra.mxu0 %v1773_v14  ;;  %2092 = vmatmul.mubr.f32.vlgmr.msra.gmra.mxu1 %v1773_v14  ;;  %v12350_v14 = vld [vmem:[#allocation132_spill] sm:$0xff] }
 0x44f   :  { %2099 = vmatpush1.msra.mxu0 %v7629_v0  ;;  %2170 = vmatpush1.msra.mxu1 %v7635_v11  ;;  %v12313_v0 = vld [vmem:[#allocation95_spill] sm:$0xff]  ;;  %v12314_v11 = vld [vmem:[#allocation96_spill] sm:$0xff] }
 0x450   :  { %2100 = vmatprep.subr.mxu0 %v7641_v5  ;;  %2171 = vmatprep.subr.mxu1 %v7647_v3  ;;  %v12315_v5 = vld [vmem:[#allocation97_spill] sm:$0xff]  ;;  %v4563_v3 = vpop.eup %4562 }
 0x451   :  { %2101 = vmatpush1.msra.mxu0 %v7653_v9  ;;  %2172 = vmatpush1.msra.mxu1 %v7659_v46  ;;  %v12316_v9 = vld [vmem:[#allocation98_spill] sm:$0xff]  ;;  %v12317_v46 = vld [vmem:[#allocation99_spill] sm:$0xff]  ;;  %v1948_v17 = vadd.f32 1.0, %v4563_v3 }
 0x452   :  { %2102 = vmatprep.subr.mxu0 %v7665_v60  ;;  %2173 = vmatprep.subr.mxu1 %v7671_v55  ;;  %v12319_v55 = vld [vmem:[#allocation101_spill] sm:$0xff] }
 0x453   :  { %2103 = vmatpush1.msra.mxu0 %v7677_v59  ;;  %2174 = vmatpush1.msra.mxu1 %v7683_v63  ;;  %v12320_v63 = vld [vmem:[#allocation102_spill] sm:$0xff]  ;;  %4570 = vrcp.f32 %v1948_v17  ;;  %v8278_v17 = vld [vmem:[%s11128_s2 + $0x1d0] sm:$0xff] }
 0x454   :  { %2104 = vmatprep.subr.mxu0 %v12312_v52  ;;  %2175 = vmatprep.subr.mxu1 %v12313_v0  ;;  %v12351_v52 = vld [vmem:[#allocation133_spill] sm:$0xff] }
 0x455   :  { %2105 = vmatpush1.msra.mxu0 %v12314_v11  ;;  %2176 = vmatpush1.msra.mxu1 %v12315_v5  ;;  %v12352_v11 = vld [vmem:[#allocation134_spill] sm:$0xff]  ;;  %v12353_v5 = vld [vmem:[#allocation135_spill] sm:$0xff] }
 0x456   :  { %2106 = vmatprep.subr.mxu0 %v12316_v9  ;;  %2177 = vmatprep.subr.mxu1 %v12317_v46  ;;  %v12354_v9 = vld [vmem:[#allocation136_spill] sm:$0xff]  ;;  %v12355_v46 = vld [vmem:[#allocation137_spill] sm:$0xff] }
 0x457   :  { %v4565_v60 = vpop.eup %4564  ;;  %2107 = vmatpush1.msra.mxu0 %v12318_v15  ;;  %2178 = vmatpush1.msra.mxu1 %v12319_v55  ;;  %v8236_v55 = vld [vmem:[%s11128_s2 + $0x1e8] sm:$0xff] }
 0x458   :  { %v4567_v59 = vpop.eup %4566  ;;  %2108 = vmatprep.subr.mxu0 %v12320_v63  ;;  %2179 = vmatprep.subr.mxu1 %v7743_v27  ;;  %v12324_v27 = vld [vmem:[#allocation106_spill] sm:$0xff]  ;;  %v8266_v63 = vld [vmem:[%s11128_s2 + $0x1d8] sm:$0xff] }
 0x459   :  { %v4569_v16 = vpop.eup %4568  ;;  %2109 = vmatpush1.msra.mxu0 %v12321_v18  ;;  %2180 = vmatpush1.msra.mxu1 %v7755_v48  ;;  %v1952_v19 = vmul.f32 %v4567_v59, %v4565_v60  ;;  %v12327_v48 = vld [vmem:[#allocation109_spill] sm:$0xff]  ;;  %v12356_v60 = vld [vmem:[#allocation138_spill] sm:$0xff]  ;;  %v8260_v59 = vld [vmem:[%s11128_s2 + $0x1c8] sm:$0xff] }
 0x45a   :  { %v1951_v22 = vmul.f32 %v4569_v16, %v7783_v10  ;;  %2110 = vmatprep.subr.mxu0 %v7762_v51  ;;  %2181 = vmatprep.subr.mxu1 %v7768_v12  ;;  %v12328_v10 = vld [vmem:[#allocation110_spill] sm:$0xff]  ;;  %v12329_v51 = vld [vmem:[#allocation111_spill] sm:$0xff]  ;;  %v12330_v12 = vld [vmem:[#allocation112_spill] sm:$0xff] }
 0x45b   :  { %2111 = vmatpush1.msra.mxu0 %v12322_v23  ;;  %2182 = vmatpush1.msra.mxu1 %v12323_v25  ;;  %v8272_v16 = vld [vmem:[%s11128_s2 + $0x1c0] sm:$0xff]  ;;  %v8284_v18 = vld [vmem:[%s11128_s2 + $0x1a8] sm:$0xff]  ;;  %v8302_v23 = vld [vmem:[%s11128_s2 + $0x1b0] sm:$0xff] }
 0x45c   :  { %v8188_v26 = vadd.f32 %v1952_v19, %v1951_v22  ;;  %2112 = vmatprep.subr.mxu0 %v12324_v27  ;;  %2183 = vmatprep.subr.mxu1 %v12325_v28  ;;  %v8290_v19 = vld [vmem:[%s11128_s2 + $0x1b8] sm:$0xff]  ;;  %v8296_v22 = vld [vmem:[%s11128_s2 + $0x1a0] sm:$0xff]  ;;  %v8308_v25 = vld [vmem:[%s11128_s2 + $0x188] sm:$0xff] }
 0x45d   :  { %2113 = vmatpush1.msra.mxu0 %v12326_v57  ;;  %2184 = vmatpush1.msra.mxu1 %v12327_v48  ;;  %v8314_v27 = vld [vmem:[%s11128_s2 + $0x198] sm:$0xff]  ;;  %v8320_v28 = vld [vmem:[%s11128_s2 + $0x180] sm:$0xff]  ;;  %v8326_v57 = vld [vmem:[%s11128_s2 + $0x190] sm:$0xff] }
 0x45e   :  { %2114 = vmatprep.subr.mxu0 %v12328_v10  ;;  %2185 = vmatprep.subr.mxu1 %v12329_v51  ;;  %4572 = vtanh.f32 %v8188_v26  ;;  %v8332_v48 = vld [vmem:[%s11128_s2 + $0x168] sm:$0xff]  ;;  %v8338_v10 = vld [vmem:[%s11128_s2 + $0x178] sm:$0xff]  ;;  %v8344_v51 = vld [vmem:[%s11128_s2 + $0x160] sm:$0xff] }
 0x45f   :  { %2115 = vmatpush1.msra.mxu0 %v12330_v12  ;;  %2186 = vmatpush1.msra.mxu1 %v12331_v30  ;;  %v8350_v12 = vld [vmem:[%s11128_s2 + $0x170] sm:$0xff]  ;;  %v8356_v30 = vld [vmem:[%s11128_s2 + $0x148] sm:$0xff] }
 0x460   :  { %2116 = vmatprep.subr.mxu0 %v12332_v61  ;;  %2187 = vmatprep.subr.mxu1 %v12333_v31  ;;  %v4571_v0 = vpop.eup %4570  ;;  %v8362_v61 = vld [vmem:[%s11128_s2 + $0x158] sm:$0xff]  ;;  %v8368_v31 = vld [vmem:[%s11128_s2 + $0x140] sm:$0xff] }
 0x461   :  { %2117 = vmatpush1.msra.mxu0 %v12334_v32  ;;  %2188 = vmatpush1.msra.mxu1 %v12335_v34  ;;  %v8374_v32 = vld [vmem:[%s11128_s2 + $0x150] sm:$0xff]  ;;  %v8380_v34 = vld [vmem:[%s11128_s2 + $0x128] sm:$0xff] }
 0x462   :  { %2118 = vmatprep.subr.mxu0 %v12336_v35  ;;  %2189 = vmatprep.subr.mxu1 %v12337_v37  ;;  %v8386_v35 = vld [vmem:[%s11128_s2 + $0x138] sm:$0xff]  ;;  %v8392_v37 = vld [vmem:[%s11128_s2 + $0x120] sm:$0xff] }
 0x463   :  { %2119 = vmatpush1.msra.mxu0 %v12338_v38  ;;  %2190 = vmatpush1.msra.mxu1 %v12339_v39  ;;  %v8398_v38 = vld [vmem:[%s11128_s2 + $0x130] sm:$0xff]  ;;  %v8404_v39 = vld [vmem:[%s11128_s2 + $0x108] sm:$0xff] }
 0x464   :  { %2120 = vmatprep.subr.mxu0 %v12340_v41  ;;  %2191 = vmatprep.subr.mxu1 %v12341_v42  ;;  %v8410_v41 = vld [vmem:[%s11128_s2 + $0x118] sm:$0xff]  ;;  %v8416_v42 = vld [vmem:[%s11128_s2 + $0x100] sm:$0xff] }
 0x465   :  { %2121 = vmatpush1.msra.mxu0 %v12342_v43  ;;  %2192 = vmatpush1.msra.mxu1 %v12343_v44  ;;  %12357 = vst [vmem:[#allocation139_spill] sm:$0xff] %v8410_v41  ;;  %12358 = vst [vmem:[#allocation140_spill] sm:$0xff] %v8416_v42  ;;  %v8422_v43 = vld [vmem:[%s11128_s2 + $0x110] sm:$0xff]  ;;  %v8428_v44 = vld [vmem:[%s11128_s2 + $0xe8] sm:$0xff] }
 0x466   :  { %2122 = vmatprep.subr.mxu0 %v12344_v58  ;;  %2193 = vmatprep.subr.mxu1 %v12345_v45  ;;  %12359 = vst [vmem:[#allocation141_spill] sm:$0xff] %v8422_v43  ;;  %12360 = vst [vmem:[#allocation142_spill] sm:$0xff] %v8428_v44  ;;  %v8434_v58 = vld [vmem:[%s11128_s2 + $0xf8] sm:$0xff]  ;;  %v8440_v45 = vld [vmem:[%s11128_s2 + $0xe0] sm:$0xff] }
 0x467   :  { %2123 = vmatpush1.msra.mxu0 %v12346_v54  ;;  %2194 = vmatpush1.msra.mxu1 %v12347_v56  ;;  %12361 = vst [vmem:[#allocation143_spill] sm:$0xff] %v8434_v58  ;;  %12362 = vst [vmem:[#allocation144_spill] sm:$0xff] %v8440_v45  ;;  %v8446_v54 = vld [vmem:[%s11128_s2 + $0xf0] sm:$0xff]  ;;  %v8452_v56 = vld [vmem:[%s11128_s2 + $0xc8] sm:$0xff] }
 0x468   :  { %2124 = vmatprep.subr.mxu0 %v12348_v50  ;;  %2195 = vmatprep.subr.mxu1 %v12349_v13  ;;  %12363 = vst [vmem:[#allocation145_spill] sm:$0xff] %v8446_v54  ;;  %12364 = vst [vmem:[#allocation146_spill] sm:$0xff] %v8452_v56  ;;  %v8458_v50 = vld [vmem:[%s11128_s2 + $0xd8] sm:$0xff]  ;;  %v8464_v13 = vld [vmem:[%s11128_s2 + $0xc0] sm:$0xff] }
 0x469   :  { %2125 = vmatpush1.msra.mxu0 %v12350_v14  ;;  %2196 = vmatpush1.msra.mxu1 %v12351_v52  ;;  %12365 = vst [vmem:[#allocation147_spill] sm:$0xff] %v8458_v50  ;;  %12366 = vst [vmem:[#allocation148_spill] sm:$0xff] %v8464_v13  ;;  %v8470_v14 = vld [vmem:[%s11128_s2 + $0xd0] sm:$0xff]  ;;  %v8476_v52 = vld [vmem:[%s11128_s2 + $0xa8] sm:$0xff] }
 0x46a   :  { %2126 = vmatprep.subr.mxu0 %v12352_v11  ;;  %2197 = vmatprep.subr.mxu1 %v12353_v5  ;;  %12367 = vst [vmem:[#allocation149_spill] sm:$0xff] %v8470_v14  ;;  %12368 = vst [vmem:[#allocation2_spill] sm:$0xff] %v8476_v52  ;;  %v8488_v11 = vld [vmem:[%s11128_s2 + $0xa0] sm:$0xff]  ;;  %v8494_v5 = vld [vmem:[%s11128_s2 + $0xb0] sm:$0xff] }
 0x46b   :  { %v4573_v3 = vpop.eup %4572  ;;  %2127 = vmatpush1.msra.mxu0 %v12354_v9  ;;  %2198 = vmatpush1.msra.mxu1 %v12355_v46  ;;  %12370 = vst [vmem:[#allocation4_spill] sm:$0xff] %v8488_v11  ;;  %12371 = vst [vmem:[#allocation5_spill] sm:$0xff] %v8494_v5  ;;  %v8506_v9 = vld [vmem:[%s11128_s2 + $0x98] sm:$0xff]  ;;  %v8512_v46 = vld [vmem:[%s11128_s2 + $0x80] sm:$0xff] }
 0x46c   :  { %2128 = vmatprep.subr.mxu0 %v12356_v60  ;;  %2199 = vmatprep.subr.mxu1 %v7987_v1  ;;  %v8225_v15 = vmul.f32 %v4573_v3, %v4571_v0  ;;  %v8254_v1 = vld [vmem:[%s11128_s2 + $0x1f0] sm:$0xff]  ;;  %v8482_v0 = vld [vmem:[%s11128_s2 + $0xb8] sm:$0xff]  ;;  %v8500_v3 = vld [vmem:[%s11128_s2 + $0x88] sm:$0xff]  ;;  %12373 = vst [vmem:[#allocation7_spill] sm:$0xff] %v8506_v9 }
 0x46d   :  { %2129 = vmatpush1.msra.mxu0 %v7995_v21  ;;  %2162 = vmatprep.mubr.f32.mxu0 %v11922_v20  ;;  %v8242_v21 = vld [vmem:[%s11128_s2 + $0x1f8] sm:$0xff]  ;;  %12369 = vst [vmem:[#allocation3_spill] sm:$0xff] %v8482_v0  ;;  %12372 = vst [vmem:[#allocation6_spill] sm:$0xff] %v8500_v3  ;;  %v8518_v60 = vld [vmem:[%s11128_s2 + $0x90] sm:$0xff] }
 0x46e   :  { %2200 = vmatpush1.msra.mxu1 %v8002_v7  ;;  %2233 = vmatprep.mubr.f32.mxu1 %v11922_v20  ;;  %v8248_v7 = vld [vmem:[%s11128_s2 + $0x1e0] sm:$0xff]  ;;  %12374 = vst [vmem:[#allocation8_spill] sm:$0xff] %v8512_v46  ;;  %12375 = vst [vmem:[#allocation9_spill] sm:$0xff] %v8518_v60 }
 0x46f   :  { %2163 = vmatmul.mubr.f32.vlgmr.msra.gmra.mxu0 %v8225_v15  ;;  %2234 = vmatmul.mubr.f32.vlgmr.msra.gmra.mxu1 %v8225_v15 }
 0x470   :  { %2280 = vmatprep.subr.mxu0 %v8236_v55  ;;  %2351 = vmatprep.subr.mxu1 %v8242_v21 }
 0x471   :  { %2281 = vmatpush1.msra.mxu0 %v8248_v7  ;;  %2352 = vmatpush1.msra.mxu1 %v8254_v1 }
 0x472   :  { %2282 = vmatprep.subr.mxu0 %v8260_v59  ;;  %2353 = vmatprep.subr.mxu1 %v8266_v63 }
 0x473   :  { %2283 = vmatpush1.msra.mxu0 %v8272_v16  ;;  %2354 = vmatpush1.msra.mxu1 %v8278_v17 }
 0x474   :  { %2284 = vmatprep.subr.mxu0 %v8284_v18  ;;  %2355 = vmatprep.subr.mxu1 %v8290_v19 }
 0x475   :  { %2285 = vmatpush1.msra.mxu0 %v8296_v22  ;;  %2356 = vmatpush1.msra.mxu1 %v8302_v23 }
 0x476   :  { %2286 = vmatprep.subr.mxu0 %v8308_v25  ;;  %2357 = vmatprep.subr.mxu1 %v8314_v27 }
 0x477   :  { %2287 = vmatpush1.msra.mxu0 %v8320_v28  ;;  %2358 = vmatpush1.msra.mxu1 %v8326_v57 }
 0x478   :  { %2288 = vmatprep.subr.mxu0 %v8332_v48  ;;  %2359 = vmatprep.subr.mxu1 %v8338_v10 }
 0x479   :  { %2289 = vmatpush1.msra.mxu0 %v8344_v51  ;;  %2360 = vmatpush1.msra.mxu1 %v8350_v12 }
 0x47a   :  { %2290 = vmatprep.subr.mxu0 %v8356_v30  ;;  %2361 = vmatprep.subr.mxu1 %v8362_v61 }
 0x47b   :  { %2291 = vmatpush1.msra.mxu0 %v8368_v31  ;;  %2362 = vmatpush1.msra.mxu1 %v8374_v32 }
 0x47c   :  { %2292 = vmatprep.subr.mxu0 %v8380_v34  ;;  %2363 = vmatprep.subr.mxu1 %v8386_v35 }
 0x47d   :  { %2293 = vmatpush1.msra.mxu0 %v8392_v37  ;;  %2364 = vmatpush1.msra.mxu1 %v8398_v38 }
 0x47e   :  { %2294 = vmatprep.subr.mxu0 %v8404_v39  ;;  %2365 = vmatprep.subr.mxu1 %v8410_v41 }
 0x47f   :  { %2295 = vmatpush1.msra.mxu0 %v8416_v42  ;;  %2366 = vmatpush1.msra.mxu1 %v8422_v43 }
 0x480   :  { %2296 = vmatprep.subr.mxu0 %v8428_v44  ;;  %2367 = vmatprep.subr.mxu1 %v8434_v58 }
 0x481   :  { %2297 = vmatpush1.msra.mxu0 %v8440_v45  ;;  %2368 = vmatpush1.msra.mxu1 %v8446_v54 }
 0x482   :  { %2298 = vmatprep.subr.mxu0 %v8452_v56  ;;  %2369 = vmatprep.subr.mxu1 %v8458_v50 }
 0x483   :  { %2299 = vmatpush1.msra.mxu0 %v8464_v13  ;;  %2370 = vmatpush1.msra.mxu1 %v8470_v14 }
 0x484   :  { %2300 = vmatprep.subr.mxu0 %v8476_v52  ;;  %2371 = vmatprep.subr.mxu1 %v8482_v0  ;;  %v9022_v0 = vld [vmem:[%s11130_s0] sm:$0xff] }
 0x485   :  { %2301 = vmatpush1.msra.mxu0 %v8488_v11  ;;  %2372 = vmatpush1.msra.mxu1 %v8494_v5  ;;  %v5303_v5 = vmov 5   ;;  %12458 = vst [vmem:[#allocation152_spill] sm:$0xff] %v9022_v0 }
 0x486   :  { %2302 = vmatprep.subr.mxu0 %v8500_v3  ;;  %2373 = vmatprep.subr.mxu1 %v8506_v9  ;;  %v8524_v3 = vld [vmem:[%s11128_s2 + $0x68] sm:$0xff]  ;;  %v8530_v9 = vld [vmem:[%s11128_s2 + $0x78] sm:$0xff] }
 0x487   :  { %2303 = vmatpush1.msra.mxu0 %v8512_v46  ;;  %2374 = vmatpush1.msra.mxu1 %v8518_v60  ;;  %12376 = vst [vmem:[#allocation10_spill] sm:$0xff] %v8524_v3  ;;  %12377 = vst [vmem:[#allocation11_spill] sm:$0xff] %v8530_v9  ;;  %v8536_v46 = vld [vmem:[%s11128_s2 + $0x60] sm:$0xff]  ;;  %v8542_v60 = vld [vmem:[%s11128_s2 + $0x70] sm:$0xff] }
 0x488   :  { %2304 = vmatprep.subr.mxu0 %v8524_v3  ;;  %2375 = vmatprep.subr.mxu1 %v8530_v9  ;;  %12378 = vst [vmem:[#allocation12_spill] sm:$0xff] %v8536_v46  ;;  %12379 = vst [vmem:[#allocation13_spill] sm:$0xff] %v8542_v60  ;;  %v8548_v3 = vld [vmem:[%s11128_s2 + $0x48] sm:$0xff]  ;;  %v8554_v9 = vld [vmem:[%s11128_s2 + $0x58] sm:$0xff] }
 0x489   :  { %2305 = vmatpush1.msra.mxu0 %v8536_v46  ;;  %2376 = vmatpush1.msra.mxu1 %v8542_v60  ;;  %12380 = vst [vmem:[#allocation14_spill] sm:$0xff] %v8548_v3  ;;  %12381 = vst [vmem:[#allocation15_spill] sm:$0xff] %v8554_v9  ;;  %v8560_v46 = vld [vmem:[%s11128_s2 + $0x40] sm:$0xff]  ;;  %v8566_v60 = vld [vmem:[%s11128_s2 + $0x50] sm:$0xff] }
 0x48a   :  { %2306 = vmatprep.subr.mxu0 %v8548_v3  ;;  %2377 = vmatprep.subr.mxu1 %v8554_v9  ;;  %12382 = vst [vmem:[#allocation16_spill] sm:$0xff] %v8560_v46  ;;  %12383 = vst [vmem:[#allocation17_spill] sm:$0xff] %v8566_v60  ;;  %v8572_v3 = vld [vmem:[%s11128_s2 + $0x28] sm:$0xff]  ;;  %v8578_v9 = vld [vmem:[%s11128_s2 + $0x38] sm:$0xff] }
 0x48b   :  { %2307 = vmatpush1.msra.mxu0 %v8560_v46  ;;  %2378 = vmatpush1.msra.mxu1 %v8566_v60  ;;  %12384 = vst [vmem:[#allocation18_spill] sm:$0xff] %v8572_v3  ;;  %12385 = vst [vmem:[#allocation19_spill] sm:$0xff] %v8578_v9  ;;  %v8584_v46 = vld [vmem:[%s11128_s2 + $0x20] sm:$0xff]  ;;  %v8590_v60 = vld [vmem:[%s11128_s2 + $0x30] sm:$0xff] }
 0x48c   :  { %2308 = vmatprep.subr.mxu0 %v8572_v3  ;;  %2379 = vmatprep.subr.mxu1 %v8578_v9  ;;  %12386 = vst [vmem:[#allocation20_spill] sm:$0xff] %v8584_v46  ;;  %12387 = vst [vmem:[#allocation21_spill] sm:$0xff] %v8590_v60  ;;  %v8596_v3 = vld [vmem:[%s11128_s2 + $0x8] sm:$0xff]  ;;  %v8602_v9 = vld [vmem:[%s11128_s2 + $0x18] sm:$0xff] }
 0x48d   :  { %2309 = vmatpush1.msra.mxu0 %v8584_v46  ;;  %2380 = vmatpush1.msra.mxu1 %v8590_v60  ;;  %12388 = vst [vmem:[#allocation23_spill] sm:$0xff] %v8596_v3  ;;  %12389 = vst [vmem:[#allocation24_spill] sm:$0xff] %v8602_v9  ;;  %v8608_v46 = vld [vmem:[%s11128_s2] sm:$0xff] }
 0x48e   :  { %2310 = vmatprep.subr.mxu0 %v8596_v3  ;;  %2381 = vmatprep.subr.mxu1 %v8602_v9  ;;  %12390 = vst [vmem:[#allocation25_spill] sm:$0xff] %v8608_v46  ;;  %v8615_v3 = vld [vmem:[%s11128_s2 + $0x10] sm:$0xff]  ;;  %v8624_v9 = vld [vmem:[%s11129_s5 + $0x1e8] sm:$0xff] }
 0x48f   :  { %2311 = vmatpush1.msra.mxu0 %v8608_v46  ;;  %2344 = vmatprep.mubr.f32.mxu0 %v11922_v20  ;;  %12391 = vst [vmem:[#allocation26_spill] sm:$0xff] %v8615_v3  ;;  %12392 = vst [vmem:[#allocation27_spill] sm:$0xff] %v8624_v9  ;;  %v8630_v46 = vld [vmem:[%s11129_s5 + $0x1f8] sm:$0xff] }
 0x490   :  { %2382 = vmatpush1.msra.mxu1 %v8615_v3  ;;  %2415 = vmatprep.mubr.f32.mxu1 %v11922_v20  ;;  %12393 = vst [vmem:[#allocation28_spill] sm:$0xff] %v8630_v46  ;;  %v8636_v3 = vld [vmem:[%s11129_s5 + $0x1e0] sm:$0xff] }
 0x491   :  { %2345 = vmatmul.mubr.f32.vlgmr.msra.gmra.mxu0 %v8225_v15  ;;  %2416 = vmatmul.mubr.f32.vlgmr.msra.gmra.mxu1 %v8225_v15  ;;  %12394 = vst [vmem:[#allocation29_spill] sm:$0xff] %v8636_v3  ;;  %v8642_v15 = vld [vmem:[%s11129_s5 + $0x1f0] sm:$0xff] }
 0x492   :  { %2450 = vmatprep.subr.mxu0 %v8624_v9  ;;  %2521 = vmatprep.subr.mxu1 %v8630_v46  ;;  %12395 = vst [vmem:[#allocation30_spill] sm:$0xff] %v8642_v15  ;;  %v8648_v9 = vld [vmem:[%s11129_s5 + $0x1c8] sm:$0xff]  ;;  %v8654_v46 = vld [vmem:[%s11129_s5 + $0x1d8] sm:$0xff] }
 0x493   :  { %2451 = vmatpush1.msra.mxu0 %v8636_v3  ;;  %2522 = vmatpush1.msra.mxu1 %v8642_v15  ;;  %12396 = vst [vmem:[#allocation31_spill] sm:$0xff] %v8648_v9  ;;  %12397 = vst [vmem:[#allocation32_spill] sm:$0xff] %v8654_v46  ;;  %v8660_v3 = vld [vmem:[%s11129_s5 + $0x1c0] sm:$0xff]  ;;  %v8666_v15 = vld [vmem:[%s11129_s5 + $0x1d0] sm:$0xff] }
 0x494   :  { %2452 = vmatprep.subr.mxu0 %v8648_v9  ;;  %2523 = vmatprep.subr.mxu1 %v8654_v46  ;;  %12398 = vst [vmem:[#allocation33_spill] sm:$0xff] %v8660_v3  ;;  %12399 = vst [vmem:[#allocation34_spill] sm:$0xff] %v8666_v15  ;;  %v8672_v9 = vld [vmem:[%s11129_s5 + $0x1a8] sm:$0xff]  ;;  %v8678_v46 = vld [vmem:[%s11129_s5 + $0x1b8] sm:$0xff] }
 0x495   :  { %2453 = vmatpush1.msra.mxu0 %v8660_v3  ;;  %2524 = vmatpush1.msra.mxu1 %v8666_v15  ;;  %12400 = vst [vmem:[#allocation35_spill] sm:$0xff] %v8672_v9  ;;  %12401 = vst [vmem:[#allocation36_spill] sm:$0xff] %v8678_v46  ;;  %v8684_v3 = vld [vmem:[%s11129_s5 + $0x1a0] sm:$0xff]  ;;  %v8690_v15 = vld [vmem:[%s11129_s5 + $0x1b0] sm:$0xff] }
 0x496   :  { %2454 = vmatprep.subr.mxu0 %v8672_v9  ;;  %2525 = vmatprep.subr.mxu1 %v8678_v46  ;;  %12402 = vst [vmem:[#allocation37_spill] sm:$0xff] %v8684_v3  ;;  %12403 = vst [vmem:[#allocation38_spill] sm:$0xff] %v8690_v15  ;;  %v8696_v9 = vld [vmem:[%s11129_s5 + $0x188] sm:$0xff]  ;;  %v8702_v46 = vld [vmem:[%s11129_s5 + $0x198] sm:$0xff] }
 0x497   :  { %2455 = vmatpush1.msra.mxu0 %v8684_v3  ;;  %2526 = vmatpush1.msra.mxu1 %v8690_v15  ;;  %12404 = vst [vmem:[#allocation39_spill] sm:$0xff] %v8696_v9  ;;  %12405 = vst [vmem:[#allocation40_spill] sm:$0xff] %v8702_v46  ;;  %v8708_v3 = vld [vmem:[%s11129_s5 + $0x180] sm:$0xff]  ;;  %v8714_v15 = vld [vmem:[%s11129_s5 + $0x190] sm:$0xff] }
 0x498   :  { %2456 = vmatprep.subr.mxu0 %v8696_v9  ;;  %2527 = vmatprep.subr.mxu1 %v8702_v46  ;;  %12406 = vst [vmem:[#allocation41_spill] sm:$0xff] %v8708_v3  ;;  %12407 = vst [vmem:[#allocation42_spill] sm:$0xff] %v8714_v15  ;;  %v8720_v9 = vld [vmem:[%s11129_s5 + $0x168] sm:$0xff]  ;;  %v8726_v46 = vld [vmem:[%s11129_s5 + $0x178] sm:$0xff] }
 0x499   :  { %2457 = vmatpush1.msra.mxu0 %v8708_v3  ;;  %2528 = vmatpush1.msra.mxu1 %v8714_v15  ;;  %12408 = vst [vmem:[#allocation43_spill] sm:$0xff] %v8720_v9  ;;  %12409 = vst [vmem:[#allocation44_spill] sm:$0xff] %v8726_v46  ;;  %v8732_v3 = vld [vmem:[%s11129_s5 + $0x160] sm:$0xff]  ;;  %v8738_v15 = vld [vmem:[%s11129_s5 + $0x170] sm:$0xff] }
 0x49a   :  { %2458 = vmatprep.subr.mxu0 %v8720_v9  ;;  %2529 = vmatprep.subr.mxu1 %v8726_v46  ;;  %12410 = vst [vmem:[#allocation45_spill] sm:$0xff] %v8732_v3  ;;  %12411 = vst [vmem:[#allocation46_spill] sm:$0xff] %v8738_v15  ;;  %v8744_v9 = vld [vmem:[%s11129_s5 + $0x148] sm:$0xff]  ;;  %v8750_v46 = vld [vmem:[%s11129_s5 + $0x158] sm:$0xff] }
 0x49b   :  { %2459 = vmatpush1.msra.mxu0 %v8732_v3  ;;  %2530 = vmatpush1.msra.mxu1 %v8738_v15  ;;  %12412 = vst [vmem:[#allocation47_spill] sm:$0xff] %v8744_v9  ;;  %12413 = vst [vmem:[#allocation48_spill] sm:$0xff] %v8750_v46  ;;  %v8756_v3 = vld [vmem:[%s11129_s5 + $0x140] sm:$0xff]  ;;  %v8762_v15 = vld [vmem:[%s11129_s5 + $0x150] sm:$0xff] }
 0x49c   :  { %2460 = vmatprep.subr.mxu0 %v8744_v9  ;;  %2531 = vmatprep.subr.mxu1 %v8750_v46  ;;  %12414 = vst [vmem:[#allocation49_spill] sm:$0xff] %v8756_v3  ;;  %12415 = vst [vmem:[#allocation50_spill] sm:$0xff] %v8762_v15  ;;  %v8768_v9 = vld [vmem:[%s11129_s5 + $0x128] sm:$0xff]  ;;  %v8774_v46 = vld [vmem:[%s11129_s5 + $0x138] sm:$0xff] }
 0x49d   :  { %2461 = vmatpush1.msra.mxu0 %v8756_v3  ;;  %2532 = vmatpush1.msra.mxu1 %v8762_v15  ;;  %12416 = vst [vmem:[#allocation51_spill] sm:$0xff] %v8768_v9  ;;  %12417 = vst [vmem:[#allocation52_spill] sm:$0xff] %v8774_v46  ;;  %v8780_v3 = vld [vmem:[%s11129_s5 + $0x120] sm:$0xff]  ;;  %v8786_v15 = vld [vmem:[%s11129_s5 + $0x130] sm:$0xff] }
 0x49e   :  { %2462 = vmatprep.subr.mxu0 %v8768_v9  ;;  %2533 = vmatprep.subr.mxu1 %v8774_v46  ;;  %12418 = vst [vmem:[#allocation53_spill] sm:$0xff] %v8780_v3  ;;  %12419 = vst [vmem:[#allocation54_spill] sm:$0xff] %v8786_v15  ;;  %v8792_v9 = vld [vmem:[%s11129_s5 + $0x108] sm:$0xff]  ;;  %v8798_v46 = vld [vmem:[%s11129_s5 + $0x118] sm:$0xff] }
 0x49f   :  { %2463 = vmatpush1.msra.mxu0 %v8780_v3  ;;  %2534 = vmatpush1.msra.mxu1 %v8786_v15  ;;  %12420 = vst [vmem:[#allocation55_spill] sm:$0xff] %v8792_v9  ;;  %12421 = vst [vmem:[#allocation56_spill] sm:$0xff] %v8798_v46  ;;  %v8804_v3 = vld [vmem:[%s11129_s5 + $0x100] sm:$0xff]  ;;  %v8810_v15 = vld [vmem:[%s11129_s5 + $0x110] sm:$0xff] }
 0x4a0   :  { %2464 = vmatprep.subr.mxu0 %v8792_v9  ;;  %2535 = vmatprep.subr.mxu1 %v8798_v46  ;;  %12422 = vst [vmem:[#allocation57_spill] sm:$0xff] %v8804_v3  ;;  %12423 = vst [vmem:[#allocation58_spill] sm:$0xff] %v8810_v15  ;;  %v8816_v9 = vld [vmem:[%s11129_s5 + $0xe8] sm:$0xff]  ;;  %v8822_v46 = vld [vmem:[%s11129_s5 + $0xf8] sm:$0xff] }
 0x4a1   :  { %2465 = vmatpush1.msra.mxu0 %v8804_v3  ;;  %2536 = vmatpush1.msra.mxu1 %v8810_v15  ;;  %12424 = vst [vmem:[#allocation59_spill] sm:$0xff] %v8816_v9  ;;  %12425 = vst [vmem:[#allocation60_spill] sm:$0xff] %v8822_v46  ;;  %v8828_v3 = vld [vmem:[%s11129_s5 + $0xe0] sm:$0xff]  ;;  %v8834_v15 = vld [vmem:[%s11129_s5 + $0xf0] sm:$0xff] }
 0x4a2   :  { %2466 = vmatprep.subr.mxu0 %v8816_v9  ;;  %2537 = vmatprep.subr.mxu1 %v8822_v46  ;;  %12426 = vst [vmem:[#allocation61_spill] sm:$0xff] %v8828_v3  ;;  %12427 = vst [vmem:[#allocation62_spill] sm:$0xff] %v8834_v15  ;;  %v8840_v9 = vld [vmem:[%s11129_s5 + $0xc8] sm:$0xff]  ;;  %v8846_v46 = vld [vmem:[%s11129_s5 + $0xd8] sm:$0xff] }
 0x4a3   :  { %2467 = vmatpush1.msra.mxu0 %v8828_v3  ;;  %2538 = vmatpush1.msra.mxu1 %v8834_v15  ;;  %12428 = vst [vmem:[#allocation63_spill] sm:$0xff] %v8840_v9  ;;  %12429 = vst [vmem:[#allocation64_spill] sm:$0xff] %v8846_v46  ;;  %v8852_v3 = vld [vmem:[%s11129_s5 + $0xc0] sm:$0xff]  ;;  %v8858_v15 = vld [vmem:[%s11129_s5 + $0xd0] sm:$0xff] }
 0x4a4   :  { %2468 = vmatprep.subr.mxu0 %v8840_v9  ;;  %2539 = vmatprep.subr.mxu1 %v8846_v46  ;;  %12430 = vst [vmem:[#allocation65_spill] sm:$0xff] %v8852_v3  ;;  %12431 = vst [vmem:[#allocation66_spill] sm:$0xff] %v8858_v15  ;;  %v8864_v9 = vld [vmem:[%s11129_s5 + $0xa8] sm:$0xff]  ;;  %v8870_v46 = vld [vmem:[%s11129_s5 + $0xb8] sm:$0xff] }
 0x4a5   :  { %2469 = vmatpush1.msra.mxu0 %v8852_v3  ;;  %2540 = vmatpush1.msra.mxu1 %v8858_v15  ;;  %12432 = vst [vmem:[#allocation67_spill] sm:$0xff] %v8864_v9  ;;  %12433 = vst [vmem:[#allocation68_spill] sm:$0xff] %v8870_v46  ;;  %v8876_v3 = vld [vmem:[%s11129_s5 + $0xa0] sm:$0xff]  ;;  %v8882_v15 = vld [vmem:[%s11129_s5 + $0xb0] sm:$0xff] }
 0x4a6   :  { %2470 = vmatprep.subr.mxu0 %v8864_v9  ;;  %2541 = vmatprep.subr.mxu1 %v8870_v46  ;;  %12434 = vst [vmem:[#allocation69_spill] sm:$0xff] %v8876_v3  ;;  %12435 = vst [vmem:[#allocation70_spill] sm:$0xff] %v8882_v15  ;;  %v8888_v9 = vld [vmem:[%s11129_s5 + $0x88] sm:$0xff]  ;;  %v8894_v46 = vld [vmem:[%s11129_s5 + $0x98] sm:$0xff] }
 0x4a7   :  { %2471 = vmatpush1.msra.mxu0 %v8876_v3  ;;  %2542 = vmatpush1.msra.mxu1 %v8882_v15  ;;  %12436 = vst [vmem:[#allocation71_spill] sm:$0xff] %v8888_v9  ;;  %12437 = vst [vmem:[#allocation72_spill] sm:$0xff] %v8894_v46  ;;  %v8900_v3 = vld [vmem:[%s11129_s5 + $0x80] sm:$0xff]  ;;  %v8906_v15 = vld [vmem:[%s11129_s5 + $0x90] sm:$0xff] }
 0x4a8   :  { %2472 = vmatprep.subr.mxu0 %v8888_v9  ;;  %2543 = vmatprep.subr.mxu1 %v8894_v46  ;;  %12438 = vst [vmem:[#allocation73_spill] sm:$0xff] %v8900_v3  ;;  %12439 = vst [vmem:[#allocation74_spill] sm:$0xff] %v8906_v15  ;;  %v8912_v9 = vld [vmem:[%s11129_s5 + $0x68] sm:$0xff]  ;;  %v8918_v46 = vld [vmem:[%s11129_s5 + $0x78] sm:$0xff] }
 0x4a9   :  { %2473 = vmatpush1.msra.mxu0 %v8900_v3  ;;  %2544 = vmatpush1.msra.mxu1 %v8906_v15  ;;  %12440 = vst [vmem:[#allocation75_spill] sm:$0xff] %v8912_v9  ;;  %12441 = vst [vmem:[#allocation76_spill] sm:$0xff] %v8918_v46  ;;  %v8924_v3 = vld [vmem:[%s11129_s5 + $0x60] sm:$0xff]  ;;  %v8930_v15 = vld [vmem:[%s11129_s5 + $0x70] sm:$0xff] }
 0x4aa   :  { %2474 = vmatprep.subr.mxu0 %v8912_v9  ;;  %2545 = vmatprep.subr.mxu1 %v8918_v46  ;;  %12442 = vst [vmem:[#allocation77_spill] sm:$0xff] %v8924_v3  ;;  %12443 = vst [vmem:[#allocation78_spill] sm:$0xff] %v8930_v15  ;;  %v8936_v9 = vld [vmem:[%s11129_s5 + $0x48] sm:$0xff]  ;;  %v8942_v46 = vld [vmem:[%s11129_s5 + $0x58] sm:$0xff] }
 0x4ab   :  { %2475 = vmatpush1.msra.mxu0 %v8924_v3  ;;  %2546 = vmatpush1.msra.mxu1 %v8930_v15  ;;  %12444 = vst [vmem:[#allocation79_spill] sm:$0xff] %v8936_v9  ;;  %12445 = vst [vmem:[#allocation80_spill] sm:$0xff] %v8942_v46  ;;  %v8948_v3 = vld [vmem:[%s11129_s5 + $0x40] sm:$0xff]  ;;  %v8954_v15 = vld [vmem:[%s11129_s5 + $0x50] sm:$0xff] }
 0x4ac   :  { %2476 = vmatprep.subr.mxu0 %v8936_v9  ;;  %2547 = vmatprep.subr.mxu1 %v8942_v46  ;;  %12446 = vst [vmem:[#allocation81_spill] sm:$0xff] %v8948_v3  ;;  %12447 = vst [vmem:[#allocation82_spill] sm:$0xff] %v8954_v15  ;;  %v8960_v9 = vld [vmem:[%s11129_s5 + $0x28] sm:$0xff]  ;;  %v8966_v46 = vld [vmem:[%s11129_s5 + $0x38] sm:$0xff] }
 0x4ad   :  { %2477 = vmatpush1.msra.mxu0 %v8948_v3  ;;  %2548 = vmatpush1.msra.mxu1 %v8954_v15  ;;  %12448 = vst [vmem:[#allocation83_spill] sm:$0xff] %v8960_v9  ;;  %12449 = vst [vmem:[#allocation84_spill] sm:$0xff] %v8966_v46  ;;  %v8972_v3 = vld [vmem:[%s11129_s5 + $0x20] sm:$0xff]  ;;  %v8978_v15 = vld [vmem:[%s11129_s5 + $0x30] sm:$0xff] }
 0x4ae   :  { %2478 = vmatprep.subr.mxu0 %v8960_v9  ;;  %2549 = vmatprep.subr.mxu1 %v8966_v46  ;;  %12450 = vst [vmem:[#allocation85_spill] sm:$0xff] %v8972_v3  ;;  %12451 = vst [vmem:[#allocation86_spill] sm:$0xff] %v8978_v15  ;;  %v8984_v9 = vld [vmem:[%s11129_s5 + $0x8] sm:$0xff]  ;;  %v8990_v46 = vld [vmem:[%s11129_s5 + $0x18] sm:$0xff] }
 0x4af   :  { %2479 = vmatpush1.msra.mxu0 %v8972_v3  ;;  %2550 = vmatpush1.msra.mxu1 %v8978_v15  ;;  %12452 = vst [vmem:[#allocation87_spill] sm:$0xff] %v8984_v9  ;;  %12453 = vst [vmem:[#allocation150_spill] sm:$0xff] %v8990_v46  ;;  %v8996_v3 = vld [vmem:[%s11129_s5] sm:$0xff]  ;;  %v9002_v15 = vld [vmem:[%s11129_s5 + $0x10] sm:$0xff] }
 0x4b0   :  { %2480 = vmatprep.subr.mxu0 %v8984_v9  ;;  %2551 = vmatprep.subr.mxu1 %v8990_v46  ;;  %12454 = vst [vmem:[#allocation22_spill] sm:$0xff] %v8996_v3  ;;  %12455 = vst [vmem:[#allocation151_spill] sm:$0xff] %v9002_v15  ;;  %v9010_v46 = vld [vmem:[%s11131_s4 + $0x1e8] sm:$0xff] }
 0x4b1   :  { %2481 = vmatpush1.msra.mxu0 %v8996_v3  ;;  %2552 = vmatpush1.msra.mxu1 %v9002_v15  ;;  %12456 = vst [vmem:[#allocation156_spill] sm:$0xff] %v9010_v46  ;;  %v9016_v3 = vld [vmem:[%s11131_s4 + $0x1f8] sm:$0xff] }
 0x4b2   :  { %2514 = vmatprep.mubr.f32.mxu0 %v11922_v20  ;;  %2585 = vmatprep.mubr.f32.mxu1 %v11922_v20  ;;  %12457 = vst [vmem:[#allocation158_spill] sm:$0xff] %v9016_v3 }
 0x4b3   :  { %2592 = vmatprep.subr.mxu0 %v9010_v46  ;;  %2663 = vmatprep.subr.mxu1 %v9016_v3 }
 0x4b4   :  { %4458 = vset.pattern.permute.xlu0 %v5303_v5 }
 0x4b5   :  { %2763 = vperm.xlu0 %4458, %v9022_v0  }
 0x50e   :  { %v2022_v9 = vpop.f32.mrf.mxu0  ;;  %v2093_v15 = vpop.f32.mrf.mxu1 }
 0x510   :  { %v2024_v60 = vpop.f32.mrf.mxu0  ;;  %v2095_v46 = vpop.f32.mrf.mxu1 }
 0x52f   :  { %v2164_v11 = vpop.f32.mrf.mxu0  ;;  %v2235_v50 = vpop.f32.mrf.mxu1 }
 0x530   :  { %v2165_v52 = vadd.f32 %v2164_v11, %v2022_v9  ;;  %v2236_v43 = vadd.f32 %v2235_v50, %v2093_v15 }
 0x531   :  { %v2166_v14 = vpop.f32.mrf.mxu0  ;;  %v2237_v45 = vpop.f32.mrf.mxu1 }
 0x532   :  { %v2240_v13 = vadd.f32 %v2165_v52, %v6719_v33  ;;  %v2167_v3 = vadd.f32 %v2166_v14, %v2024_v60  ;;  %v2238_v58 = vadd.f32 %v2237_v45, %v2095_v46  ;;  %v2242_v11 = vadd.f32 %v2236_v43, %v6732_v47 }
 0x534   :  { %v4363_v56 = vmul.f32 -1.442695, %v2240_v13  ;;  %v2241_v54 = vadd.f32 %v2167_v3, %v6723_v40  ;;  %v2243_v44 = vadd.f32 %v2238_v58, %v6728_v49  ;;  %v2270_v13 = vpop.permute.xlu1 %2269 }
 0x535   :  { %v2275_v15 = vmul.f32 %v2270_v13, %v11999_v24 }
 0x536   :  { %4574 = vpow2.f32 %v4363_v56  ;;  %v4364_v5 = vmul.f32 -1.442695, %v2241_v54  ;;  %v4365_v42 = vmul.f32 -1.442695, %v2243_v44  ;;  %v2272_v54 = vmul.f32 %v2270_v13, %v11995_v2 }
 0x537   :  { %v2273_v56 = vmul.f32 %v2270_v13, %v11996_v4 }
 0x538   :  { %4576 = vpow2.f32 %v4364_v5  ;;  %v2276_v45 = vadd.f32 %v2272_v54, %v11997_v6 }
 0x539   :  { %4578 = vpow2.f32 %v4365_v42  ;;  %v2277_v58 = vadd.f32 %v2273_v56, %v11998_v8  ;;  %v2279_v56 = vadd.f32 %v2275_v15, %v12000_v29  ;;  %v9050_v15 = vld [vmem:[%s11131_s4 + $0x1f0] sm:$0xff] }
 0x543   :  { %v4575_v0 = vpop.eup %4574 }
 0x544   :  { %v2247_v9 = vadd.f32 1.0, %v4575_v0 }
 0x545   :  { %v4577_v41 = vpop.eup %4576 }
 0x546   :  { %4580 = vrcp.f32 %v2247_v9  ;;  %v2253_v14 = vadd.f32 1.0, %v4577_v41  ;;  %v4579_v50 = vpop.eup %4578 }
 0x547   :  { %4582 = vtanh.f32 %v2242_v11  ;;  %v2260_v60 = vadd.f32 1.0, %v4579_v50 }
 0x548   :  { %4584 = vrcp.f32 %v2253_v14 }
 0x551   :  { %v2346_v44 = vpop.f32.mrf.mxu0  ;;  %v2417_v9 = vpop.f32.mrf.mxu1 }
 0x552   :  { %v2422_v52 = vadd.f32 %v2346_v44, %v2276_v45 }
 0x553   :  { %v4581_v43 = vpop.eup %4580  ;;  %v2348_v0 = vpop.f32.mrf.mxu0 }
 0x554   :  { %v4583_v3 = vpop.eup %4582  ;;  %v4366_v42 = vmul.f32 -1.442695, %v2422_v52  ;;  %v2423_v46 = vadd.f32 %v2348_v0, %v2277_v58  ;;  %v2419_v45 = vpop.f32.mrf.mxu1  ;;  %v2274_v58 = vmul.f32 %v2270_v13, %v6566_v62  ;;  %v9044_v13 = vld [vmem:[%s11131_s4 + $0x1e0] sm:$0xff] }
 0x555   :  { %v4585_v41 = vpop.eup %4584  ;;  %v2264_v5 = vmul.f32 %v4583_v3, %v4581_v43  ;;  %v2425_v44 = vadd.f32 %v2419_v45, %v2279_v56  ;;  %v9080_v56 = vld [vmem:[%s11131_s4 + $0x1a8] sm:$0xff]  ;;  %v9086_v45 = vld [vmem:[%s11131_s4 + $0x1b8] sm:$0xff] }
 0x556   :  { %v2263_v11 = vmul.f32 %v4585_v41, %v8155_v36  ;;  %4586 = vpow2.f32 %v4366_v42  ;;  %v4367_v14 = vmul.f32 -1.442695, %v2423_v46  ;;  %v2278_v50 = vadd.f32 %v2274_v58, %v6570_v53  ;;  %v9092_v58 = vld [vmem:[%s11131_s4 + $0x1a0] sm:$0xff] }
 0x557   :  { %v4368_v52 = vmul.f32 -1.442695, %v2425_v44  ;;  %v9098_v44 = vld [vmem:[%s11131_s4 + $0x1b0] sm:$0xff] }
 0x558   :  { %4588 = vpow2.f32 %v4367_v14  ;;  %v9035_v54 = vadd.f32 %v2264_v5, %v2263_v11  ;;  %v2424_v36 = vadd.f32 %v2417_v9, %v2278_v50  ;;  %v9056_v5 = vld [vmem:[%s11131_s4 + $0x1c8] sm:$0xff]  ;;  %v9062_v11 = vld [vmem:[%s11131_s4 + $0x1d8] sm:$0xff]  ;;  %v9068_v9 = vld [vmem:[%s11131_s4 + $0x1c0] sm:$0xff] }
 0x559   :  { %4590 = vrcp.f32 %v2260_v60  ;;  %v9074_v14 = vld [vmem:[%s11131_s4 + $0x1d0] sm:$0xff]  ;;  %v9104_v50 = vld [vmem:[%s11131_s4 + $0x188] sm:$0xff] }
 0x55a   :  { %4592 = vtanh.f32 %v9035_v54  ;;  %12459 = vst [vmem:[#allocation153_spill] sm:$0xff] %v9104_v50 }
 0x55b   :  { %4594 = vpow2.f32 %v4368_v52  ;;  %v9110_v52 = vld [vmem:[%s11131_s4 + $0x198] sm:$0xff] }
 0x55c   :  { %12460 = vst [vmem:[#allocation154_spill] sm:$0xff] %v9110_v52 }
 0x563   :  { %v4587_v43 = vpop.eup %4586 }
 0x564   :  { %v2429_v0 = vadd.f32 1.0, %v4587_v43  ;;  %v9116_v43 = vld [vmem:[%s11131_s4 + $0x180] sm:$0xff] }
 0x565   :  { %v4589_v3 = vpop.eup %4588  ;;  %12461 = vst [vmem:[#allocation155_spill] sm:$0xff] %v9116_v43 }
 0x566   :  { %v4591_v42 = vpop.eup %4590  ;;  %4596 = vrcp.f32 %v2429_v0  ;;  %v2435_v46 = vadd.f32 1.0, %v4589_v3  ;;  %v9128_v3 = vld [vmem:[%s11131_s4 + $0x168] sm:$0xff] }
 0x567   :  { %v4593_v41 = vpop.eup %4592  ;;  %4598 = vtanh.f32 %v2424_v36  ;;  %v9122_v36 = vld [vmem:[%s11131_s4 + $0x190] sm:$0xff]  ;;  %12463 = vst [vmem:[#allocation159_spill] sm:$0xff] %v9128_v3 }
 0x568   :  { %4600 = vrcp.f32 %v2435_v46  ;;  %v2267_v60 = vmul.f32 %v4593_v41, %v4591_v42  ;;  %12462 = vst [vmem:[#allocation157_spill] sm:$0xff] %v9122_v36  ;;  %v4595_v0 = vpop.eup %4594  ;;  %v9134_v42 = vld [vmem:[%s11131_s4 + $0x178] sm:$0xff]  ;;  %v9140_v41 = vld [vmem:[%s11131_s4 + $0x160] sm:$0xff] }
 0x569   :  { %12464 = vst [vmem:[#allocation88_spill] sm:$0xff] %v9134_v42  ;;  %12465 = vst [vmem:[#allocation89_spill] sm:$0xff] %v9140_v41 }
 0x56a   :  { %2515 = vmatmul.mubr.f32.vlgmr.msra.gmra.mxu0 %v2267_v60  ;;  %2586 = vmatmul.mubr.f32.vlgmr.msra.gmra.mxu1 %v2267_v60  ;;  %v9146_v60 = vld [vmem:[%s11131_s4 + $0x170] sm:$0xff] }
 0x56b   :  { %2593 = vmatpush1.msra.mxu0 %v9044_v13  ;;  %2664 = vmatpush1.msra.mxu1 %v9050_v15  ;;  %12466 = vst [vmem:[#allocation90_spill] sm:$0xff] %v9146_v60 }
 0x56c   :  { %2594 = vmatprep.subr.mxu0 %v9056_v5  ;;  %2665 = vmatprep.subr.mxu1 %v9062_v11 }
 0x56d   :  { %2595 = vmatpush1.msra.mxu0 %v9068_v9  ;;  %2666 = vmatpush1.msra.mxu1 %v9074_v14 }
 0x56e   :  { %2596 = vmatprep.subr.mxu0 %v9080_v56  ;;  %2667 = vmatprep.subr.mxu1 %v9086_v45 }
 0x56f   :  { %2597 = vmatpush1.msra.mxu0 %v9092_v58  ;;  %2668 = vmatpush1.msra.mxu1 %v9098_v44 }
 0x570   :  { %2598 = vmatprep.subr.mxu0 %v9104_v50  ;;  %2669 = vmatprep.subr.mxu1 %v9110_v52 }
 0x571   :  { %2599 = vmatpush1.msra.mxu0 %v9116_v43  ;;  %2670 = vmatpush1.msra.mxu1 %v9122_v36  ;;  %v9158_v36 = vld [vmem:[%s11131_s4 + $0x158] sm:$0xff]  ;;  %v2442_v43 = vadd.f32 1.0, %v4595_v0  ;;  %v9177_v0 = vld [vmem:[%s11131_s4 + $0x128] sm:$0xff] }
 0x572   :  { %2600 = vmatprep.subr.mxu0 %v9128_v3  ;;  %2671 = vmatprep.subr.mxu1 %v9134_v42  ;;  %v9152_v42 = vld [vmem:[%s11131_s4 + $0x148] sm:$0xff] }
 0x573   :  { %v4597_v46 = vpop.eup %4596  ;;  %2601 = vmatpush1.msra.mxu0 %v9140_v41  ;;  %2672 = vmatpush1.msra.mxu1 %v9146_v60  ;;  %12467 = vst [vmem:[#allocation91_spill] sm:$0xff] %v9152_v42  ;;  %v9164_v60 = vld [vmem:[%s11131_s4 + $0x140] sm:$0xff]  ;;  %4602 = vrcp.f32 %v2442_v43  ;;  %v9233_v43 = vld [vmem:[%s11131_s4 + $0xf8] sm:$0xff] }
 0x574   :  { %v4599_v3 = vpop.eup %4598  ;;  %2602 = vmatprep.subr.mxu0 %v9152_v42  ;;  %2673 = vmatprep.subr.mxu1 %v9158_v36  ;;  %12468 = vst [vmem:[#allocation92_spill] sm:$0xff] %v9164_v60  ;;  %v9170_v42 = vld [vmem:[%s11131_s4 + $0x150] sm:$0xff]  ;;  %12476 = vst [vmem:[#allocation100_spill] sm:$0xff] %v9233_v43 }
 0x575   :  { %v4601_v41 = vpop.eup %4600  ;;  %2603 = vmatpush1.msra.mxu0 %v9164_v60  ;;  %2674 = vmatpush1.msra.mxu1 %v9170_v42  ;;  %v2446_v52 = vmul.f32 %v4599_v3, %v4597_v46  ;;  %v9183_v60 = vld [vmem:[%s11131_s4 + $0x138] sm:$0xff]  ;;  %v9189_v3 = vld [vmem:[%s11131_s4 + $0x120] sm:$0xff] }
 0x576   :  { %v2445_v50 = vmul.f32 %v4601_v41, %v8188_v26  ;;  %2604 = vmatprep.subr.mxu0 %v9177_v0  ;;  %2675 = vmatprep.subr.mxu1 %v9183_v60  ;;  %12469 = vst [vmem:[#allocation93_spill] sm:$0xff] %v9189_v3  ;;  %v9195_v26 = vld [vmem:[%s11131_s4 + $0x130] sm:$0xff]  ;;  %v9203_v41 = vld [vmem:[%s11131_s4 + $0x108] sm:$0xff] }
 0x577   :  { %2605 = vmatpush1.msra.mxu0 %v9189_v3  ;;  %12470 = vst [vmem:[#allocation94_spill] sm:$0xff] %v9195_v26  ;;  %2676 = vmatpush1.msra.mxu1 %v9195_v26  ;;  %12471 = vst [vmem:[#allocation95_spill] sm:$0xff] %v9203_v41  ;;  %v9209_v3 = vld [vmem:[%s11131_s4 + $0x118] sm:$0xff]  ;;  %v9390_v26 = vld [vmem:[%s11131_s4 + $0x30] sm:$0xff] }
 0x578   :  { %v9198_v46 = vadd.f32 %v2446_v52, %v2445_v50  ;;  %2606 = vmatprep.subr.mxu0 %v9203_v41  ;;  %12472 = vst [vmem:[#allocation96_spill] sm:$0xff] %v9209_v3  ;;  %2677 = vmatprep.subr.mxu1 %v9209_v3  ;;  %v9215_v50 = vld [vmem:[%s11131_s4 + $0x100] sm:$0xff]  ;;  %v9221_v52 = vld [vmem:[%s11131_s4 + $0x110] sm:$0xff]  ;;  %v9227_v41 = vld [vmem:[%s11131_s4 + $0xe8] sm:$0xff] }
 0x579   :  { %12473 = vst [vmem:[#allocation97_spill] sm:$0xff] %v9215_v50  ;;  %2607 = vmatpush1.msra.mxu0 %v9215_v50  ;;  %12474 = vst [vmem:[#allocation98_spill] sm:$0xff] %v9221_v52  ;;  %2678 = vmatpush1.msra.mxu1 %v9221_v52  ;;  %v9240_v52 = vld [vmem:[%s11131_s4 + $0xe0] sm:$0xff]  ;;  %v9258_v50 = vld [vmem:[%s11131_s4 + $0xd8] sm:$0xff] }
 0x57a   :  { %12475 = vst [vmem:[#allocation99_spill] sm:$0xff] %v9227_v41  ;;  %2608 = vmatprep.subr.mxu0 %v9227_v41  ;;  %2679 = vmatprep.subr.mxu1 %v9233_v43  ;;  %4604 = vtanh.f32 %v9198_v46  ;;  %12477 = vst [vmem:[#allocation101_spill] sm:$0xff] %v9240_v52  ;;  %v9246_v41 = vld [vmem:[%s11131_s4 + $0xf0] sm:$0xff]  ;;  %v9252_v43 = vld [vmem:[%s11131_s4 + $0xc8] sm:$0xff] }
 0x57b   :  { %2609 = vmatpush1.msra.mxu0 %v9240_v52  ;;  %12478 = vst [vmem:[#allocation102_spill] sm:$0xff] %v9246_v41  ;;  %2680 = vmatpush1.msra.mxu1 %v9246_v41  ;;  %12479 = vst [vmem:[#allocation103_spill] sm:$0xff] %v9252_v43  ;;  %v9264_v52 = vld [vmem:[%s11131_s4 + $0xc0] sm:$0xff]  ;;  %v9270_v41 = vld [vmem:[%s11131_s4 + $0xd0] sm:$0xff] }
 0x57c   :  { %2610 = vmatprep.subr.mxu0 %v9252_v43  ;;  %12480 = vst [vmem:[#allocation104_spill] sm:$0xff] %v9258_v50  ;;  %2681 = vmatprep.subr.mxu1 %v9258_v50  ;;  %12481 = vst [vmem:[#allocation105_spill] sm:$0xff] %v9264_v52  ;;  %v9276_v43 = vld [vmem:[%s11131_s4 + $0xa8] sm:$0xff]  ;;  %v9282_v50 = vld [vmem:[%s11131_s4 + $0xb8] sm:$0xff] }
 0x57d   :  { %2611 = vmatpush1.msra.mxu0 %v9264_v52  ;;  %12482 = vst [vmem:[#allocation106_spill] sm:$0xff] %v9270_v41  ;;  %2682 = vmatpush1.msra.mxu1 %v9270_v41  ;;  %12483 = vst [vmem:[#allocation107_spill] sm:$0xff] %v9276_v43  ;;  %v9288_v52 = vld [vmem:[%s11131_s4 + $0xa0] sm:$0xff]  ;;  %v9294_v41 = vld [vmem:[%s11131_s4 + $0xb0] sm:$0xff] }
 0x57e   :  { %2612 = vmatprep.subr.mxu0 %v9276_v43  ;;  %12484 = vst [vmem:[#allocation108_spill] sm:$0xff] %v9282_v50  ;;  %2683 = vmatprep.subr.mxu1 %v9282_v50  ;;  %12485 = vst [vmem:[#allocation109_spill] sm:$0xff] %v9288_v52  ;;  %v9300_v43 = vld [vmem:[%s11131_s4 + $0x88] sm:$0xff]  ;;  %v9306_v50 = vld [vmem:[%s11131_s4 + $0x98] sm:$0xff] }
 0x57f   :  { %2613 = vmatpush1.msra.mxu0 %v9288_v52  ;;  %12486 = vst [vmem:[#allocation110_spill] sm:$0xff] %v9294_v41  ;;  %2684 = vmatpush1.msra.mxu1 %v9294_v41  ;;  %12487 = vst [vmem:[#allocation111_spill] sm:$0xff] %v9300_v43  ;;  %v9312_v52 = vld [vmem:[%s11131_s4 + $0x80] sm:$0xff]  ;;  %v9318_v41 = vld [vmem:[%s11131_s4 + $0x90] sm:$0xff] }
 0x580   :  { %2614 = vmatprep.subr.mxu0 %v9300_v43  ;;  %12488 = vst [vmem:[#allocation112_spill] sm:$0xff] %v9306_v50  ;;  %2685 = vmatprep.subr.mxu1 %v9306_v50  ;;  %12489 = vst [vmem:[#allocation113_spill] sm:$0xff] %v9312_v52  ;;  %v9324_v43 = vld [vmem:[%s11131_s4 + $0x68] sm:$0xff]  ;;  %v9330_v50 = vld [vmem:[%s11131_s4 + $0x78] sm:$0xff] }
 0x581   :  { %2615 = vmatpush1.msra.mxu0 %v9312_v52  ;;  %12490 = vst [vmem:[#allocation114_spill] sm:$0xff] %v9318_v41  ;;  %2686 = vmatpush1.msra.mxu1 %v9318_v41  ;;  %12491 = vst [vmem:[#allocation115_spill] sm:$0xff] %v9324_v43  ;;  %v9336_v52 = vld [vmem:[%s11131_s4 + $0x60] sm:$0xff]  ;;  %v9342_v41 = vld [vmem:[%s11131_s4 + $0x70] sm:$0xff] }
 0x582   :  { %2616 = vmatprep.subr.mxu0 %v9324_v43  ;;  %12492 = vst [vmem:[#allocation116_spill] sm:$0xff] %v9330_v50  ;;  %2687 = vmatprep.subr.mxu1 %v9330_v50  ;;  %12493 = vst [vmem:[#allocation117_spill] sm:$0xff] %v9336_v52  ;;  %v9348_v43 = vld [vmem:[%s11131_s4 + $0x48] sm:$0xff]  ;;  %v9354_v50 = vld [vmem:[%s11131_s4 + $0x58] sm:$0xff] }
 0x583   :  { %2617 = vmatpush1.msra.mxu0 %v9336_v52  ;;  %12494 = vst [vmem:[#allocation118_spill] sm:$0xff] %v9342_v41  ;;  %2688 = vmatpush1.msra.mxu1 %v9342_v41  ;;  %12495 = vst [vmem:[#allocation119_spill] sm:$0xff] %v9348_v43  ;;  %v9360_v52 = vld [vmem:[%s11131_s4 + $0x40] sm:$0xff]  ;;  %v9366_v41 = vld [vmem:[%s11131_s4 + $0x50] sm:$0xff] }
 0x584   :  { %2618 = vmatprep.subr.mxu0 %v9348_v43  ;;  %12496 = vst [vmem:[#allocation120_spill] sm:$0xff] %v9354_v50  ;;  %2689 = vmatprep.subr.mxu1 %v9354_v50  ;;  %12497 = vst [vmem:[#allocation121_spill] sm:$0xff] %v9360_v52  ;;  %v4603_v43 = vpop.eup %4602  ;;  %v9372_v3 = vld [vmem:[%s11131_s4 + $0x28] sm:$0xff]  ;;  %v9378_v50 = vld [vmem:[%s11131_s4 + $0x38] sm:$0xff] }
 0x585   :  { %2619 = vmatpush1.msra.mxu0 %v9360_v52  ;;  %12498 = vst [vmem:[#allocation122_spill] sm:$0xff] %v9366_v41  ;;  %2690 = vmatpush1.msra.mxu1 %v9366_v41  ;;  %12499 = vst [vmem:[#allocation123_spill] sm:$0xff] %v9372_v3  ;;  %v9384_v41 = vld [vmem:[%s11131_s4 + $0x20] sm:$0xff] }
 0x586   :  { %2620 = vmatprep.subr.mxu0 %v9372_v3  ;;  %12500 = vst [vmem:[#allocation124_spill] sm:$0xff] %v9378_v50  ;;  %2691 = vmatprep.subr.mxu1 %v9378_v50  ;;  %12501 = vst [vmem:[#allocation125_spill] sm:$0xff] %v9384_v41  ;;  %v9396_v3 = vld [vmem:[%s11131_s4 + $0x8] sm:$0xff]  ;;  %v9402_v50 = vld [vmem:[%s11131_s4 + $0x18] sm:$0xff] }
 0x587   :  { %v4605_v52 = vpop.eup %4604  ;;  %2621 = vmatpush1.msra.mxu0 %v9384_v41  ;;  %12502 = vst [vmem:[#allocation126_spill] sm:$0xff] %v9390_v26  ;;  %2692 = vmatpush1.msra.mxu1 %v9390_v26  ;;  %12503 = vst [vmem:[#allocation127_spill] sm:$0xff] %v9396_v3  ;;  %v9410_v26 = vld [vmem:[%s11131_s4] sm:$0xff] }
 0x588   :  { %2622 = vmatprep.subr.mxu0 %v9396_v3  ;;  %2693 = vmatprep.subr.mxu1 %v9402_v50  ;;  %v9405_v41 = vmul.f32 %v4605_v52, %v4603_v43  ;;  %v9417_v3 = vld [vmem:[%s11131_s4 + $0x10] sm:$0xff]  ;;  %v12534_v43 = vld [vmem:[#allocation21_spill] sm:$0xff] }
 0x589   :  { %2623 = vmatpush1.msra.mxu0 %v9410_v26  ;;  %2656 = vmatprep.mubr.f32.mxu0 %v11922_v20  ;;  %v12533_v52 = vld [vmem:[#allocation20_spill] sm:$0xff] }
 0x58a   :  { %2694 = vmatpush1.msra.mxu1 %v9417_v3  ;;  %2727 = vmatprep.mubr.f32.mxu1 %v11922_v20 }
 0x58b   :  { %2657 = vmatmul.mubr.f32.vlgmr.msra.gmra.mxu0 %v9405_v41  ;;  %2728 = vmatmul.mubr.f32.vlgmr.msra.gmra.mxu1 %v9405_v41 }
 0x58c   :  { %2774 = vmatprep.subr.mxu0 %v8236_v55  ;;  %2845 = vmatprep.subr.mxu1 %v8242_v21  ;;  %v12504_v55 = vld [vmem:[#allocation139_spill] sm:$0xff]  ;;  %v12505_v21 = vld [vmem:[#allocation140_spill] sm:$0xff] }
 0x58d   :  { %2775 = vmatpush1.msra.mxu0 %v8248_v7  ;;  %2846 = vmatpush1.msra.mxu1 %v8254_v1  ;;  %v12506_v7 = vld [vmem:[#allocation141_spill] sm:$0xff]  ;;  %v12507_v1 = vld [vmem:[#allocation142_spill] sm:$0xff] }
 0x58e   :  { %2776 = vmatprep.subr.mxu0 %v8260_v59  ;;  %2847 = vmatprep.subr.mxu1 %v8266_v63  ;;  %v12508_v59 = vld [vmem:[#allocation143_spill] sm:$0xff]  ;;  %v12509_v63 = vld [vmem:[#allocation144_spill] sm:$0xff] }
 0x58f   :  { %2777 = vmatpush1.msra.mxu0 %v8272_v16  ;;  %2848 = vmatpush1.msra.mxu1 %v8278_v17  ;;  %v12510_v16 = vld [vmem:[#allocation145_spill] sm:$0xff]  ;;  %v12511_v17 = vld [vmem:[#allocation146_spill] sm:$0xff] }
 0x590   :  { %2778 = vmatprep.subr.mxu0 %v8284_v18  ;;  %2849 = vmatprep.subr.mxu1 %v8290_v19  ;;  %v12512_v18 = vld [vmem:[#allocation147_spill] sm:$0xff]  ;;  %v12513_v19 = vld [vmem:[#allocation148_spill] sm:$0xff] }
 0x591   :  { %2779 = vmatpush1.msra.mxu0 %v8296_v22  ;;  %2850 = vmatpush1.msra.mxu1 %v8302_v23  ;;  %v12514_v22 = vld [vmem:[#allocation149_spill] sm:$0xff]  ;;  %v12515_v23 = vld [vmem:[#allocation2_spill] sm:$0xff] }
 0x592   :  { %2780 = vmatprep.subr.mxu0 %v8308_v25  ;;  %2851 = vmatprep.subr.mxu1 %v8314_v27  ;;  %v12516_v25 = vld [vmem:[#allocation3_spill] sm:$0xff]  ;;  %v12517_v27 = vld [vmem:[#allocation4_spill] sm:$0xff] }
 0x593   :  { %2781 = vmatpush1.msra.mxu0 %v8320_v28  ;;  %2852 = vmatpush1.msra.mxu1 %v8326_v57  ;;  %v12518_v28 = vld [vmem:[#allocation5_spill] sm:$0xff]  ;;  %v12519_v57 = vld [vmem:[#allocation6_spill] sm:$0xff] }
 0x594   :  { %2782 = vmatprep.subr.mxu0 %v8332_v48  ;;  %2853 = vmatprep.subr.mxu1 %v8338_v10  ;;  %v12520_v48 = vld [vmem:[#allocation7_spill] sm:$0xff]  ;;  %v12521_v10 = vld [vmem:[#allocation8_spill] sm:$0xff] }
 0x595   :  { %2783 = vmatpush1.msra.mxu0 %v8344_v51  ;;  %2854 = vmatpush1.msra.mxu1 %v8350_v12  ;;  %v12522_v51 = vld [vmem:[#allocation9_spill] sm:$0xff]  ;;  %v12523_v12 = vld [vmem:[#allocation10_spill] sm:$0xff] }
 0x596   :  { %2784 = vmatprep.subr.mxu0 %v8356_v30  ;;  %2855 = vmatprep.subr.mxu1 %v8362_v61  ;;  %v12524_v30 = vld [vmem:[#allocation11_spill] sm:$0xff]  ;;  %v12525_v61 = vld [vmem:[#allocation12_spill] sm:$0xff] }
 0x597   :  { %2785 = vmatpush1.msra.mxu0 %v8368_v31  ;;  %2856 = vmatpush1.msra.mxu1 %v8374_v32  ;;  %v12526_v31 = vld [vmem:[#allocation13_spill] sm:$0xff]  ;;  %v12527_v32 = vld [vmem:[#allocation14_spill] sm:$0xff] }
 0x598   :  { %2786 = vmatprep.subr.mxu0 %v8380_v34  ;;  %2857 = vmatprep.subr.mxu1 %v8386_v35  ;;  %v12528_v34 = vld [vmem:[#allocation15_spill] sm:$0xff]  ;;  %v12529_v35 = vld [vmem:[#allocation16_spill] sm:$0xff] }
 0x599   :  { %2787 = vmatpush1.msra.mxu0 %v8392_v37  ;;  %2858 = vmatpush1.msra.mxu1 %v8398_v38  ;;  %v12530_v37 = vld [vmem:[#allocation17_spill] sm:$0xff]  ;;  %v12531_v38 = vld [vmem:[#allocation18_spill] sm:$0xff] }
 0x59a   :  { %2788 = vmatprep.subr.mxu0 %v8404_v39  ;;  %2859 = vmatprep.subr.mxu1 %v12504_v55  ;;  %v12532_v39 = vld [vmem:[#allocation19_spill] sm:$0xff] }
 0x59b   :  { %2789 = vmatpush1.msra.mxu0 %v12505_v21  ;;  %2860 = vmatpush1.msra.mxu1 %v12506_v7  ;;  %v12535_v55 = vld [vmem:[#allocation23_spill] sm:$0xff]  ;;  %v12536_v21 = vld [vmem:[#allocation24_spill] sm:$0xff]  ;;  %v12537_v7 = vld [vmem:[#allocation25_spill] sm:$0xff] }
 0x59c   :  { %2790 = vmatprep.subr.mxu0 %v12507_v1  ;;  %2861 = vmatprep.subr.mxu1 %v12508_v59  ;;  %v12538_v1 = vld [vmem:[#allocation26_spill] sm:$0xff]  ;;  %v12539_v59 = vld [vmem:[#allocation27_spill] sm:$0xff] }
 0x59d   :  { %2791 = vmatpush1.msra.mxu0 %v12509_v63  ;;  %2862 = vmatpush1.msra.mxu1 %v12510_v16  ;;  %v12540_v63 = vld [vmem:[#allocation28_spill] sm:$0xff]  ;;  %v12541_v16 = vld [vmem:[#allocation29_spill] sm:$0xff] }
 0x59e   :  { %2792 = vmatprep.subr.mxu0 %v12511_v17  ;;  %2863 = vmatprep.subr.mxu1 %v12512_v18  ;;  %v12542_v17 = vld [vmem:[#allocation30_spill] sm:$0xff]  ;;  %v12543_v18 = vld [vmem:[#allocation31_spill] sm:$0xff] }
 0x59f   :  { %2793 = vmatpush1.msra.mxu0 %v12513_v19  ;;  %2864 = vmatpush1.msra.mxu1 %v12514_v22  ;;  %v12544_v19 = vld [vmem:[#allocation32_spill] sm:$0xff]  ;;  %v12545_v22 = vld [vmem:[#allocation33_spill] sm:$0xff] }
 0x5a0   :  { %2794 = vmatprep.subr.mxu0 %v12515_v23  ;;  %2865 = vmatprep.subr.mxu1 %v12516_v25  ;;  %v12546_v23 = vld [vmem:[#allocation34_spill] sm:$0xff]  ;;  %v12547_v25 = vld [vmem:[#allocation35_spill] sm:$0xff] }
 0x5a1   :  { %2795 = vmatpush1.msra.mxu0 %v12517_v27  ;;  %2866 = vmatpush1.msra.mxu1 %v12518_v28  ;;  %v12548_v27 = vld [vmem:[#allocation36_spill] sm:$0xff]  ;;  %v12550_v28 = vld [vmem:[#allocation38_spill] sm:$0xff] }
 0x5a2   :  { %2796 = vmatprep.subr.mxu0 %v12519_v57  ;;  %2867 = vmatprep.subr.mxu1 %v12520_v48  ;;  %v12551_v57 = vld [vmem:[#allocation39_spill] sm:$0xff]  ;;  %v12552_v48 = vld [vmem:[#allocation40_spill] sm:$0xff] }
 0x5a3   :  { %2797 = vmatpush1.msra.mxu0 %v12521_v10  ;;  %2868 = vmatpush1.msra.mxu1 %v12522_v51  ;;  %v12553_v10 = vld [vmem:[#allocation41_spill] sm:$0xff]  ;;  %v12554_v51 = vld [vmem:[#allocation42_spill] sm:$0xff] }
 0x5a4   :  { %2798 = vmatprep.subr.mxu0 %v12523_v12  ;;  %2869 = vmatprep.subr.mxu1 %v12524_v30  ;;  %v12555_v12 = vld [vmem:[#allocation43_spill] sm:$0xff]  ;;  %v12556_v30 = vld [vmem:[#allocation44_spill] sm:$0xff] }
 0x5a5   :  { %2799 = vmatpush1.msra.mxu0 %v12525_v61  ;;  %2870 = vmatpush1.msra.mxu1 %v12526_v31  ;;  %v12557_v61 = vld [vmem:[#allocation45_spill] sm:$0xff]  ;;  %v12558_v31 = vld [vmem:[#allocation46_spill] sm:$0xff] }
 0x5a6   :  { %2800 = vmatprep.subr.mxu0 %v12527_v32  ;;  %2871 = vmatprep.subr.mxu1 %v12528_v34  ;;  %v12559_v32 = vld [vmem:[#allocation47_spill] sm:$0xff]  ;;  %v12560_v34 = vld [vmem:[#allocation48_spill] sm:$0xff] }
 0x5a7   :  { %2801 = vmatpush1.msra.mxu0 %v12529_v35  ;;  %2872 = vmatpush1.msra.mxu1 %v12530_v37  ;;  %v12561_v35 = vld [vmem:[#allocation49_spill] sm:$0xff]  ;;  %v12562_v37 = vld [vmem:[#allocation50_spill] sm:$0xff] }
 0x5a8   :  { %2802 = vmatprep.subr.mxu0 %v12531_v38  ;;  %2873 = vmatprep.subr.mxu1 %v12532_v39  ;;  %v12563_v38 = vld [vmem:[#allocation51_spill] sm:$0xff]  ;;  %v12564_v39 = vld [vmem:[#allocation52_spill] sm:$0xff] }
 0x5a9   :  { %2803 = vmatpush1.msra.mxu0 %v12533_v52  ;;  %2874 = vmatpush1.msra.mxu1 %v12534_v43  ;;  %v12565_v52 = vld [vmem:[#allocation53_spill] sm:$0xff]  ;;  %v12566_v43 = vld [vmem:[#allocation54_spill] sm:$0xff] }
 0x5aa   :  { %2804 = vmatprep.subr.mxu0 %v12535_v55  ;;  %2875 = vmatprep.subr.mxu1 %v12536_v21  ;;  %v12567_v55 = vld [vmem:[#allocation55_spill] sm:$0xff]  ;;  %v12568_v21 = vld [vmem:[#allocation56_spill] sm:$0xff] }
 0x5ab   :  { %2805 = vmatpush1.msra.mxu0 %v12537_v7  ;;  %2838 = vmatprep.mubr.f32.mxu0 %v11922_v20  ;;  %v12569_v7 = vld [vmem:[#allocation57_spill] sm:$0xff] }
 0x5ac   :  { %2876 = vmatpush1.msra.mxu1 %v12538_v1  ;;  %2909 = vmatprep.mubr.f32.mxu1 %v11922_v20  ;;  %v12570_v1 = vld [vmem:[#allocation58_spill] sm:$0xff] }
 0x5ad   :  { %2839 = vmatmul.mubr.f32.vlgmr.msra.gmra.mxu0 %v9405_v41  ;;  %2910 = vmatmul.mubr.f32.vlgmr.msra.gmra.mxu1 %v9405_v41  ;;  %v12549_v41 = vld [vmem:[#allocation37_spill] sm:$0xff] }
 0x5ae   :  { %2944 = vmatprep.subr.mxu0 %v12539_v59  ;;  %3015 = vmatprep.subr.mxu1 %v12540_v63  ;;  %v12571_v59 = vld [vmem:[#allocation59_spill] sm:$0xff]  ;;  %v12572_v63 = vld [vmem:[#allocation60_spill] sm:$0xff] }
 0x5af   :  { %2945 = vmatpush1.msra.mxu0 %v12541_v16  ;;  %3016 = vmatpush1.msra.mxu1 %v12542_v17  ;;  %v12573_v16 = vld [vmem:[#allocation61_spill] sm:$0xff]  ;;  %v12574_v17 = vld [vmem:[#allocation62_spill] sm:$0xff] }
 0x5b0   :  { %2946 = vmatprep.subr.mxu0 %v12543_v18  ;;  %3017 = vmatprep.subr.mxu1 %v12544_v19  ;;  %v12575_v18 = vld [vmem:[#allocation63_spill] sm:$0xff]  ;;  %v12576_v19 = vld [vmem:[#allocation64_spill] sm:$0xff] }
 0x5b1   :  { %2947 = vmatpush1.msra.mxu0 %v12545_v22  ;;  %3018 = vmatpush1.msra.mxu1 %v12546_v23  ;;  %v12577_v22 = vld [vmem:[#allocation65_spill] sm:$0xff]  ;;  %v12578_v23 = vld [vmem:[#allocation66_spill] sm:$0xff] }
 0x5b2   :  { %2948 = vmatprep.subr.mxu0 %v12547_v25  ;;  %3019 = vmatprep.subr.mxu1 %v12548_v27  ;;  %v12579_v25 = vld [vmem:[#allocation67_spill] sm:$0xff]  ;;  %v12580_v27 = vld [vmem:[#allocation68_spill] sm:$0xff] }
 0x5b3   :  { %2949 = vmatpush1.msra.mxu0 %v12549_v41  ;;  %3020 = vmatpush1.msra.mxu1 %v12550_v28  ;;  %v12581_v41 = vld [vmem:[#allocation69_spill] sm:$0xff]  ;;  %v12582_v28 = vld [vmem:[#allocation70_spill] sm:$0xff] }
 0x5b4   :  { %2950 = vmatprep.subr.mxu0 %v12551_v57  ;;  %3021 = vmatprep.subr.mxu1 %v12552_v48  ;;  %v12583_v57 = vld [vmem:[#allocation71_spill] sm:$0xff]  ;;  %v12584_v48 = vld [vmem:[#allocation72_spill] sm:$0xff] }
 0x5b5   :  { %2951 = vmatpush1.msra.mxu0 %v12553_v10  ;;  %3022 = vmatpush1.msra.mxu1 %v12554_v51  ;;  %v12585_v10 = vld [vmem:[#allocation73_spill] sm:$0xff]  ;;  %v12586_v51 = vld [vmem:[#allocation74_spill] sm:$0xff] }
 0x5b6   :  { %2952 = vmatprep.subr.mxu0 %v12555_v12  ;;  %3023 = vmatprep.subr.mxu1 %v12556_v30  ;;  %v12587_v12 = vld [vmem:[#allocation75_spill] sm:$0xff]  ;;  %v12588_v30 = vld [vmem:[#allocation76_spill] sm:$0xff] }
 0x5b7   :  { %2953 = vmatpush1.msra.mxu0 %v12557_v61  ;;  %3024 = vmatpush1.msra.mxu1 %v12558_v31  ;;  %v12589_v61 = vld [vmem:[#allocation77_spill] sm:$0xff]  ;;  %v12590_v31 = vld [vmem:[#allocation78_spill] sm:$0xff] }
 0x5b8   :  { %2954 = vmatprep.subr.mxu0 %v12559_v32  ;;  %3025 = vmatprep.subr.mxu1 %v12560_v34  ;;  %v12591_v32 = vld [vmem:[#allocation79_spill] sm:$0xff]  ;;  %v12592_v34 = vld [vmem:[#allocation80_spill] sm:$0xff] }
 0x5b9   :  { %2955 = vmatpush1.msra.mxu0 %v12561_v35  ;;  %3026 = vmatpush1.msra.mxu1 %v12562_v37  ;;  %v12593_v35 = vld [vmem:[#allocation81_spill] sm:$0xff]  ;;  %v12594_v37 = vld [vmem:[#allocation82_spill] sm:$0xff] }
 0x5ba   :  { %2956 = vmatprep.subr.mxu0 %v12563_v38  ;;  %3027 = vmatprep.subr.mxu1 %v12564_v39  ;;  %v12595_v38 = vld [vmem:[#allocation83_spill] sm:$0xff]  ;;  %v12596_v39 = vld [vmem:[#allocation84_spill] sm:$0xff] }
 0x5bb   :  { %2957 = vmatpush1.msra.mxu0 %v12565_v52  ;;  %3028 = vmatpush1.msra.mxu1 %v12566_v43  ;;  %v12597_v52 = vld [vmem:[#allocation85_spill] sm:$0xff]  ;;  %v12598_v43 = vld [vmem:[#allocation86_spill] sm:$0xff] }
 0x5bc   :  { %2958 = vmatprep.subr.mxu0 %v12567_v55  ;;  %3029 = vmatprep.subr.mxu1 %v12568_v21  ;;  %v12599_v55 = vld [vmem:[#allocation87_spill] sm:$0xff]  ;;  %v12600_v21 = vld [vmem:[#allocation150_spill] sm:$0xff] }
 0x5bd   :  { %2959 = vmatpush1.msra.mxu0 %v12569_v7  ;;  %3030 = vmatpush1.msra.mxu1 %v12570_v1  ;;  %v12601_v7 = vld [vmem:[#allocation22_spill] sm:$0xff]  ;;  %v12602_v1 = vld [vmem:[#allocation151_spill] sm:$0xff] }
 0x5be   :  { %2960 = vmatprep.subr.mxu0 %v12571_v59  ;;  %3031 = vmatprep.subr.mxu1 %v12572_v63  ;;  %v12603_v59 = vld [vmem:[#allocation156_spill] sm:$0xff]  ;;  %v12604_v63 = vld [vmem:[#allocation158_spill] sm:$0xff] }
 0x5bf   :  { %2961 = vmatpush1.msra.mxu0 %v12573_v16  ;;  %3032 = vmatpush1.msra.mxu1 %v12574_v17 }
 0x5c0   :  { %2962 = vmatprep.subr.mxu0 %v12575_v18  ;;  %3033 = vmatprep.subr.mxu1 %v12576_v19  ;;  %v5304_v19 = vmov 6  }
 0x5c1   :  { %2963 = vmatpush1.msra.mxu0 %v12577_v22  ;;  %3034 = vmatpush1.msra.mxu1 %v12578_v23  ;;  %v12605_v23 = vld [vmem:[#allocation152_spill] sm:$0xff] }
 0x5c2   :  { %2964 = vmatprep.subr.mxu0 %v12579_v25  ;;  %3035 = vmatprep.subr.mxu1 %v12580_v27 }
 0x5c3   :  { %2965 = vmatpush1.msra.mxu0 %v12581_v41  ;;  %3036 = vmatpush1.msra.mxu1 %v12582_v28 }
 0x5c4   :  { %2966 = vmatprep.subr.mxu0 %v12583_v57  ;;  %3037 = vmatprep.subr.mxu1 %v12584_v48 }
 0x5c5   :  { %2967 = vmatpush1.msra.mxu0 %v12585_v10  ;;  %3038 = vmatpush1.msra.mxu1 %v12586_v51 }
 0x5c6   :  { %2968 = vmatprep.subr.mxu0 %v12587_v12  ;;  %3039 = vmatprep.subr.mxu1 %v12588_v30 }
 0x5c7   :  { %2969 = vmatpush1.msra.mxu0 %v12589_v61  ;;  %3040 = vmatpush1.msra.mxu1 %v12590_v31 }
 0x5c8   :  { %2970 = vmatprep.subr.mxu0 %v12591_v32  ;;  %3041 = vmatprep.subr.mxu1 %v12592_v34 }
 0x5c9   :  { %2971 = vmatpush1.msra.mxu0 %v12593_v35  ;;  %3042 = vmatpush1.msra.mxu1 %v12594_v37 }
 0x5ca   :  { %2972 = vmatprep.subr.mxu0 %v12595_v38  ;;  %3043 = vmatprep.subr.mxu1 %v12596_v39 }
 0x5cb   :  { %2973 = vmatpush1.msra.mxu0 %v12597_v52  ;;  %3044 = vmatpush1.msra.mxu1 %v12598_v43  ;;  %v2764_v43 = vpop.permute.xlu0 %2763 }
 0x5cc   :  { %2974 = vmatprep.subr.mxu0 %v12599_v55  ;;  %3045 = vmatprep.subr.mxu1 %v12600_v21  ;;  %v2766_v55 = vmul.f32 %v2764_v43, %v11995_v2  ;;  %v2767_v21 = vmul.f32 %v2764_v43, %v11996_v4 }
 0x5cd   :  { %2975 = vmatpush1.msra.mxu0 %v12601_v7  ;;  %3046 = vmatpush1.msra.mxu1 %v12602_v1 }
 0x5ce   :  { %3008 = vmatprep.mubr.f32.mxu0 %v11922_v20  ;;  %3079 = vmatprep.mubr.f32.mxu1 %v11922_v20  ;;  %v2770_v7 = vadd.f32 %v2766_v55, %v11997_v6  ;;  %v2771_v1 = vadd.f32 %v2767_v21, %v11998_v8 }
 0x5cf   :  { %3086 = vmatprep.subr.mxu0 %v12603_v59  ;;  %3157 = vmatprep.subr.mxu1 %v12604_v63 }
 0x5d0   :  { %4459 = vset.pattern.permute.xlu1 %v5304_v19 }
 0x5d1   :  { %3257 = vperm.xlu1 %4459, %v12605_v23  }
 0x62a   :  { %v2516_v16 = vpop.f32.mrf.mxu0  ;;  %v2587_v17 = vpop.f32.mrf.mxu1 }
 0x62c   :  { %v2518_v18 = vpop.f32.mrf.mxu0  ;;  %v2589_v25 = vpop.f32.mrf.mxu1 }
 0x64b   :  { %v2658_v22 = vpop.f32.mrf.mxu0  ;;  %v2729_v57 = vpop.f32.mrf.mxu1 }
 0x64c   :  { %v2659_v27 = vadd.f32 %v2658_v22, %v2516_v16  ;;  %v2730_v32 = vadd.f32 %v2729_v57, %v2587_v17 }
 0x64d   :  { %v2660_v41 = vpop.f32.mrf.mxu0  ;;  %v2731_v30 = vpop.f32.mrf.mxu1 }
 0x64e   :  { %v2734_v28 = vadd.f32 %v2659_v27, %v6719_v33  ;;  %v2661_v48 = vadd.f32 %v2660_v41, %v2518_v18  ;;  %v2732_v61 = vadd.f32 %v2731_v30, %v2589_v25  ;;  %v2736_v37 = vadd.f32 %v2730_v32, %v6732_v47 }
 0x64f   :  { %v2769_v41 = vmul.f32 %v2764_v43, %v11999_v24 }
 0x650   :  { %v4369_v10 = vmul.f32 -1.442695, %v2734_v28  ;;  %v2735_v51 = vadd.f32 %v2661_v48, %v6723_v40  ;;  %v2737_v31 = vadd.f32 %v2732_v61, %v6728_v49  ;;  %v2768_v61 = vmul.f32 %v2764_v43, %v6566_v62  ;;  %v12606_v43 = vld [vmem:[#allocation153_spill] sm:$0xff] }
 0x652   :  { %4606 = vpow2.f32 %v4369_v10  ;;  %v4370_v12 = vmul.f32 -1.442695, %v2735_v51  ;;  %v4371_v34 = vmul.f32 -1.442695, %v2737_v31  ;;  %v2772_v32 = vadd.f32 %v2768_v61, %v6570_v53  ;;  %v12633_v61 = vld [vmem:[#allocation110_spill] sm:$0xff] }
 0x654   :  { %4608 = vpow2.f32 %v4370_v12  ;;  %v2773_v12 = vadd.f32 %v2769_v41, %v12000_v29  ;;  %v12626_v41 = vld [vmem:[#allocation103_spill] sm:$0xff] }
 0x655   :  { %4610 = vpow2.f32 %v4371_v34 }
 0x65f   :  { %v4607_v35 = vpop.eup %4606 }
 0x660   :  { %v2741_v38 = vadd.f32 1.0, %v4607_v35 }
 0x661   :  { %v4609_v39 = vpop.eup %4608 }
 0x662   :  { %4612 = vrcp.f32 %v2741_v38  ;;  %v2747_v52 = vadd.f32 1.0, %v4609_v39  ;;  %v4611_v63 = vpop.eup %4610 }
 0x663   :  { %4614 = vtanh.f32 %v2736_v37  ;;  %v2754_v27 = vadd.f32 1.0, %v4611_v63  ;;  %v12615_v63 = vld [vmem:[#allocation92_spill] sm:$0xff] }
 0x664   :  { %4616 = vrcp.f32 %v2747_v52 }
 0x66d   :  { %v2840_v59 = vpop.f32.mrf.mxu0  ;;  %v2911_v48 = vpop.f32.mrf.mxu1 }
 0x66e   :  { %v2916_v16 = vadd.f32 %v2840_v59, %v2770_v7  ;;  %v12612_v7 = vld [vmem:[#allocation89_spill] sm:$0xff] }
 0x66f   :  { %v4613_v17 = vpop.eup %4612  ;;  %v2842_v18 = vpop.f32.mrf.mxu0 }
 0x670   :  { %v4615_v19 = vpop.eup %4614  ;;  %v4372_v22 = vmul.f32 -1.442695, %v2916_v16  ;;  %v2917_v23 = vadd.f32 %v2842_v18, %v2771_v1  ;;  %v2913_v30 = vpop.f32.mrf.mxu1  ;;  %v12616_v18 = vld [vmem:[#allocation93_spill] sm:$0xff] }
 0x671   :  { %v4617_v25 = vpop.eup %4616  ;;  %v2758_v28 = vmul.f32 %v4615_v19, %v4613_v17  ;;  %v2919_v31 = vadd.f32 %v2913_v30, %v2773_v12  ;;  %v12617_v19 = vld [vmem:[#allocation94_spill] sm:$0xff]  ;;  %v12631_v12 = vld [vmem:[#allocation108_spill] sm:$0xff]  ;;  %v12632_v30 = vld [vmem:[#allocation109_spill] sm:$0xff] }
 0x672   :  { %v2757_v57 = vmul.f32 %v4617_v25, %v9035_v54  ;;  %4618 = vpow2.f32 %v4372_v22  ;;  %v4373_v10 = vmul.f32 -1.442695, %v2917_v23  ;;  %v2918_v54 = vadd.f32 %v2911_v48, %v2772_v32  ;;  %v12619_v23 = vld [vmem:[#allocation96_spill] sm:$0xff]  ;;  %v12620_v25 = vld [vmem:[#allocation97_spill] sm:$0xff]  ;;  %v12629_v48 = vld [vmem:[#allocation106_spill] sm:$0xff] }
 0x673   :  { %v4374_v34 = vmul.f32 -1.442695, %v2919_v31  ;;  %v12634_v31 = vld [vmem:[#allocation111_spill] sm:$0xff]  ;;  %v12635_v32 = vld [vmem:[#allocation112_spill] sm:$0xff] }
 0x674   :  { %4620 = vpow2.f32 %v4373_v10  ;;  %v9570_v51 = vadd.f32 %v2758_v28, %v2757_v57  ;;  %v12627_v28 = vld [vmem:[#allocation104_spill] sm:$0xff]  ;;  %v12628_v57 = vld [vmem:[#allocation105_spill] sm:$0xff]  ;;  %v12630_v10 = vld [vmem:[#allocation107_spill] sm:$0xff] }
 0x675   :  { %4622 = vrcp.f32 %v2754_v27  ;;  %v12625_v27 = vld [vmem:[#allocation102_spill] sm:$0xff] }
 0x676   :  { %4624 = vtanh.f32 %v9570_v51 }
 0x677   :  { %4626 = vpow2.f32 %v4374_v34  ;;  %v12636_v34 = vld [vmem:[#allocation113_spill] sm:$0xff] }
 0x67f   :  { %v4619_v35 = vpop.eup %4618 }
 0x680   :  { %v2923_v37 = vadd.f32 1.0, %v4619_v35  ;;  %v12637_v35 = vld [vmem:[#allocation114_spill] sm:$0xff] }
 0x681   :  { %v4621_v38 = vpop.eup %4620 }
 0x682   :  { %v4623_v39 = vpop.eup %4622  ;;  %4628 = vrcp.f32 %v2923_v37  ;;  %v2929_v52 = vadd.f32 1.0, %v4621_v38  ;;  %v12639_v37 = vld [vmem:[#allocation116_spill] sm:$0xff]  ;;  %v12640_v38 = vld [vmem:[#allocation117_spill] sm:$0xff] }
 0x683   :  { %v4625_v55 = vpop.eup %4624  ;;  %4630 = vtanh.f32 %v2918_v54  ;;  %v12638_v54 = vld [vmem:[#allocation115_spill] sm:$0xff] }
 0x684   :  { %4632 = vrcp.f32 %v2929_v52  ;;  %v2761_v21 = vmul.f32 %v4625_v55, %v4623_v39  ;;  %v12641_v39 = vld [vmem:[#allocation118_spill] sm:$0xff]  ;;  %v12642_v52 = vld [vmem:[#allocation119_spill] sm:$0xff]  ;;  %v12643_v55 = vld [vmem:[#allocation120_spill] sm:$0xff] }
 0x686   :  { %3009 = vmatmul.mubr.f32.vlgmr.msra.gmra.mxu0 %v2761_v21  ;;  %3080 = vmatmul.mubr.f32.vlgmr.msra.gmra.mxu1 %v2761_v21  ;;  %v12644_v21 = vld [vmem:[#allocation121_spill] sm:$0xff] }
 0x687   :  { %3087 = vmatpush1.msra.mxu0 %v9044_v13  ;;  %3158 = vmatpush1.msra.mxu1 %v9050_v15  ;;  %v12607_v13 = vld [vmem:[#allocation154_spill] sm:$0xff]  ;;  %v12608_v15 = vld [vmem:[#allocation155_spill] sm:$0xff] }
 0x688   :  { %3088 = vmatprep.subr.mxu0 %v9056_v5  ;;  %3159 = vmatprep.subr.mxu1 %v9062_v11  ;;  %v12609_v5 = vld [vmem:[#allocation157_spill] sm:$0xff]  ;;  %v4627_v11 = vpop.eup %4626 }
 0x689   :  { %3089 = vmatpush1.msra.mxu0 %v9068_v9  ;;  %3160 = vmatpush1.msra.mxu1 %v9074_v14  ;;  %v12610_v9 = vld [vmem:[#allocation159_spill] sm:$0xff]  ;;  %v12611_v14 = vld [vmem:[#allocation88_spill] sm:$0xff]  ;;  %v2936_v59 = vadd.f32 1.0, %v4627_v11 }
 0x68a   :  { %3090 = vmatprep.subr.mxu0 %v9080_v56  ;;  %3161 = vmatprep.subr.mxu1 %v9086_v45  ;;  %v12613_v45 = vld [vmem:[#allocation90_spill] sm:$0xff] }
 0x68b   :  { %3091 = vmatpush1.msra.mxu0 %v9092_v58  ;;  %3162 = vmatpush1.msra.mxu1 %v9098_v44  ;;  %v12614_v44 = vld [vmem:[#allocation91_spill] sm:$0xff]  ;;  %4634 = vrcp.f32 %v2936_v59  ;;  %v9693_v59 = vld [vmem:[%s11128_s2 + $0x1d0] sm:$0xff] }
 0x68c   :  { %3092 = vmatprep.subr.mxu0 %v12606_v43  ;;  %3163 = vmatprep.subr.mxu1 %v12607_v13  ;;  %v12645_v43 = vld [vmem:[#allocation122_spill] sm:$0xff] }
 0x68d   :  { %3093 = vmatpush1.msra.mxu0 %v12608_v15  ;;  %3164 = vmatpush1.msra.mxu1 %v12609_v5  ;;  %v12646_v15 = vld [vmem:[#allocation123_spill] sm:$0xff]  ;;  %v12647_v5 = vld [vmem:[#allocation124_spill] sm:$0xff] }
 0x68e   :  { %3094 = vmatprep.subr.mxu0 %v12610_v9  ;;  %3165 = vmatprep.subr.mxu1 %v12611_v14  ;;  %v12648_v9 = vld [vmem:[#allocation125_spill] sm:$0xff]  ;;  %v12649_v14 = vld [vmem:[#allocation126_spill] sm:$0xff] }
 0x68f   :  { %v4629_v56 = vpop.eup %4628  ;;  %3095 = vmatpush1.msra.mxu0 %v12612_v7  ;;  %3166 = vmatpush1.msra.mxu1 %v12613_v45  ;;  %v9651_v45 = vld [vmem:[%s11128_s2 + $0x1e8] sm:$0xff] }
 0x690   :  { %v4631_v58 = vpop.eup %4630  ;;  %3096 = vmatprep.subr.mxu0 %v12614_v44  ;;  %3167 = vmatprep.subr.mxu1 %v9158_v36  ;;  %v12618_v36 = vld [vmem:[#allocation95_spill] sm:$0xff]  ;;  %v9681_v44 = vld [vmem:[%s11128_s2 + $0x1d8] sm:$0xff] }
 0x691   :  { %v4633_v1 = vpop.eup %4632  ;;  %3097 = vmatpush1.msra.mxu0 %v12615_v63  ;;  %3168 = vmatpush1.msra.mxu1 %v9170_v42  ;;  %v2940_v16 = vmul.f32 %v4631_v58, %v4629_v56  ;;  %v12621_v42 = vld [vmem:[#allocation98_spill] sm:$0xff]  ;;  %v12650_v56 = vld [vmem:[#allocation127_spill] sm:$0xff] }
 0x692   :  { %v2939_v17 = vmul.f32 %v4633_v1, %v9198_v46  ;;  %3098 = vmatprep.subr.mxu0 %v9177_v0  ;;  %3169 = vmatprep.subr.mxu1 %v9183_v60  ;;  %v12622_v46 = vld [vmem:[#allocation99_spill] sm:$0xff]  ;;  %v12623_v0 = vld [vmem:[#allocation100_spill] sm:$0xff]  ;;  %v12624_v60 = vld [vmem:[#allocation101_spill] sm:$0xff] }
 0x693   :  { %3099 = vmatpush1.msra.mxu0 %v12616_v18  ;;  %3170 = vmatpush1.msra.mxu1 %v12617_v19  ;;  %v9675_v58 = vld [vmem:[%s11128_s2 + $0x1c8] sm:$0xff]  ;;  %v9687_v1 = vld [vmem:[%s11128_s2 + $0x1c0] sm:$0xff]  ;;  %v9717_v18 = vld [vmem:[%s11128_s2 + $0x1b0] sm:$0xff] }
 0x694   :  { %v9603_v22 = vadd.f32 %v2940_v16, %v2939_v17  ;;  %3100 = vmatprep.subr.mxu0 %v12618_v36  ;;  %3171 = vmatprep.subr.mxu1 %v12619_v23  ;;  %v9699_v63 = vld [vmem:[%s11128_s2 + $0x1a8] sm:$0xff]  ;;  %v9705_v16 = vld [vmem:[%s11128_s2 + $0x1b8] sm:$0xff]  ;;  %v9711_v17 = vld [vmem:[%s11128_s2 + $0x1a0] sm:$0xff] }
 0x695   :  { %3101 = vmatpush1.msra.mxu0 %v12620_v25  ;;  %3172 = vmatpush1.msra.mxu1 %v12621_v42  ;;  %v9723_v19 = vld [vmem:[%s11128_s2 + $0x188] sm:$0xff]  ;;  %v9729_v36 = vld [vmem:[%s11128_s2 + $0x198] sm:$0xff]  ;;  %v9735_v23 = vld [vmem:[%s11128_s2 + $0x180] sm:$0xff] }
 0x696   :  { %3102 = vmatprep.subr.mxu0 %v12622_v46  ;;  %3173 = vmatprep.subr.mxu1 %v12623_v0  ;;  %4636 = vtanh.f32 %v9603_v22  ;;  %v9741_v25 = vld [vmem:[%s11128_s2 + $0x190] sm:$0xff]  ;;  %v9747_v42 = vld [vmem:[%s11128_s2 + $0x168] sm:$0xff]  ;;  %v9753_v46 = vld [vmem:[%s11128_s2 + $0x178] sm:$0xff] }
 0x697   :  { %3103 = vmatpush1.msra.mxu0 %v12624_v60  ;;  %3174 = vmatpush1.msra.mxu1 %v12625_v27  ;;  %v9759_v0 = vld [vmem:[%s11128_s2 + $0x160] sm:$0xff]  ;;  %v9765_v60 = vld [vmem:[%s11128_s2 + $0x170] sm:$0xff]  ;;  %v9771_v27 = vld [vmem:[%s11128_s2 + $0x148] sm:$0xff] }
 0x698   :  { %3104 = vmatprep.subr.mxu0 %v12626_v41  ;;  %3175 = vmatprep.subr.mxu1 %v12627_v28  ;;  %v4635_v13 = vpop.eup %4634  ;;  %v9777_v41 = vld [vmem:[%s11128_s2 + $0x158] sm:$0xff]  ;;  %v9783_v28 = vld [vmem:[%s11128_s2 + $0x140] sm:$0xff] }
 0x699   :  { %3105 = vmatpush1.msra.mxu0 %v12628_v57  ;;  %3176 = vmatpush1.msra.mxu1 %v12629_v48  ;;  %v9789_v57 = vld [vmem:[%s11128_s2 + $0x150] sm:$0xff]  ;;  %v9795_v48 = vld [vmem:[%s11128_s2 + $0x128] sm:$0xff] }
 0x69a   :  { %3106 = vmatprep.subr.mxu0 %v12630_v10  ;;  %3177 = vmatprep.subr.mxu1 %v12631_v12  ;;  %v9801_v10 = vld [vmem:[%s11128_s2 + $0x138] sm:$0xff]  ;;  %v9807_v12 = vld [vmem:[%s11128_s2 + $0x120] sm:$0xff] }
 0x69b   :  { %3107 = vmatpush1.msra.mxu0 %v12632_v30  ;;  %3178 = vmatpush1.msra.mxu1 %v12633_v61  ;;  %v9813_v30 = vld [vmem:[%s11128_s2 + $0x130] sm:$0xff]  ;;  %v9819_v61 = vld [vmem:[%s11128_s2 + $0x108] sm:$0xff] }
 0x69c   :  { %3108 = vmatprep.subr.mxu0 %v12634_v31  ;;  %3179 = vmatprep.subr.mxu1 %v12635_v32  ;;  %v9825_v31 = vld [vmem:[%s11128_s2 + $0x118] sm:$0xff]  ;;  %v9831_v32 = vld [vmem:[%s11128_s2 + $0x100] sm:$0xff] }
 0x69d   :  { %3109 = vmatpush1.msra.mxu0 %v12636_v34  ;;  %3180 = vmatpush1.msra.mxu1 %v12637_v35  ;;  %12651 = vst [vmem:[#allocation128_spill] sm:$0xff] %v9825_v31  ;;  %12652 = vst [vmem:[#allocation129_spill] sm:$0xff] %v9831_v32  ;;  %v9837_v34 = vld [vmem:[%s11128_s2 + $0x110] sm:$0xff]  ;;  %v9843_v35 = vld [vmem:[%s11128_s2 + $0xe8] sm:$0xff] }
 0x69e   :  { %3110 = vmatprep.subr.mxu0 %v12638_v54  ;;  %3181 = vmatprep.subr.mxu1 %v12639_v37  ;;  %12653 = vst [vmem:[#allocation130_spill] sm:$0xff] %v9837_v34  ;;  %12654 = vst [vmem:[#allocation131_spill] sm:$0xff] %v9843_v35  ;;  %v9849_v54 = vld [vmem:[%s11128_s2 + $0xf8] sm:$0xff]  ;;  %v9855_v37 = vld [vmem:[%s11128_s2 + $0xe0] sm:$0xff] }
 0x69f   :  { %3111 = vmatpush1.msra.mxu0 %v12640_v38  ;;  %3182 = vmatpush1.msra.mxu1 %v12641_v39  ;;  %12655 = vst [vmem:[#allocation132_spill] sm:$0xff] %v9849_v54  ;;  %12656 = vst [vmem:[#allocation133_spill] sm:$0xff] %v9855_v37  ;;  %v9861_v38 = vld [vmem:[%s11128_s2 + $0xf0] sm:$0xff]  ;;  %v9867_v39 = vld [vmem:[%s11128_s2 + $0xc8] sm:$0xff] }
 0x6a0   :  { %3112 = vmatprep.subr.mxu0 %v12642_v52  ;;  %3183 = vmatprep.subr.mxu1 %v12643_v55  ;;  %12657 = vst [vmem:[#allocation134_spill] sm:$0xff] %v9861_v38  ;;  %12658 = vst [vmem:[#allocation135_spill] sm:$0xff] %v9867_v39  ;;  %v9873_v52 = vld [vmem:[%s11128_s2 + $0xd8] sm:$0xff]  ;;  %v9879_v55 = vld [vmem:[%s11128_s2 + $0xc0] sm:$0xff] }
 0x6a1   :  { %3113 = vmatpush1.msra.mxu0 %v12644_v21  ;;  %3184 = vmatpush1.msra.mxu1 %v12645_v43  ;;  %12659 = vst [vmem:[#allocation136_spill] sm:$0xff] %v9873_v52  ;;  %12660 = vst [vmem:[#allocation137_spill] sm:$0xff] %v9879_v55  ;;  %v9885_v21 = vld [vmem:[%s11128_s2 + $0xd0] sm:$0xff]  ;;  %v9891_v43 = vld [vmem:[%s11128_s2 + $0xa8] sm:$0xff] }
 0x6a2   :  { %3114 = vmatprep.subr.mxu0 %v12646_v15  ;;  %3185 = vmatprep.subr.mxu1 %v12647_v5  ;;  %12661 = vst [vmem:[#allocation138_spill] sm:$0xff] %v9885_v21  ;;  %12662 = vst [vmem:[#allocation139_spill] sm:$0xff] %v9891_v43  ;;  %v9903_v15 = vld [vmem:[%s11128_s2 + $0xa0] sm:$0xff]  ;;  %v9909_v5 = vld [vmem:[%s11128_s2 + $0xb0] sm:$0xff] }
 0x6a3   :  { %v4637_v11 = vpop.eup %4636  ;;  %3115 = vmatpush1.msra.mxu0 %v12648_v9  ;;  %3186 = vmatpush1.msra.mxu1 %v12649_v14  ;;  %12664 = vst [vmem:[#allocation141_spill] sm:$0xff] %v9903_v15  ;;  %12665 = vst [vmem:[#allocation142_spill] sm:$0xff] %v9909_v5  ;;  %v9921_v9 = vld [vmem:[%s11128_s2 + $0x98] sm:$0xff]  ;;  %v9927_v14 = vld [vmem:[%s11128_s2 + $0x80] sm:$0xff] }
 0x6a4   :  { %3116 = vmatprep.subr.mxu0 %v12650_v56  ;;  %3187 = vmatprep.subr.mxu1 %v9402_v50  ;;  %v9640_v7 = vmul.f32 %v4637_v11, %v4635_v13  ;;  %v9669_v50 = vld [vmem:[%s11128_s2 + $0x1f0] sm:$0xff]  ;;  %v9897_v13 = vld [vmem:[%s11128_s2 + $0xb8] sm:$0xff]  ;;  %v9915_v11 = vld [vmem:[%s11128_s2 + $0x88] sm:$0xff]  ;;  %12667 = vst [vmem:[#allocation144_spill] sm:$0xff] %v9921_v9 }
 0x6a5   :  { %3117 = vmatpush1.msra.mxu0 %v9410_v26  ;;  %3150 = vmatprep.mubr.f32.mxu0 %v11922_v20  ;;  %v9657_v26 = vld [vmem:[%s11128_s2 + $0x1f8] sm:$0xff]  ;;  %12663 = vst [vmem:[#allocation140_spill] sm:$0xff] %v9897_v13  ;;  %12666 = vst [vmem:[#allocation143_spill] sm:$0xff] %v9915_v11  ;;  %v9933_v56 = vld [vmem:[%s11128_s2 + $0x90] sm:$0xff] }
 0x6a6   :  { %3188 = vmatpush1.msra.mxu1 %v9417_v3  ;;  %3221 = vmatprep.mubr.f32.mxu1 %v11922_v20  ;;  %v9663_v3 = vld [vmem:[%s11128_s2 + $0x1e0] sm:$0xff]  ;;  %12668 = vst [vmem:[#allocation145_spill] sm:$0xff] %v9927_v14  ;;  %12669 = vst [vmem:[#allocation146_spill] sm:$0xff] %v9933_v56 }
 0x6a7   :  { %3151 = vmatmul.mubr.f32.vlgmr.msra.gmra.mxu0 %v9640_v7  ;;  %3222 = vmatmul.mubr.f32.vlgmr.msra.gmra.mxu1 %v9640_v7 }
 0x6a8   :  { %3268 = vmatprep.subr.mxu0 %v9651_v45  ;;  %3339 = vmatprep.subr.mxu1 %v9657_v26 }
 0x6a9   :  { %3269 = vmatpush1.msra.mxu0 %v9663_v3  ;;  %3340 = vmatpush1.msra.mxu1 %v9669_v50 }
 0x6aa   :  { %3270 = vmatprep.subr.mxu0 %v9675_v58  ;;  %3341 = vmatprep.subr.mxu1 %v9681_v44 }
 0x6ab   :  { %3271 = vmatpush1.msra.mxu0 %v9687_v1  ;;  %3342 = vmatpush1.msra.mxu1 %v9693_v59 }
 0x6ac   :  { %3272 = vmatprep.subr.mxu0 %v9699_v63  ;;  %3343 = vmatprep.subr.mxu1 %v9705_v16 }
 0x6ad   :  { %3273 = vmatpush1.msra.mxu0 %v9711_v17  ;;  %3344 = vmatpush1.msra.mxu1 %v9717_v18 }
 0x6ae   :  { %3274 = vmatprep.subr.mxu0 %v9723_v19  ;;  %3345 = vmatprep.subr.mxu1 %v9729_v36 }
 0x6af   :  { %3275 = vmatpush1.msra.mxu0 %v9735_v23  ;;  %3346 = vmatpush1.msra.mxu1 %v9741_v25 }
 0x6b0   :  { %3276 = vmatprep.subr.mxu0 %v9747_v42  ;;  %3347 = vmatprep.subr.mxu1 %v9753_v46 }
 0x6b1   :  { %3277 = vmatpush1.msra.mxu0 %v9759_v0  ;;  %3348 = vmatpush1.msra.mxu1 %v9765_v60 }
 0x6b2   :  { %3278 = vmatprep.subr.mxu0 %v9771_v27  ;;  %3349 = vmatprep.subr.mxu1 %v9777_v41 }
 0x6b3   :  { %3279 = vmatpush1.msra.mxu0 %v9783_v28  ;;  %3350 = vmatpush1.msra.mxu1 %v9789_v57 }
 0x6b4   :  { %3280 = vmatprep.subr.mxu0 %v9795_v48  ;;  %3351 = vmatprep.subr.mxu1 %v9801_v10 }
 0x6b5   :  { %3281 = vmatpush1.msra.mxu0 %v9807_v12  ;;  %3352 = vmatpush1.msra.mxu1 %v9813_v30 }
 0x6b6   :  { %3282 = vmatprep.subr.mxu0 %v9819_v61  ;;  %3353 = vmatprep.subr.mxu1 %v9825_v31 }
 0x6b7   :  { %3283 = vmatpush1.msra.mxu0 %v9831_v32  ;;  %3354 = vmatpush1.msra.mxu1 %v9837_v34 }
 0x6b8   :  { %3284 = vmatprep.subr.mxu0 %v9843_v35  ;;  %3355 = vmatprep.subr.mxu1 %v9849_v54 }
 0x6b9   :  { %3285 = vmatpush1.msra.mxu0 %v9855_v37  ;;  %3356 = vmatpush1.msra.mxu1 %v9861_v38 }
 0x6ba   :  { %3286 = vmatprep.subr.mxu0 %v9867_v39  ;;  %3357 = vmatprep.subr.mxu1 %v9873_v52 }
 0x6bb   :  { %3287 = vmatpush1.msra.mxu0 %v9879_v55  ;;  %3358 = vmatpush1.msra.mxu1 %v9885_v21 }
 0x6bc   :  { %3288 = vmatprep.subr.mxu0 %v9891_v43  ;;  %3359 = vmatprep.subr.mxu1 %v9897_v13  ;;  %v5234_v13 = vld [vmem:[%s11130_s0] sm:$0xff] }
 0x6bd   :  { %3289 = vmatpush1.msra.mxu0 %v9903_v15  ;;  %3360 = vmatpush1.msra.mxu1 %v9909_v5  ;;  %v5305_v5 = vmov 7  }
 0x6be   :  { %3290 = vmatprep.subr.mxu0 %v9915_v11  ;;  %3361 = vmatprep.subr.mxu1 %v9921_v9  ;;  %v9939_v11 = vld [vmem:[%s11128_s2 + $0x68] sm:$0xff]  ;;  %v9945_v9 = vld [vmem:[%s11128_s2 + $0x78] sm:$0xff] }
 0x6bf   :  { %3291 = vmatpush1.msra.mxu0 %v9927_v14  ;;  %3362 = vmatpush1.msra.mxu1 %v9933_v56  ;;  %12670 = vst [vmem:[#allocation147_spill] sm:$0xff] %v9939_v11  ;;  %12671 = vst [vmem:[#allocation148_spill] sm:$0xff] %v9945_v9  ;;  %v9951_v14 = vld [vmem:[%s11128_s2 + $0x60] sm:$0xff]  ;;  %v9957_v56 = vld [vmem:[%s11128_s2 + $0x70] sm:$0xff] }
 0x6c0   :  { %3292 = vmatprep.subr.mxu0 %v9939_v11  ;;  %3363 = vmatprep.subr.mxu1 %v9945_v9  ;;  %12672 = vst [vmem:[#allocation149_spill] sm:$0xff] %v9951_v14  ;;  %12673 = vst [vmem:[#allocation2_spill] sm:$0xff] %v9957_v56  ;;  %v9963_v11 = vld [vmem:[%s11128_s2 + $0x48] sm:$0xff]  ;;  %v9969_v9 = vld [vmem:[%s11128_s2 + $0x58] sm:$0xff] }
 0x6c1   :  { %3293 = vmatpush1.msra.mxu0 %v9951_v14  ;;  %3364 = vmatpush1.msra.mxu1 %v9957_v56  ;;  %12674 = vst [vmem:[#allocation3_spill] sm:$0xff] %v9963_v11  ;;  %12675 = vst [vmem:[#allocation4_spill] sm:$0xff] %v9969_v9  ;;  %v9975_v14 = vld [vmem:[%s11128_s2 + $0x40] sm:$0xff]  ;;  %v9981_v56 = vld [vmem:[%s11128_s2 + $0x50] sm:$0xff] }
 0x6c2   :  { %3294 = vmatprep.subr.mxu0 %v9963_v11  ;;  %3365 = vmatprep.subr.mxu1 %v9969_v9  ;;  %12676 = vst [vmem:[#allocation5_spill] sm:$0xff] %v9975_v14  ;;  %12677 = vst [vmem:[#allocation6_spill] sm:$0xff] %v9981_v56  ;;  %v9987_v11 = vld [vmem:[%s11128_s2 + $0x28] sm:$0xff]  ;;  %v9993_v9 = vld [vmem:[%s11128_s2 + $0x38] sm:$0xff] }
 0x6c3   :  { %3295 = vmatpush1.msra.mxu0 %v9975_v14  ;;  %3366 = vmatpush1.msra.mxu1 %v9981_v56  ;;  %12678 = vst [vmem:[#allocation7_spill] sm:$0xff] %v9987_v11  ;;  %12679 = vst [vmem:[#allocation8_spill] sm:$0xff] %v9993_v9  ;;  %v9999_v14 = vld [vmem:[%s11128_s2 + $0x20] sm:$0xff]  ;;  %v10005_v56 = vld [vmem:[%s11128_s2 + $0x30] sm:$0xff] }
 0x6c4   :  { %3296 = vmatprep.subr.mxu0 %v9987_v11  ;;  %3367 = vmatprep.subr.mxu1 %v9993_v9  ;;  %12680 = vst [vmem:[#allocation9_spill] sm:$0xff] %v9999_v14  ;;  %12681 = vst [vmem:[#allocation10_spill] sm:$0xff] %v10005_v56  ;;  %v10011_v11 = vld [vmem:[%s11128_s2 + $0x8] sm:$0xff]  ;;  %v10017_v9 = vld [vmem:[%s11128_s2 + $0x18] sm:$0xff] }
 0x6c5   :  { %3297 = vmatpush1.msra.mxu0 %v9999_v14  ;;  %3368 = vmatpush1.msra.mxu1 %v10005_v56  ;;  %12682 = vst [vmem:[#allocation11_spill] sm:$0xff] %v10011_v11  ;;  %12683 = vst [vmem:[#allocation12_spill] sm:$0xff] %v10017_v9  ;;  %v10023_v14 = vld [vmem:[%s11128_s2] sm:$0xff] }
 0x6c6   :  { %3298 = vmatprep.subr.mxu0 %v10011_v11  ;;  %3369 = vmatprep.subr.mxu1 %v10017_v9  ;;  %12684 = vst [vmem:[#allocation13_spill] sm:$0xff] %v10023_v14  ;;  %v10030_v11 = vld [vmem:[%s11128_s2 + $0x10] sm:$0xff]  ;;  %v10039_v9 = vld [vmem:[%s11129_s5 + $0x1e8] sm:$0xff] }
 0x6c7   :  { %3299 = vmatpush1.msra.mxu0 %v10023_v14  ;;  %3332 = vmatprep.mubr.f32.mxu0 %v11922_v20  ;;  %12685 = vst [vmem:[#allocation14_spill] sm:$0xff] %v10030_v11  ;;  %12686 = vst [vmem:[#allocation15_spill] sm:$0xff] %v10039_v9  ;;  %v10045_v14 = vld [vmem:[%s11129_s5 + $0x1f8] sm:$0xff] }
 0x6c8   :  { %3370 = vmatpush1.msra.mxu1 %v10030_v11  ;;  %3403 = vmatprep.mubr.f32.mxu1 %v11922_v20  ;;  %12687 = vst [vmem:[#allocation16_spill] sm:$0xff] %v10045_v14  ;;  %v10051_v11 = vld [vmem:[%s11129_s5 + $0x1e0] sm:$0xff] }
 0x6c9   :  { %3333 = vmatmul.mubr.f32.vlgmr.msra.gmra.mxu0 %v9640_v7  ;;  %3404 = vmatmul.mubr.f32.vlgmr.msra.gmra.mxu1 %v9640_v7  ;;  %12688 = vst [vmem:[#allocation17_spill] sm:$0xff] %v10051_v11  ;;  %v10057_v7 = vld [vmem:[%s11129_s5 + $0x1f0] sm:$0xff] }
 0x6ca   :  { %3438 = vmatprep.subr.mxu0 %v10039_v9  ;;  %3509 = vmatprep.subr.mxu1 %v10045_v14  ;;  %12689 = vst [vmem:[#allocation18_spill] sm:$0xff] %v10057_v7  ;;  %v10063_v9 = vld [vmem:[%s11129_s5 + $0x1c8] sm:$0xff]  ;;  %v10069_v14 = vld [vmem:[%s11129_s5 + $0x1d8] sm:$0xff] }
 0x6cb   :  { %3439 = vmatpush1.msra.mxu0 %v10051_v11  ;;  %3510 = vmatpush1.msra.mxu1 %v10057_v7  ;;  %12690 = vst [vmem:[#allocation19_spill] sm:$0xff] %v10063_v9  ;;  %12691 = vst [vmem:[#allocation20_spill] sm:$0xff] %v10069_v14  ;;  %v10075_v11 = vld [vmem:[%s11129_s5 + $0x1c0] sm:$0xff]  ;;  %v10081_v7 = vld [vmem:[%s11129_s5 + $0x1d0] sm:$0xff] }
 0x6cc   :  { %3440 = vmatprep.subr.mxu0 %v10063_v9  ;;  %3511 = vmatprep.subr.mxu1 %v10069_v14  ;;  %12692 = vst [vmem:[#allocation21_spill] sm:$0xff] %v10075_v11  ;;  %12693 = vst [vmem:[#allocation23_spill] sm:$0xff] %v10081_v7  ;;  %v10087_v9 = vld [vmem:[%s11129_s5 + $0x1a8] sm:$0xff]  ;;  %v10093_v14 = vld [vmem:[%s11129_s5 + $0x1b8] sm:$0xff] }
 0x6cd   :  { %3441 = vmatpush1.msra.mxu0 %v10075_v11  ;;  %3512 = vmatpush1.msra.mxu1 %v10081_v7  ;;  %12694 = vst [vmem:[#allocation24_spill] sm:$0xff] %v10087_v9  ;;  %12695 = vst [vmem:[#allocation25_spill] sm:$0xff] %v10093_v14  ;;  %v10099_v11 = vld [vmem:[%s11129_s5 + $0x1a0] sm:$0xff]  ;;  %v10105_v7 = vld [vmem:[%s11129_s5 + $0x1b0] sm:$0xff] }
 0x6ce   :  { %3442 = vmatprep.subr.mxu0 %v10087_v9  ;;  %3513 = vmatprep.subr.mxu1 %v10093_v14  ;;  %12696 = vst [vmem:[#allocation26_spill] sm:$0xff] %v10099_v11  ;;  %12697 = vst [vmem:[#allocation27_spill] sm:$0xff] %v10105_v7  ;;  %v10111_v9 = vld [vmem:[%s11129_s5 + $0x188] sm:$0xff]  ;;  %v10117_v14 = vld [vmem:[%s11129_s5 + $0x198] sm:$0xff] }
 0x6cf   :  { %3443 = vmatpush1.msra.mxu0 %v10099_v11  ;;  %3514 = vmatpush1.msra.mxu1 %v10105_v7  ;;  %12698 = vst [vmem:[#allocation28_spill] sm:$0xff] %v10111_v9  ;;  %12699 = vst [vmem:[#allocation29_spill] sm:$0xff] %v10117_v14  ;;  %v10123_v11 = vld [vmem:[%s11129_s5 + $0x180] sm:$0xff]  ;;  %v10129_v7 = vld [vmem:[%s11129_s5 + $0x190] sm:$0xff] }
 0x6d0   :  { %3444 = vmatprep.subr.mxu0 %v10111_v9  ;;  %3515 = vmatprep.subr.mxu1 %v10117_v14  ;;  %12700 = vst [vmem:[#allocation30_spill] sm:$0xff] %v10123_v11  ;;  %12701 = vst [vmem:[#allocation31_spill] sm:$0xff] %v10129_v7  ;;  %v10135_v9 = vld [vmem:[%s11129_s5 + $0x168] sm:$0xff]  ;;  %v10141_v14 = vld [vmem:[%s11129_s5 + $0x178] sm:$0xff] }
 0x6d1   :  { %3445 = vmatpush1.msra.mxu0 %v10123_v11  ;;  %3516 = vmatpush1.msra.mxu1 %v10129_v7  ;;  %12702 = vst [vmem:[#allocation32_spill] sm:$0xff] %v10135_v9  ;;  %12703 = vst [vmem:[#allocation33_spill] sm:$0xff] %v10141_v14  ;;  %v10147_v11 = vld [vmem:[%s11129_s5 + $0x160] sm:$0xff]  ;;  %v10153_v7 = vld [vmem:[%s11129_s5 + $0x170] sm:$0xff] }
 0x6d2   :  { %3446 = vmatprep.subr.mxu0 %v10135_v9  ;;  %3517 = vmatprep.subr.mxu1 %v10141_v14  ;;  %12704 = vst [vmem:[#allocation34_spill] sm:$0xff] %v10147_v11  ;;  %12705 = vst [vmem:[#allocation35_spill] sm:$0xff] %v10153_v7  ;;  %v10159_v9 = vld [vmem:[%s11129_s5 + $0x148] sm:$0xff]  ;;  %v10165_v14 = vld [vmem:[%s11129_s5 + $0x158] sm:$0xff] }
 0x6d3   :  { %3447 = vmatpush1.msra.mxu0 %v10147_v11  ;;  %3518 = vmatpush1.msra.mxu1 %v10153_v7  ;;  %12706 = vst [vmem:[#allocation36_spill] sm:$0xff] %v10159_v9  ;;  %12707 = vst [vmem:[#allocation37_spill] sm:$0xff] %v10165_v14  ;;  %v10171_v11 = vld [vmem:[%s11129_s5 + $0x140] sm:$0xff]  ;;  %v10177_v7 = vld [vmem:[%s11129_s5 + $0x150] sm:$0xff] }
 0x6d4   :  { %3448 = vmatprep.subr.mxu0 %v10159_v9  ;;  %3519 = vmatprep.subr.mxu1 %v10165_v14  ;;  %12708 = vst [vmem:[#allocation38_spill] sm:$0xff] %v10171_v11  ;;  %12709 = vst [vmem:[#allocation39_spill] sm:$0xff] %v10177_v7  ;;  %v10183_v9 = vld [vmem:[%s11129_s5 + $0x128] sm:$0xff]  ;;  %v10189_v14 = vld [vmem:[%s11129_s5 + $0x138] sm:$0xff] }
 0x6d5   :  { %3449 = vmatpush1.msra.mxu0 %v10171_v11  ;;  %3520 = vmatpush1.msra.mxu1 %v10177_v7  ;;  %12710 = vst [vmem:[#allocation40_spill] sm:$0xff] %v10183_v9  ;;  %12711 = vst [vmem:[#allocation41_spill] sm:$0xff] %v10189_v14  ;;  %v10195_v11 = vld [vmem:[%s11129_s5 + $0x120] sm:$0xff]  ;;  %v10201_v7 = vld [vmem:[%s11129_s5 + $0x130] sm:$0xff] }
 0x6d6   :  { %3450 = vmatprep.subr.mxu0 %v10183_v9  ;;  %3521 = vmatprep.subr.mxu1 %v10189_v14  ;;  %12712 = vst [vmem:[#allocation42_spill] sm:$0xff] %v10195_v11  ;;  %12713 = vst [vmem:[#allocation43_spill] sm:$0xff] %v10201_v7  ;;  %v10207_v9 = vld [vmem:[%s11129_s5 + $0x108] sm:$0xff]  ;;  %v10213_v14 = vld [vmem:[%s11129_s5 + $0x118] sm:$0xff] }
 0x6d7   :  { %3451 = vmatpush1.msra.mxu0 %v10195_v11  ;;  %3522 = vmatpush1.msra.mxu1 %v10201_v7  ;;  %12714 = vst [vmem:[#allocation44_spill] sm:$0xff] %v10207_v9  ;;  %12715 = vst [vmem:[#allocation45_spill] sm:$0xff] %v10213_v14  ;;  %v10219_v11 = vld [vmem:[%s11129_s5 + $0x100] sm:$0xff]  ;;  %v10225_v7 = vld [vmem:[%s11129_s5 + $0x110] sm:$0xff] }
 0x6d8   :  { %3452 = vmatprep.subr.mxu0 %v10207_v9  ;;  %3523 = vmatprep.subr.mxu1 %v10213_v14  ;;  %12716 = vst [vmem:[#allocation46_spill] sm:$0xff] %v10219_v11  ;;  %12717 = vst [vmem:[#allocation47_spill] sm:$0xff] %v10225_v7  ;;  %v10231_v9 = vld [vmem:[%s11129_s5 + $0xe8] sm:$0xff]  ;;  %v10237_v14 = vld [vmem:[%s11129_s5 + $0xf8] sm:$0xff] }
 0x6d9   :  { %3453 = vmatpush1.msra.mxu0 %v10219_v11  ;;  %3524 = vmatpush1.msra.mxu1 %v10225_v7  ;;  %12718 = vst [vmem:[#allocation48_spill] sm:$0xff] %v10231_v9  ;;  %12719 = vst [vmem:[#allocation49_spill] sm:$0xff] %v10237_v14  ;;  %v10243_v11 = vld [vmem:[%s11129_s5 + $0xe0] sm:$0xff]  ;;  %v10249_v7 = vld [vmem:[%s11129_s5 + $0xf0] sm:$0xff] }
 0x6da   :  { %3454 = vmatprep.subr.mxu0 %v10231_v9  ;;  %3525 = vmatprep.subr.mxu1 %v10237_v14  ;;  %12720 = vst [vmem:[#allocation50_spill] sm:$0xff] %v10243_v11  ;;  %12721 = vst [vmem:[#allocation51_spill] sm:$0xff] %v10249_v7  ;;  %v10255_v9 = vld [vmem:[%s11129_s5 + $0xc8] sm:$0xff]  ;;  %v10261_v14 = vld [vmem:[%s11129_s5 + $0xd8] sm:$0xff] }
 0x6db   :  { %3455 = vmatpush1.msra.mxu0 %v10243_v11  ;;  %3526 = vmatpush1.msra.mxu1 %v10249_v7  ;;  %12722 = vst [vmem:[#allocation52_spill] sm:$0xff] %v10255_v9  ;;  %12723 = vst [vmem:[#allocation53_spill] sm:$0xff] %v10261_v14  ;;  %v10267_v11 = vld [vmem:[%s11129_s5 + $0xc0] sm:$0xff]  ;;  %v10273_v7 = vld [vmem:[%s11129_s5 + $0xd0] sm:$0xff] }
 0x6dc   :  { %3456 = vmatprep.subr.mxu0 %v10255_v9  ;;  %3527 = vmatprep.subr.mxu1 %v10261_v14  ;;  %12724 = vst [vmem:[#allocation54_spill] sm:$0xff] %v10267_v11  ;;  %12725 = vst [vmem:[#allocation55_spill] sm:$0xff] %v10273_v7  ;;  %v10279_v9 = vld [vmem:[%s11129_s5 + $0xa8] sm:$0xff]  ;;  %v10285_v14 = vld [vmem:[%s11129_s5 + $0xb8] sm:$0xff] }
 0x6dd   :  { %3457 = vmatpush1.msra.mxu0 %v10267_v11  ;;  %3528 = vmatpush1.msra.mxu1 %v10273_v7  ;;  %12726 = vst [vmem:[#allocation56_spill] sm:$0xff] %v10279_v9  ;;  %12727 = vst [vmem:[#allocation57_spill] sm:$0xff] %v10285_v14  ;;  %v10291_v11 = vld [vmem:[%s11129_s5 + $0xa0] sm:$0xff]  ;;  %v10297_v7 = vld [vmem:[%s11129_s5 + $0xb0] sm:$0xff] }
 0x6de   :  { %3458 = vmatprep.subr.mxu0 %v10279_v9  ;;  %3529 = vmatprep.subr.mxu1 %v10285_v14  ;;  %12728 = vst [vmem:[#allocation58_spill] sm:$0xff] %v10291_v11  ;;  %12729 = vst [vmem:[#allocation59_spill] sm:$0xff] %v10297_v7  ;;  %v10303_v9 = vld [vmem:[%s11129_s5 + $0x88] sm:$0xff]  ;;  %v10309_v14 = vld [vmem:[%s11129_s5 + $0x98] sm:$0xff] }
 0x6df   :  { %3459 = vmatpush1.msra.mxu0 %v10291_v11  ;;  %3530 = vmatpush1.msra.mxu1 %v10297_v7  ;;  %12730 = vst [vmem:[#allocation60_spill] sm:$0xff] %v10303_v9  ;;  %12731 = vst [vmem:[#allocation61_spill] sm:$0xff] %v10309_v14  ;;  %v10315_v11 = vld [vmem:[%s11129_s5 + $0x80] sm:$0xff]  ;;  %v10321_v7 = vld [vmem:[%s11129_s5 + $0x90] sm:$0xff] }
 0x6e0   :  { %3460 = vmatprep.subr.mxu0 %v10303_v9  ;;  %3531 = vmatprep.subr.mxu1 %v10309_v14  ;;  %12732 = vst [vmem:[#allocation62_spill] sm:$0xff] %v10315_v11  ;;  %12733 = vst [vmem:[#allocation63_spill] sm:$0xff] %v10321_v7  ;;  %v10327_v9 = vld [vmem:[%s11129_s5 + $0x68] sm:$0xff]  ;;  %v10333_v14 = vld [vmem:[%s11129_s5 + $0x78] sm:$0xff] }
 0x6e1   :  { %3461 = vmatpush1.msra.mxu0 %v10315_v11  ;;  %3532 = vmatpush1.msra.mxu1 %v10321_v7  ;;  %12734 = vst [vmem:[#allocation64_spill] sm:$0xff] %v10327_v9  ;;  %12735 = vst [vmem:[#allocation65_spill] sm:$0xff] %v10333_v14  ;;  %v10339_v11 = vld [vmem:[%s11129_s5 + $0x60] sm:$0xff]  ;;  %v10345_v7 = vld [vmem:[%s11129_s5 + $0x70] sm:$0xff] }
 0x6e2   :  { %3462 = vmatprep.subr.mxu0 %v10327_v9  ;;  %3533 = vmatprep.subr.mxu1 %v10333_v14  ;;  %12736 = vst [vmem:[#allocation66_spill] sm:$0xff] %v10339_v11  ;;  %12737 = vst [vmem:[#allocation67_spill] sm:$0xff] %v10345_v7  ;;  %v10351_v9 = vld [vmem:[%s11129_s5 + $0x48] sm:$0xff]  ;;  %v10357_v14 = vld [vmem:[%s11129_s5 + $0x58] sm:$0xff] }
 0x6e3   :  { %3463 = vmatpush1.msra.mxu0 %v10339_v11  ;;  %3534 = vmatpush1.msra.mxu1 %v10345_v7  ;;  %12738 = vst [vmem:[#allocation68_spill] sm:$0xff] %v10351_v9  ;;  %12739 = vst [vmem:[#allocation69_spill] sm:$0xff] %v10357_v14  ;;  %v10363_v11 = vld [vmem:[%s11129_s5 + $0x40] sm:$0xff]  ;;  %v10369_v7 = vld [vmem:[%s11129_s5 + $0x50] sm:$0xff] }
 0x6e4   :  { %3464 = vmatprep.subr.mxu0 %v10351_v9  ;;  %3535 = vmatprep.subr.mxu1 %v10357_v14  ;;  %12740 = vst [vmem:[#allocation70_spill] sm:$0xff] %v10363_v11  ;;  %12741 = vst [vmem:[#allocation71_spill] sm:$0xff] %v10369_v7  ;;  %v10375_v9 = vld [vmem:[%s11129_s5 + $0x28] sm:$0xff]  ;;  %v10381_v14 = vld [vmem:[%s11129_s5 + $0x38] sm:$0xff] }
 0x6e5   :  { %3465 = vmatpush1.msra.mxu0 %v10363_v11  ;;  %3536 = vmatpush1.msra.mxu1 %v10369_v7  ;;  %12742 = vst [vmem:[#allocation72_spill] sm:$0xff] %v10375_v9  ;;  %12743 = vst [vmem:[#allocation73_spill] sm:$0xff] %v10381_v14  ;;  %v10387_v11 = vld [vmem:[%s11129_s5 + $0x20] sm:$0xff]  ;;  %v10393_v7 = vld [vmem:[%s11129_s5 + $0x30] sm:$0xff] }
 0x6e6   :  { %3466 = vmatprep.subr.mxu0 %v10375_v9  ;;  %3537 = vmatprep.subr.mxu1 %v10381_v14  ;;  %12744 = vst [vmem:[#allocation74_spill] sm:$0xff] %v10387_v11  ;;  %12745 = vst [vmem:[#allocation75_spill] sm:$0xff] %v10393_v7  ;;  %v10399_v9 = vld [vmem:[%s11129_s5 + $0x8] sm:$0xff]  ;;  %v10405_v14 = vld [vmem:[%s11129_s5 + $0x18] sm:$0xff] }
 0x6e7   :  { %3467 = vmatpush1.msra.mxu0 %v10387_v11  ;;  %3538 = vmatpush1.msra.mxu1 %v10393_v7  ;;  %12746 = vst [vmem:[#allocation76_spill] sm:$0xff] %v10399_v9  ;;  %12747 = vst [vmem:[#allocation77_spill] sm:$0xff] %v10405_v14  ;;  %v10411_v11 = vld [vmem:[%s11129_s5] sm:$0xff]  ;;  %v10417_v7 = vld [vmem:[%s11129_s5 + $0x10] sm:$0xff] }
 0x6e8   :  { %3468 = vmatprep.subr.mxu0 %v10399_v9  ;;  %3539 = vmatprep.subr.mxu1 %v10405_v14  ;;  %12748 = vst [vmem:[#allocation78_spill] sm:$0xff] %v10411_v11  ;;  %12749 = vst [vmem:[#allocation79_spill] sm:$0xff] %v10417_v7  ;;  %v10425_v14 = vld [vmem:[%s11131_s4 + $0x1e8] sm:$0xff] }
 0x6e9   :  { %3469 = vmatpush1.msra.mxu0 %v10411_v11  ;;  %3540 = vmatpush1.msra.mxu1 %v10417_v7  ;;  %12750 = vst [vmem:[#allocation80_spill] sm:$0xff] %v10425_v14  ;;  %v10431_v11 = vld [vmem:[%s11131_s4 + $0x1f8] sm:$0xff] }
 0x6ea   :  { %3502 = vmatprep.mubr.f32.mxu0 %v11922_v20  ;;  %3573 = vmatprep.mubr.f32.mxu1 %v11922_v20  ;;  %12751 = vst [vmem:[#allocation81_spill] sm:$0xff] %v10431_v11 }
 0x6eb   :  { %3580 = vmatprep.subr.mxu0 %v10425_v14  ;;  %3651 = vmatprep.subr.mxu1 %v10431_v11 }
 0x6ec   :  { %4460 = vset.pattern.permute.xlu1 %v5305_v5  ;;  %4461 = vset.pattern.permute.xlu0 %v5305_v5 }
 0x6ed   :  { %3751 = vperm.xlu1 %4460, %v5234_v13  }
 0x746   :  { %v3010_v9 = vpop.f32.mrf.mxu0  ;;  %v3081_v7 = vpop.f32.mrf.mxu1 }
 0x748   :  { %v3012_v56 = vpop.f32.mrf.mxu0  ;;  %v3083_v14 = vpop.f32.mrf.mxu1 }
 0x767   :  { %v3152_v15 = vpop.f32.mrf.mxu0  ;;  %v3223_v52 = vpop.f32.mrf.mxu1 }
 0x768   :  { %v3153_v43 = vadd.f32 %v3152_v15, %v3010_v9  ;;  %v3224_v34 = vadd.f32 %v3223_v52, %v3081_v7 }
 0x769   :  { %v3154_v21 = vpop.f32.mrf.mxu0  ;;  %v3225_v54 = vpop.f32.mrf.mxu1 }
 0x76a   :  { %v3228_v55 = vadd.f32 %v3153_v43, %v6719_v33  ;;  %v3155_v39 = vadd.f32 %v3154_v21, %v3012_v56  ;;  %v3226_v5 = vadd.f32 %v3225_v54, %v3083_v14  ;;  %v3230_v15 = vadd.f32 %v3224_v34, %v6732_v47 }
 0x76c   :  { %v4375_v11 = vmul.f32 -1.442695, %v3228_v55  ;;  %v3229_v38 = vadd.f32 %v3155_v39, %v6723_v40  ;;  %v3231_v35 = vadd.f32 %v3226_v5, %v6728_v49  ;;  %v3258_v55 = vpop.permute.xlu1 %3257 }
 0x76d   :  { %v3263_v5 = vmul.f32 %v3258_v55, %v11999_v24 }
 0x76e   :  { %4638 = vpow2.f32 %v4375_v11  ;;  %v4376_v37 = vmul.f32 -1.442695, %v3229_v38  ;;  %v4377_v32 = vmul.f32 -1.442695, %v3231_v35  ;;  %v3260_v38 = vmul.f32 %v3258_v55, %v11995_v2 }
 0x770   :  { %4640 = vpow2.f32 %v4376_v37  ;;  %v3261_v37 = vmul.f32 %v3258_v55, %v11996_v4  ;;  %v3264_v54 = vadd.f32 %v3260_v38, %v11997_v6 }
 0x771   :  { %4642 = vpow2.f32 %v4377_v32 }
 0x772   :  { %v3265_v39 = vadd.f32 %v3261_v37, %v11998_v8  ;;  %v3267_v37 = vadd.f32 %v3263_v5, %v12000_v29  ;;  %v10462_v5 = vld [vmem:[%s11131_s4 + $0x1f0] sm:$0xff] }
 0x77b   :  { %v4639_v13 = vpop.eup %4638 }
 0x77c   :  { %v3235_v9 = vadd.f32 1.0, %v4639_v13 }
 0x77d   :  { %v4641_v31 = vpop.eup %4640 }
 0x77e   :  { %4644 = vrcp.f32 %v3235_v9  ;;  %v3241_v21 = vadd.f32 1.0, %v4641_v31  ;;  %v4643_v52 = vpop.eup %4642 }
 0x77f   :  { %4646 = vtanh.f32 %v3230_v15  ;;  %v3248_v7 = vadd.f32 1.0, %v4643_v52 }
 0x780   :  { %4648 = vrcp.f32 %v3241_v21 }
 0x789   :  { %v3334_v35 = vpop.f32.mrf.mxu0  ;;  %v3405_v9 = vpop.f32.mrf.mxu1 }
 0x78a   :  { %v3410_v43 = vadd.f32 %v3334_v35, %v3264_v54 }
 0x78b   :  { %v4645_v34 = vpop.eup %4644  ;;  %v3336_v11 = vpop.f32.mrf.mxu0 }
 0x78c   :  { %v4647_v14 = vpop.eup %4646  ;;  %v4378_v32 = vmul.f32 -1.442695, %v3410_v43  ;;  %v3411_v56 = vadd.f32 %v3336_v11, %v3265_v39  ;;  %v3407_v54 = vpop.f32.mrf.mxu1  ;;  %v3262_v39 = vmul.f32 %v3258_v55, %v6566_v62  ;;  %v10456_v55 = vld [vmem:[%s11131_s4 + $0x1e0] sm:$0xff] }
 0x78d   :  { %v4649_v31 = vpop.eup %4648  ;;  %v3252_v13 = vmul.f32 %v4647_v14, %v4645_v34  ;;  %v3413_v35 = vadd.f32 %v3407_v54, %v3267_v37  ;;  %v10492_v37 = vld [vmem:[%s11131_s4 + $0x1a8] sm:$0xff]  ;;  %v10498_v54 = vld [vmem:[%s11131_s4 + $0x1b8] sm:$0xff] }
 0x78e   :  { %v3251_v15 = vmul.f32 %v4649_v31, %v9570_v51  ;;  %4650 = vpow2.f32 %v4378_v32  ;;  %v4379_v21 = vmul.f32 -1.442695, %v3411_v56  ;;  %v3266_v52 = vadd.f32 %v3262_v39, %v6570_v53  ;;  %v10504_v39 = vld [vmem:[%s11131_s4 + $0x1a0] sm:$0xff] }
 0x78f   :  { %v4380_v43 = vmul.f32 -1.442695, %v3413_v35  ;;  %v10510_v35 = vld [vmem:[%s11131_s4 + $0x1b0] sm:$0xff] }
 0x790   :  { %4652 = vpow2.f32 %v4379_v21  ;;  %v10447_v38 = vadd.f32 %v3252_v13, %v3251_v15  ;;  %v3412_v51 = vadd.f32 %v3405_v9, %v3266_v52  ;;  %v10468_v13 = vld [vmem:[%s11131_s4 + $0x1c8] sm:$0xff]  ;;  %v10474_v15 = vld [vmem:[%s11131_s4 + $0x1d8] sm:$0xff]  ;;  %v10480_v9 = vld [vmem:[%s11131_s4 + $0x1c0] sm:$0xff] }
 0x791   :  { %4654 = vrcp.f32 %v3248_v7  ;;  %v10486_v21 = vld [vmem:[%s11131_s4 + $0x1d0] sm:$0xff]  ;;  %v10516_v52 = vld [vmem:[%s11131_s4 + $0x188] sm:$0xff] }
 0x792   :  { %4656 = vtanh.f32 %v10447_v38  ;;  %12752 = vst [vmem:[#allocation82_spill] sm:$0xff] %v10516_v52 }
 0x793   :  { %4658 = vpow2.f32 %v4380_v43  ;;  %v10522_v43 = vld [vmem:[%s11131_s4 + $0x198] sm:$0xff] }
 0x794   :  { %12753 = vst [vmem:[#allocation83_spill] sm:$0xff] %v10522_v43 }
 0x79b   :  { %v4651_v34 = vpop.eup %4650 }
 0x79c   :  { %v3417_v11 = vadd.f32 1.0, %v4651_v34  ;;  %v10528_v34 = vld [vmem:[%s11131_s4 + $0x180] sm:$0xff] }
 0x79d   :  { %v4653_v14 = vpop.eup %4652  ;;  %12754 = vst [vmem:[#allocation84_spill] sm:$0xff] %v10528_v34 }
 0x79e   :  { %v4655_v32 = vpop.eup %4654  ;;  %4660 = vrcp.f32 %v3417_v11  ;;  %v3423_v56 = vadd.f32 1.0, %v4653_v14  ;;  %v10540_v14 = vld [vmem:[%s11131_s4 + $0x168] sm:$0xff] }
 0x79f   :  { %v4657_v31 = vpop.eup %4656  ;;  %4662 = vtanh.f32 %v3412_v51  ;;  %v10534_v51 = vld [vmem:[%s11131_s4 + $0x190] sm:$0xff]  ;;  %12756 = vst [vmem:[#allocation86_spill] sm:$0xff] %v10540_v14 }
 0x7a0   :  { %4664 = vrcp.f32 %v3423_v56  ;;  %v3255_v7 = vmul.f32 %v4657_v31, %v4655_v32  ;;  %12755 = vst [vmem:[#allocation85_spill] sm:$0xff] %v10534_v51  ;;  %v4659_v11 = vpop.eup %4658  ;;  %v10546_v32 = vld [vmem:[%s11131_s4 + $0x178] sm:$0xff]  ;;  %v10552_v31 = vld [vmem:[%s11131_s4 + $0x160] sm:$0xff] }
 0x7a1   :  { %12757 = vst [vmem:[#allocation87_spill] sm:$0xff] %v10546_v32  ;;  %12758 = vst [vmem:[#allocation150_spill] sm:$0xff] %v10552_v31 }
 0x7a2   :  { %3503 = vmatmul.mubr.f32.vlgmr.msra.gmra.mxu0 %v3255_v7  ;;  %3574 = vmatmul.mubr.f32.vlgmr.msra.gmra.mxu1 %v3255_v7  ;;  %v10558_v7 = vld [vmem:[%s11131_s4 + $0x170] sm:$0xff] }
 0x7a3   :  { %3581 = vmatpush1.msra.mxu0 %v10456_v55  ;;  %3652 = vmatpush1.msra.mxu1 %v10462_v5  ;;  %12759 = vst [vmem:[#allocation22_spill] sm:$0xff] %v10558_v7 }
 0x7a4   :  { %3582 = vmatprep.subr.mxu0 %v10468_v13  ;;  %3653 = vmatprep.subr.mxu1 %v10474_v15 }
 0x7a5   :  { %3583 = vmatpush1.msra.mxu0 %v10480_v9  ;;  %3654 = vmatpush1.msra.mxu1 %v10486_v21 }
 0x7a6   :  { %3584 = vmatprep.subr.mxu0 %v10492_v37  ;;  %3655 = vmatprep.subr.mxu1 %v10498_v54 }
 0x7a7   :  { %3585 = vmatpush1.msra.mxu0 %v10504_v39  ;;  %3656 = vmatpush1.msra.mxu1 %v10510_v35 }
 0x7a8   :  { %3586 = vmatprep.subr.mxu0 %v10516_v52  ;;  %3657 = vmatprep.subr.mxu1 %v10522_v43 }
 0x7a9   :  { %3587 = vmatpush1.msra.mxu0 %v10528_v34  ;;  %3658 = vmatpush1.msra.mxu1 %v10534_v51  ;;  %v10570_v51 = vld [vmem:[%s11131_s4 + $0x158] sm:$0xff]  ;;  %v3430_v34 = vadd.f32 1.0, %v4659_v11  ;;  %v10589_v11 = vld [vmem:[%s11131_s4 + $0x128] sm:$0xff] }
 0x7aa   :  { %3588 = vmatprep.subr.mxu0 %v10540_v14  ;;  %3659 = vmatprep.subr.mxu1 %v10546_v32  ;;  %v10564_v32 = vld [vmem:[%s11131_s4 + $0x148] sm:$0xff] }
 0x7ab   :  { %v4661_v56 = vpop.eup %4660  ;;  %3589 = vmatpush1.msra.mxu0 %v10552_v31  ;;  %3660 = vmatpush1.msra.mxu1 %v10558_v7  ;;  %12760 = vst [vmem:[#allocation151_spill] sm:$0xff] %v10564_v32  ;;  %v10576_v7 = vld [vmem:[%s11131_s4 + $0x140] sm:$0xff]  ;;  %4666 = vrcp.f32 %v3430_v34  ;;  %v10645_v34 = vld [vmem:[%s11131_s4 + $0xf8] sm:$0xff] }
 0x7ac   :  { %v4663_v14 = vpop.eup %4662  ;;  %3590 = vmatprep.subr.mxu0 %v10564_v32  ;;  %3661 = vmatprep.subr.mxu1 %v10570_v51  ;;  %12761 = vst [vmem:[#allocation156_spill] sm:$0xff] %v10576_v7  ;;  %v10582_v32 = vld [vmem:[%s11131_s4 + $0x150] sm:$0xff]  ;;  %12769 = vst [vmem:[#allocation88_spill] sm:$0xff] %v10645_v34 }
 0x7ad   :  { %v4665_v31 = vpop.eup %4664  ;;  %3591 = vmatpush1.msra.mxu0 %v10576_v7  ;;  %3662 = vmatpush1.msra.mxu1 %v10582_v32  ;;  %v3434_v43 = vmul.f32 %v4663_v14, %v4661_v56  ;;  %v10595_v7 = vld [vmem:[%s11131_s4 + $0x138] sm:$0xff]  ;;  %v10601_v14 = vld [vmem:[%s11131_s4 + $0x120] sm:$0xff] }
 0x7ae   :  { %v3433_v52 = vmul.f32 %v4665_v31, %v9603_v22  ;;  %3592 = vmatprep.subr.mxu0 %v10589_v11  ;;  %3663 = vmatprep.subr.mxu1 %v10595_v7  ;;  %12762 = vst [vmem:[#allocation158_spill] sm:$0xff] %v10601_v14  ;;  %v10607_v22 = vld [vmem:[%s11131_s4 + $0x130] sm:$0xff]  ;;  %v10615_v31 = vld [vmem:[%s11131_s4 + $0x108] sm:$0xff] }
 0x7af   :  { %3593 = vmatpush1.msra.mxu0 %v10601_v14  ;;  %12763 = vst [vmem:[#allocation152_spill] sm:$0xff] %v10607_v22  ;;  %3664 = vmatpush1.msra.mxu1 %v10607_v22  ;;  %12764 = vst [vmem:[#allocation153_spill] sm:$0xff] %v10615_v31  ;;  %v10621_v14 = vld [vmem:[%s11131_s4 + $0x118] sm:$0xff]  ;;  %v10802_v22 = vld [vmem:[%s11131_s4 + $0x30] sm:$0xff] }
 0x7b0   :  { %v10610_v56 = vadd.f32 %v3434_v43, %v3433_v52  ;;  %3594 = vmatprep.subr.mxu0 %v10615_v31  ;;  %12765 = vst [vmem:[#allocation154_spill] sm:$0xff] %v10621_v14  ;;  %3665 = vmatprep.subr.mxu1 %v10621_v14  ;;  %v10627_v52 = vld [vmem:[%s11131_s4 + $0x100] sm:$0xff]  ;;  %v10633_v43 = vld [vmem:[%s11131_s4 + $0x110] sm:$0xff]  ;;  %v10639_v31 = vld [vmem:[%s11131_s4 + $0xe8] sm:$0xff] }
 0x7b1   :  { %12766 = vst [vmem:[#allocation155_spill] sm:$0xff] %v10627_v52  ;;  %3595 = vmatpush1.msra.mxu0 %v10627_v52  ;;  %12767 = vst [vmem:[#allocation157_spill] sm:$0xff] %v10633_v43  ;;  %3666 = vmatpush1.msra.mxu1 %v10633_v43  ;;  %v10652_v43 = vld [vmem:[%s11131_s4 + $0xe0] sm:$0xff]  ;;  %v10670_v52 = vld [vmem:[%s11131_s4 + $0xd8] sm:$0xff] }
 0x7b2   :  { %12768 = vst [vmem:[#allocation159_spill] sm:$0xff] %v10639_v31  ;;  %3596 = vmatprep.subr.mxu0 %v10639_v31  ;;  %3667 = vmatprep.subr.mxu1 %v10645_v34  ;;  %4668 = vtanh.f32 %v10610_v56  ;;  %12770 = vst [vmem:[#allocation89_spill] sm:$0xff] %v10652_v43  ;;  %v10658_v31 = vld [vmem:[%s11131_s4 + $0xf0] sm:$0xff]  ;;  %v10664_v34 = vld [vmem:[%s11131_s4 + $0xc8] sm:$0xff] }
 0x7b3   :  { %3597 = vmatpush1.msra.mxu0 %v10652_v43  ;;  %12771 = vst [vmem:[#allocation90_spill] sm:$0xff] %v10658_v31  ;;  %3668 = vmatpush1.msra.mxu1 %v10658_v31  ;;  %12772 = vst [vmem:[#allocation91_spill] sm:$0xff] %v10664_v34  ;;  %v10676_v43 = vld [vmem:[%s11131_s4 + $0xc0] sm:$0xff]  ;;  %v10682_v31 = vld [vmem:[%s11131_s4 + $0xd0] sm:$0xff] }
 0x7b4   :  { %3598 = vmatprep.subr.mxu0 %v10664_v34  ;;  %12773 = vst [vmem:[#allocation92_spill] sm:$0xff] %v10670_v52  ;;  %3669 = vmatprep.subr.mxu1 %v10670_v52  ;;  %12774 = vst [vmem:[#allocation93_spill] sm:$0xff] %v10676_v43  ;;  %v10688_v34 = vld [vmem:[%s11131_s4 + $0xa8] sm:$0xff]  ;;  %v10694_v52 = vld [vmem:[%s11131_s4 + $0xb8] sm:$0xff] }
 0x7b5   :  { %3599 = vmatpush1.msra.mxu0 %v10676_v43  ;;  %12775 = vst [vmem:[#allocation94_spill] sm:$0xff] %v10682_v31  ;;  %3670 = vmatpush1.msra.mxu1 %v10682_v31  ;;  %12776 = vst [vmem:[#allocation95_spill] sm:$0xff] %v10688_v34  ;;  %v10700_v43 = vld [vmem:[%s11131_s4 + $0xa0] sm:$0xff]  ;;  %v10706_v31 = vld [vmem:[%s11131_s4 + $0xb0] sm:$0xff] }
 0x7b6   :  { %3600 = vmatprep.subr.mxu0 %v10688_v34  ;;  %12777 = vst [vmem:[#allocation96_spill] sm:$0xff] %v10694_v52  ;;  %3671 = vmatprep.subr.mxu1 %v10694_v52  ;;  %12778 = vst [vmem:[#allocation97_spill] sm:$0xff] %v10700_v43  ;;  %v10712_v34 = vld [vmem:[%s11131_s4 + $0x88] sm:$0xff]  ;;  %v10718_v52 = vld [vmem:[%s11131_s4 + $0x98] sm:$0xff] }
 0x7b7   :  { %3601 = vmatpush1.msra.mxu0 %v10700_v43  ;;  %12779 = vst [vmem:[#allocation98_spill] sm:$0xff] %v10706_v31  ;;  %3672 = vmatpush1.msra.mxu1 %v10706_v31  ;;  %12780 = vst [vmem:[#allocation99_spill] sm:$0xff] %v10712_v34  ;;  %v10724_v43 = vld [vmem:[%s11131_s4 + $0x80] sm:$0xff]  ;;  %v10730_v31 = vld [vmem:[%s11131_s4 + $0x90] sm:$0xff] }
 0x7b8   :  { %3602 = vmatprep.subr.mxu0 %v10712_v34  ;;  %12781 = vst [vmem:[#allocation100_spill] sm:$0xff] %v10718_v52  ;;  %3673 = vmatprep.subr.mxu1 %v10718_v52  ;;  %12782 = vst [vmem:[#allocation101_spill] sm:$0xff] %v10724_v43  ;;  %v10736_v34 = vld [vmem:[%s11131_s4 + $0x68] sm:$0xff]  ;;  %v10742_v52 = vld [vmem:[%s11131_s4 + $0x78] sm:$0xff] }
 0x7b9   :  { %3603 = vmatpush1.msra.mxu0 %v10724_v43  ;;  %12783 = vst [vmem:[#allocation102_spill] sm:$0xff] %v10730_v31  ;;  %3674 = vmatpush1.msra.mxu1 %v10730_v31  ;;  %12784 = vst [vmem:[#allocation103_spill] sm:$0xff] %v10736_v34  ;;  %v10748_v43 = vld [vmem:[%s11131_s4 + $0x60] sm:$0xff]  ;;  %v10754_v31 = vld [vmem:[%s11131_s4 + $0x70] sm:$0xff] }
 0x7ba   :  { %3604 = vmatprep.subr.mxu0 %v10736_v34  ;;  %12785 = vst [vmem:[#allocation104_spill] sm:$0xff] %v10742_v52  ;;  %3675 = vmatprep.subr.mxu1 %v10742_v52  ;;  %12786 = vst [vmem:[#allocation105_spill] sm:$0xff] %v10748_v43  ;;  %v10760_v34 = vld [vmem:[%s11131_s4 + $0x48] sm:$0xff]  ;;  %v10766_v52 = vld [vmem:[%s11131_s4 + $0x58] sm:$0xff] }
 0x7bb   :  { %3605 = vmatpush1.msra.mxu0 %v10748_v43  ;;  %12787 = vst [vmem:[#allocation106_spill] sm:$0xff] %v10754_v31  ;;  %3676 = vmatpush1.msra.mxu1 %v10754_v31  ;;  %12788 = vst [vmem:[#allocation107_spill] sm:$0xff] %v10760_v34  ;;  %v10772_v43 = vld [vmem:[%s11131_s4 + $0x40] sm:$0xff]  ;;  %v10778_v31 = vld [vmem:[%s11131_s4 + $0x50] sm:$0xff] }
 0x7bc   :  { %3606 = vmatprep.subr.mxu0 %v10760_v34  ;;  %12789 = vst [vmem:[#allocation108_spill] sm:$0xff] %v10766_v52  ;;  %3677 = vmatprep.subr.mxu1 %v10766_v52  ;;  %12790 = vst [vmem:[#allocation109_spill] sm:$0xff] %v10772_v43  ;;  %v4667_v34 = vpop.eup %4666  ;;  %v10784_v14 = vld [vmem:[%s11131_s4 + $0x28] sm:$0xff]  ;;  %v10790_v52 = vld [vmem:[%s11131_s4 + $0x38] sm:$0xff] }
 0x7bd   :  { %3607 = vmatpush1.msra.mxu0 %v10772_v43  ;;  %12791 = vst [vmem:[#allocation110_spill] sm:$0xff] %v10778_v31  ;;  %3678 = vmatpush1.msra.mxu1 %v10778_v31  ;;  %12792 = vst [vmem:[#allocation111_spill] sm:$0xff] %v10784_v14  ;;  %v10796_v31 = vld [vmem:[%s11131_s4 + $0x20] sm:$0xff] }
 0x7be   :  { %3608 = vmatprep.subr.mxu0 %v10784_v14  ;;  %12793 = vst [vmem:[#allocation112_spill] sm:$0xff] %v10790_v52  ;;  %3679 = vmatprep.subr.mxu1 %v10790_v52  ;;  %12794 = vst [vmem:[#allocation113_spill] sm:$0xff] %v10796_v31  ;;  %v10808_v14 = vld [vmem:[%s11131_s4 + $0x8] sm:$0xff]  ;;  %v10814_v52 = vld [vmem:[%s11131_s4 + $0x18] sm:$0xff] }
 0x7bf   :  { %v4669_v43 = vpop.eup %4668  ;;  %3609 = vmatpush1.msra.mxu0 %v10796_v31  ;;  %12795 = vst [vmem:[#allocation114_spill] sm:$0xff] %v10802_v22  ;;  %3680 = vmatpush1.msra.mxu1 %v10802_v22  ;;  %12796 = vst [vmem:[#allocation115_spill] sm:$0xff] %v10808_v14  ;;  %v10822_v22 = vld [vmem:[%s11131_s4] sm:$0xff] }
 0x7c0   :  { %3610 = vmatprep.subr.mxu0 %v10808_v14  ;;  %3681 = vmatprep.subr.mxu1 %v10814_v52  ;;  %v10817_v31 = vmul.f32 %v4669_v43, %v4667_v34  ;;  %v10829_v14 = vld [vmem:[%s11131_s4 + $0x10] sm:$0xff]  ;;  %v12826_v43 = vld [vmem:[#allocation9_spill] sm:$0xff]  ;;  %v12827_v34 = vld [vmem:[#allocation10_spill] sm:$0xff] }
 0x7c1   :  { %3611 = vmatpush1.msra.mxu0 %v10822_v22  ;;  %3644 = vmatprep.mubr.f32.mxu0 %v11922_v20 }
 0x7c2   :  { %3682 = vmatpush1.msra.mxu1 %v10829_v14  ;;  %3715 = vmatprep.mubr.f32.mxu1 %v11922_v20 }
 0x7c3   :  { %3645 = vmatmul.mubr.f32.vlgmr.msra.gmra.mxu0 %v10817_v31  ;;  %3716 = vmatmul.mubr.f32.vlgmr.msra.gmra.mxu1 %v10817_v31 }
 0x7c4   :  { %3762 = vmatprep.subr.mxu0 %v9651_v45  ;;  %3833 = vmatprep.subr.mxu1 %v9657_v26  ;;  %v12797_v45 = vld [vmem:[#allocation128_spill] sm:$0xff]  ;;  %v12798_v26 = vld [vmem:[#allocation129_spill] sm:$0xff] }
 0x7c5   :  { %3763 = vmatpush1.msra.mxu0 %v9663_v3  ;;  %3834 = vmatpush1.msra.mxu1 %v9669_v50  ;;  %v12799_v3 = vld [vmem:[#allocation130_spill] sm:$0xff]  ;;  %v12800_v50 = vld [vmem:[#allocation131_spill] sm:$0xff] }
 0x7c6   :  { %3764 = vmatprep.subr.mxu0 %v9675_v58  ;;  %3835 = vmatprep.subr.mxu1 %v9681_v44  ;;  %v12801_v58 = vld [vmem:[#allocation132_spill] sm:$0xff]  ;;  %v12802_v44 = vld [vmem:[#allocation133_spill] sm:$0xff] }
 0x7c7   :  { %3765 = vmatpush1.msra.mxu0 %v9687_v1  ;;  %3836 = vmatpush1.msra.mxu1 %v9693_v59  ;;  %v12803_v1 = vld [vmem:[#allocation134_spill] sm:$0xff]  ;;  %v12804_v59 = vld [vmem:[#allocation135_spill] sm:$0xff] }
 0x7c8   :  { %3766 = vmatprep.subr.mxu0 %v9699_v63  ;;  %3837 = vmatprep.subr.mxu1 %v9705_v16  ;;  %v12805_v63 = vld [vmem:[#allocation136_spill] sm:$0xff]  ;;  %v12806_v16 = vld [vmem:[#allocation137_spill] sm:$0xff] }
 0x7c9   :  { %3767 = vmatpush1.msra.mxu0 %v9711_v17  ;;  %3838 = vmatpush1.msra.mxu1 %v9717_v18  ;;  %v12807_v17 = vld [vmem:[#allocation138_spill] sm:$0xff]  ;;  %v12808_v18 = vld [vmem:[#allocation139_spill] sm:$0xff] }
 0x7ca   :  { %3768 = vmatprep.subr.mxu0 %v9723_v19  ;;  %3839 = vmatprep.subr.mxu1 %v9729_v36  ;;  %v12809_v19 = vld [vmem:[#allocation140_spill] sm:$0xff]  ;;  %v12810_v36 = vld [vmem:[#allocation141_spill] sm:$0xff] }
 0x7cb   :  { %3769 = vmatpush1.msra.mxu0 %v9735_v23  ;;  %3840 = vmatpush1.msra.mxu1 %v9741_v25  ;;  %v12811_v23 = vld [vmem:[#allocation142_spill] sm:$0xff]  ;;  %v12812_v25 = vld [vmem:[#allocation143_spill] sm:$0xff] }
 0x7cc   :  { %3770 = vmatprep.subr.mxu0 %v9747_v42  ;;  %3841 = vmatprep.subr.mxu1 %v9753_v46  ;;  %v12813_v42 = vld [vmem:[#allocation144_spill] sm:$0xff]  ;;  %v12814_v46 = vld [vmem:[#allocation145_spill] sm:$0xff] }
 0x7cd   :  { %3771 = vmatpush1.msra.mxu0 %v9759_v0  ;;  %3842 = vmatpush1.msra.mxu1 %v9765_v60  ;;  %v12815_v0 = vld [vmem:[#allocation146_spill] sm:$0xff]  ;;  %v12816_v60 = vld [vmem:[#allocation147_spill] sm:$0xff] }
 0x7ce   :  { %3772 = vmatprep.subr.mxu0 %v9771_v27  ;;  %3843 = vmatprep.subr.mxu1 %v9777_v41  ;;  %v12817_v27 = vld [vmem:[#allocation148_spill] sm:$0xff]  ;;  %v12818_v41 = vld [vmem:[#allocation149_spill] sm:$0xff] }
 0x7cf   :  { %3773 = vmatpush1.msra.mxu0 %v9783_v28  ;;  %3844 = vmatpush1.msra.mxu1 %v9789_v57  ;;  %v12819_v28 = vld [vmem:[#allocation2_spill] sm:$0xff]  ;;  %v12820_v57 = vld [vmem:[#allocation3_spill] sm:$0xff] }
 0x7d0   :  { %3774 = vmatprep.subr.mxu0 %v9795_v48  ;;  %3845 = vmatprep.subr.mxu1 %v9801_v10  ;;  %v12821_v48 = vld [vmem:[#allocation4_spill] sm:$0xff]  ;;  %v12822_v10 = vld [vmem:[#allocation5_spill] sm:$0xff] }
 0x7d1   :  { %3775 = vmatpush1.msra.mxu0 %v9807_v12  ;;  %3846 = vmatpush1.msra.mxu1 %v9813_v30  ;;  %v12823_v12 = vld [vmem:[#allocation6_spill] sm:$0xff]  ;;  %v12824_v30 = vld [vmem:[#allocation7_spill] sm:$0xff] }
 0x7d2   :  { %3776 = vmatprep.subr.mxu0 %v9819_v61  ;;  %3847 = vmatprep.subr.mxu1 %v12797_v45  ;;  %v12825_v61 = vld [vmem:[#allocation8_spill] sm:$0xff]  ;;  %v12828_v45 = vld [vmem:[#allocation11_spill] sm:$0xff] }
 0x7d3   :  { %3777 = vmatpush1.msra.mxu0 %v12798_v26  ;;  %3848 = vmatpush1.msra.mxu1 %v12799_v3  ;;  %v12829_v26 = vld [vmem:[#allocation12_spill] sm:$0xff]  ;;  %v12830_v3 = vld [vmem:[#allocation13_spill] sm:$0xff] }
 0x7d4   :  { %3778 = vmatprep.subr.mxu0 %v12800_v50  ;;  %3849 = vmatprep.subr.mxu1 %v12801_v58  ;;  %v12831_v50 = vld [vmem:[#allocation14_spill] sm:$0xff]  ;;  %v12832_v58 = vld [vmem:[#allocation15_spill] sm:$0xff] }
 0x7d5   :  { %3779 = vmatpush1.msra.mxu0 %v12802_v44  ;;  %3850 = vmatpush1.msra.mxu1 %v12803_v1  ;;  %v12833_v44 = vld [vmem:[#allocation16_spill] sm:$0xff]  ;;  %v12834_v1 = vld [vmem:[#allocation17_spill] sm:$0xff] }
 0x7d6   :  { %3780 = vmatprep.subr.mxu0 %v12804_v59  ;;  %3851 = vmatprep.subr.mxu1 %v12805_v63  ;;  %v12835_v59 = vld [vmem:[#allocation18_spill] sm:$0xff]  ;;  %v12836_v63 = vld [vmem:[#allocation19_spill] sm:$0xff] }
 0x7d7   :  { %3781 = vmatpush1.msra.mxu0 %v12806_v16  ;;  %3852 = vmatpush1.msra.mxu1 %v12807_v17  ;;  %v12837_v16 = vld [vmem:[#allocation20_spill] sm:$0xff]  ;;  %v12838_v17 = vld [vmem:[#allocation21_spill] sm:$0xff] }
 0x7d8   :  { %3782 = vmatprep.subr.mxu0 %v12808_v18  ;;  %3853 = vmatprep.subr.mxu1 %v12809_v19  ;;  %v12839_v18 = vld [vmem:[#allocation23_spill] sm:$0xff]  ;;  %v12840_v19 = vld [vmem:[#allocation24_spill] sm:$0xff] }
 0x7d9   :  { %3783 = vmatpush1.msra.mxu0 %v12810_v36  ;;  %3854 = vmatpush1.msra.mxu1 %v12811_v23  ;;  %v12841_v36 = vld [vmem:[#allocation25_spill] sm:$0xff]  ;;  %v12843_v23 = vld [vmem:[#allocation27_spill] sm:$0xff] }
 0x7da   :  { %3784 = vmatprep.subr.mxu0 %v12812_v25  ;;  %3855 = vmatprep.subr.mxu1 %v12813_v42  ;;  %v12844_v25 = vld [vmem:[#allocation28_spill] sm:$0xff]  ;;  %v12845_v42 = vld [vmem:[#allocation29_spill] sm:$0xff] }
 0x7db   :  { %3785 = vmatpush1.msra.mxu0 %v12814_v46  ;;  %3856 = vmatpush1.msra.mxu1 %v12815_v0  ;;  %v12846_v46 = vld [vmem:[#allocation30_spill] sm:$0xff]  ;;  %v12847_v0 = vld [vmem:[#allocation31_spill] sm:$0xff] }
 0x7dc   :  { %3786 = vmatprep.subr.mxu0 %v12816_v60  ;;  %3857 = vmatprep.subr.mxu1 %v12817_v27  ;;  %v12848_v60 = vld [vmem:[#allocation32_spill] sm:$0xff]  ;;  %v12849_v27 = vld [vmem:[#allocation33_spill] sm:$0xff] }
 0x7dd   :  { %3787 = vmatpush1.msra.mxu0 %v12818_v41  ;;  %3858 = vmatpush1.msra.mxu1 %v12819_v28  ;;  %v12850_v41 = vld [vmem:[#allocation34_spill] sm:$0xff]  ;;  %v12851_v28 = vld [vmem:[#allocation35_spill] sm:$0xff] }
 0x7de   :  { %3788 = vmatprep.subr.mxu0 %v12820_v57  ;;  %3859 = vmatprep.subr.mxu1 %v12821_v48  ;;  %v12852_v57 = vld [vmem:[#allocation36_spill] sm:$0xff]  ;;  %v12853_v48 = vld [vmem:[#allocation37_spill] sm:$0xff] }
 0x7df   :  { %3789 = vmatpush1.msra.mxu0 %v12822_v10  ;;  %3860 = vmatpush1.msra.mxu1 %v12823_v12  ;;  %v12854_v10 = vld [vmem:[#allocation38_spill] sm:$0xff]  ;;  %v12855_v12 = vld [vmem:[#allocation39_spill] sm:$0xff] }
 0x7e0   :  { %3790 = vmatprep.subr.mxu0 %v12824_v30  ;;  %3861 = vmatprep.subr.mxu1 %v12825_v61  ;;  %v12856_v30 = vld [vmem:[#allocation40_spill] sm:$0xff]  ;;  %v12857_v61 = vld [vmem:[#allocation41_spill] sm:$0xff] }
 0x7e1   :  { %3791 = vmatpush1.msra.mxu0 %v12826_v43  ;;  %3862 = vmatpush1.msra.mxu1 %v12827_v34  ;;  %v12858_v43 = vld [vmem:[#allocation42_spill] sm:$0xff]  ;;  %v12859_v34 = vld [vmem:[#allocation43_spill] sm:$0xff] }
 0x7e2   :  { %3792 = vmatprep.subr.mxu0 %v12828_v45  ;;  %3863 = vmatprep.subr.mxu1 %v12829_v26  ;;  %v12860_v45 = vld [vmem:[#allocation44_spill] sm:$0xff]  ;;  %v12861_v26 = vld [vmem:[#allocation45_spill] sm:$0xff] }
 0x7e3   :  { %3793 = vmatpush1.msra.mxu0 %v12830_v3  ;;  %3826 = vmatprep.mubr.f32.mxu0 %v11922_v20  ;;  %v12862_v3 = vld [vmem:[#allocation46_spill] sm:$0xff] }
 0x7e4   :  { %3864 = vmatpush1.msra.mxu1 %v12831_v50  ;;  %3897 = vmatprep.mubr.f32.mxu1 %v11922_v20  ;;  %v12863_v50 = vld [vmem:[#allocation47_spill] sm:$0xff] }
 0x7e5   :  { %3827 = vmatmul.mubr.f32.vlgmr.msra.gmra.mxu0 %v10817_v31  ;;  %3898 = vmatmul.mubr.f32.vlgmr.msra.gmra.mxu1 %v10817_v31  ;;  %v12842_v31 = vld [vmem:[#allocation26_spill] sm:$0xff] }
 0x7e6   :  { %3932 = vmatprep.subr.mxu0 %v12832_v58  ;;  %4003 = vmatprep.subr.mxu1 %v12833_v44  ;;  %v12864_v58 = vld [vmem:[#allocation48_spill] sm:$0xff]  ;;  %v12865_v44 = vld [vmem:[#allocation49_spill] sm:$0xff] }
 0x7e7   :  { %3933 = vmatpush1.msra.mxu0 %v12834_v1  ;;  %4004 = vmatpush1.msra.mxu1 %v12835_v59  ;;  %v12866_v1 = vld [vmem:[#allocation50_spill] sm:$0xff]  ;;  %v12867_v59 = vld [vmem:[#allocation51_spill] sm:$0xff] }
 0x7e8   :  { %3934 = vmatprep.subr.mxu0 %v12836_v63  ;;  %4005 = vmatprep.subr.mxu1 %v12837_v16  ;;  %v12868_v63 = vld [vmem:[#allocation52_spill] sm:$0xff]  ;;  %v12869_v16 = vld [vmem:[#allocation53_spill] sm:$0xff] }
 0x7e9   :  { %3935 = vmatpush1.msra.mxu0 %v12838_v17  ;;  %4006 = vmatpush1.msra.mxu1 %v12839_v18  ;;  %v12870_v17 = vld [vmem:[#allocation54_spill] sm:$0xff]  ;;  %v12871_v18 = vld [vmem:[#allocation55_spill] sm:$0xff] }
 0x7ea   :  { %3936 = vmatprep.subr.mxu0 %v12840_v19  ;;  %4007 = vmatprep.subr.mxu1 %v12841_v36  ;;  %v12872_v19 = vld [vmem:[#allocation56_spill] sm:$0xff]  ;;  %v12873_v36 = vld [vmem:[#allocation57_spill] sm:$0xff] }
 0x7eb   :  { %3937 = vmatpush1.msra.mxu0 %v12842_v31  ;;  %4008 = vmatpush1.msra.mxu1 %v12843_v23  ;;  %v12874_v31 = vld [vmem:[#allocation58_spill] sm:$0xff]  ;;  %v12875_v23 = vld [vmem:[#allocation59_spill] sm:$0xff] }
 0x7ec   :  { %3938 = vmatprep.subr.mxu0 %v12844_v25  ;;  %4009 = vmatprep.subr.mxu1 %v12845_v42  ;;  %v12876_v25 = vld [vmem:[#allocation60_spill] sm:$0xff]  ;;  %v12877_v42 = vld [vmem:[#allocation61_spill] sm:$0xff] }
 0x7ed   :  { %3939 = vmatpush1.msra.mxu0 %v12846_v46  ;;  %4010 = vmatpush1.msra.mxu1 %v12847_v0  ;;  %v12878_v46 = vld [vmem:[#allocation62_spill] sm:$0xff]  ;;  %v12879_v0 = vld [vmem:[#allocation63_spill] sm:$0xff] }
 0x7ee   :  { %3940 = vmatprep.subr.mxu0 %v12848_v60  ;;  %4011 = vmatprep.subr.mxu1 %v12849_v27  ;;  %v12880_v60 = vld [vmem:[#allocation64_spill] sm:$0xff]  ;;  %v12881_v27 = vld [vmem:[#allocation65_spill] sm:$0xff] }
 0x7ef   :  { %3941 = vmatpush1.msra.mxu0 %v12850_v41  ;;  %4012 = vmatpush1.msra.mxu1 %v12851_v28  ;;  %v12882_v41 = vld [vmem:[#allocation66_spill] sm:$0xff]  ;;  %v12883_v28 = vld [vmem:[#allocation67_spill] sm:$0xff] }
 0x7f0   :  { %3942 = vmatprep.subr.mxu0 %v12852_v57  ;;  %4013 = vmatprep.subr.mxu1 %v12853_v48  ;;  %v12884_v57 = vld [vmem:[#allocation68_spill] sm:$0xff]  ;;  %v12885_v48 = vld [vmem:[#allocation69_spill] sm:$0xff] }
 0x7f1   :  { %3943 = vmatpush1.msra.mxu0 %v12854_v10  ;;  %4014 = vmatpush1.msra.mxu1 %v12855_v12  ;;  %v12886_v10 = vld [vmem:[#allocation70_spill] sm:$0xff]  ;;  %v12887_v12 = vld [vmem:[#allocation71_spill] sm:$0xff] }
 0x7f2   :  { %3944 = vmatprep.subr.mxu0 %v12856_v30  ;;  %4015 = vmatprep.subr.mxu1 %v12857_v61  ;;  %v12888_v30 = vld [vmem:[#allocation72_spill] sm:$0xff]  ;;  %v12889_v61 = vld [vmem:[#allocation73_spill] sm:$0xff] }
 0x7f3   :  { %3945 = vmatpush1.msra.mxu0 %v12858_v43  ;;  %4016 = vmatpush1.msra.mxu1 %v12859_v34  ;;  %v12890_v43 = vld [vmem:[#allocation74_spill] sm:$0xff]  ;;  %v12891_v34 = vld [vmem:[#allocation75_spill] sm:$0xff] }
 0x7f4   :  { %3946 = vmatprep.subr.mxu0 %v12860_v45  ;;  %4017 = vmatprep.subr.mxu1 %v12861_v26  ;;  %v12892_v45 = vld [vmem:[#allocation76_spill] sm:$0xff]  ;;  %v12893_v26 = vld [vmem:[#allocation77_spill] sm:$0xff] }
 0x7f5   :  { %3947 = vmatpush1.msra.mxu0 %v12862_v3  ;;  %4018 = vmatpush1.msra.mxu1 %v12863_v50  ;;  %v12894_v3 = vld [vmem:[#allocation78_spill] sm:$0xff]  ;;  %v12895_v50 = vld [vmem:[#allocation79_spill] sm:$0xff] }
 0x7f6   :  { %3948 = vmatprep.subr.mxu0 %v12864_v58  ;;  %4019 = vmatprep.subr.mxu1 %v12865_v44  ;;  %v12896_v58 = vld [vmem:[#allocation80_spill] sm:$0xff]  ;;  %v12897_v44 = vld [vmem:[#allocation81_spill] sm:$0xff] }
 0x7f7   :  { %3949 = vmatpush1.msra.mxu0 %v12866_v1  ;;  %4020 = vmatpush1.msra.mxu1 %v12867_v59 }
 0x7f8   :  { %3950 = vmatprep.subr.mxu0 %v12868_v63  ;;  %4021 = vmatprep.subr.mxu1 %v12869_v16 }
 0x7f9   :  { %3951 = vmatpush1.msra.mxu0 %v12870_v17  ;;  %4022 = vmatpush1.msra.mxu1 %v12871_v18 }
 0x7fa   :  { %3952 = vmatprep.subr.mxu0 %v12872_v19  ;;  %4023 = vmatprep.subr.mxu1 %v12873_v36 }
 0x7fb   :  { %3953 = vmatpush1.msra.mxu0 %v12874_v31  ;;  %4024 = vmatpush1.msra.mxu1 %v12875_v23 }
 0x7fc   :  { %3954 = vmatprep.subr.mxu0 %v12876_v25  ;;  %4025 = vmatprep.subr.mxu1 %v12877_v42 }
 0x7fd   :  { %3955 = vmatpush1.msra.mxu0 %v12878_v46  ;;  %4026 = vmatpush1.msra.mxu1 %v12879_v0 }
 0x7fe   :  { %3956 = vmatprep.subr.mxu0 %v12880_v60  ;;  %4027 = vmatprep.subr.mxu1 %v12881_v27 }
 0x7ff   :  { %3957 = vmatpush1.msra.mxu0 %v12882_v41  ;;  %4028 = vmatpush1.msra.mxu1 %v12883_v28 }
 0x800   :  { %3958 = vmatprep.subr.mxu0 %v12884_v57  ;;  %4029 = vmatprep.subr.mxu1 %v12885_v48 }
 0x801   :  { %3959 = vmatpush1.msra.mxu0 %v12886_v10  ;;  %4030 = vmatpush1.msra.mxu1 %v12887_v12 }
 0x802   :  { %3960 = vmatprep.subr.mxu0 %v12888_v30  ;;  %4031 = vmatprep.subr.mxu1 %v12889_v61  ;;  %v3752_v61 = vpop.permute.xlu1 %3751 }
 0x803   :  { %3961 = vmatpush1.msra.mxu0 %v12890_v43  ;;  %4032 = vmatpush1.msra.mxu1 %v12891_v34  ;;  %v3754_v43 = vmul.f32 %v3752_v61, %v11995_v2  ;;  %v3755_v34 = vmul.f32 %v3752_v61, %v11996_v4 }
 0x804   :  { %3962 = vmatprep.subr.mxu0 %v12892_v45  ;;  %4033 = vmatprep.subr.mxu1 %v12893_v26 }
 0x805   :  { %3963 = vmatpush1.msra.mxu0 %v12894_v3  ;;  %4034 = vmatpush1.msra.mxu1 %v12895_v50  ;;  %v3758_v45 = vadd.f32 %v3754_v43, %v11997_v6  ;;  %v3759_v26 = vadd.f32 %v3755_v34, %v11998_v8  ;;  %v12908_v43 = vld [vmem:[#allocation158_spill] sm:$0xff]  ;;  %v12909_v34 = vld [vmem:[#allocation152_spill] sm:$0xff] }
 0x806   :  { %3996 = vmatprep.mubr.f32.mxu0 %v11922_v20  ;;  %4067 = vmatprep.mubr.f32.mxu1 %v11922_v20 }
 0x807   :  { %4074 = vmatprep.subr.mxu0 %v12896_v58  ;;  %4145 = vmatprep.subr.mxu1 %v12897_v44 }
 0x862   :  { %v3504_v1 = vpop.f32.mrf.mxu0  ;;  %v3575_v59 = vpop.f32.mrf.mxu1 }
 0x864   :  { %v3506_v63 = vpop.f32.mrf.mxu0  ;;  %v3577_v17 = vpop.f32.mrf.mxu1 }
 0x883   :  { %v3646_v16 = vpop.f32.mrf.mxu0  ;;  %v3717_v31 = vpop.f32.mrf.mxu1 }
 0x884   :  { %v3647_v18 = vadd.f32 %v3646_v16, %v3504_v1  ;;  %v3718_v41 = vadd.f32 %v3717_v31, %v3575_v59 }
 0x885   :  { %v3648_v19 = vpop.f32.mrf.mxu0  ;;  %v3719_v0 = vpop.f32.mrf.mxu1 }
 0x886   :  { %v3722_v36 = vadd.f32 %v3647_v18, %v6719_v33  ;;  %v3649_v23 = vadd.f32 %v3648_v19, %v3506_v63  ;;  %v3720_v60 = vadd.f32 %v3719_v0, %v3577_v17  ;;  %v3724_v48 = vadd.f32 %v3718_v41, %v6732_v47 }
 0x887   :  { %v3757_v19 = vmul.f32 %v3752_v61, %v11999_v24 }
 0x888   :  { %v4381_v25 = vmul.f32 -1.442695, %v3722_v36  ;;  %v3723_v42 = vadd.f32 %v3649_v23, %v6723_v40  ;;  %v3725_v27 = vadd.f32 %v3720_v60, %v6728_v49 }
 0x889   :  { %v3761_v31 = vadd.f32 %v3757_v19, %v12000_v29  ;;  %v12926_v19 = vld [vmem:[#allocation99_spill] sm:$0xff] }
 0x88a   :  { %4670 = vpow2.f32 %v4381_v25  ;;  %v4382_v46 = vmul.f32 -1.442695, %v3723_v42  ;;  %v4383_v28 = vmul.f32 -1.442695, %v3725_v27  ;;  %v3756_v25 = vmul.f32 %v3752_v61, %v6566_v62  ;;  %v12898_v62 = vld [vmem:[#allocation82_spill] sm:$0xff] }
 0x88c   :  { %4672 = vpow2.f32 %v4382_v46  ;;  %v3760_v24 = vadd.f32 %v3756_v25, %v6570_v53  ;;  %v12899_v53 = vld [vmem:[#allocation83_spill] sm:$0xff]  ;;  %v12933_v25 = vld [vmem:[#allocation106_spill] sm:$0xff] }
 0x88d   :  { %4674 = vpow2.f32 %v4383_v28 }
 0x897   :  { %v4671_v57 = vpop.eup %4670 }
 0x898   :  { %v3729_v10 = vadd.f32 1.0, %v4671_v57 }
 0x899   :  { %v4673_v12 = vpop.eup %4672 }
 0x89a   :  { %4676 = vrcp.f32 %v3729_v10  ;;  %v3735_v30 = vadd.f32 1.0, %v4673_v12  ;;  %v4675_v50 = vpop.eup %4674  ;;  %v12907_v12 = vld [vmem:[#allocation156_spill] sm:$0xff] }
 0x89b   :  { %4678 = vtanh.f32 %v3724_v48  ;;  %v3742_v18 = vadd.f32 1.0, %v4675_v50  ;;  %v12914_v50 = vld [vmem:[#allocation159_spill] sm:$0xff] }
 0x89c   :  { %4680 = vrcp.f32 %v3735_v30 }
 0x8a5   :  { %v3828_v3 = vpop.f32.mrf.mxu0  ;;  %v3899_v4 = vpop.f32.mrf.mxu1 }
 0x8a6   :  { %v3904_v58 = vadd.f32 %v3828_v3, %v3758_v45  ;;  %v12912_v3 = vld [vmem:[#allocation155_spill] sm:$0xff] }
 0x8a7   :  { %v4677_v44 = vpop.eup %4676  ;;  %v3830_v1 = vpop.f32.mrf.mxu0 }
 0x8a8   :  { %v4679_v59 = vpop.eup %4678  ;;  %v4384_v63 = vmul.f32 -1.442695, %v3904_v58  ;;  %v3905_v16 = vadd.f32 %v3830_v1, %v3759_v26  ;;  %v3901_v23 = vpop.f32.mrf.mxu1  ;;  %v12910_v26 = vld [vmem:[#allocation153_spill] sm:$0xff]  ;;  %v12918_v58 = vld [vmem:[#allocation91_spill] sm:$0xff] }
 0x8a9   :  { %v4681_v17 = vpop.eup %4680  ;;  %v3746_v36 = vmul.f32 %v4679_v59, %v4677_v44  ;;  %v3907_v42 = vadd.f32 %v3901_v23, %v3761_v31  ;;  %v12919_v44 = vld [vmem:[#allocation92_spill] sm:$0xff]  ;;  %v12920_v1 = vld [vmem:[#allocation93_spill] sm:$0xff]  ;;  %v12921_v59 = vld [vmem:[#allocation94_spill] sm:$0xff] }
 0x8aa   :  { %v3745_v2 = vmul.f32 %v4681_v17, %v10447_v38  ;;  %4682 = vpow2.f32 %v4384_v63  ;;  %v4385_v6 = vmul.f32 -1.442695, %v3905_v16  ;;  %v3906_v38 = vadd.f32 %v3899_v4, %v3760_v24  ;;  %v12922_v63 = vld [vmem:[#allocation95_spill] sm:$0xff]  ;;  %v12923_v16 = vld [vmem:[#allocation96_spill] sm:$0xff]  ;;  %v12924_v17 = vld [vmem:[#allocation97_spill] sm:$0xff] }
 0x8ab   :  { %v4386_v46 = vmul.f32 -1.442695, %v3907_v42  ;;  %v12929_v4 = vld [vmem:[#allocation102_spill] sm:$0xff]  ;;  %v12931_v31 = vld [vmem:[#allocation104_spill] sm:$0xff]  ;;  %v12932_v23 = vld [vmem:[#allocation105_spill] sm:$0xff] }
 0x8ac   :  { %4684 = vpow2.f32 %v4385_v6  ;;  %v10981_v8 = vadd.f32 %v3746_v36, %v3745_v2  ;;  %v12927_v36 = vld [vmem:[#allocation100_spill] sm:$0xff]  ;;  %v12928_v2 = vld [vmem:[#allocation101_spill] sm:$0xff]  ;;  %v12930_v6 = vld [vmem:[#allocation103_spill] sm:$0xff] }
 0x8ad   :  { %4686 = vrcp.f32 %v3742_v18  ;;  %v12925_v18 = vld [vmem:[#allocation98_spill] sm:$0xff]  ;;  %v12934_v42 = vld [vmem:[#allocation107_spill] sm:$0xff]  ;;  %v12935_v24 = vld [vmem:[#allocation108_spill] sm:$0xff] }
 0x8ae   :  { %4688 = vtanh.f32 %v10981_v8 }
 0x8af   :  { %4690 = vpow2.f32 %v4386_v46  ;;  %v12936_v46 = vld [vmem:[#allocation109_spill] sm:$0xff] }
 0x8b7   :  { %v4683_v0 = vpop.eup %4682 }
 0x8b8   :  { %v3911_v60 = vadd.f32 1.0, %v4683_v0  ;;  %v12937_v0 = vld [vmem:[#allocation110_spill] sm:$0xff] }
 0x8b9   :  { %v4685_v27 = vpop.eup %4684 }
 0x8ba   :  { %v4687_v41 = vpop.eup %4686  ;;  %4692 = vrcp.f32 %v3911_v60  ;;  %v3917_v28 = vadd.f32 1.0, %v4685_v27  ;;  %v12938_v60 = vld [vmem:[#allocation111_spill] sm:$0xff]  ;;  %v12939_v27 = vld [vmem:[#allocation112_spill] sm:$0xff] }
 0x8bb   :  { %v4689_v57 = vpop.eup %4688  ;;  %4694 = vtanh.f32 %v3906_v38 }
 0x8bc   :  { %4696 = vrcp.f32 %v3917_v28  ;;  %v3749_v29 = vmul.f32 %v4689_v57, %v4687_v41  ;;  %v12940_v28 = vld [vmem:[#allocation113_spill] sm:$0xff]  ;;  %v12941_v57 = vld [vmem:[#allocation114_spill] sm:$0xff] }
 0x8be   :  { %3997 = vmatmul.mubr.f32.vlgmr.msra.gmra.mxu0 %v3749_v29  ;;  %4068 = vmatmul.mubr.f32.vlgmr.msra.gmra.mxu1 %v3749_v29  ;;  %v12942_v29 = vld [vmem:[#allocation115_spill] sm:$0xff] }
 0x8bf   :  { %4075 = vmatpush1.msra.mxu0 %v10456_v55  ;;  %4146 = vmatpush1.msra.mxu1 %v10462_v5  ;;  %v12900_v55 = vld [vmem:[#allocation84_spill] sm:$0xff]  ;;  %v12901_v5 = vld [vmem:[#allocation85_spill] sm:$0xff] }
 0x8c0   :  { %4076 = vmatprep.subr.mxu0 %v10468_v13  ;;  %4147 = vmatprep.subr.mxu1 %v10474_v15  ;;  %v4691_v13 = vpop.eup %4690  ;;  %v12902_v15 = vld [vmem:[#allocation86_spill] sm:$0xff] }
 0x8c1   :  { %4077 = vmatpush1.msra.mxu0 %v10480_v9  ;;  %4148 = vmatpush1.msra.mxu1 %v10486_v21  ;;  %v12903_v9 = vld [vmem:[#allocation87_spill] sm:$0xff]  ;;  %v3924_v10 = vadd.f32 1.0, %v4691_v13 }
 0x8c2   :  { %4078 = vmatprep.subr.mxu0 %v10492_v37  ;;  %4149 = vmatprep.subr.mxu1 %v10498_v54  ;;  %v12904_v37 = vld [vmem:[#allocation150_spill] sm:$0xff]  ;;  %v4253_v13 = vld [vmem:[%s11135_s7 + $0x48] sm:$0xff] }
 0x8c3   :  { %4079 = vmatpush1.msra.mxu0 %v10504_v39  ;;  %4150 = vmatpush1.msra.mxu1 %v10510_v35  ;;  %v12905_v54 = vld [vmem:[#allocation22_spill] sm:$0xff]  ;;  %v12906_v35 = vld [vmem:[#allocation151_spill] sm:$0xff]  ;;  %4698 = vrcp.f32 %v3924_v10 }
 0x8c4   :  { %4080 = vmatprep.subr.mxu0 %v12898_v62  ;;  %4151 = vmatprep.subr.mxu1 %v12899_v53  ;;  %v4259_v53 = vld [vmem:[%s11135_s7 + $0x78] sm:$0xff]  ;;  %v4244_v10 = vld [vmem:[%s11135_s7] sm:$0xff] }
 0x8c5   :  { %4081 = vmatpush1.msra.mxu0 %v12900_v55  ;;  %4152 = vmatpush1.msra.mxu1 %v12901_v5  ;;  %v4255_v55 = vld [vmem:[%s11135_s7 + $0x58] sm:$0xff]  ;;  %v4254_v5 = vld [vmem:[%s11135_s7 + $0x50] sm:$0xff] }
 0x8c6   :  { %4082 = vmatprep.subr.mxu0 %v12902_v15  ;;  %4153 = vmatprep.subr.mxu1 %v12903_v9  ;;  %v4252_v15 = vld [vmem:[%s11135_s7 + $0x40] sm:$0xff]  ;;  %v4251_v9 = vld [vmem:[%s11135_s7 + $0x38] sm:$0xff] }
 0x8c7   :  { %v4693_v21 = vpop.eup %4692  ;;  %4083 = vmatpush1.msra.mxu0 %v12904_v37  ;;  %4154 = vmatpush1.msra.mxu1 %v12905_v54  ;;  %v4249_v37 = vld [vmem:[%s11135_s7 + $0x28] sm:$0xff]  ;;  %v4248_v54 = vld [vmem:[%s11135_s7 + $0x20] sm:$0xff] }
 0x8c8   :  { %v4695_v39 = vpop.eup %4694  ;;  %4084 = vmatprep.subr.mxu0 %v12906_v35  ;;  %4155 = vmatprep.subr.mxu1 %v10570_v51  ;;  %v12911_v51 = vld [vmem:[#allocation154_spill] sm:$0xff]  ;;  %v4246_v35 = vld [vmem:[%s11135_s7 + $0x10] sm:$0xff] }
 0x8c9   :  { %v4697_v48 = vpop.eup %4696  ;;  %4085 = vmatpush1.msra.mxu0 %v12907_v12  ;;  %4156 = vmatpush1.msra.mxu1 %v10582_v32  ;;  %v3928_v30 = vmul.f32 %v4695_v39, %v4693_v21  ;;  %v12913_v32 = vld [vmem:[#allocation157_spill] sm:$0xff]  ;;  %v4250_v21 = vld [vmem:[%s11135_s7 + $0x30] sm:$0xff] }
 0x8ca   :  { %v3927_v61 = vmul.f32 %v4697_v48, %v10610_v56  ;;  %4086 = vmatprep.subr.mxu0 %v10589_v11  ;;  %4157 = vmatprep.subr.mxu1 %v10595_v7  ;;  %v12915_v56 = vld [vmem:[#allocation88_spill] sm:$0xff]  ;;  %v12916_v7 = vld [vmem:[#allocation89_spill] sm:$0xff]  ;;  %v12917_v11 = vld [vmem:[#allocation90_spill] sm:$0xff] }
 0x8cb   :  { %4087 = vmatpush1.msra.mxu0 %v12908_v43  ;;  %4158 = vmatpush1.msra.mxu1 %v12909_v34  ;;  %v4247_v39 = vld [vmem:[%s11135_s7 + $0x18] sm:$0xff]  ;;  %v4245_v48 = vld [vmem:[%s11135_s7 + $0x8] sm:$0xff] }
 0x8cc   :  { %v3929_v45 = vadd.f32 %v3928_v30, %v3927_v61  ;;  %4088 = vmatprep.subr.mxu0 %v12910_v26  ;;  %4159 = vmatprep.subr.mxu1 %v12911_v51 }
 0x8cd   :  { %4089 = vmatpush1.msra.mxu0 %v12912_v3  ;;  %4160 = vmatpush1.msra.mxu1 %v12913_v32 }
 0x8ce   :  { %4090 = vmatprep.subr.mxu0 %v12914_v50  ;;  %4161 = vmatprep.subr.mxu1 %v12915_v56  ;;  %4700 = vtanh.f32 %v3929_v45 }
 0x8cf   :  { %4091 = vmatpush1.msra.mxu0 %v12916_v7  ;;  %4162 = vmatpush1.msra.mxu1 %v12917_v11 }
 0x8d0   :  { %4092 = vmatprep.subr.mxu0 %v12918_v58  ;;  %4163 = vmatprep.subr.mxu1 %v12919_v44  ;;  %v4699_v38 = vpop.eup %4698 }
 0x8d1   :  { %4093 = vmatpush1.msra.mxu0 %v12920_v1  ;;  %4164 = vmatpush1.msra.mxu1 %v12921_v59 }
 0x8d2   :  { %4094 = vmatprep.subr.mxu0 %v12922_v63  ;;  %4165 = vmatprep.subr.mxu1 %v12923_v16 }
 0x8d3   :  { %4095 = vmatpush1.msra.mxu0 %v12924_v17  ;;  %4166 = vmatpush1.msra.mxu1 %v12925_v18 }
 0x8d4   :  { %4096 = vmatprep.subr.mxu0 %v12926_v19  ;;  %4167 = vmatprep.subr.mxu1 %v12927_v36 }
 0x8d5   :  { %4097 = vmatpush1.msra.mxu0 %v12928_v2  ;;  %4168 = vmatpush1.msra.mxu1 %v12929_v4 }
 0x8d6   :  { %4098 = vmatprep.subr.mxu0 %v12930_v6  ;;  %4169 = vmatprep.subr.mxu1 %v12931_v31 }
 0x8d7   :  { %4099 = vmatpush1.msra.mxu0 %v12932_v23  ;;  %4170 = vmatpush1.msra.mxu1 %v12933_v25  ;;  %v4390_v25 = vld [vmem:[%s11136_s8] ss:$0 sm:$0xff] }
 0x8d8   :  { %4100 = vmatprep.subr.mxu0 %v12934_v42  ;;  %4171 = vmatprep.subr.mxu1 %v12935_v24 }
 0x8d9   :  { %4101 = vmatpush1.msra.mxu0 %v12936_v46  ;;  %4172 = vmatpush1.msra.mxu1 %v12937_v0 }
 0x8da   :  { %4102 = vmatprep.subr.mxu0 %v12938_v60  ;;  %4173 = vmatprep.subr.mxu1 %v12939_v27 }
 0x8db   :  { %v4701_v41 = vpop.eup %4700  ;;  %4103 = vmatpush1.msra.mxu0 %v12940_v28  ;;  %4174 = vmatpush1.msra.mxu1 %v12941_v57 }
 0x8dc   :  { %4104 = vmatprep.subr.mxu0 %v12942_v29  ;;  %4175 = vmatprep.subr.mxu1 %v10814_v52  ;;  %v3931_v62 = vmul.f32 %v4701_v41, %v4699_v38  ;;  %v4256_v52 = vld [vmem:[%s11135_s7 + $0x60] sm:$0xff] }
 0x8dd   :  { %4105 = vmatpush1.msra.mxu0 %v10822_v22  ;;  %4138 = vmatprep.mubr.f32.mxu0 %v11922_v20  ;;  %v4258_v22 = vld [vmem:[%s11135_s7 + $0x70] sm:$0xff] }
 0x8de   :  { %4176 = vmatpush1.msra.mxu1 %v10829_v14  ;;  %4209 = vmatprep.mubr.f32.mxu1 %v11922_v20  ;;  %v4257_v14 = vld [vmem:[%s11135_s7 + $0x68] sm:$0xff] }
 0x8df   :  { %4139 = vmatmul.mubr.f32.vlgmr.msra.gmra.mxu0 %v3931_v62  ;;  %4210 = vmatmul.mubr.f32.vlgmr.msra.gmra.mxu1 %v3931_v62 }
 0x8e0   :  { %4408 = vmatprep.subr.mxu0 %v11922_v20  ;;  %4440 = vmatprep.mubr.msk.f32.mxu0 %vm5306_vm0, %v11922_v20 }
 0x8e1   :  { %4409 = vmatpush3.msra.mxu0 %v4259_v53 }
 0x8e2   :  { %4410 = vmatprep.subr.mxu0 %v11922_v20 }
 0x8e3   :  { %4411 = vmatpush3.msra.mxu0 %v4258_v22 }
 0x8e4   :  { %4412 = vmatprep.subr.mxu0 %v11922_v20 }
 0x8e5   :  { %4413 = vmatpush3.msra.mxu0 %v4257_v14 }
 0x8e6   :  { %4414 = vmatprep.subr.mxu0 %v11922_v20 }
 0x8e7   :  { %4415 = vmatpush3.msra.mxu0 %v4256_v52 }
 0x8e8   :  { %4416 = vmatprep.subr.mxu0 %v11922_v20 }
 0x8e9   :  { %4417 = vmatpush3.msra.mxu0 %v4255_v55 }
 0x8ea   :  { %4418 = vmatprep.subr.mxu0 %v11922_v20 }
 0x8eb   :  { %4419 = vmatpush3.msra.mxu0 %v4254_v5 }
 0x8ec   :  { %4420 = vmatprep.subr.mxu0 %v11922_v20 }
 0x8ed   :  { %4421 = vmatpush3.msra.mxu0 %v4253_v13 }
 0x8ee   :  { %4422 = vmatprep.subr.mxu0 %v11922_v20 }
 0x8ef   :  { %4423 = vmatpush3.msra.mxu0 %v4252_v15 }
 0x8f0   :  { %4424 = vmatprep.subr.mxu0 %v11922_v20 }
 0x8f1   :  { %4425 = vmatpush3.msra.mxu0 %v4251_v9 }
 0x8f2   :  { %4426 = vmatprep.subr.mxu0 %v11922_v20 }
 0x8f3   :  { %4427 = vmatpush3.msra.mxu0 %v4250_v21 }
 0x8f4   :  { %4428 = vmatprep.subr.mxu0 %v11922_v20 }
 0x8f5   :  { %4429 = vmatpush3.msra.mxu0 %v4249_v37 }
 0x8f6   :  { %4430 = vmatprep.subr.mxu0 %v11922_v20 }
 0x8f7   :  { %4431 = vmatpush3.msra.mxu0 %v4248_v54 }
 0x8f8   :  { %4432 = vmatprep.subr.mxu0 %v11922_v20 }
 0x8f9   :  { %4433 = vmatpush3.msra.mxu0 %v4247_v39 }
 0x8fa   :  { %4434 = vmatprep.subr.mxu0 %v11922_v20 }
 0x8fb   :  { %4435 = vmatpush3.msra.mxu0 %v4246_v35 }
 0x8fc   :  { %4436 = vmatprep.subr.mxu0 %v11922_v20 }
 0x8fd   :  { %4437 = vmatpush3.msra.mxu0 %v4245_v48 }
 0x8fe   :  { %4438 = vmatprep.subr.mxu0 %v11922_v20 }
 0x8ff   :  { %4439 = vmatpush3.msra.mxu0 %v4244_v10 }
 0x97e   :  { %v3998_v12 = vpop.f32.mrf.mxu0  ;;  %v4069_v30 = vpop.f32.mrf.mxu1 }
 0x980   :  { %v4000_v61 = vpop.f32.mrf.mxu0  ;;  %v4071_v34 = vpop.f32.mrf.mxu1 }
 0x99f   :  { %v4140_v43 = vpop.f32.mrf.mxu0  ;;  %v4211_v3 = vpop.f32.mrf.mxu1 }
 0x9a0   :  { %v4141_v45 = vadd.f32 %v4140_v43, %v3998_v12  ;;  %v4212_v44 = vadd.f32 %v4211_v3, %v4069_v30 }
 0x9a1   :  { %v4142_v26 = vpop.f32.mrf.mxu0  ;;  %v4213_v11 = vpop.f32.mrf.mxu1 }
 0x9a2   :  { %v4216_v51 = vadd.f32 %v4141_v45, %v6719_v33  ;;  %v4143_v32 = vadd.f32 %v4142_v26, %v4000_v61  ;;  %v4214_v20 = vadd.f32 %v4213_v11, %v4071_v34  ;;  %v4218_v63 = vadd.f32 %v4212_v44, %v6732_v47 }
 0x9a4   :  { %v4387_v50 = vmul.f32 -1.442695, %v4216_v51  ;;  %v4217_v56 = vadd.f32 %v4143_v32, %v6723_v40  ;;  %v4219_v58 = vadd.f32 %v4214_v20, %v6728_v49 }
 0x9a6   :  { %4702 = vpow2.f32 %v4387_v50  ;;  %v4388_v7 = vmul.f32 -1.442695, %v4217_v56  ;;  %v4389_v1 = vmul.f32 -1.442695, %v4219_v58 }
 0x9a8   :  { %4704 = vpow2.f32 %v4388_v7 }
 0x9a9   :  { %4706 = vpow2.f32 %v4389_v1 }
 0x9b3   :  { %v4703_v59 = vpop.eup %4702 }
 0x9b4   :  { %v4223_v16 = vadd.f32 1.0, %v4703_v59 }
 0x9b5   :  { %v4705_v17 = vpop.eup %4704 }
 0x9b6   :  { %4708 = vrcp.f32 %v4223_v16  ;;  %v4229_v33 = vadd.f32 1.0, %v4705_v17  ;;  %v4707_v40 = vpop.eup %4706 }
 0x9b7   :  { %4710 = vtanh.f32 %v4218_v63  ;;  %v4236_v2 = vadd.f32 1.0, %v4707_v40 }
 0x9b8   :  { %4712 = vrcp.f32 %v4229_v33 }
 0x9b9   :  { %4714 = vrcp.f32 %v4236_v2 }
 0x9c3   :  { %v4709_v18 = vpop.eup %4708 }
 0x9c4   :  { %v4711_v19 = vpop.eup %4710 }
 0x9c5   :  { %v4713_v36 = vpop.eup %4712  ;;  %v4240_v4 = vmul.f32 %v4711_v19, %v4709_v18 }
 0x9c6   :  { %v4239_v49 = vmul.f32 %v4713_v36, %v10981_v8  ;;  %v4715_v31 = vpop.eup %4714 }
 0x9c8   :  { %v4241_v6 = vadd.f32 %v4240_v4, %v4239_v49 }
 0x9ca   :  { %4716 = vtanh.f32 %v4241_v6 }
 0x9d7   :  { %v4717_v47 = vpop.eup %4716 }
 0x9d8   :  { %v4243_v23 = vmul.f32 %v4717_v47, %v4715_v31 }
 0x9da   :  { %4441 = vmatmul.mubr.f32.vlgmr.msra.gmra.mxu0 %v4243_v23 }
 0xa9a   :  { %v4333_v42 = vpop.f32.mrf.mxu0 }
 0xa9b   :  { %v4334_v24 = vadd.f32 %v4390_v25, %v4333_v42 }
 0xa9c   :  { %v4442_v46 = vpop.f32.mrf.mxu0 }
 0xa9d   :  { %4337 = vst [vmem:[%s11137_s9] sm:$0xff] %v4334_v24 }

</bundles_post_ra>
